<compile_context>
chip_gen: v5e
topology: v5e:2x2
jax: 0.10.0
libtpu: 0.0.40
codegen_flags: <defaults>
</compile_context>

<pallas_src>
import functools

import jax
import jax.numpy as jnp
from jax.experimental import pallas as pl
from jax.experimental.pallas import tpu as pltpu

_BN_EPS = 1e-5
_LANE = 128


def _round_up(x, m):
    return ((x + m - 1) // m) * m


# ----------------------------------------------------------------------------
# In-kernel helpers
# ----------------------------------------------------------------------------
def _zero_halo(ref, H, W, C):
    """Zero only the 1-pixel perimeter of a (H+2, W+2, C) scratch buffer."""
    dt = ref.dtype
    ref[pl.ds(0, 1), :, :] = jnp.zeros((1, W + 2, C), dt)          # top row
    ref[pl.ds(H + 1, 1), :, :] = jnp.zeros((1, W + 2, C), dt)      # bottom row
    ref[pl.ds(1, H), pl.ds(0, 1), :] = jnp.zeros((H, 1, C), dt)    # left col
    ref[pl.ds(1, H), pl.ds(W + 1, 1), :] = jnp.zeros((H, 1, C), dt)  # right col


def _im2col(src_pad_ref, col_ref, H, W, C):
    """src_pad_ref: (H+2, W+2, C) -> col_ref: (H*W, 9*C), tap-major columns."""
    for kh in range(3):
        for kw in range(3):
            t = kh * 3 + kw
            patch = src_pad_ref[pl.ds(kh, H), pl.ds(kw, W), :].reshape(H * W, C)
            col_ref[pl.ds(0, H * W), pl.ds(t * C, C)] = patch


# ----------------------------------------------------------------------------
# Fused BasicBlock kernel: one NHWC image (channel-padded) per grid step.
# ----------------------------------------------------------------------------
def _basic_block_kernel(x_ref, w1_ref, w2_ref, b1_ref, b2_ref, out_ref,
                        xpad_ref, midpad_ref, col_ref, *, H, W, C):
    # x_ref:      (H, W, C)        bf16  (batch dim squeezed by BlockSpec)
    # w1_ref:     (9*C, C)         bf16  (bn1 scale pre-folded, im2col layout)
    # w2_ref:     (9*C, C)         bf16  (bn2 scale pre-folded)
    # b1_ref/b2_ref: (1, C)        f32
    # out_ref:    (H, W, C)        bf16
    # xpad_ref:   (H+2, W+2, C)    bf16  scratch (zero halo)
    # midpad_ref: (H+2, W+2, C)    bf16  scratch (zero halo)
    # col_ref:    (H*W, 9*C)       bf16  im2col scratch (reused by both stages)

    _zero_halo(xpad_ref, H, W, C)
    _zero_halo(midpad_ref, H, W, C)
    xpad_ref[pl.ds(1, H), pl.ds(1, W), :] = x_ref[...]

    # ---- stage 1: conv1 (3x3, pad=1) + bn1 (scale folded, bias add) + relu ----
    _im2col(xpad_ref, col_ref, H, W, C)
    conv1 = jnp.dot(col_ref[...], w1_ref[...],
                    preferred_element_type=jnp.float32)          # (H*W, C) f32, in vregs
    mid = jnp.maximum(conv1 + b1_ref[...], 0.0)

    # intermediate activation stays in VMEM (never hits HBM), with zero halo for conv2
    midpad_ref[pl.ds(1, H), pl.ds(1, W), :] = (
        mid.reshape(H, W, C).astype(midpad_ref.dtype))

    # ---- stage 2: conv2 + bn2 (scale folded) + identity residual + relu ----
    _im2col(midpad_ref, col_ref, H, W, C)
    conv2 = jnp.dot(col_ref[...], w2_ref[...],
                    preferred_element_type=jnp.float32)
    res = x_ref[...].astype(jnp.float32).reshape(H * W, C)        # identity shortcut
    out = jnp.maximum(conv2 + b2_ref[...] + res, 0.0)
    out_ref[...] = out.reshape(H, W, C).astype(out_ref.dtype)


def _fold_bn(gamma, beta, mean, var, eps=_BN_EPS):
    scale = gamma / jnp.sqrt(var + eps)
    bias = beta - mean * scale
    return scale, bias


def _vmem_budget_bytes(H, W, Cp):
    """Rough VMEM budget for the scoped limit, derived from actual buffers."""
    bf16, f32 = 2, 4
    blocks = (2 * H * W * Cp * bf16            # x block (double-buffered)
              + 2 * H * W * Cp * bf16          # out block (double-buffered)
              + 2 * 2 * 9 * Cp * Cp * bf16     # w1 + w2 (assume double-buffered)
              + 2 * 2 * 8 * _LANE * f32)       # biases (padded blocks)
    scratch = (2 * (H + 2) * (W + 2) * Cp * bf16   # xpad + midpad
               + H * W * 9 * Cp * bf16)            # im2col buffer
    live = (H * W * 9 * Cp * bf16                  # col value feeding the matmul
            + 3 * H * W * Cp * f32)                # conv result / mid / res temporaries
    return blocks + scratch + live


# ----------------------------------------------------------------------------
# BasicBlock forward (NCHW public interface, like PyTorch)
# ----------------------------------------------------------------------------
def basic_block_forward(x_nchw, params):
    x = jnp.transpose(x_nchw, (0, 2, 3, 1))          # NCHW -> NHWC
    N, H, W, Cin = x.shape

    s1, b1 = _fold_bn(*params["bn1"])
    s2, b2 = _fold_bn(*params["bn2"])

    w1 = params["w1_hwio"] * s1                       # fold BN scale into conv weights
    w2 = params["w2_hwio"] * s2
    C = w1.shape[-1]
    assert w2.shape[-1] == C and Cin == C, "identity shortcut needs inplanes == planes"

    # ---- pad channels to a lane-dense multiple of 128 ----------------------
    Cp = _round_up(C, _LANE)
    pc = Cp - C
    x_p = jnp.pad(x, ((0, 0), (0, 0), (0, 0), (0, pc))).astype(jnp.bfloat16)
    w1_p = jnp.pad(w1, ((0, 0), (0, 0), (0, pc), (0, pc)))
    w2_p = jnp.pad(w2, ((0, 0), (0, 0), (0, pc), (0, pc)))
    # (3,3,Cp,Cp) -> (9*Cp, Cp): row = (kh*3 + kw)*Cp + cin, matching the im2col columns
    w1_p = w1_p.reshape(9 * Cp, Cp).astype(jnp.bfloat16)
    w2_p = w2_p.reshape(9 * Cp, Cp).astype(jnp.bfloat16)
    b1_p = jnp.pad(b1, (0, pc)).reshape(1, Cp).astype(jnp.float32)
    b2_p = jnp.pad(b2, (0, pc)).reshape(1, Cp).astype(jnp.float32)

    kernel = functools.partial(_basic_block_kernel, H=H, W=W, C=Cp)

    vmem_limit = min(64 * 1024 * 1024,
                     2 * _vmem_budget_bytes(H, W, Cp) + (8 << 20))

    out = pl.pallas_call(
        kernel,
        out_shape=jax.ShapeDtypeStruct((N, H, W, Cp), jnp.bfloat16),
        grid=(N,),
        in_specs=[
            # per-image activation block (batch dim squeezed)
            pl.BlockSpec((None, H, W, Cp), lambda n: (n, 0, 0, 0)),
            # weights & biases: constant index_map -> fetched once, VMEM-resident
            pl.BlockSpec((9 * Cp, Cp), lambda n: (0, 0)),
            pl.BlockSpec((9 * Cp, Cp), lambda n: (0, 0)),
            pl.BlockSpec((1, Cp), lambda n: (0, 0)),
            pl.BlockSpec((1, Cp), lambda n: (0, 0)),
        ],
        out_specs=pl.BlockSpec((None, H, W, Cp), lambda n: (n, 0, 0, 0)),
        scratch_shapes=[
            pltpu.VMEM((H + 2, W + 2, Cp), jnp.bfloat16),   # padded input
            pltpu.VMEM((H + 2, W + 2, Cp), jnp.bfloat16),   # padded intermediate
            pltpu.VMEM((H * W, 9 * Cp), jnp.bfloat16),      # im2col buffer (both stages)
        ],
        compiler_params=pltpu.CompilerParams(
            dimension_semantics=("parallel",),   # shards batch across TCs on v7x
            vmem_limit_bytes=int(vmem_limit),
        ),
    )(x_p, w1_p, w2_p, b1_p, b2_p)

    out = out[..., :C]                                   # drop padded channels
    return jnp.transpose(out, (0, 3, 1, 2)).astype(jnp.float32)   # NHWC -> NCHW


# ----------------------------------------------------------------------------
# Pure-JAX reference (f32, via lax.conv) for a correctness check
# ----------------------------------------------------------------------------
def _ref_forward(x_nchw, params, eps=_BN_EPS):
    def conv(x, w_oihw):
        return jax.lax.conv_general_dilated(
            x, w_oihw, window_strides=(1, 1), padding=((1, 1), (1, 1)),
            dimension_numbers=("NCHW", "OIHW", "NCHW"))

    def bn(x, p):
        g, b, m, v = (t[None, :, None, None] for t in p)
        return (x - m) / jnp.sqrt(v + eps) * g + b

    out = jax.nn.relu(bn(conv(x_nchw, params["w1_oihw"]), params["bn1"]))
    out = bn(conv(out, params["w2_oihw"]), params["bn2"])
    out = out + x_nchw
    return jax.nn.relu(out)


# ----------------------------------------------------------------------------
# Deterministic parameter construction
# ----------------------------------------------------------------------------
def make_params(inplanes, planes, key):
    ks = jax.random.split(key, 10)
    w1 = jax.random.normal(ks[0], (planes, inplanes, 3, 3), jnp.float32) * 0.1
    w2 = jax.random.normal(ks[1], (planes, planes, 3, 3), jnp.float32) * 0.1

    def bn_params(k0, k1, k2, k3, c):
        gamma = jax.random.uniform(k0, (c,), jnp.float32, 0.5, 1.5)
        beta = jax.random.normal(k1, (c,), jnp.float32) * 0.1
        mean = jax.random.normal(k2, (c,), jnp.float32) * 0.1
        var = jax.random.uniform(k3, (c,), jnp.float32, 0.5, 1.5)
        return (gamma, beta, mean, var)

    return {
        "w1_oihw": w1,
        "w2_oihw": w2,
        "w1_hwio": jnp.transpose(w1, (2, 3, 1, 0)),   # OIHW -> HWIO
        "w2_hwio": jnp.transpose(w2, (2, 3, 1, 0)),
        "bn1": bn_params(ks[2], ks[3], ks[4], ks[5], planes),
        "bn2": bn_params(ks[6], ks[7], ks[8], ks[9], planes),
    }


if __name__ == "__main__":
    key = jax.random.PRNGKey(0)
    k_x, k_p = jax.random.split(key)

    N, C, H, W = 2, 8, 16, 16          # inplanes == planes, stride=1, no downsample
    x = jax.random.normal(k_x, (N, C, H, W), jnp.float32)
    params = make_params(C, C, k_p)

    out = jax.block_until_ready(basic_block_forward(x, params))
    ref = jax.block_until_ready(_ref_forward(x, params))

    assert out.shape == (N, C, H, W), out.shape
    # bf16 MXU inputs + bf16 output -> relaxed tolerance vs the f32 reference.
    assert jnp.allclose(out, ref, rtol=5e-2, atol=5e-2), (
        float(jnp.max(jnp.abs(out - ref))))
    print("KERNEL_OK")
</pallas_src>

<mosaic_0001>
module attributes {stable_mosaic.version = 11 : i64} {
  func.func @_basic_block_kernel(%arg0: i32, %arg1: memref<1x16x16x128xbf16, #tpu.memory_space<vmem>>, %arg2: memref<1152x128xbf16, #tpu.memory_space<vmem>>, %arg3: memref<1152x128xbf16, #tpu.memory_space<vmem>>, %arg4: memref<1x128xf32, #tpu.memory_space<vmem>>, %arg5: memref<1x128xf32, #tpu.memory_space<vmem>>, %arg6: memref<1x16x16x128xbf16, #tpu.memory_space<vmem>>, %arg7: memref<18x18x128xbf16, #tpu.memory_space<vmem>>, %arg8: memref<18x18x128xbf16, #tpu.memory_space<vmem>>, %arg9: memref<256x1152xbf16, #tpu.memory_space<vmem>>) attributes {dimension_semantics = [#tpu.dimension_semantics<parallel>], iteration_bounds = array<i64: 2>, scalar_prefetch = 0 : i64, scratch_operands = 3 : i64, tpu.core_type = #tpu.core_type<tc>, window_params = [{transform_indices = @transform_0, window_bounds = array<i64: 1, 16, 16, 128>}, {pipeline_mode = #tpu.pipeline_mode<synchronous>, transform_indices = @transform_1, window_bounds = array<i64: 1152, 128>}, {pipeline_mode = #tpu.pipeline_mode<synchronous>, transform_indices = @transform_2, window_bounds = array<i64: 1152, 128>}, {pipeline_mode = #tpu.pipeline_mode<synchronous>, transform_indices = @transform_3, window_bounds = array<i64: 1, 128>}, {pipeline_mode = #tpu.pipeline_mode<synchronous>, transform_indices = @transform_4, window_bounds = array<i64: 1, 128>}, {transform_indices = @transform_5, window_bounds = array<i64: 1, 16, 16, 128>}]} {
    %cst = arith.constant 0.000000e+00 : bf16
    %0 = vector.broadcast %cst : bf16 to vector<1x18x128xbf16>
    %c0 = arith.constant 0 : index
    %c0_0 = arith.constant 0 : index
    %c0_1 = arith.constant 0 : index
    %1 = vector.load %arg7[%c0, %c0_0, %c0_1] : memref<18x18x128xbf16, #tpu.memory_space<vmem>>, vector<1x18x128xbf16>
    tpu.vector_store %arg7[%c0, %c0_0, %c0_1], %0 {strides = array<i32>} : memref<18x18x128xbf16, #tpu.memory_space<vmem>>, vector<1x18x128xbf16>,
    %cst_2 = arith.constant 0.000000e+00 : bf16
    %2 = vector.broadcast %cst_2 : bf16 to vector<1x18x128xbf16>
    %c17 = arith.constant 17 : index
    %c0_3 = arith.constant 0 : index
    %c0_4 = arith.constant 0 : index
    %3 = vector.load %arg7[%c17, %c0_3, %c0_4] : memref<18x18x128xbf16, #tpu.memory_space<vmem>>, vector<1x18x128xbf16>
    tpu.vector_store %arg7[%c17, %c0_3, %c0_4], %2 {strides = array<i32>} : memref<18x18x128xbf16, #tpu.memory_space<vmem>>, vector<1x18x128xbf16>,
    %cst_5 = arith.constant 0.000000e+00 : bf16
    %4 = vector.broadcast %cst_5 : bf16 to vector<16x1x128xbf16>
    %c1 = arith.constant 1 : index
    %c0_6 = arith.constant 0 : index
    %c0_7 = arith.constant 0 : index
    %5 = vector.load %arg7[%c1, %c0_6, %c0_7] : memref<18x18x128xbf16, #tpu.memory_space<vmem>>, vector<16x1x128xbf16>
    tpu.vector_store %arg7[%c1, %c0_6, %c0_7], %4 {strides = array<i32>} : memref<18x18x128xbf16, #tpu.memory_space<vmem>>, vector<16x1x128xbf16>,
    %cst_8 = arith.constant 0.000000e+00 : bf16
    %6 = vector.broadcast %cst_8 : bf16 to vector<16x1x128xbf16>
    %c1_9 = arith.constant 1 : index
    %c17_10 = arith.constant 17 : index
    %c0_11 = arith.constant 0 : index
    %7 = vector.load %arg7[%c1_9, %c17_10, %c0_11] : memref<18x18x128xbf16, #tpu.memory_space<vmem>>, vector<16x1x128xbf16>
    tpu.vector_store %arg7[%c1_9, %c17_10, %c0_11], %6 {strides = array<i32>} : memref<18x18x128xbf16, #tpu.memory_space<vmem>>, vector<16x1x128xbf16>,
    %cst_12 = arith.constant 0.000000e+00 : bf16
    %8 = vector.broadcast %cst_12 : bf16 to vector<1x18x128xbf16>
    %c0_13 = arith.constant 0 : index
    %c0_14 = arith.constant 0 : index
    %c0_15 = arith.constant 0 : index
    %9 = vector.load %arg8[%c0_13, %c0_14, %c0_15] : memref<18x18x128xbf16, #tpu.memory_space<vmem>>, vector<1x18x128xbf16>
    tpu.vector_store %arg8[%c0_13, %c0_14, %c0_15], %8 {strides = array<i32>} : memref<18x18x128xbf16, #tpu.memory_space<vmem>>, vector<1x18x128xbf16>,
    %cst_16 = arith.constant 0.000000e+00 : bf16
    %10 = vector.broadcast %cst_16 : bf16 to vector<1x18x128xbf16>
    %c17_17 = arith.constant 17 : index
    %c0_18 = arith.constant 0 : index
    %c0_19 = arith.constant 0 : index
    %11 = vector.load %arg8[%c17_17, %c0_18, %c0_19] : memref<18x18x128xbf16, #tpu.memory_space<vmem>>, vector<1x18x128xbf16>
    tpu.vector_store %arg8[%c17_17, %c0_18, %c0_19], %10 {strides = array<i32>} : memref<18x18x128xbf16, #tpu.memory_space<vmem>>, vector<1x18x128xbf16>,
    %cst_20 = arith.constant 0.000000e+00 : bf16
    %12 = vector.broadcast %cst_20 : bf16 to vector<16x1x128xbf16>
    %c1_21 = arith.constant 1 : index
    %c0_22 = arith.constant 0 : index
    %c0_23 = arith.constant 0 : index
    %13 = vector.load %arg8[%c1_21, %c0_22, %c0_23] : memref<18x18x128xbf16, #tpu.memory_space<vmem>>, vector<16x1x128xbf16>
    tpu.vector_store %arg8[%c1_21, %c0_22, %c0_23], %12 {strides = array<i32>} : memref<18x18x128xbf16, #tpu.memory_space<vmem>>, vector<16x1x128xbf16>,
    %cst_24 = arith.constant 0.000000e+00 : bf16
    %14 = vector.broadcast %cst_24 : bf16 to vector<16x1x128xbf16>
    %c1_25 = arith.constant 1 : index
    %c17_26 = arith.constant 17 : index
    %c0_27 = arith.constant 0 : index
    %15 = vector.load %arg8[%c1_25, %c17_26, %c0_27] : memref<18x18x128xbf16, #tpu.memory_space<vmem>>, vector<16x1x128xbf16>
    tpu.vector_store %arg8[%c1_25, %c17_26, %c0_27], %14 {strides = array<i32>} : memref<18x18x128xbf16, #tpu.memory_space<vmem>>, vector<16x1x128xbf16>,
    %c0_28 = arith.constant 0 : index
    %c0_29 = arith.constant 0 : index
    %c0_30 = arith.constant 0 : index
    %c0_31 = arith.constant 0 : index
    %16 = vector.load %arg1[%c0_28, %c0_29, %c0_30, %c0_31] : memref<1x16x16x128xbf16, #tpu.memory_space<vmem>>, vector<1x16x16x128xbf16>
    %17 = vector.shape_cast %16 : vector<1x16x16x128xbf16> to vector<16x16x128xbf16>
    %c1_32 = arith.constant 1 : index
    %c1_33 = arith.constant 1 : index
    %c0_34 = arith.constant 0 : index
    %18 = vector.load %arg7[%c1_32, %c1_33, %c0_34] : memref<18x18x128xbf16, #tpu.memory_space<vmem>>, vector<16x16x128xbf16>
    tpu.vector_store %arg7[%c1_32, %c1_33, %c0_34], %17 {strides = array<i32>} : memref<18x18x128xbf16, #tpu.memory_space<vmem>>, vector<16x16x128xbf16>,
    %c0_35 = arith.constant 0 : index
    %c0_36 = arith.constant 0 : index
    %c0_37 = arith.constant 0 : index
    %19 = vector.load %arg7[%c0_35, %c0_36, %c0_37] : memref<18x18x128xbf16, #tpu.memory_space<vmem>>, vector<16x16x128xbf16>
    %20 = vector.shape_cast %19 : vector<16x16x128xbf16> to vector<256x128xbf16>
    %c0_38 = arith.constant 0 : index
    %c0_39 = arith.constant 0 : index
    %21 = vector.load %arg9[%c0_38, %c0_39] : memref<256x1152xbf16, #tpu.memory_space<vmem>>, vector<256x128xbf16>
    tpu.vector_store %arg9[%c0_38, %c0_39], %20 {strides = array<i32>} : memref<256x1152xbf16, #tpu.memory_space<vmem>>, vector<256x128xbf16>,
    %c0_40 = arith.constant 0 : index
    %c1_41 = arith.constant 1 : index
    %c0_42 = arith.constant 0 : index
    %22 = vector.load %arg7[%c0_40, %c1_41, %c0_42] : memref<18x18x128xbf16, #tpu.memory_space<vmem>>, vector<16x16x128xbf16>
    %23 = vector.shape_cast %22 : vector<16x16x128xbf16> to vector<256x128xbf16>
    %c0_43 = arith.constant 0 : index
    %c128 = arith.constant 128 : index
    %24 = vector.load %arg9[%c0_43, %c128] : memref<256x1152xbf16, #tpu.memory_space<vmem>>, vector<256x128xbf16>
    tpu.vector_store %arg9[%c0_43, %c128], %23 {strides = array<i32>} : memref<256x1152xbf16, #tpu.memory_space<vmem>>, vector<256x128xbf16>,
    %c0_44 = arith.constant 0 : index
    %c2 = arith.constant 2 : index
    %c0_45 = arith.constant 0 : index
    %25 = vector.load %arg7[%c0_44, %c2, %c0_45] : memref<18x18x128xbf16, #tpu.memory_space<vmem>>, vector<16x16x128xbf16>
    %26 = vector.shape_cast %25 : vector<16x16x128xbf16> to vector<256x128xbf16>
    %c0_46 = arith.constant 0 : index
    %c256 = arith.constant 256 : index
    %27 = vector.load %arg9[%c0_46, %c256] : memref<256x1152xbf16, #tpu.memory_space<vmem>>, vector<256x128xbf16>
    tpu.vector_store %arg9[%c0_46, %c256], %26 {strides = array<i32>} : memref<256x1152xbf16, #tpu.memory_space<vmem>>, vector<256x128xbf16>,
    %c1_47 = arith.constant 1 : index
    %c0_48 = arith.constant 0 : index
    %c0_49 = arith.constant 0 : index
    %28 = vector.load %arg7[%c1_47, %c0_48, %c0_49] : memref<18x18x128xbf16, #tpu.memory_space<vmem>>, vector<16x16x128xbf16>
    %29 = vector.shape_cast %28 : vector<16x16x128xbf16> to vector<256x128xbf16>
    %c0_50 = arith.constant 0 : index
    %c384 = arith.constant 384 : index
    %30 = vector.load %arg9[%c0_50, %c384] : memref<256x1152xbf16, #tpu.memory_space<vmem>>, vector<256x128xbf16>
    tpu.vector_store %arg9[%c0_50, %c384], %29 {strides = array<i32>} : memref<256x1152xbf16, #tpu.memory_space<vmem>>, vector<256x128xbf16>,
    %c1_51 = arith.constant 1 : index
    %c1_52 = arith.constant 1 : index
    %c0_53 = arith.constant 0 : index
    %31 = vector.load %arg7[%c1_51, %c1_52, %c0_53] : memref<18x18x128xbf16, #tpu.memory_space<vmem>>, vector<16x16x128xbf16>
    %32 = vector.shape_cast %31 : vector<16x16x128xbf16> to vector<256x128xbf16>
    %c0_54 = arith.constant 0 : index
    %c512 = arith.constant 512 : index
    %33 = vector.load %arg9[%c0_54, %c512] : memref<256x1152xbf16, #tpu.memory_space<vmem>>, vector<256x128xbf16>
    tpu.vector_store %arg9[%c0_54, %c512], %32 {strides = array<i32>} : memref<256x1152xbf16, #tpu.memory_space<vmem>>, vector<256x128xbf16>,
    %c1_55 = arith.constant 1 : index
    %c2_56 = arith.constant 2 : index
    %c0_57 = arith.constant 0 : index
    %34 = vector.load %arg7[%c1_55, %c2_56, %c0_57] : memref<18x18x128xbf16, #tpu.memory_space<vmem>>, vector<16x16x128xbf16>
    %35 = vector.shape_cast %34 : vector<16x16x128xbf16> to vector<256x128xbf16>
    %c0_58 = arith.constant 0 : index
    %c640 = arith.constant 640 : index
    %36 = vector.load %arg9[%c0_58, %c640] : memref<256x1152xbf16, #tpu.memory_space<vmem>>, vector<256x128xbf16>
    tpu.vector_store %arg9[%c0_58, %c640], %35 {strides = array<i32>} : memref<256x1152xbf16, #tpu.memory_space<vmem>>, vector<256x128xbf16>,
    %c2_59 = arith.constant 2 : index
    %c0_60 = arith.constant 0 : index
    %c0_61 = arith.constant 0 : index
    %37 = vector.load %arg7[%c2_59, %c0_60, %c0_61] : memref<18x18x128xbf16, #tpu.memory_space<vmem>>, vector<16x16x128xbf16>
    %38 = vector.shape_cast %37 : vector<16x16x128xbf16> to vector<256x128xbf16>
    %c0_62 = arith.constant 0 : index
    %c768 = arith.constant 768 : index
    %39 = vector.load %arg9[%c0_62, %c768] : memref<256x1152xbf16, #tpu.memory_space<vmem>>, vector<256x128xbf16>
    tpu.vector_store %arg9[%c0_62, %c768], %38 {strides = array<i32>} : memref<256x1152xbf16, #tpu.memory_space<vmem>>, vector<256x128xbf16>,
    %c2_63 = arith.constant 2 : index
    %c1_64 = arith.constant 1 : index
    %c0_65 = arith.constant 0 : index
    %40 = vector.load %arg7[%c2_63, %c1_64, %c0_65] : memref<18x18x128xbf16, #tpu.memory_space<vmem>>, vector<16x16x128xbf16>
    %41 = vector.shape_cast %40 : vector<16x16x128xbf16> to vector<256x128xbf16>
    %c0_66 = arith.constant 0 : index
    %c896 = arith.constant 896 : index
    %42 = vector.load %arg9[%c0_66, %c896] : memref<256x1152xbf16, #tpu.memory_space<vmem>>, vector<256x128xbf16>
    tpu.vector_store %arg9[%c0_66, %c896], %41 {strides = array<i32>} : memref<256x1152xbf16, #tpu.memory_space<vmem>>, vector<256x128xbf16>,
    %c2_67 = arith.constant 2 : index
    %c2_68 = arith.constant 2 : index
    %c0_69 = arith.constant 0 : index
    %43 = vector.load %arg7[%c2_67, %c2_68, %c0_69] : memref<18x18x128xbf16, #tpu.memory_space<vmem>>, vector<16x16x128xbf16>
    %44 = vector.shape_cast %43 : vector<16x16x128xbf16> to vector<256x128xbf16>
    %c0_70 = arith.constant 0 : index
    %c1024 = arith.constant 1024 : index
    %45 = vector.load %arg9[%c0_70, %c1024] : memref<256x1152xbf16, #tpu.memory_space<vmem>>, vector<256x128xbf16>
    tpu.vector_store %arg9[%c0_70, %c1024], %44 {strides = array<i32>} : memref<256x1152xbf16, #tpu.memory_space<vmem>>, vector<256x128xbf16>,
    %c0_71 = arith.constant 0 : index
    %c0_72 = arith.constant 0 : index
    %46 = vector.load %arg9[%c0_71, %c0_72] : memref<256x1152xbf16, #tpu.memory_space<vmem>>, vector<256x1152xbf16>
    %c0_73 = arith.constant 0 : index
    %c0_74 = arith.constant 0 : index
    %47 = vector.load %arg2[%c0_73, %c0_74] : memref<1152x128xbf16, #tpu.memory_space<vmem>>, vector<1152x128xbf16>
    %cst_75 = arith.constant dense<0.000000e+00> : vector<256x128xf32>
    %48 = tpu.matmul %46, %47, %cst_75 {dimension_numbers = #tpu.dot_dimension_numbers<[1], [0], [0], [1], [0, 0, 1, 1], [], []>} : vector<256x1152xbf16>, vector<1152x128xbf16>, vector<256x128xf32> -> vector<256x128xf32>
    %c0_76 = arith.constant 0 : index
    %c0_77 = arith.constant 0 : index
    %49 = vector.load %arg4[%c0_76, %c0_77] : memref<1x128xf32, #tpu.memory_space<vmem>>, vector<1x128xf32>
    %50 = vector.broadcast %49 : vector<1x128xf32> to vector<256x128xf32>
    %51 = arith.addf %48, %50 : vector<256x128xf32>
    %cst_78 = arith.constant 0.000000e+00 : f32
    %52 = vector.broadcast %cst_78 : f32 to vector<256x128xf32>
    %53 = arith.maximumf %51, %52 : vector<256x128xf32>
    %54 = vector.shape_cast %53 : vector<256x128xf32> to vector<16x16x128xf32>
    %55 = arith.truncf %54 : vector<16x16x128xf32> to vector<16x16x128xbf16>
    %c1_79 = arith.constant 1 : index
    %c1_80 = arith.constant 1 : index
    %c0_81 = arith.constant 0 : index
    %56 = vector.load %arg8[%c1_79, %c1_80, %c0_81] : memref<18x18x128xbf16, #tpu.memory_space<vmem>>, vector<16x16x128xbf16>
    tpu.vector_store %arg8[%c1_79, %c1_80, %c0_81], %55 {strides = array<i32>} : memref<18x18x128xbf16, #tpu.memory_space<vmem>>, vector<16x16x128xbf16>,
    %c0_82 = arith.constant 0 : index
    %c0_83 = arith.constant 0 : index
    %c0_84 = arith.constant 0 : index
    %57 = vector.load %arg8[%c0_82, %c0_83, %c0_84] : memref<18x18x128xbf16, #tpu.memory_space<vmem>>, vector<16x16x128xbf16>
    %58 = vector.shape_cast %57 : vector<16x16x128xbf16> to vector<256x128xbf16>
    %c0_85 = arith.constant 0 : index
    %c0_86 = arith.constant 0 : index
    %59 = vector.load %arg9[%c0_85, %c0_86] : memref<256x1152xbf16, #tpu.memory_space<vmem>>, vector<256x128xbf16>
    tpu.vector_store %arg9[%c0_85, %c0_86], %58 {strides = array<i32>} : memref<256x1152xbf16, #tpu.memory_space<vmem>>, vector<256x128xbf16>,
    %c0_87 = arith.constant 0 : index
    %c1_88 = arith.constant 1 : index
    %c0_89 = arith.constant 0 : index
    %60 = vector.load %arg8[%c0_87, %c1_88, %c0_89] : memref<18x18x128xbf16, #tpu.memory_space<vmem>>, vector<16x16x128xbf16>
    %61 = vector.shape_cast %60 : vector<16x16x128xbf16> to vector<256x128xbf16>
    %c0_90 = arith.constant 0 : index
    %c128_91 = arith.constant 128 : index
    %62 = vector.load %arg9[%c0_90, %c128_91] : memref<256x1152xbf16, #tpu.memory_space<vmem>>, vector<256x128xbf16>
    tpu.vector_store %arg9[%c0_90, %c128_91], %61 {strides = array<i32>} : memref<256x1152xbf16, #tpu.memory_space<vmem>>, vector<256x128xbf16>,
    %c0_92 = arith.constant 0 : index
    %c2_93 = arith.constant 2 : index
    %c0_94 = arith.constant 0 : index
    %63 = vector.load %arg8[%c0_92, %c2_93, %c0_94] : memref<18x18x128xbf16, #tpu.memory_space<vmem>>, vector<16x16x128xbf16>
    %64 = vector.shape_cast %63 : vector<16x16x128xbf16> to vector<256x128xbf16>
    %c0_95 = arith.constant 0 : index
    %c256_96 = arith.constant 256 : index
    %65 = vector.load %arg9[%c0_95, %c256_96] : memref<256x1152xbf16, #tpu.memory_space<vmem>>, vector<256x128xbf16>
    tpu.vector_store %arg9[%c0_95, %c256_96], %64 {strides = array<i32>} : memref<256x1152xbf16, #tpu.memory_space<vmem>>, vector<256x128xbf16>,
    %c1_97 = arith.constant 1 : index
    %c0_98 = arith.constant 0 : index
    %c0_99 = arith.constant 0 : index
    %66 = vector.load %arg8[%c1_97, %c0_98, %c0_99] : memref<18x18x128xbf16, #tpu.memory_space<vmem>>, vector<16x16x128xbf16>
    %67 = vector.shape_cast %66 : vector<16x16x128xbf16> to vector<256x128xbf16>
    %c0_100 = arith.constant 0 : index
    %c384_101 = arith.constant 384 : index
    %68 = vector.load %arg9[%c0_100, %c384_101] : memref<256x1152xbf16, #tpu.memory_space<vmem>>, vector<256x128xbf16>
    tpu.vector_store %arg9[%c0_100, %c384_101], %67 {strides = array<i32>} : memref<256x1152xbf16, #tpu.memory_space<vmem>>, vector<256x128xbf16>,
    %c1_102 = arith.constant 1 : index
    %c1_103 = arith.constant 1 : index
    %c0_104 = arith.constant 0 : index
    %69 = vector.load %arg8[%c1_102, %c1_103, %c0_104] : memref<18x18x128xbf16, #tpu.memory_space<vmem>>, vector<16x16x128xbf16>
    %70 = vector.shape_cast %69 : vector<16x16x128xbf16> to vector<256x128xbf16>
    %c0_105 = arith.constant 0 : index
    %c512_106 = arith.constant 512 : index
    %71 = vector.load %arg9[%c0_105, %c512_106] : memref<256x1152xbf16, #tpu.memory_space<vmem>>, vector<256x128xbf16>
    tpu.vector_store %arg9[%c0_105, %c512_106], %70 {strides = array<i32>} : memref<256x1152xbf16, #tpu.memory_space<vmem>>, vector<256x128xbf16>,
    %c1_107 = arith.constant 1 : index
    %c2_108 = arith.constant 2 : index
    %c0_109 = arith.constant 0 : index
    %72 = vector.load %arg8[%c1_107, %c2_108, %c0_109] : memref<18x18x128xbf16, #tpu.memory_space<vmem>>, vector<16x16x128xbf16>
    %73 = vector.shape_cast %72 : vector<16x16x128xbf16> to vector<256x128xbf16>
    %c0_110 = arith.constant 0 : index
    %c640_111 = arith.constant 640 : index
    %74 = vector.load %arg9[%c0_110, %c640_111] : memref<256x1152xbf16, #tpu.memory_space<vmem>>, vector<256x128xbf16>
    tpu.vector_store %arg9[%c0_110, %c640_111], %73 {strides = array<i32>} : memref<256x1152xbf16, #tpu.memory_space<vmem>>, vector<256x128xbf16>,
    %c2_112 = arith.constant 2 : index
    %c0_113 = arith.constant 0 : index
    %c0_114 = arith.constant 0 : index
    %75 = vector.load %arg8[%c2_112, %c0_113, %c0_114] : memref<18x18x128xbf16, #tpu.memory_space<vmem>>, vector<16x16x128xbf16>
    %76 = vector.shape_cast %75 : vector<16x16x128xbf16> to vector<256x128xbf16>
    %c0_115 = arith.constant 0 : index
    %c768_116 = arith.constant 768 : index
    %77 = vector.load %arg9[%c0_115, %c768_116] : memref<256x1152xbf16, #tpu.memory_space<vmem>>, vector<256x128xbf16>
    tpu.vector_store %arg9[%c0_115, %c768_116], %76 {strides = array<i32>} : memref<256x1152xbf16, #tpu.memory_space<vmem>>, vector<256x128xbf16>,
    %c2_117 = arith.constant 2 : index
    %c1_118 = arith.constant 1 : index
    %c0_119 = arith.constant 0 : index
    %78 = vector.load %arg8[%c2_117, %c1_118, %c0_119] : memref<18x18x128xbf16, #tpu.memory_space<vmem>>, vector<16x16x128xbf16>
    %79 = vector.shape_cast %78 : vector<16x16x128xbf16> to vector<256x128xbf16>
    %c0_120 = arith.constant 0 : index
    %c896_121 = arith.constant 896 : index
    %80 = vector.load %arg9[%c0_120, %c896_121] : memref<256x1152xbf16, #tpu.memory_space<vmem>>, vector<256x128xbf16>
    tpu.vector_store %arg9[%c0_120, %c896_121], %79 {strides = array<i32>} : memref<256x1152xbf16, #tpu.memory_space<vmem>>, vector<256x128xbf16>,
    %c2_122 = arith.constant 2 : index
    %c2_123 = arith.constant 2 : index
    %c0_124 = arith.constant 0 : index
    %81 = vector.load %arg8[%c2_122, %c2_123, %c0_124] : memref<18x18x128xbf16, #tpu.memory_space<vmem>>, vector<16x16x128xbf16>
    %82 = vector.shape_cast %81 : vector<16x16x128xbf16> to vector<256x128xbf16>
    %c0_125 = arith.constant 0 : index
    %c1024_126 = arith.constant 1024 : index
    %83 = vector.load %arg9[%c0_125, %c1024_126] : memref<256x1152xbf16, #tpu.memory_space<vmem>>, vector<256x128xbf16>
    tpu.vector_store %arg9[%c0_125, %c1024_126], %82 {strides = array<i32>} : memref<256x1152xbf16, #tpu.memory_space<vmem>>, vector<256x128xbf16>,
    %c0_127 = arith.constant 0 : index
    %c0_128 = arith.constant 0 : index
    %84 = vector.load %arg9[%c0_127, %c0_128] : memref<256x1152xbf16, #tpu.memory_space<vmem>>, vector<256x1152xbf16>
    %c0_129 = arith.constant 0 : index
    %c0_130 = arith.constant 0 : index
    %85 = vector.load %arg3[%c0_129, %c0_130] : memref<1152x128xbf16, #tpu.memory_space<vmem>>, vector<1152x128xbf16>
    %cst_131 = arith.constant dense<0.000000e+00> : vector<256x128xf32>
    %86 = tpu.matmul %84, %85, %cst_131 {dimension_numbers = #tpu.dot_dimension_numbers<[1], [0], [0], [1], [0, 0, 1, 1], [], []>} : vector<256x1152xbf16>, vector<1152x128xbf16>, vector<256x128xf32> -> vector<256x128xf32>
    %c0_132 = arith.constant 0 : index
    %c0_133 = arith.constant 0 : index
    %c0_134 = arith.constant 0 : index
    %c0_135 = arith.constant 0 : index
    %87 = vector.load %arg1[%c0_132, %c0_133, %c0_134, %c0_135] : memref<1x16x16x128xbf16, #tpu.memory_space<vmem>>, vector<1x16x16x128xbf16>
    %88 = vector.shape_cast %87 : vector<1x16x16x128xbf16> to vector<16x16x128xbf16>
    %89 = arith.extf %88 : vector<16x16x128xbf16> to vector<16x16x128xf32>
    %90 = vector.shape_cast %89 : vector<16x16x128xf32> to vector<256x128xf32>
    %c0_136 = arith.constant 0 : index
    %c0_137 = arith.constant 0 : index
    %91 = vector.load %arg5[%c0_136, %c0_137] : memref<1x128xf32, #tpu.memory_space<vmem>>, vector<1x128xf32>
    %92 = vector.broadcast %91 : vector<1x128xf32> to vector<256x128xf32>
    %93 = arith.addf %86, %92 : vector<256x128xf32>
    %94 = arith.addf %93, %90 : vector<256x128xf32>
    %cst_138 = arith.constant 0.000000e+00 : f32
    %95 = vector.broadcast %cst_138 : f32 to vector<256x128xf32>
    %96 = arith.maximumf %94, %95 : vector<256x128xf32>
    %97 = vector.shape_cast %96 : vector<256x128xf32> to vector<16x16x128xf32>
    %98 = arith.truncf %97 : vector<16x16x128xf32> to vector<16x16x128xbf16>
    %c0_139 = arith.constant 0 : index
    %c0_140 = arith.constant 0 : index
    %c0_141 = arith.constant 0 : index
    %c0_142 = arith.constant 0 : index
    %99 = vector.load %arg6[%c0_139, %c0_140, %c0_141, %c0_142] : memref<1x16x16x128xbf16, #tpu.memory_space<vmem>>, vector<1x16x16x128xbf16>
    %100 = vector.shape_cast %99 : vector<1x16x16x128xbf16> to vector<16x16x128xbf16>
    %101 = vector.shape_cast %98 : vector<16x16x128xbf16> to vector<1x16x16x128xbf16>
    tpu.vector_store %arg6[%c0_139, %c0_140, %c0_141, %c0_142], %101 {strides = array<i32>} : memref<1x16x16x128xbf16, #tpu.memory_space<vmem>>, vector<1x16x16x128xbf16>,
    return
  }
  func.func @transform_0(%arg0: i32) -> (i32, i32, i32, i32) {
    %c0_i32 = arith.constant 0 : i32
    %c0_i32_0 = arith.constant 0 : i32
    %c0_i32_1 = arith.constant 0 : i32
    %c0_i32_2 = arith.constant 0 : i32
    return %arg0, %c0_i32, %c0_i32_0, %c0_i32_1 : i32, i32, i32, i32
  }
  func.func @transform_1(%arg0: i32) -> (i32, i32) {
    %c0_i32 = arith.constant 0 : i32
    %c0_i32_0 = arith.constant 0 : i32
    %c0_i32_1 = arith.constant 0 : i32
    return %c0_i32, %c0_i32_0 : i32, i32
  }
  func.func @transform_2(%arg0: i32) -> (i32, i32) {
    %c0_i32 = arith.constant 0 : i32
    %c0_i32_0 = arith.constant 0 : i32
    %c0_i32_1 = arith.constant 0 : i32
    return %c0_i32, %c0_i32_0 : i32, i32
  }
  func.func @transform_3(%arg0: i32) -> (i32, i32) {
    %c0_i32 = arith.constant 0 : i32
    %c0_i32_0 = arith.constant 0 : i32
    %c0_i32_1 = arith.constant 0 : i32
    return %c0_i32, %c0_i32_0 : i32, i32
  }
  func.func @transform_4(%arg0: i32) -> (i32, i32) {
    %c0_i32 = arith.constant 0 : i32
    %c0_i32_0 = arith.constant 0 : i32
    %c0_i32_1 = arith.constant 0 : i32
    return %c0_i32, %c0_i32_0 : i32, i32
  }
  func.func @transform_5(%arg0: i32) -> (i32, i32, i32, i32) {
    %c0_i32 = arith.constant 0 : i32
    %c0_i32_0 = arith.constant 0 : i32
    %c0_i32_1 = arith.constant 0 : i32
    %c0_i32_2 = arith.constant 0 : i32
    return %arg0, %c0_i32, %c0_i32_0, %c0_i32_1 : i32, i32, i32, i32
  }
}

</mosaic_0001>

<bundles_post_ra>
// kernel: tpu_custom_call.1
= control target key start
LH: loop header
LB: loop body
LE: loop exit
PB: predicated region body
PF: predicated region fallthrough
CT: control target
= control target key end

     0   :  { %10 = vsyncpa [#allocation6], 0  ;;  %s16968_s0 = inlined_call_operand.hbm [shape: bf16[2,16,16,128], index: 0, kind: input, shape index: {}]   ;;  %s16969_s1 = inlined_call_operand.hbm [shape: bf16[1152,128], index: 1, kind: input, shape index: {}]   ;;  %s16970_s2 = inlined_call_operand.hbm [shape: bf16[1152,128], index: 2, kind: input, shape index: {}]   ;;  %s16971_s3 = inlined_call_operand.vmem [shape: f32[1,128], index: 3, kind: input, shape index: {}]   ;;  %s16972_s4 = inlined_call_operand.vmem [shape: f32[1,128], index: 4, kind: input, shape index: {}]   ;;  %s16973_s5 = inlined_call_operand.hbm [shape: bf16[2,16,16,128], index: 5, kind: output, shape index: {}]  }
   0x1   :  { %12 = vsyncpa [#allocation6 + $0x1], 0 }
   0x2   :  { %13 = vsyncpa [#allocation9], 0 }
   0x3   :  { %14 = vsyncpa [#allocation7], 0 }
   0x4   :  { %16 = vsyncpa [#allocation7 + $0x1], 0  ;;  %s14055_s18 = smov 0   ;;  %s14057_s19 = smov 0  }
   0x5   :  { %s14059_s20 = smov 0   ;;  %s14061_s21 = smov 0  }
   0x6 LB: > { %s14076_s22 = sadd.s32 4294967295, %s14016_s21   ;;  %s11310_s23 = sadd.s32 4294967294, %s14016_s21   ;;  %s14016_s21 = sphi %s14061_s21, %s17163_s21   ;;  %s14012_s20 = sphi %s14059_s20, %s17162_s20   ;;  %s14008_s19 = sphi %s14057_s19, %s17161_s19   ;;  %s14004_s18 = sphi %s14055_s18, %s17160_s18  }
   0x7   : > { %p42_p0 = scmp.ne.s32.totalorder %s14008_s19, %s14004_s18  ;;  %p43_p1 = scmp.eq.s32.totalorder %s14076_s22, 0 }
   0x8   : > { %p150_p2 = scmp.eq.s32.totalorder %s14076_s22, 1  ;;  %p156_p3 = scmp.eq.s32.totalorder %s11310_s23, 1 }
   0x9   : > { %p14085_p4 = por %p43_p1, %p42_p0  ;;  %p11311_p5 = scmp.ge.s32.totalorder %s14016_s21, 1 }
   0xa   : > { %p14090_p6 = por %p156_p3, %p42_p0  ;;  %p163_p7 = scmp.lt.s32.totalorder %s14016_s21, 3 }
   0xb   : > { %s174_s28 = sshll.u32 %s16969_s1, 4  ;;  %s14018_s30 = smov [#allocation8]   ;;  %s175_s28 = int_to_ptr.hbm [resolvable:$true] %s174_s28 }
   0xc   : > { %p14098_p8 = pnand %p11311_p5, %p163_p7  ;;  %s176_s6 = sshll.u32 %s14018_s30, 4  ;;  %s177_s6 = int_to_ptr.vmem [resolvable:$true] %s176_s6 }
   0xd   : > { %s188_s9 = sshll.u32 %s16970_s2, 4  ;;  %s16974_s10 = smov 64   ;;  %s189_s9 = int_to_ptr.hbm [resolvable:$true] %s188_s9 }
   0xe   : > { %p13788_p9 = pneg %p14098_p8  ;;  %s14020_s11 = smov 4  }
   0xf   : > { %s14021_s12 = smov [#allocation10]   ;;  %s14117_s14 = sadd.s32 1, %s14016_s21  }
  0x10   : > { %p13789_p10 = pnand %p13788_p9, %p43_p1  ;;  %s190_s13 = sshll.u32 %s14021_s12, 4  ;;  %s191_s13 = int_to_ptr.vmem [resolvable:$true] %s190_s13 }
  0x11   : > { %s29_s15 = sadd.s32 1, %s14012_s20  ;;  %s26_s16 = ssub.s32 %s14016_s21, %s14117_s14 }
  0x12   : > { %13791 = dma.hbm_to_vmem [thread:$0]  (!%p13789_p10), %s175_s28, 9216, %s177_s6, [#allocation9], %s16974_s10, %s16974_s10, %s14020_s11  }
  0x13   : > { %13794 = dma.hbm_to_vmem [thread:$0]  (!%p13789_p10), %s189_s9, 9216, %s191_s13, [#allocation9], %s16974_s10, %s16974_s10, %s14020_s11  }
  0x14   : > { %p36_p12 = scmp.ne.s32.totalorder %s14012_s20, %s14008_s19  ;;  %p27_p13 = scmp.eq.s32.totalorder %s26_s16, 0 }
  0x15   : > { %p37_p0 = scmp.eq.s32.totalorder %s14016_s21, 0  ;;  %p13805_p5 = scmp.lt.s32.totalorder %s14016_s21, 2 }
  0x16   : > { %p14127_p3 = por %p150_p2, %p36_p12  ;;  %s210_s26 = sand.u32 1, %s14012_s20  }
  0x17   : > { %s14133_s23 = scalar_select %p27_p13, %s14012_s20, %s29_s15  }
  0x18   : > { %p38_p7 = por %p37_p0, %p36_p12  ;;  %s11315_s27 = sshll.u32 %s210_s26, 7 }
  0x19   : > { %s13152_s28 = sshll.u32 %s14016_s21, 7  ;;  %s214_s8 = scalar_lea.vmem [#allocation5], %s11315_s27 }
  0x1a   : > { %s219_s7 = scalar_lea.hbm %s16968_s0, %s13152_s28  ;;  %s222_s9 = sshll.u32 %s214_s8, 4  ;;  %s223_s9 = int_to_ptr.vmem [resolvable:$true] %s222_s9 }
  0x1b   : > { %s220_s12 = sshll.u32 %s219_s7, 4  ;;  %p14140_p2 = pnand %p13805_p5, %p38_p7  ;;  %s221_s12 = int_to_ptr.hbm [resolvable:$true] %s220_s12 }
  0x1c   : > { %s211_s15 = scalar_lea.sflag [#allocation6], %s210_s26  ;;  %s13916_s16 = sshra.s32 %s221_s12, 4  ;;  %s13917_s16 = int_to_ptr.hbm [resolvable:$true] %s13916_s16 }
  0x1d   : > { %s13918_s10 = scalar_lea.hbm %s13917_s16, 128  ;;  %p13920_p10 = pneg %p14140_p2 }
  0x1e   : > { %p13919_p9 = scmp.ne.s32.totalorder %s13917_s16, %s13918_s10  ;;  %s13923_s30 = scalar_lea.hbm %s16968_s0, 256 }
  0x1f   : > { %p13924_p0 = scmp.lt.s32.totalorder %s13917_s16, %s16968_s0  ;;  %p13925_p5 = scmp.lt.s32.totalorder %s13923_s30, %s13918_s10 }
  0x20   : > { %p13921_p12 = pnand %p13920_p10, %p13919_p9 }
  0x21   : > { %p13926_p7 = por %p13925_p5, %p13924_p0 }
  0x22   : > { %p13922_p13 = pneg %p13921_p12 }
  0x24   : > { %p13927_p11 = pnand %p13926_p7, %p13922_p13 }
  0x26   : > { %13930 = shalt.err (!%p13927_p11)
}
  0x27   : > { %s16981_s26 = smov 64   ;;  %234 = sbr.rel (%p14098_p8) target bundleno = 1640 (0x668), region = 40 }
  0x28   : > { %13798 = dma.hbm_to_vmem [thread:$0]  (!%p14140_p2), %s221_s12, 2048, %s223_s9, %s211_s15, %s16981_s26, %s16981_s26, %s14020_s11  }
  0x2c   : > { %s14160_s8 = sand.u32 1, %s14008_s19  }
  0x2d   : > { %s11319_s10 = sshll.u32 %s14160_s8, 7  ;;  %s237_s16 = scalar_lea.sflag [#allocation6], %s14160_s8 }
  0x2e   : > { %s14166_s28 = scalar_lea.vmem [#allocation5], %s11319_s10 }
  0x2f   : > { %13991 = dma.done.wait (%p14085_p4), %s237_s16, 2048  }
  0x30   : > { %13993 = vsyncadd (%p14085_p4), %s237_s16, 4294965248 }
  0x31   : > { %13995 = dma.done.wait (%p43_p1), [#allocation9], 18432  }
  0x32   : > { %13997 = vsyncadd (%p43_p1), [#allocation9], 4294948864  ;;  %v14022_v0 = vmov 0   ;;  %v13304_v1 = vld [vmem:[#allocation8 + $0x38] sm:$0xff]  ;;  %vm287_vm0 = vcmask 1040384   ;;  %v13303_v3 = vld [vmem:[#allocation8 + $0x30] sm:$0xff] }
  0x33   : > { %279 = vst [vmem:[#allocation2] sm:$0xf] %v14022_v0  ;;  %v13312_v2 = vld [vmem:[#allocation8 + $0x78] sm:$0xff]  ;;  %vm288_vm1 = vsmask.f32 256  ;;  %4939 = vmatpush.bf16.msra.mxu0 %v13304_v1  ;;  %13760 = vmatpush.bf16.msra.mxu2 %v13304_v1  ;;  %v13311_v4 = vld [vmem:[#allocation8 + $0x70] sm:$0xff] }
  0x34   : > { %280 = vst [vmem:[#allocation2 + $0x4] sm:$0xf] %v14022_v0  ;;  %13768 = vmatpush.bf16.msra.mxu3 %v13312_v2  ;;  %5028 = vmatpush.bf16.msra.mxu1 %v13312_v2  ;;  %vm14178_vm2 = vmand %vm287_vm0, %vm288_vm1  ;;  %vm338_vm3 = vsmask.f32 7938  ;;  %vm524_vm4 = vsmask.f32 4368 }
  0x35   : > { %388 = vst [vmem:[#allocation3] sm:$0xf] %v14022_v0  ;;  %v13302_v8 = vld [vmem:[#allocation8 + $0x28] sm:$0xff]  ;;  %v311_v9 = vld [vmem:[#allocation2 + $0x60] sm:$0x1]  ;;  %vm14187_vm5 = vmand %vm287_vm0, %vm338_vm3  ;;  %vm846_vm6 = vcmask 1043456  }
  0x36   : > { %389 = vst [vmem:[#allocation3 + $0x4] sm:$0xf] %v14022_v0  ;;  %v13310_v10 = vld [vmem:[#allocation8 + $0x68] sm:$0xff]  ;;  %v312_v11 = vsel %vm14178_vm2, 0, %v311_v9  ;;  %v506_v12 = vld [vmem:[%s14166_s28 + $0x38] sm:$0xf]  ;;  %vm14196_vm9 = vmor %vm288_vm1, %vm524_vm4 }
  0x37   : > { %281 = vst [vmem:[#allocation2 + $0x8] sm:$0x1] %v14022_v0  ;;  %4940 = vmatpush.bf16.msra.mxu0 %v13303_v3  ;;  %13761 = vmatpush.bf16.msra.mxu2 %v13303_v3  ;;  %v507_v14 = vld [vmem:[%s14166_s28 + $0x3c] sm:$0xf]  ;;  %v646_v15 = vshrl.u32 %v506_v12, 16  ;;  %v13301_v16 = vld [vmem:[#allocation8 + $0x20] sm:$0xff]  ;;  %vm14206_vm10 = vmand %vm846_vm6, %vm338_vm3 }
  0x38   : > { %283 = vst [vmem:[#allocation2 + $0xcc] sm:$0xf] %v14022_v0  ;;  %13769 = vmatpush.bf16.msra.mxu3 %v13311_v4  ;;  %5029 = vmatpush.bf16.msra.mxu1 %v13311_v4  ;;  %v649_v18 = vshll.u32 %v506_v12, 16  ;;  %v654_v19 = vshrl.u32 %v507_v14, 16  ;;  %v657_v20 = vshll.u32 %v507_v14, 16  ;;  %v13309_v21 = vld [vmem:[#allocation8 + $0x60] sm:$0xff] }
  0x39   : > { %284 = vst [vmem:[#allocation2 + $0xd0] sm:$0xf] %v14022_v0  ;;  %v648_v23 = vrot.slane %v646_v15, 7  ;;  %v361_v24 = vld [vmem:[#allocation2 + $0x68] sm:$0x1]  ;;  %v13299_v55 = vld [vmem:[#allocation8 + $0x10] sm:$0xff] }
  0x3a   : > { %285 = vst [vmem:[#allocation2 + $0xd4] sm:$0x1] %v14022_v0  ;;  %v960_v6 = vld [vmem:[#allocation2] sm:$0xf]  ;;  %vm1072_vm7 = vsmask.f32 3328 }
  0x3b   : > { %390 = vst [vmem:[#allocation3 + $0x8] sm:$0x1] %v14022_v0  ;;  %v961_v7 = vld [vmem:[#allocation2 + $0x4] sm:$0xf]  ;;  %4941 = vmatpush.bf16.msra.mxu0 %v13302_v8  ;;  %13762 = vmatpush.bf16.msra.mxu2 %v13302_v8  ;;  %v656_v25 = vrot.slane %v654_v19, 7  ;;  %v362_v26 = vsel %vm14187_vm5, 0, %v361_v24  ;;  %v651_v35 = vor.u32 %v649_v18, %v648_v23 }
  0x3c   : > { %392 = vst [vmem:[#allocation3 + $0xcc] sm:$0xf] %v14022_v0  ;;  %v6236_v17 = vld [vmem:[#allocation3] sm:$0xf]  ;;  %13770 = vmatpush.bf16.msra.mxu3 %v13310_v10  ;;  %5030 = vmatpush.bf16.msra.mxu1 %v13310_v10  ;;  %vm1073_vm8 = vsmask.f32 7440 }
  0x3d   : > { %393 = vst [vmem:[#allocation3 + $0xd0] sm:$0xf] %v14022_v0  ;;  %v6237_v22 = vld [vmem:[#allocation3 + $0x4] sm:$0xf]  ;;  %v1024_v27 = vld [vmem:[#allocation2] sm:$0xf]  ;;  %v659_v36 = vor.u32 %v657_v20, %v656_v25  ;;  %vm14218_vm11 = vmor %vm1072_vm7, %vm1073_vm8 }
  0x3e   : > { %992 = vst [vmem:[#allocation4] sm:$0xf] %v960_v6  ;;  %v13300_v28 = vld [vmem:[#allocation8 + $0x18] sm:$0xff]  ;;  %v652_v30 = vrot.slane %v648_v23, 4  ;;  %v1025_v31 = vld [vmem:[#allocation2 + $0x4] sm:$0xf] }
  0x3f   : > { %993 = vst [vmem:[#allocation4 + $0x24] sm:$0xf] %v961_v7  ;;  %v1076_v32 = vshrl.u32 %v1024_v27, 16  ;;  %v13308_v33 = vld [vmem:[#allocation8 + $0x58] sm:$0xff]  ;;  %v661_v37 = vrot.slane %v656_v25, 4  ;;  %4942 = vmatpush.bf16.msra.mxu0 %v13301_v16  ;;  %13763 = vmatpush.bf16.msra.mxu2 %v13301_v16  ;;  %v1079_v42 = vshll.u32 %v1024_v27, 16 }
  0x40   : > { %394 = vst [vmem:[#allocation3 + $0xd4] sm:$0x1] %v14022_v0  ;;  %v1026_v38 = vld [vmem:[#allocation2 + $0x8] sm:$0x1]  ;;  %13771 = vmatpush.bf16.msra.mxu3 %v13309_v21  ;;  %5031 = vmatpush.bf16.msra.mxu1 %v13309_v21  ;;  %v660_v43 = vsel %vm14196_vm9, %v652_v30, %v659_v36  ;;  %v1085_v44 = vshll.u32 %v1025_v31, 16  ;;  %v1089_v45 = vshrl.u32 %v1025_v31, 16 }
  0x41   : > { %313 = vst [vmem:[#allocation2 + $0x60] sm:$0x1] %v312_v11  ;;  %v1078_v41 = vrot.slane %v1076_v32, 4  ;;  %v6300_v46 = vld [vmem:[#allocation3] sm:$0xf]  ;;  %v1081_v48 = vrot.slane %v1079_v42, 5 }
  0x42   : > { %363 = vst [vmem:[#allocation2 + $0x68] sm:$0x1] %v362_v26  ;;  %v1095_v49 = vshll.u32 %v1026_v38, 16  ;;  %v1087_v51 = vrot.slane %v1085_v44, 5  ;;  %v1091_v52 = vrot.slane %v1089_v45, 4  ;;  %v6349_v58 = vshrl.u32 %v6300_v46, 16 }
  0x43   : > { %900 = vst [vmem:[#allocation2 + $0x64] sm:$0xf] %v660_v43  ;;  %v6301_v53 = vld [vmem:[#allocation3 + $0x4] sm:$0xf]  ;;  %v6302_v54 = vld [vmem:[#allocation3 + $0x8] sm:$0x1]  ;;  %4943 = vmatpush.bf16.msra.mxu0 %v13300_v28  ;;  %13764 = vmatpush.bf16.msra.mxu2 %v13300_v28  ;;  %v1082_v56 = vor.u32 %v1081_v48, %v1078_v41 }
  0x44   : > { %v1097_v57 = vrot.slane %v1095_v49, 5  ;;  %v6352_v59 = vshll.u32 %v6300_v46, 16  ;;  %13772 = vmatpush.bf16.msra.mxu3 %v13308_v33  ;;  %5032 = vmatpush.bf16.msra.mxu1 %v13308_v33  ;;  %v13307_v60 = vld [vmem:[#allocation8 + $0x50] sm:$0xff]  ;;  %v1092_v62 = vor.u32 %v1091_v52, %v1087_v51  ;;  %v6358_v63 = vshll.u32 %v6301_v53, 16  ;;  %v290_v7 = vld [vmem:[#allocation2 + $0xc] sm:$0x1] }
  0x45   : > { %v14200_v34 = vld [vmem:[#allocation4] sm:$0xf]  ;;  %v6362_v0 = vshrl.u32 %v6301_v53, 16  ;;  %v6368_v1 = vshll.u32 %v6302_v54, 16  ;;  %v1083_v3 = vrot.slane %v1082_v56, 4  ;;  %v6351_v4 = vrot.slane %v6349_v58, 4 }
  0x46   : > { %v14202_v39 = vld [vmem:[#allocation4 + $0x20] sm:$0xf0]  ;;  %6268 = vst [vmem:[#allocation4] sm:$0xf] %v6236_v17  ;;  %v6354_v6 = vrot.slane %v6352_v59, 5  ;;  %v1093_v9 = vrot.slane %v1092_v62, 4 }
  0x47   : > { %6269 = vst [vmem:[#allocation4 + $0x24] sm:$0xf] %v6237_v22  ;;  %v14222_v10 = vrot.slane %v6358_v63, 5  ;;  %v6364_v11 = vrot.slane %v6362_v0, 4  ;;  %4944 = vmatpush.bf16.msra.mxu0 %v13299_v55  ;;  %13765 = vmatpush.bf16.msra.mxu2 %v13299_v55  ;;  %v13298_v12 = vld [vmem:[#allocation8 + $0x8] sm:$0xff]  ;;  %v1088_v15 = vsel %vm14218_vm11, %v1083_v3, %v1087_v51  ;;  %v14226_v17 = vrot.slane %v6368_v1, 5 }
  0x48   : > { %v897_v47 = vld [vmem:[#allocation2 + $0x60] sm:$0xf]  ;;  %v13306_v14 = vld [vmem:[#allocation8 + $0x48] sm:$0xff]  ;;  %v6355_v16 = vor.u32 %v6354_v6, %v6351_v4  ;;  %v291_v18 = vsel %vm14178_vm2, 0, %v290_v7  ;;  %v492_v19 = vld [vmem:[%s14166_s28] sm:$0xf]  ;;  %13773 = vmatpush.bf16.msra.mxu3 %v13307_v60  ;;  %5033 = vmatpush.bf16.msra.mxu1 %v13307_v60  ;;  %v1098_v22 = vsel %vm14218_vm11, %v1093_v9, %v1097_v57  ;;  %v11374_v53 = vor.u32 %v14202_v39, %v14200_v34 }
  0x49   : > { %v898_v50 = vsel %vm14206_vm10, %v651_v35, %v897_v47  ;;  %v901_v61 = vld [vmem:[#allocation2 + $0x68] sm:$0x1]  ;;  %1491 = vst [vmem:[#allocation4 + $0x4] sm:$0xf] %v1088_v15  ;;  %v6365_v23 = vor.u32 %v6364_v11, %v14222_v10  ;;  %v493_v24 = vld [vmem:[%s14166_s28 + $0x4] sm:$0xf] }
  0x4a   : > { %899 = vst [vmem:[#allocation2 + $0x60] sm:$0xf] %v898_v50  ;;  %v902_v2 = vsel %vm14178_vm2, %v661_v37, %v901_v61  ;;  %v977_v20 = vld [vmem:[#allocation2 + $0x64] sm:$0xf]  ;;  %v13297_v25 = vld [vmem:[#allocation8] sm:$0xff]  ;;  %v6356_v28 = vrot.slane %v6355_v16, 4 }
  0x4b   : > { %903 = vst [vmem:[#allocation2 + $0x68] sm:$0x1] %v902_v2  ;;  %v1049_v21 = vld [vmem:[#allocation2 + $0x64] sm:$0xf]  ;;  %v527_v30 = vshrl.u32 %v492_v19, 16  ;;  %v13305_v32 = vld [vmem:[#allocation8 + $0x40] sm:$0xff]  ;;  %4945 = vmatpush.bf16.msra.mxu0 %v13298_v12  ;;  %13766 = vmatpush.bf16.msra.mxu2 %v13298_v12 }
  0x4c   : > { %1009 = vst [vmem:[#allocation4 + $0x264] sm:$0xf] %v977_v20  ;;  %v1277_v26 = vshll.u32 %v1049_v21, 16  ;;  %v1281_v27 = vshrl.u32 %v1049_v21, 16  ;;  %v13320_v33 = vld [vmem:[#allocation8 + $0xb8] sm:$0xff]  ;;  %13774 = vmatpush.bf16.msra.mxu3 %v13306_v14  ;;  %5034 = vmatpush.bf16.msra.mxu1 %v13306_v14  ;;  %v6361_v43 = vsel %vm14218_vm11, %v6356_v28, %v14222_v10  ;;  %v6366_v44 = vrot.slane %v6365_v23, 4 }
  0x4d   : > { %1492 = vst [vmem:[#allocation4 + $0x28] sm:$0xf] %v1098_v22  ;;  %v13328_v42 = vld [vmem:[#allocation8 + $0xf8] sm:$0xff]  ;;  %v529_v45 = vrot.slane %v527_v30, 7  ;;  %v530_v46 = vshll.u32 %v492_v19, 16  ;;  %v535_v52 = vshrl.u32 %v493_v24, 16 }
  0x4e   : > { %v1279_v38 = vrot.slane %v1277_v26, 5  ;;  %v1283_v41 = vrot.slane %v1281_v27, 4  ;;  %292 = vst [vmem:[#allocation2 + $0xc] sm:$0x1] %v291_v18  ;;  %v13336_v51 = vld [vmem:[#allocation8 + $0x138] sm:$0xff]  ;;  %v6371_v55 = vsel %vm14218_vm11, %v6366_v44, %v14226_v17  ;;  %v538_v63 = vshll.u32 %v493_v24, 16 }
  0x4f   : > { %v533_v56 = vrot.slane %v529_v45, 4  ;;  %v314_v57 = vld [vmem:[#allocation2 + $0x6c] sm:$0x1]  ;;  %v508_v58 = vld [vmem:[%s14166_s28 + $0x40] sm:$0xf]  ;;  %4946 = vmatpush.bf16.msra.mxu0 %v13297_v25  ;;  %13767 = vmatpush.bf16.msra.mxu2 %v13297_v25  ;;  %v14244_v62 = vrot.slane %v535_v52, 7  ;;  %v532_v39 = vor.u32 %v530_v46, %v529_v45 }
  0x50   : > { %v1284_v50 = vor.u32 %v1283_v41, %v1279_v38  ;;  %v13153_v61 = vld [vmem:[#allocation4 + $0x4] sm:$0xf]  ;;  %v13319_v0 = vld [vmem:[#allocation8 + $0xb0] sm:$0xff]  ;;  %13775 = vmatpush.bf16.msra.mxu3 %v13305_v32  ;;  %v315_v2 = vsel %vm14178_vm2, 0, %v314_v57  ;;  %5035 = vmatpush.bf16.msra.mxu1 %v13305_v32  ;;  %v663_v17 = vshrl.u32 %v508_v58, 16  ;;  %v666_v19 = vshll.u32 %v508_v58, 16 }
  0x51   : > { %v976_v31 = vld [vmem:[#allocation2 + $0x60] sm:$0xf]  ;;  %6764 = vst [vmem:[#allocation4 + $0x4] sm:$0xf] %v6361_v43  ;;  %v540_v6 = vor.u32 %v538_v63, %v14244_v62  ;;  %v509_v11 = vld [vmem:[%s14166_s28 + $0x44] sm:$0xf] }
  0x52   : > { %v1048_v35 = vld [vmem:[#allocation2 + $0x60] sm:$0xf]  ;;  %1008 = vst [vmem:[#allocation4 + $0x240] sm:$0xf] %v976_v31  ;;  %v1050_v47 = vld [vmem:[#allocation2 + $0x68] sm:$0x1]  ;;  %4947 = vmatmul.bf16.vlgmr.msra.gmra.mxu0 %v11374_v53 }
  0x53   : > { %v1268_v36 = vshrl.u32 %v1048_v35, 16  ;;  %v1271_v37 = vshll.u32 %v1048_v35, 16  ;;  %v1287_v54 = vshll.u32 %v1050_v47, 16  ;;  %v1285_v60 = vrot.slane %v1284_v50, 4  ;;  %v13229_v1 = vld [vmem:[#allocation4 + $0x260] sm:$0xf0]  ;;  %5117 = vmatpush.bf16.msrb.mxu2 %v13320_v33  ;;  %5295 = vmatpush.bf16.msrb.mxu0 %v13336_v51 }
  0x54   : > { %5206 = vmatpush.bf16.msrb.mxu3 %v13328_v42  ;;  %v11375_v4 = vld [vmem:[#allocation4 + $0x24] sm:$0xf0]  ;;  %316 = vst [vmem:[#allocation2 + $0x6c] sm:$0x1] %v315_v2  ;;  %v541_v15 = vsel %vm14196_vm9, %v533_v56, %v540_v6  ;;  %v671_v20 = vshrl.u32 %v509_v11, 16  ;;  %v674_v21 = vshll.u32 %v509_v11, 16 }
  0x55   : > { %v1270_v48 = vrot.slane %v1268_v36, 4  ;;  %v1273_v49 = vrot.slane %v1271_v37, 5  ;;  %v1289_v34 = vrot.slane %v1287_v54, 5  ;;  %v11378_v10 = vor.u32 %v13153_v61, %v11375_v4  ;;  %6765 = vst [vmem:[#allocation4 + $0x28] sm:$0xf] %v6371_v55  ;;  %v13327_v31 = vld [vmem:[#allocation8 + $0xf0] sm:$0xff] }
  0x56   : > { %v848_v16 = vld [vmem:[#allocation2 + $0xc] sm:$0xf]  ;;  %v665_v22 = vrot.slane %v663_v17, 7  ;;  %v364_v23 = vld [vmem:[#allocation2 + $0x74] sm:$0x1]  ;;  %v673_v24 = vrot.slane %v671_v20, 7 }
  0x57   : > { %v1274_v59 = vor.u32 %v1273_v49, %v1270_v48  ;;  %v1290_v9 = vsel %vm14218_vm11, %v1285_v60, %v1289_v34  ;;  %5036 = vmatmul.bf16.vlgmr.msra.gmra.mxu1 %v11378_v10  ;;  %v849_v18 = vsel %vm14206_vm10, %v532_v39, %v848_v16  ;;  %5118 = vmatpush.bf16.msrb.mxu2 %v13319_v0  ;;  %v365_v25 = vsel %vm14187_vm5, 0, %v364_v23  ;;  %v340_v26 = vld [vmem:[#allocation2 + $0x14] sm:$0x1]  ;;  %v13335_v37 = vld [vmem:[#allocation8 + $0x130] sm:$0xff]  ;;  %v293_v41 = vld [vmem:[#allocation2 + $0x18] sm:$0x1] }
  0x58   : > { %1508 = vst [vmem:[#allocation4 + $0x268] sm:$0xf] %v1290_v9  ;;  %v542_v27 = vrot.slane %v14244_v62, 4  ;;  %v668_v28 = vor.u32 %v666_v19, %v665_v22  ;;  %v669_v30 = vrot.slane %v665_v22, 4  ;;  %v341_v32 = vsel %vm14187_vm5, 0, %v340_v26  ;;  %5207 = vmatpush.bf16.msrb.mxu3 %v13327_v31  ;;  %5296 = vmatpush.bf16.msrb.mxu0 %v13335_v37  ;;  %v13318_v37 = vld [vmem:[#allocation8 + $0xa8] sm:$0xff] }
  0x59   : > { %v1275_v3 = vrot.slane %v1274_v59, 4  ;;  %v11661_v7 = vld [vmem:[#allocation4 + $0x240] sm:$0xf]  ;;  %850 = vst [vmem:[#allocation2 + $0xc] sm:$0xf] %v849_v18  ;;  %v676_v33 = vor.u32 %v674_v21, %v673_v24  ;;  %v678_v35 = vrot.slane %v673_v24, 4 }
  0x5a   : > { %v11662_v12 = vor.u32 %v13229_v1, %v11661_v7  ;;  %851 = vst [vmem:[#allocation2 + $0x10] sm:$0xf] %v541_v15  ;;  %v494_v42 = vld [vmem:[%s14166_s28 + $0x8] sm:$0xf]  ;;  %v14267_v43 = vld [vmem:[%s14166_s28 + $0xc] sm:$0xf] }
  0x5b   : > { %v1280_v14 = vsel %vm14218_vm11, %v1275_v3, %v1279_v38  ;;  %366 = vst [vmem:[#allocation2 + $0x74] sm:$0x1] %v365_v25  ;;  %v904_v36 = vld [vmem:[#allocation2 + $0x6c] sm:$0xf]  ;;  %v677_v45 = vsel %vm14196_vm9, %v669_v30, %v676_v33  ;;  %v294_v46 = vsel %vm14178_vm2, 0, %v293_v41  ;;  %v544_v47 = vshrl.u32 %v494_v42, 16  ;;  %5119 = vmatpush.bf16.msrb.mxu2 %v13318_v37 }
  0x5c   : > { %1507 = vst [vmem:[#allocation4 + $0x244] sm:$0xf] %v1280_v14  ;;  %4987 = vmatmul.bf16.vlgmr.msra.gmra.mxu2 %v11662_v12  ;;  %v905_v38 = vsel %vm14206_vm10, %v668_v28, %v904_v36  ;;  %v547_v49 = vshll.u32 %v494_v42, 16  ;;  %v552_v50 = vshrl.u32 %v14267_v43, 16  ;;  %v555_v28 = vshll.u32 %v14267_v43, 16  ;;  %v13584_v5 = vld [vmem:[#allocation10 + $0x238] sm:$0xff] }
  0x5d   : > { %342 = vst [vmem:[#allocation2 + $0x14] sm:$0x1] %v341_v32  ;;  %v546_v63 = vrot.slane %v544_v47, 7  ;;  %v317_v31 = vld [vmem:[#allocation2 + $0x78] sm:$0x1]  ;;  %vm1619_vm12 = vcmask 1042432  }
  0x5e   : > { %906 = vst [vmem:[#allocation2 + $0x6c] sm:$0xf] %v905_v38  ;;  %v14278_v39 = vrot.slane %v552_v50, 7  ;;  %vm1620_vm13 = vcmask 1046532   ;;  %s16805_s9 = scalar_lea.vmem [#allocation11], %s11319_s10  ;;  %s13585_s10 = sshll.u32 %s14076_s22, 7 }
  0x5f   : > { %v11663_v44 = vld [vmem:[#allocation4 + $0x264] sm:$0xf0]  ;;  %907 = vst [vmem:[#allocation2 + $0x70] sm:$0xf] %v677_v45  ;;  %v549_v9 = vor.u32 %v547_v49, %v546_v63  ;;  %v550_v19 = vrot.slane %v546_v63, 4  ;;  %vm14544_vm14 = vmor %vm1619_vm12, %vm1620_vm13  ;;  %s11214_s15 = scalar_lea.hbm %s16973_s5, %s13585_s10  ;;  %s11203_s22 = scalar_lea.sflag [#allocation7], %s14160_s8 }
  0x60   : > { %v962_v52 = vld [vmem:[#allocation2 + $0xc] sm:$0xf]  ;;  %295 = vst [vmem:[#allocation2 + $0x18] sm:$0x1] %v294_v46  ;;  %v367_v63 = vld [vmem:[#allocation2 + $0x80] sm:$0x1] }
  0x61   : > { %v1027_v53 = vld [vmem:[#allocation2 + $0xc] sm:$0xf]  ;;  %v963_v54 = vld [vmem:[#allocation2 + $0x10] sm:$0xf]  ;;  %994 = vst [vmem:[#allocation4 + $0x48] sm:$0xf] %v962_v52 }
  0x62   : > { %v1028_v55 = vld [vmem:[#allocation2 + $0x10] sm:$0xf]  ;;  %995 = vst [vmem:[#allocation4 + $0x6c] sm:$0xf] %v963_v54  ;;  %v908_v56 = vld [vmem:[#allocation2 + $0x74] sm:$0x1] }
  0x63   : > { %v13225_v48 = vld [vmem:[#allocation4 + $0x244] sm:$0xf]  ;;  %v1100_v57 = vshrl.u32 %v1027_v53, 16  ;;  %v1103_v58 = vshll.u32 %v1027_v53, 16  ;;  %v909_v59 = vsel %vm14178_vm2, %v678_v35, %v908_v56  ;;  %v1109_v61 = vshll.u32 %v1028_v55, 16  ;;  %s11217_s27 = sshll.u32 %s11214_s15, 4  ;;  %s11218_s27 = int_to_ptr.hbm [resolvable:$true] %s11217_s27 }
  0x64   : > { %v11666_v51 = vor.u32 %v13225_v48, %v11663_v44  ;;  %v852_v60 = vld [vmem:[#allocation2 + $0x14] sm:$0x1]  ;;  %v1113_v62 = vshrl.u32 %v1028_v55, 16  ;;  %910 = vst [vmem:[#allocation2 + $0x74] sm:$0x1] %v909_v59  ;;  %v557_v44 = vor.u32 %v555_v28, %v14278_v39  ;;  %v318_v48 = vsel %vm14178_vm2, 0, %v317_v31 }
  0x65   : > { %v853_v0 = vsel %vm14178_vm2, %v542_v27, %v852_v60  ;;  %v1102_v1 = vrot.slane %v1100_v57, 4  ;;  %v1105_v34 = vrot.slane %v1103_v58, 5  ;;  %v978_v2 = vld [vmem:[#allocation2 + $0x6c] sm:$0xf]  ;;  %v1111_v17 = vrot.slane %v1109_v61, 5  ;;  %s13960_s30 = sshra.s32 %s11218_s27, 4  ;;  %s13961_s30 = int_to_ptr.hbm [resolvable:$true] %s13960_s30 }
  0x66   : > { %5076 = vmatmul.bf16.vlgmr.msra.gmra.mxu3 %v11666_v51  ;;  %v1051_v3 = vld [vmem:[#allocation2 + $0x6c] sm:$0xf]  ;;  %854 = vst [vmem:[#allocation2 + $0x14] sm:$0x1] %v853_v0  ;;  %v979_v4 = vld [vmem:[#allocation2 + $0x70] sm:$0xf]  ;;  %v558_v51 = vsel %vm14196_vm9, %v550_v19, %v557_v44  ;;  %p13967_p11 = scmp.lt.s32.totalorder %s13961_s30, %s16973_s5 }
  0x67   : > { %1010 = vst [vmem:[#allocation4 + $0x288] sm:$0xf] %v978_v2  ;;  %v1052_v6 = vld [vmem:[#allocation2 + $0x70] sm:$0xf]  ;;  %v1106_v7 = vor.u32 %v1105_v34, %v1102_v1  ;;  %v1292_v10 = vshrl.u32 %v1051_v3, 16  ;;  %v1295_v11 = vshll.u32 %v1051_v3, 16 }
  0x68   : > { %1011 = vst [vmem:[#allocation4 + $0x2ac] sm:$0xf] %v979_v4  ;;  %v1301_v12 = vshll.u32 %v1052_v6, 16  ;;  %v1305_v14 = vshrl.u32 %v1052_v6, 16  ;;  %v11409_v15 = vld [vmem:[#allocation4 + $0x48] sm:$0xf] }
  0x69   : > { %v1107_v16 = vrot.slane %v1106_v7, 4  ;;  %v1115_v18 = vrot.slane %v1113_v62, 4  ;;  %v13166_v20 = vld [vmem:[#allocation4 + $0x68] sm:$0xf0]  ;;  %v1294_v21 = vrot.slane %v1292_v10, 4  ;;  %v1297_v22 = vrot.slane %v1295_v11, 5 }
  0x6a   : > { %v1303_v23 = vrot.slane %v1301_v12, 5  ;;  %v1307_v24 = vrot.slane %v1305_v14, 4  ;;  %v11410_v25 = vor.u32 %v13166_v20, %v11409_v15  ;;  %v855_v30 = vld [vmem:[#allocation2 + $0x18] sm:$0xf]  ;;  %319 = vst [vmem:[#allocation2 + $0x78] sm:$0x1] %v318_v48 }
  0x6b   : > { %v1112_v26 = vsel %vm14218_vm11, %v1107_v16, %v1111_v17  ;;  %v1116_v27 = vor.u32 %v1115_v18, %v1111_v17  ;;  %v1053_v32 = vld [vmem:[#allocation2 + $0x74] sm:$0x1]  ;;  %v1298_v33 = vor.u32 %v1297_v22, %v1294_v21  ;;  %v856_v36 = vsel %vm14206_vm10, %v549_v9, %v855_v30  ;;  %858 = vst [vmem:[#allocation2 + $0x1c] sm:$0xf] %v558_v51  ;;  %v510_v55 = vld [vmem:[%s14166_s28 + $0x48] sm:$0xf] }
  0x6c   : > { %v1308_v35 = vor.u32 %v1307_v24, %v1303_v23  ;;  %1493 = vst [vmem:[#allocation4 + $0x4c] sm:$0xf] %v1112_v26  ;;  %4952 = vmatmul.bf16.gmra.mxu0 %v11410_v25  ;;  %v1311_v38 = vshll.u32 %v1053_v32, 16  ;;  %v511_v57 = vld [vmem:[%s14166_s28 + $0x4c] sm:$0xf]  ;;  %v680_v58 = vshrl.u32 %v510_v55, 16 }
  0x6d   : > { %v1029_v41 = vld [vmem:[#allocation2 + $0x14] sm:$0x1]  ;;  %v1117_v42 = vrot.slane %v1116_v27, 4  ;;  %857 = vst [vmem:[#allocation2 + $0x18] sm:$0xf] %v856_v36  ;;  %v1299_v43 = vrot.slane %v1298_v33, 4 }
  0x6e   : > { %v11697_v45 = vld [vmem:[#allocation4 + $0x288] sm:$0xf]  ;;  %v1309_v46 = vrot.slane %v1308_v35, 4  ;;  %v1119_v47 = vshll.u32 %v1029_v41, 16  ;;  %v1313_v50 = vrot.slane %v1311_v38, 5  ;;  %v683_v59 = vshll.u32 %v510_v55, 16 }
  0x6f   : > { %v13238_v49 = vld [vmem:[#allocation4 + $0x2a8] sm:$0xf0]  ;;  %v1304_v53 = vsel %vm14218_vm11, %v1299_v43, %v1303_v23  ;;  %v688_v61 = vshrl.u32 %v511_v57, 16  ;;  %v691_v62 = vshll.u32 %v511_v57, 16  ;;  %v682_v0 = vrot.slane %v680_v58, 7  ;;  %s13962_s6 = scalar_lea.hbm %s13961_s30, 128 }
  0x70   : > { %v11698_v52 = vor.u32 %v13238_v49, %v11697_v45  ;;  %v1121_v54 = vrot.slane %v1119_v47, 5  ;;  %v1314_v56 = vsel %vm14218_vm11, %v1309_v46, %v1313_v50  ;;  %1509 = vst [vmem:[#allocation4 + $0x28c] sm:$0xf] %v1304_v53  ;;  %v368_v1 = vsel %vm14187_vm5, 0, %v367_v63  ;;  %v343_v6 = vld [vmem:[#allocation2 + $0x20] sm:$0x1]  ;;  %p13963_p1 = scmp.ne.s32.totalorder %s13961_s30, %s13962_s6 }
  0x71   : > { %1510 = vst [vmem:[#allocation4 + $0x2b0] sm:$0xf] %v1314_v56  ;;  %v690_v2 = vrot.slane %v688_v61, 7  ;;  %v685_v3 = vor.u32 %v683_v59, %v682_v0  ;;  %v686_v4 = vrot.slane %v682_v0, 4  ;;  %v911_v11 = vld [vmem:[#allocation2 + $0x78] sm:$0xf] }
  0x72   : > { %4992 = vmatmul.bf16.gmra.mxu2 %v11698_v52  ;;  %v1122_v60 = vsel %vm14218_vm11, %v1117_v42, %v1121_v54  ;;  %369 = vst [vmem:[#allocation2 + $0x80] sm:$0x1] %v368_v1  ;;  %v13326_v12 = vld [vmem:[#allocation8 + $0xe8] sm:$0xff]  ;;  %v344_v14 = vsel %vm14187_vm5, 0, %v343_v6  ;;  %v559_v30 = vrot.slane %v14278_v39, 4  ;;  %p13964_p4 = pnand %p13963_p1, %p14127_p3  ;;  %s13966_s16 = scalar_lea.hbm %s16973_s5, 256 }
  0x73   : > { %1494 = vst [vmem:[#allocation4 + $0x70] sm:$0xf] %v1122_v60  ;;  %v13162_v7 = vld [vmem:[#allocation4 + $0x4c] sm:$0xf]  ;;  %v693_v9 = vor.u32 %v691_v62, %v690_v2  ;;  %v695_v10 = vrot.slane %v690_v2, 4  ;;  %v912_v16 = vsel %vm14206_vm10, %v685_v3, %v911_v11  ;;  %5208 = vmatpush.bf16.msrb.mxu3 %v13326_v12  ;;  %p13968_p2 = scmp.lt.s32.totalorder %s13966_s16, %s13962_s6 }
  0x74   : > { %v964_v34 = vld [vmem:[#allocation2 + $0x18] sm:$0xf]  ;;  %v965_v15 = vld [vmem:[#allocation2 + $0x1c] sm:$0xf]  ;;  %345 = vst [vmem:[#allocation2 + $0x20] sm:$0x1] %v344_v14  ;;  %p13965_p8 = pneg %p13964_p4 }
  0x75   : > { %996 = vst [vmem:[#allocation4 + $0x90] sm:$0xf] %v964_v34  ;;  %v1030_v17 = vld [vmem:[#allocation2 + $0x18] sm:$0xf]  ;;  %v694_v19 = vsel %vm14196_vm9, %v686_v4, %v693_v9  ;;  %v1031_v20 = vld [vmem:[#allocation2 + $0x1c] sm:$0xf]  ;;  %p13969_p9 = por %p13968_p2, %p13967_p11 }
  0x76   : > { %997 = vst [vmem:[#allocation4 + $0xb4] sm:$0xf] %v965_v15  ;;  %v1124_v22 = vshrl.u32 %v1030_v17, 16  ;;  %v1127_v23 = vshll.u32 %v1030_v17, 16  ;;  %v1133_v26 = vshll.u32 %v1031_v20, 16  ;;  %v1137_v27 = vshrl.u32 %v1031_v20, 16 }
  0x77   : > { %v13234_v18 = vld [vmem:[#allocation4 + $0x28c] sm:$0xf]  ;;  %913 = vst [vmem:[#allocation2 + $0x78] sm:$0xf] %v912_v16  ;;  %v296_v41 = vld [vmem:[#allocation2 + $0x24] sm:$0x1]  ;;  %p13970_p10 = pnand %p13969_p9, %p13965_p8 }
  0x78   : > { %v11699_v21 = vld [vmem:[#allocation4 + $0x2ac] sm:$0xf0]  ;;  %914 = vst [vmem:[#allocation2 + $0x7c] sm:$0xf] %v694_v19  ;;  %v1126_v32 = vrot.slane %v1124_v22, 4  ;;  %v1129_v33 = vrot.slane %v1127_v23, 5 }
  0x79   : > { %v11702_v24 = vor.u32 %v13234_v18, %v11699_v21  ;;  %v915_v31 = vld [vmem:[#allocation2 + $0x80] sm:$0x1]  ;;  %v13334_v35 = vld [vmem:[#allocation8 + $0x128] sm:$0xff]  ;;  %v1135_v38 = vrot.slane %v1133_v26, 5  ;;  %v1139_v44 = vrot.slane %v1137_v27, 4  ;;  %v297_v39 = vsel %vm14178_vm2, 0, %v296_v41 }
  0x7a   : > { %v11411_v25 = vld [vmem:[#allocation4 + $0x6c] sm:$0xf0]  ;;  %v916_v37 = vsel %vm14178_vm2, %v695_v10, %v915_v31  ;;  %v1130_v42 = vor.u32 %v1129_v33, %v1126_v32  ;;  %5297 = vmatpush.bf16.msrb.mxu0 %v13334_v35  ;;  %298 = vst [vmem:[#allocation2 + $0x24] sm:$0x1] %v297_v39  ;;  %v497_v46 = vld [vmem:[%s14166_s28 + $0x14] sm:$0xf] }
  0x7b   : > { %v11414_v28 = vor.u32 %v13162_v7, %v11411_v25  ;;  %5081 = vmatmul.bf16.gmra.mxu3 %v11702_v24  ;;  %917 = vst [vmem:[#allocation2 + $0x80] sm:$0x1] %v916_v37  ;;  %v496_v45 = vld [vmem:[%s14166_s28 + $0x10] sm:$0xf]  ;;  %v1140_v62 = vor.u32 %v1139_v44, %v1135_v38  ;;  %v569_v0 = vshrl.u32 %v497_v46, 16  ;;  %v572_v1 = vshll.u32 %v497_v46, 16 }
  0x7c   : > { %v11445_v36 = vld [vmem:[#allocation4 + $0x90] sm:$0xf]  ;;  %v1131_v49 = vrot.slane %v1130_v42, 4  ;;  %v561_v50 = vshrl.u32 %v496_v45, 16  ;;  %v564_v51 = vshll.u32 %v496_v45, 16  ;;  %v13317_v41 = vld [vmem:[#allocation8 + $0xa0] sm:$0xff] }
  0x7d   : > { %5041 = vmatmul.bf16.gmra.mxu1 %v11414_v28  ;;  %v859_v43 = vld [vmem:[#allocation2 + $0x20] sm:$0x1]  ;;  %v13175_v47 = vld [vmem:[#allocation4 + $0xb0] sm:$0xf0]  ;;  %v14317_v11 = vrot.slane %v569_v0, 7  ;;  %v1141_v27 = vrot.slane %v1140_v62, 4  ;;  %5120 = vmatpush.bf16.msrb.mxu2 %v13317_v41 }
  0x7e   : > { %v860_v48 = vsel %vm14178_vm2, %v559_v30, %v859_v43  ;;  %v11446_v52 = vor.u32 %v13175_v47, %v11445_v36  ;;  %v980_v53 = vld [vmem:[#allocation2 + $0x78] sm:$0xf]  ;;  %v1136_v57 = vsel %vm14218_vm11, %v1131_v49, %v1135_v38  ;;  %v563_v63 = vrot.slane %v561_v50, 7  ;;  %v320_v16 = vld [vmem:[#allocation2 + $0x84] sm:$0x1] }
  0x7f   : > { %v1054_v54 = vld [vmem:[#allocation2 + $0x78] sm:$0xf]  ;;  %861 = vst [vmem:[#allocation2 + $0x20] sm:$0x1] %v860_v48  ;;  %v981_v55 = vld [vmem:[#allocation2 + $0x7c] sm:$0xf]  ;;  %v574_v21 = vor.u32 %v572_v1, %v14317_v11 }
  0x80   : > { %1012 = vst [vmem:[#allocation4 + $0x2d0] sm:$0xf] %v980_v53  ;;  %v1055_v56 = vld [vmem:[#allocation2 + $0x7c] sm:$0xf]  ;;  %4957 = vmatmul.bf16.gmra.mxu0 %v11446_v52  ;;  %v1316_v58 = vshrl.u32 %v1054_v54, 16  ;;  %v1319_v59 = vshll.u32 %v1054_v54, 16  ;;  %v566_v9 = vor.u32 %v564_v51, %v563_v63 }
  0x81   : > { %1013 = vst [vmem:[#allocation4 + $0x2f4] sm:$0xf] %v981_v55  ;;  %v1325_v60 = vshll.u32 %v1055_v56, 16  ;;  %v1329_v61 = vshrl.u32 %v1055_v56, 16  ;;  %v567_v10 = vrot.slane %v563_v63, 4  ;;  %v321_v32 = vsel %vm14178_vm2, 0, %v320_v16 }
  0x82   : > { %1495 = vst [vmem:[#allocation4 + $0x94] sm:$0xf] %v1136_v57  ;;  %v1056_v34 = vld [vmem:[#allocation2 + $0x80] sm:$0x1]  ;;  %v1318_v2 = vrot.slane %v1316_v58, 4  ;;  %v1321_v3 = vrot.slane %v1319_v59, 5 }
  0x83   : > { %v1327_v4 = vrot.slane %v1325_v60, 5  ;;  %v1331_v6 = vrot.slane %v1329_v61, 4  ;;  %v1335_v7 = vshll.u32 %v1056_v34, 16  ;;  %v862_v12 = vld [vmem:[#allocation2 + $0x24] sm:$0xf]  ;;  %v575_v31 = vsel %vm14196_vm9, %v567_v10, %v574_v21  ;;  %v13325_v34 = vld [vmem:[#allocation8 + $0xe0] sm:$0xff] }
  0x84   : > { %v1322_v14 = vor.u32 %v1321_v3, %v1318_v2  ;;  %v512_v17 = vld [vmem:[%s14166_s28 + $0x50] sm:$0xf]  ;;  %v513_v18 = vld [vmem:[%s14166_s28 + $0x54] sm:$0xf]  ;;  %v863_v22 = vsel %vm14206_vm10, %v566_v9, %v862_v12  ;;  %v370_v23 = vld [vmem:[#allocation2 + $0x8c] sm:$0x1]  ;;  %5209 = vmatpush.bf16.msrb.mxu3 %v13325_v34 }
  0x85   : > { %v1332_v15 = vor.u32 %v1331_v6, %v1327_v4  ;;  %v1337_v19 = vrot.slane %v1335_v7, 5  ;;  %864 = vst [vmem:[#allocation2 + $0x24] sm:$0xf] %v863_v22  ;;  %v697_v33 = vshrl.u32 %v512_v17, 16  ;;  %v705_v44 = vshrl.u32 %v513_v18, 16 }
  0x86   : > { %v1032_v20 = vld [vmem:[#allocation2 + $0x20] sm:$0x1]  ;;  %v1323_v25 = vrot.slane %v1322_v14, 4  ;;  %865 = vst [vmem:[#allocation2 + $0x28] sm:$0xf] %v575_v31  ;;  %v708_v39 = vshll.u32 %v513_v18, 16 }
  0x87   : > { %v11733_v24 = vld [vmem:[#allocation4 + $0x2d0] sm:$0xf]  ;;  %v1333_v26 = vrot.slane %v1332_v15, 4  ;;  %v1143_v28 = vshll.u32 %v1032_v20, 16  ;;  %v699_v42 = vrot.slane %v697_v33, 7  ;;  %v371_v45 = vsel %vm14187_vm5, 0, %v370_v23 }
  0x88   : > { %v13247_v30 = vld [vmem:[#allocation4 + $0x2f0] sm:$0xf0]  ;;  %v1328_v36 = vsel %vm14218_vm11, %v1323_v25, %v1327_v4  ;;  %v346_v46 = vld [vmem:[#allocation2 + $0x2c] sm:$0x1]  ;;  %v299_v47 = vld [vmem:[#allocation2 + $0x30] sm:$0x1] }
  0x89   : > { %v11734_v35 = vor.u32 %v13247_v30, %v11733_v24  ;;  %v1338_v37 = vsel %vm14218_vm11, %v1333_v26, %v1337_v19  ;;  %v1145_v38 = vrot.slane %v1143_v28, 5  ;;  %1511 = vst [vmem:[#allocation4 + $0x2d4] sm:$0xf] %v1328_v36  ;;  %v703_v48 = vrot.slane %v699_v42, 4  ;;  %v498_v53 = vld [vmem:[%s14166_s28 + $0x18] sm:$0xf] }
  0x8a   : > { %1512 = vst [vmem:[#allocation4 + $0x2f8] sm:$0xf] %v1338_v37  ;;  %v707_v49 = vrot.slane %v705_v44, 7  ;;  %v347_v50 = vsel %vm14187_vm5, 0, %v346_v46  ;;  %v576_v51 = vrot.slane %v14317_v11, 4  ;;  %v700_v52 = vshll.u32 %v512_v17, 16 }
  0x8b   : > { %4997 = vmatmul.bf16.gmra.mxu2 %v11734_v35  ;;  %v1146_v43 = vsel %vm14218_vm11, %v1141_v27, %v1145_v38  ;;  %322 = vst [vmem:[#allocation2 + $0x84] sm:$0x1] %v321_v32  ;;  %v300_v56 = vsel %vm14178_vm2, 0, %v299_v47  ;;  %v578_v57 = vshrl.u32 %v498_v53, 16  ;;  %v13171_v58 = vld [vmem:[#allocation4 + $0x94] sm:$0xf] }
  0x8c   : > { %1496 = vst [vmem:[#allocation4 + $0xb8] sm:$0xf] %v1146_v43  ;;  %v710_v54 = vor.u32 %v708_v39, %v707_v49  ;;  %v712_v55 = vrot.slane %v707_v49, 4  ;;  %v966_v59 = vld [vmem:[#allocation2 + $0x24] sm:$0xf]  ;;  %v702_v1 = vor.u32 %v700_v52, %v699_v42  ;;  %v13333_v14 = vld [vmem:[#allocation8 + $0x120] sm:$0xff] }
  0x8d   : > { %372 = vst [vmem:[#allocation2 + $0x8c] sm:$0x1] %v371_v45  ;;  %v1033_v60 = vld [vmem:[#allocation2 + $0x24] sm:$0xf]  ;;  %v967_v61 = vld [vmem:[#allocation2 + $0x28] sm:$0xf]  ;;  %5298 = vmatpush.bf16.msrb.mxu0 %v13333_v14 }
  0x8e   : > { %348 = vst [vmem:[#allocation2 + $0x2c] sm:$0x1] %v347_v50  ;;  %v711_v62 = vsel %vm14196_vm9, %v703_v48, %v710_v54  ;;  %v1034_v63 = vld [vmem:[#allocation2 + $0x28] sm:$0xf]  ;;  %v1148_v2 = vshrl.u32 %v1033_v60, 16  ;;  %v1151_v6 = vshll.u32 %v1033_v60, 16 }
  0x8f   : > { %998 = vst [vmem:[#allocation4 + $0xd8] sm:$0xf] %v966_v59  ;;  %v499_v3 = vld [vmem:[%s14166_s28 + $0x1c] sm:$0xf]  ;;  %v1157_v7 = vshll.u32 %v1034_v63, 16  ;;  %v1161_v12 = vshrl.u32 %v1034_v63, 16 }
  0x90   : > { %v13243_v0 = vld [vmem:[#allocation4 + $0x2d4] sm:$0xf]  ;;  %999 = vst [vmem:[#allocation4 + $0xfc] sm:$0xf] %v967_v61  ;;  %v1150_v11 = vrot.slane %v1148_v2, 4  ;;  %v580_v15 = vrot.slane %v578_v57, 7 }
  0x91   : > { %v11735_v4 = vld [vmem:[#allocation4 + $0x2f4] sm:$0xf0]  ;;  %921 = vst [vmem:[#allocation2 + $0x88] sm:$0xf] %v711_v62  ;;  %v1153_v18 = vrot.slane %v1151_v6, 5  ;;  %v1159_v19 = vrot.slane %v1157_v7, 5 }
  0x92   : > { %v11738_v9 = vor.u32 %v13243_v0, %v11735_v4  ;;  %v918_v17 = vld [vmem:[#allocation2 + $0x84] sm:$0xf]  ;;  %301 = vst [vmem:[#allocation2 + $0x30] sm:$0x1] %v300_v56  ;;  %v1163_v22 = vrot.slane %v1161_v12, 4  ;;  %v581_v23 = vshll.u32 %v498_v53, 16 }
  0x93   : > { %v11447_v10 = vld [vmem:[#allocation4 + $0xb4] sm:$0xf0]  ;;  %v919_v20 = vsel %vm14206_vm10, %v702_v1, %v918_v17  ;;  %v584_v24 = vrot.slane %v580_v15, 4  ;;  %v1154_v27 = vor.u32 %v1153_v18, %v1150_v11  ;;  %v586_v28 = vshrl.u32 %v499_v3, 16  ;;  %v323_v35 = vld [vmem:[#allocation2 + $0x90] sm:$0x1] }
  0x94   : > { %v11450_v16 = vor.u32 %v13171_v58, %v11447_v10  ;;  %5086 = vmatmul.bf16.gmra.mxu3 %v11738_v9  ;;  %v922_v21 = vld [vmem:[#allocation2 + $0x8c] sm:$0x1]  ;;  %920 = vst [vmem:[#allocation2 + $0x84] sm:$0xf] %v919_v20  ;;  %v589_v30 = vshll.u32 %v499_v3, 16  ;;  %v1164_v33 = vor.u32 %v1163_v22, %v1159_v19  ;;  %v583_v38 = vor.u32 %v581_v23, %v580_v15 }
  0x95   : > { %v923_v25 = vsel %vm14178_vm2, %v712_v55, %v922_v21  ;;  %v866_v26 = vld [vmem:[#allocation2 + $0x2c] sm:$0x1]  ;;  %v1155_v37 = vrot.slane %v1154_v27, 4  ;;  %v14351_v41 = vrot.slane %v586_v28, 7  ;;  %v324_v45 = vsel %vm14178_vm2, 0, %v323_v35 }
  0x96   : > { %5046 = vmatmul.bf16.gmra.mxu1 %v11450_v16  ;;  %v11481_v31 = vld [vmem:[#allocation4 + $0xd8] sm:$0xf]  ;;  %924 = vst [vmem:[#allocation2 + $0x8c] sm:$0x1] %v923_v25  ;;  %v867_v32 = vsel %vm14178_vm2, %v576_v51, %v866_v26  ;;  %v1165_v50 = vrot.slane %v1164_v33, 4 }
  0x97   : > { %v13184_v36 = vld [vmem:[#allocation4 + $0xf8] sm:$0xf0]  ;;  %868 = vst [vmem:[#allocation2 + $0x2c] sm:$0x1] %v867_v32  ;;  %v1160_v47 = vsel %vm14218_vm11, %v1155_v37, %v1159_v19  ;;  %v591_v48 = vor.u32 %v589_v30, %v14351_v41  ;;  %v514_v49 = vld [vmem:[%s14166_s28 + $0x58] sm:$0xf] }
  0x98   : > { %v11482_v42 = vor.u32 %v13184_v36, %v11481_v31  ;;  %v983_v44 = vld [vmem:[#allocation2 + $0x88] sm:$0xf]  ;;  %1497 = vst [vmem:[#allocation4 + $0xdc] sm:$0xf] %v1160_v47  ;;  %v714_v52 = vshrl.u32 %v514_v49, 16  ;;  %v717_v10 = vshll.u32 %v514_v49, 16 }
  0x99   : > { %v1058_v39 = vld [vmem:[#allocation2 + $0x88] sm:$0xf]  ;;  %1015 = vst [vmem:[#allocation4 + $0x33c] sm:$0xf] %v983_v44  ;;  %v869_v51 = vld [vmem:[#allocation2 + $0x30] sm:$0xf]  ;;  %v592_v55 = vsel %vm14196_vm9, %v584_v24, %v591_v48 }
  0x9a   : > { %v1349_v43 = vshll.u32 %v1058_v39, 16  ;;  %v1353_v46 = vshrl.u32 %v1058_v39, 16  ;;  %4962 = vmatmul.bf16.gmra.mxu0 %v11482_v42  ;;  %v870_v56 = vsel %vm14206_vm10, %v583_v38, %v869_v51  ;;  %325 = vst [vmem:[#allocation2 + $0x90] sm:$0x1] %v324_v45  ;;  %v515_v57 = vld [vmem:[%s14166_s28 + $0x5c] sm:$0xf] }
  0x9b   : > { %v982_v58 = vld [vmem:[#allocation2 + $0x84] sm:$0xf]  ;;  %871 = vst [vmem:[#allocation2 + $0x30] sm:$0xf] %v870_v56  ;;  %v716_v34 = vrot.slane %v714_v52, 7  ;;  %v13316_v7 = vld [vmem:[#allocation8 + $0x98] sm:$0xff] }
  0x9c   : > { %v1351_v53 = vrot.slane %v1349_v43, 5  ;;  %v1355_v54 = vrot.slane %v1353_v46, 4  ;;  %v1057_v59 = vld [vmem:[#allocation2 + $0x84] sm:$0xf]  ;;  %1014 = vst [vmem:[#allocation4 + $0x318] sm:$0xf] %v982_v58  ;;  %5121 = vmatpush.bf16.msrb.mxu2 %v13316_v7 }
  0x9d   : > { %v1059_v60 = vld [vmem:[#allocation2 + $0x8c] sm:$0x1]  ;;  %v1340_v61 = vshrl.u32 %v1057_v59, 16  ;;  %v1343_v62 = vshll.u32 %v1057_v59, 16  ;;  %872 = vst [vmem:[#allocation2 + $0x34] sm:$0xf] %v592_v55  ;;  %v719_v18 = vor.u32 %v717_v10, %v716_v34 }
  0x9e   : > { %v1356_v63 = vor.u32 %v1355_v54, %v1351_v53  ;;  %v1359_v0 = vshll.u32 %v1059_v60, 16  ;;  %v1035_v1 = vld [vmem:[#allocation2 + $0x2c] sm:$0x1]  ;;  %v722_v11 = vshrl.u32 %v515_v57, 16  ;;  %v725_v16 = vshll.u32 %v515_v57, 16 }
  0x9f   : > { %v1342_v2 = vrot.slane %v1340_v61, 4  ;;  %v1345_v3 = vrot.slane %v1343_v62, 5  ;;  %v1167_v6 = vshll.u32 %v1035_v1, 16  ;;  %v720_v19 = vrot.slane %v716_v34, 4  ;;  %v373_v22 = vld [vmem:[#allocation2 + $0x98] sm:$0x1] }
  0xa0   : > { %v1357_v4 = vrot.slane %v1356_v63, 4  ;;  %v1361_v9 = vrot.slane %v1359_v0, 5  ;;  %v13256_v12 = vld [vmem:[#allocation4 + $0x338] sm:$0xf0]  ;;  %v14366_v20 = vrot.slane %v722_v11, 7  ;;  %v374_v39 = vsel %vm14187_vm5, 0, %v373_v22 }
  0xa1   : > { %v1346_v14 = vor.u32 %v1345_v3, %v1342_v2  ;;  %v1169_v15 = vrot.slane %v1167_v6, 5  ;;  %v925_v21 = vld [vmem:[#allocation2 + $0x90] sm:$0xf]  ;;  %v349_v28 = vld [vmem:[#allocation2 + $0x38] sm:$0x1]  ;;  %v13332_v58 = vld [vmem:[#allocation8 + $0x118] sm:$0xff] }
  0xa2   : > { %v1362_v17 = vsel %vm14218_vm11, %v1357_v4, %v1361_v9  ;;  %v968_v25 = vld [vmem:[#allocation2 + $0x30] sm:$0xf]  ;;  %v727_v27 = vor.u32 %v725_v16, %v14366_v20  ;;  %v926_v33 = vsel %vm14206_vm10, %v719_v18, %v925_v21  ;;  %v13180_v44 = vld [vmem:[#allocation4 + $0xdc] sm:$0xf]  ;;  %v302_v43 = vld [vmem:[#allocation2 + $0x3c] sm:$0x1]  ;;  %5299 = vmatpush.bf16.msrb.mxu0 %v13332_v58 }
  0xa3   : > { %v1347_v23 = vrot.slane %v1346_v14, 4  ;;  %1514 = vst [vmem:[#allocation4 + $0x340] sm:$0xf] %v1362_v17  ;;  %v1170_v24 = vsel %vm14218_vm11, %v1165_v50, %v1169_v15  ;;  %v11769_v26 = vld [vmem:[#allocation4 + $0x318] sm:$0xf]  ;;  %v350_v46 = vsel %vm14187_vm5, 0, %v349_v28 }
  0xa4   : > { %1498 = vst [vmem:[#allocation4 + $0x100] sm:$0xf] %v1170_v24  ;;  %v11770_v30 = vor.u32 %v13256_v12, %v11769_v26  ;;  %v969_v32 = vld [vmem:[#allocation2 + $0x34] sm:$0xf]  ;;  %v1036_v35 = vld [vmem:[#allocation2 + $0x30] sm:$0xf]  ;;  %v728_v36 = vsel %vm14196_vm9, %v720_v19, %v727_v27 }
  0xa5   : > { %v1352_v31 = vsel %vm14218_vm11, %v1347_v23, %v1351_v53  ;;  %1000 = vst [vmem:[#allocation4 + $0x120] sm:$0xf] %v968_v25  ;;  %v1037_v37 = vld [vmem:[#allocation2 + $0x34] sm:$0xf]  ;;  %v1172_v38 = vshrl.u32 %v1036_v35, 16  ;;  %v1175_v42 = vshll.u32 %v1036_v35, 16 }
  0xa6   : > { %1513 = vst [vmem:[#allocation4 + $0x31c] sm:$0xf] %v1352_v31  ;;  %5002 = vmatmul.bf16.gmra.mxu2 %v11770_v30  ;;  %v1181_v45 = vshll.u32 %v1037_v37, 16  ;;  %v1185_v49 = vshrl.u32 %v1037_v37, 16  ;;  %v303_v50 = vsel %vm14178_vm2, 0, %v302_v43  ;;  %v13324_v53 = vld [vmem:[#allocation8 + $0xd8] sm:$0xff] }
  0xa7   : > { %1001 = vst [vmem:[#allocation4 + $0x144] sm:$0xf] %v969_v32  ;;  %v1174_v47 = vrot.slane %v1172_v38, 4  ;;  %v1177_v48 = vrot.slane %v1175_v42, 5  ;;  %v500_v51 = vld [vmem:[%s14166_s28 + $0x20] sm:$0xf]  ;;  %5210 = vmatpush.bf16.msrb.mxu3 %v13324_v53 }
  0xa8   : > { %927 = vst [vmem:[#allocation2 + $0x90] sm:$0xf] %v926_v33  ;;  %v595_v55 = vshrl.u32 %v500_v51, 16  ;;  %v14384_v57 = vrot.slane %v1181_v45, 5  ;;  %v593_v0 = vrot.slane %v14351_v41, 4  ;;  %v1187_v1 = vrot.slane %v1185_v49, 4 }
  0xa9   : > { %928 = vst [vmem:[#allocation2 + $0x94] sm:$0xf] %v728_v36  ;;  %v1178_v54 = vor.u32 %v1177_v48, %v1174_v47  ;;  %v598_v34 = vshll.u32 %v500_v51, 16  ;;  %v729_v4 = vrot.slane %v14366_v20, 4  ;;  %v501_v7 = vld [vmem:[%s14166_s28 + $0x24] sm:$0xf] }
  0xaa   : > { %v11771_v52 = vld [vmem:[#allocation4 + $0x33c] sm:$0xf0]  ;;  %375 = vst [vmem:[#allocation2 + $0x98] sm:$0x1] %v374_v39  ;;  %v597_v62 = vrot.slane %v595_v55, 7  ;;  %v1188_v19 = vor.u32 %v1187_v1, %v14384_v57  ;;  %v603_v25 = vshrl.u32 %v501_v7, 16 }
  0xab   : > { %v11483_v56 = vld [vmem:[#allocation4 + $0xfc] sm:$0xf0]  ;;  %351 = vst [vmem:[#allocation2 + $0x38] sm:$0x1] %v350_v46  ;;  %v1179_v61 = vrot.slane %v1178_v54, 4  ;;  %v606_v30 = vshll.u32 %v501_v7, 16 }
  0xac   : > { %v11486_v59 = vor.u32 %v13180_v44, %v11483_v56  ;;  %v11517_v60 = vld [vmem:[#allocation4 + $0x120] sm:$0xf]  ;;  %304 = vst [vmem:[#allocation2 + $0x3c] sm:$0x1] %v303_v50  ;;  %v601_v9 = vrot.slane %v597_v62, 4  ;;  %v600_v20 = vor.u32 %v598_v34, %v597_v62  ;;  %v14397_v33 = vrot.slane %v603_v25, 7 }
  0xad   : > { %v13252_v63 = vld [vmem:[#allocation4 + $0x31c] sm:$0xf]  ;;  %v1184_v6 = vsel %vm14218_vm11, %v1179_v61, %v14384_v57  ;;  %v326_v14 = vld [vmem:[#allocation2 + $0x9c] sm:$0x1]  ;;  %v516_v38 = vld [vmem:[%s14166_s28 + $0x60] sm:$0xf] }
  0xae   : > { %v11774_v2 = vor.u32 %v13252_v63, %v11771_v52  ;;  %5051 = vmatmul.bf16.gmra.mxu1 %v11486_v59  ;;  %v13193_v3 = vld [vmem:[#allocation4 + $0x140] sm:$0xf0]  ;;  %1499 = vst [vmem:[#allocation4 + $0x124] sm:$0xf] %v1184_v6  ;;  %v327_v35 = vsel %vm14178_vm2, 0, %v326_v14  ;;  %v608_v42 = vor.u32 %v606_v30, %v14397_v33  ;;  %v13315_v45 = vld [vmem:[#allocation8 + $0x90] sm:$0xff] }
  0xaf   : > { %v11518_v10 = vor.u32 %v13193_v3, %v11517_v60  ;;  %v984_v11 = vld [vmem:[#allocation2 + $0x90] sm:$0xf]  ;;  %328 = vst [vmem:[#allocation2 + $0x9c] sm:$0x1] %v327_v35  ;;  %v517_v39 = vld [vmem:[%s14166_s28 + $0x64] sm:$0xf]  ;;  %5122 = vmatpush.bf16.msrb.mxu2 %v13315_v45 }
  0xb0   : > { %v1060_v12 = vld [vmem:[#allocation2 + $0x90] sm:$0xf]  ;;  %5091 = vmatmul.bf16.gmra.mxu3 %v11774_v2  ;;  %v985_v41 = vld [vmem:[#allocation2 + $0x94] sm:$0xf]  ;;  %1016 = vst [vmem:[#allocation4 + $0x360] sm:$0xf] %v984_v11  ;;  %v609_v51 = vsel %vm14196_vm9, %v601_v9, %v608_v42 }
  0xb1   : > { %v1061_v15 = vld [vmem:[#allocation2 + $0x94] sm:$0xf]  ;;  %4967 = vmatmul.bf16.gmra.mxu0 %v11518_v10  ;;  %1017 = vst [vmem:[#allocation4 + $0x384] sm:$0xf] %v985_v41  ;;  %v929_v16 = vld [vmem:[#allocation2 + $0x98] sm:$0x1] }
  0xb2   : > { %v1364_v17 = vshrl.u32 %v1060_v12, 16  ;;  %v1367_v18 = vshll.u32 %v1060_v12, 16  ;;  %v930_v21 = vsel %vm14178_vm2, %v729_v4, %v929_v16  ;;  %v1373_v22 = vshll.u32 %v1061_v15, 16  ;;  %v873_v24 = vld [vmem:[#allocation2 + $0x38] sm:$0x1]  ;;  %v13323_v41 = vld [vmem:[#allocation8 + $0xd0] sm:$0xff] }
  0xb3   : > { %v1377_v23 = vshrl.u32 %v1061_v15, 16  ;;  %931 = vst [vmem:[#allocation2 + $0x98] sm:$0x1] %v930_v21  ;;  %v874_v28 = vsel %vm14178_vm2, %v593_v0, %v873_v24  ;;  %v876_v37 = vld [vmem:[#allocation2 + $0x3c] sm:$0xf]  ;;  %v731_v48 = vshrl.u32 %v516_v38, 16  ;;  %5211 = vmatpush.bf16.msrb.mxu3 %v13323_v41 }
  0xb4   : > { %v1366_v26 = vrot.slane %v1364_v17, 4  ;;  %v1369_v27 = vrot.slane %v1367_v18, 5  ;;  %v1375_v31 = vrot.slane %v1373_v22, 5  ;;  %875 = vst [vmem:[#allocation2 + $0x38] sm:$0x1] %v874_v28  ;;  %v877_v44 = vsel %vm14206_vm10, %v600_v20, %v876_v37 }
  0xb5   : > { %v1379_v32 = vrot.slane %v1377_v23, 4  ;;  %878 = vst [vmem:[#allocation2 + $0x3c] sm:$0xf] %v877_v44  ;;  %v1189_v50 = vrot.slane %v1188_v19, 4  ;;  %v734_v52 = vshll.u32 %v516_v38, 16  ;;  %v739_v53 = vshrl.u32 %v517_v39, 16 }
  0xb6   : > { %v1370_v36 = vor.u32 %v1369_v27, %v1366_v26  ;;  %879 = vst [vmem:[#allocation2 + $0x40] sm:$0xf] %v609_v51  ;;  %v733_v56 = vrot.slane %v731_v48, 7  ;;  %v742_v57 = vshll.u32 %v517_v39, 16  ;;  %v376_v58 = vld [vmem:[#allocation2 + $0xa4] sm:$0x1] }
  0xb7   : > { %v11805_v43 = vld [vmem:[#allocation4 + $0x360] sm:$0xf]  ;;  %v1380_v47 = vor.u32 %v1379_v32, %v1375_v31  ;;  %v741_v60 = vrot.slane %v739_v53, 7  ;;  %v377_v61 = vsel %vm14187_vm5, 0, %v376_v58  ;;  %v932_v4 = vld [vmem:[#allocation2 + $0x9c] sm:$0xf] }
  0xb8   : > { %v1371_v46 = vrot.slane %v1370_v36, 4  ;;  %v13265_v49 = vld [vmem:[#allocation4 + $0x380] sm:$0xf0]  ;;  %v736_v1 = vor.u32 %v734_v52, %v733_v56  ;;  %378 = vst [vmem:[#allocation2 + $0xa4] sm:$0x1] %v377_v61  ;;  %v737_v2 = vrot.slane %v733_v56, 4 }
  0xb9   : > { %v11806_v54 = vor.u32 %v13265_v49, %v11805_v43  ;;  %v1381_v62 = vrot.slane %v1380_v47, 4  ;;  %v744_v3 = vor.u32 %v742_v57, %v741_v60  ;;  %v352_v6 = vld [vmem:[#allocation2 + $0x44] sm:$0x1]  ;;  %v305_v10 = vld [vmem:[#allocation2 + $0x48] sm:$0x1]  ;;  %v746_v16 = vrot.slane %v741_v60, 4 }
  0xba   : > { %v1376_v55 = vsel %vm14218_vm11, %v1371_v46, %v1375_v31  ;;  %v1062_v59 = vld [vmem:[#allocation2 + $0x98] sm:$0x1]  ;;  %v933_v9 = vsel %vm14206_vm10, %v736_v1, %v932_v4  ;;  %v610_v23 = vrot.slane %v14397_v33, 4  ;;  %v353_v24 = vsel %vm14187_vm5, 0, %v352_v6  ;;  %v13189_v37 = vld [vmem:[#allocation4 + $0x124] sm:$0xf] }
  0xbb   : > { %1515 = vst [vmem:[#allocation4 + $0x364] sm:$0xf] %v1376_v55  ;;  %5007 = vmatmul.bf16.gmra.mxu2 %v11806_v54  ;;  %v1383_v63 = vshll.u32 %v1062_v59, 16  ;;  %v1038_v0 = vld [vmem:[#allocation2 + $0x38] sm:$0x1]  ;;  %v745_v21 = vsel %vm14196_vm9, %v737_v2, %v744_v3  ;;  %v306_v30 = vsel %vm14178_vm2, 0, %v305_v10 }
  0xbc   : > { %v1191_v34 = vshll.u32 %v1038_v0, 16  ;;  %v14415_v11 = vld [vmem:[%s14166_s28 + $0x28] sm:$0xf]  ;;  %v970_v14 = vld [vmem:[#allocation2 + $0x3c] sm:$0xf]  ;;  %v13331_v53 = vld [vmem:[#allocation8 + $0x110] sm:$0xff] }
  0xbd   : > { %v1385_v7 = vrot.slane %v1383_v63, 5  ;;  %934 = vst [vmem:[#allocation2 + $0x9c] sm:$0xf] %v933_v9  ;;  %v1039_v17 = vld [vmem:[#allocation2 + $0x3c] sm:$0xf]  ;;  %v612_v18 = vshrl.u32 %v14415_v11, 16  ;;  %5300 = vmatpush.bf16.msrb.mxu0 %v13331_v53 }
  0xbe   : > { %v1193_v12 = vrot.slane %v1191_v34, 5  ;;  %1002 = vst [vmem:[#allocation4 + $0x168] sm:$0xf] %v970_v14  ;;  %v971_v20 = vld [vmem:[#allocation2 + $0x40] sm:$0xf]  ;;  %v1196_v25 = vshrl.u32 %v1039_v17, 16 }
  0xbf   : > { %v1386_v15 = vsel %vm14218_vm11, %v1381_v62, %v1385_v7  ;;  %v1040_v22 = vld [vmem:[#allocation2 + $0x40] sm:$0xf]  ;;  %v1199_v26 = vshll.u32 %v1039_v17, 16  ;;  %1003 = vst [vmem:[#allocation4 + $0x18c] sm:$0xf] %v971_v20  ;;  %v14434_v39 = vrot.slane %v612_v18, 7 }
  0xc0   : > { %1516 = vst [vmem:[#allocation4 + $0x388] sm:$0xf] %v1386_v15  ;;  %v1194_v19 = vsel %vm14218_vm11, %v1189_v50, %v1193_v12  ;;  %v936_v27 = vld [vmem:[#allocation2 + $0xa4] sm:$0x1]  ;;  %v1205_v28 = vshll.u32 %v1040_v22, 16  ;;  %v1198_v35 = vrot.slane %v1196_v25, 4 }
  0xc1   : > { %1500 = vst [vmem:[#allocation4 + $0x148] sm:$0xf] %v1194_v19  ;;  %v937_v32 = vsel %vm14178_vm2, %v746_v16, %v936_v27  ;;  %v1201_v36 = vrot.slane %v1199_v26, 5  ;;  %v1209_v42 = vshrl.u32 %v1040_v22, 16  ;;  %v503_v44 = vld [vmem:[%s14166_s28 + $0x2c] sm:$0xf] }
  0xc2   : > { %v13261_v31 = vld [vmem:[#allocation4 + $0x364] sm:$0xf]  ;;  %935 = vst [vmem:[#allocation2 + $0xa0] sm:$0xf] %v745_v21  ;;  %v14431_v38 = vrot.slane %v1205_v28, 5  ;;  %v615_v45 = vshll.u32 %v14415_v11, 16 }
  0xc3   : > { %938 = vst [vmem:[#allocation2 + $0xa4] sm:$0x1] %v937_v32  ;;  %v1202_v47 = vor.u32 %v1201_v36, %v1198_v35  ;;  %v14437_v58 = vrot.slane %v1209_v42, 4  ;;  %v618_v62 = vrot.slane %v14434_v39, 4  ;;  %v620_v63 = vshrl.u32 %v503_v44, 16  ;;  %v13314_v19 = vld [vmem:[#allocation8 + $0x88] sm:$0xff] }
  0xc4   : > { %v986_v43 = vld [vmem:[#allocation2 + $0x9c] sm:$0xf]  ;;  %354 = vst [vmem:[#allocation2 + $0x44] sm:$0x1] %v353_v24  ;;  %v329_v0 = vld [vmem:[#allocation2 + $0xa8] sm:$0x1]  ;;  %v617_v9 = vor.u32 %v615_v45, %v14434_v39  ;;  %5123 = vmatpush.bf16.msrb.mxu2 %v13314_v19 }
  0xc5   : > { %v1063_v46 = vld [vmem:[#allocation2 + $0x9c] sm:$0xf]  ;;  %v11553_v48 = vld [vmem:[#allocation4 + $0x168] sm:$0xf]  ;;  %1018 = vst [vmem:[#allocation4 + $0x3a8] sm:$0xf] %v986_v43  ;;  %v1212_v36 = vor.u32 %v14437_v58, %v14431_v38 }
  0xc6   : > { %v1388_v49 = vshrl.u32 %v1063_v46, 16  ;;  %v1391_v50 = vshll.u32 %v1063_v46, 16  ;;  %v1203_v52 = vrot.slane %v1202_v47, 4  ;;  %307 = vst [vmem:[#allocation2 + $0x48] sm:$0x1] %v306_v30  ;;  %v14444_v14 = vrot.slane %v620_v63, 7 }
  0xc7   : > { %v11807_v51 = vld [vmem:[#allocation4 + $0x384] sm:$0xf0]  ;;  %v13202_v60 = vld [vmem:[#allocation4 + $0x188] sm:$0xf0]  ;;  %v623_v41 = vshll.u32 %v503_v44, 16  ;;  %v330_v18 = vsel %vm14178_vm2, 0, %v329_v0 }
  0xc8   : > { %v11810_v54 = vor.u32 %v13261_v31, %v11807_v51  ;;  %v11519_v55 = vld [vmem:[#allocation4 + $0x144] sm:$0xf0]  ;;  %v1390_v56 = vrot.slane %v1388_v49, 4  ;;  %v1393_v57 = vrot.slane %v1391_v50, 5  ;;  %v1208_v61 = vsel %vm14218_vm11, %v1203_v52, %v14431_v38  ;;  %331 = vst [vmem:[#allocation2 + $0xa8] sm:$0x1] %v330_v18 }
  0xc9   : > { %v11522_v59 = vor.u32 %v13189_v37, %v11519_v55  ;;  %v11554_v1 = vor.u32 %v13202_v60, %v11553_v48  ;;  %v987_v34 = vld [vmem:[#allocation2 + $0xa0] sm:$0xf]  ;;  %1501 = vst [vmem:[#allocation4 + $0x16c] sm:$0xf] %v1208_v61  ;;  %v625_v22 = vor.u32 %v623_v41, %v14444_v14  ;;  %v518_v27 = vld [vmem:[%s14166_s28 + $0x68] sm:$0xf] }
  0xca   : > { %5096 = vmatmul.bf16.gmra.mxu3 %v11810_v54  ;;  %v1064_v2 = vld [vmem:[#allocation2 + $0xa0] sm:$0xf]  ;;  %v1394_v3 = vor.u32 %v1393_v57, %v1390_v56  ;;  %1019 = vst [vmem:[#allocation4 + $0x3cc] sm:$0xf] %v987_v34  ;;  %v1065_v4 = vld [vmem:[#allocation2 + $0xa4] sm:$0x1] }
  0xcb   : > { %5056 = vmatmul.bf16.gmra.mxu1 %v11522_v59  ;;  %v1397_v6 = vshll.u32 %v1064_v2, 16  ;;  %v1401_v7 = vshrl.u32 %v1064_v2, 16  ;;  %4972 = vmatmul.bf16.gmra.mxu0 %v11554_v1  ;;  %v1407_v11 = vshll.u32 %v1065_v4, 16  ;;  %v880_v12 = vld [vmem:[#allocation2 + $0x44] sm:$0x1]  ;;  %v626_v28 = vsel %vm14196_vm9, %v618_v62, %v625_v22  ;;  %v13322_v2 = vld [vmem:[#allocation8 + $0xc8] sm:$0xff] }
  0xcc   : > { %v1395_v10 = vrot.slane %v1394_v3, 4  ;;  %v881_v17 = vsel %vm14178_vm2, %v610_v23, %v880_v12  ;;  %v11841_v20 = vld [vmem:[#allocation4 + $0x3a8] sm:$0xf]  ;;  %v519_v23 = vld [vmem:[%s14166_s28 + $0x6c] sm:$0xf]  ;;  %v748_v30 = vshrl.u32 %v518_v27, 16  ;;  %5212 = vmatpush.bf16.msrb.mxu3 %v13322_v2 }
  0xcd   : > { %v1399_v15 = vrot.slane %v1397_v6, 5  ;;  %v1403_v16 = vrot.slane %v1401_v7, 4  ;;  %v1409_v21 = vrot.slane %v1407_v11, 5  ;;  %882 = vst [vmem:[#allocation2 + $0x44] sm:$0x1] %v881_v17  ;;  %v751_v31 = vshll.u32 %v518_v27, 16 }
  0xce   : > { %v883_v24 = vld [vmem:[#allocation2 + $0x48] sm:$0xf]  ;;  %v756_v32 = vshrl.u32 %v519_v23, 16  ;;  %v759_v37 = vshll.u32 %v519_v23, 16  ;;  %886 = vst [vmem:[#allocation2 + $0x4c] sm:$0xf] %v626_v28 }
  0xcf   : > { %v1400_v25 = vsel %vm14218_vm11, %v1395_v10, %v1399_v15  ;;  %v1404_v26 = vor.u32 %v1403_v16, %v1399_v15  ;;  %v884_v33 = vsel %vm14206_vm10, %v617_v9, %v883_v24  ;;  %v750_v44 = vrot.slane %v748_v30, 7  ;;  %v379_v46 = vld [vmem:[#allocation2 + $0xb0] sm:$0x1]  ;;  %v308_v48 = vld [vmem:[#allocation2 + $0x54] sm:$0x1]  ;;  %v13330_v19 = vld [vmem:[#allocation8 + $0x108] sm:$0xff] }
  0xd0   : > { %1517 = vst [vmem:[#allocation4 + $0x3ac] sm:$0xf] %v1400_v25  ;;  %v758_v39 = vrot.slane %v756_v32, 7  ;;  %v355_v47 = vld [vmem:[#allocation2 + $0x50] sm:$0x1]  ;;  %v1213_v53 = vrot.slane %v1212_v36, 4  ;;  %5301 = vmatpush.bf16.msrb.mxu0 %v13330_v19 }
  0xd1   : > { %v1405_v35 = vrot.slane %v1404_v26, 4  ;;  %885 = vst [vmem:[#allocation2 + $0x48] sm:$0xf] %v884_v33  ;;  %v13274_v42 = vld [vmem:[#allocation4 + $0x3c8] sm:$0xf0]  ;;  %v753_v49 = vor.u32 %v751_v31, %v750_v44  ;;  %v754_v50 = vrot.slane %v750_v44, 4 }
  0xd2   : > { %v11842_v45 = vor.u32 %v13274_v42, %v11841_v20  ;;  %v761_v51 = vor.u32 %v759_v37, %v758_v39  ;;  %v14466_v52 = vld [vmem:[%s14166_s28 + $0x30] sm:$0xf]  ;;  %v627_v54 = vrot.slane %v14444_v14, 4  ;;  %v763_v55 = vrot.slane %v758_v39, 4  ;;  %v939_v59 = vld [vmem:[#allocation2 + $0xa8] sm:$0xf] }
  0xd3   : > { %v1410_v43 = vsel %vm14218_vm11, %v1405_v35, %v1409_v21  ;;  %v380_v56 = vsel %vm14187_vm5, 0, %v379_v46  ;;  %v356_v60 = vsel %vm14187_vm5, 0, %v355_v47  ;;  %v940_v62 = vsel %vm14206_vm10, %v753_v49, %v939_v59  ;;  %v14481_v6 = vld [vmem:[%s14166_s28 + $0x34] sm:$0xf]  ;;  %v13344_v20 = vld [vmem:[#allocation8 + $0x178] sm:$0xff] }
  0xd4   : > { %1518 = vst [vmem:[#allocation4 + $0x3d0] sm:$0xf] %v1410_v43  ;;  %5012 = vmatmul.bf16.gmra.mxu2 %v11842_v45  ;;  %v1041_v38 = vld [vmem:[#allocation2 + $0x44] sm:$0x1]  ;;  %v762_v58 = vsel %vm14196_vm9, %v754_v50, %v761_v51  ;;  %v309_v63 = vsel %vm14178_vm2, 0, %v308_v48  ;;  %v629_v0 = vshrl.u32 %v14466_v52, 16  ;;  %5384 = vmatpush.bf16.msrb.mxu1 %v13344_v20 }
  0xd5   : > { %v1215_v57 = vshll.u32 %v1041_v38, 16  ;;  %381 = vst [vmem:[#allocation2 + $0xb0] sm:$0x1] %v380_v56  ;;  %v973_v3 = vld [vmem:[#allocation2 + $0x4c] sm:$0xf]  ;;  %v632_v15 = vshll.u32 %v14466_v52, 16 }
  0xd6   : > { %942 = vst [vmem:[#allocation2 + $0xac] sm:$0xf] %v762_v58  ;;  %v1043_v9 = vld [vmem:[#allocation2 + $0x4c] sm:$0xf]  ;;  %v13198_v25 = vld [vmem:[#allocation4 + $0x16c] sm:$0xf] }
  0xd7   : > { %v13270_v61 = vld [vmem:[#allocation4 + $0x3ac] sm:$0xf]  ;;  %v1217_v1 = vrot.slane %v1215_v57, 5  ;;  %941 = vst [vmem:[#allocation2 + $0xa8] sm:$0xf] %v940_v62  ;;  %v1229_v41 = vshll.u32 %v1043_v9, 16 }
  0xd8   : > { %v972_v34 = vld [vmem:[#allocation2 + $0x48] sm:$0xf]  ;;  %1005 = vst [vmem:[#allocation4 + $0x1d4] sm:$0xf] %v973_v3  ;;  %v1233_v24 = vshrl.u32 %v1043_v9, 16  ;;  %v631_v28 = vrot.slane %v629_v0, 7 }
  0xd9   : > { %1004 = vst [vmem:[#allocation4 + $0x1b0] sm:$0xf] %v972_v34  ;;  %v1042_v4 = vld [vmem:[#allocation2 + $0x48] sm:$0xf]  ;;  %v1218_v7 = vsel %vm14218_vm11, %v1213_v53, %v1217_v1  ;;  %v14486_v22 = vrot.slane %v1229_v41, 5  ;;  %v637_v30 = vshrl.u32 %v14481_v6, 16 }
  0xda   : > { %v1220_v10 = vshrl.u32 %v1042_v4, 16  ;;  %v1223_v11 = vshll.u32 %v1042_v4, 16  ;;  %1502 = vst [vmem:[#allocation4 + $0x190] sm:$0xf] %v1218_v7  ;;  %v634_v45 = vor.u32 %v632_v15, %v631_v28  ;;  %v1235_v53 = vrot.slane %v1233_v24, 4  ;;  %v13343_v20 = vld [vmem:[#allocation8 + $0x170] sm:$0xff] }
  0xdb   : > { %v11843_v12 = vld [vmem:[#allocation4 + $0x3cc] sm:$0xf0]  ;;  %357 = vst [vmem:[#allocation2 + $0x50] sm:$0x1] %v356_v60  ;;  %v635_v58 = vrot.slane %v631_v28, 4  ;;  %v14498_v62 = vrot.slane %v637_v30, 7  ;;  %5385 = vmatpush.bf16.msrb.mxu1 %v13343_v20 }
  0xdc   : > { %v11846_v16 = vor.u32 %v13270_v61, %v11843_v12  ;;  %v1222_v17 = vrot.slane %v1220_v10, 4  ;;  %v1225_v18 = vrot.slane %v1223_v11, 5  ;;  %v943_v21 = vld [vmem:[#allocation2 + $0xb0] sm:$0x1]  ;;  %310 = vst [vmem:[#allocation2 + $0x54] sm:$0x1] %v309_v63  ;;  %v1236_v10 = vor.u32 %v1235_v53, %v14486_v22 }
  0xdd   : > { %v989_v26 = vld [vmem:[#allocation2 + $0xac] sm:$0xf]  ;;  %v944_v33 = vsel %vm14178_vm2, %v763_v55, %v943_v21  ;;  %v332_v60 = vld [vmem:[#allocation2 + $0xb4] sm:$0x1]  ;;  %v640_v63 = vshll.u32 %v14481_v6, 16 }
  0xde   : > { %5101 = vmatmul.bf16.gmra.mxu3 %v11846_v16  ;;  %v1067_v27 = vld [vmem:[#allocation2 + $0xac] sm:$0xf]  ;;  %v1226_v23 = vor.u32 %v1225_v18, %v1222_v17  ;;  %v988_v31 = vld [vmem:[#allocation2 + $0xa8] sm:$0xf]  ;;  %1021 = vst [vmem:[#allocation4 + $0x414] sm:$0xf] %v989_v26 }
  0xdf   : > { %v1066_v32 = vld [vmem:[#allocation2 + $0xa8] sm:$0xf]  ;;  %1020 = vst [vmem:[#allocation4 + $0x3f0] sm:$0xf] %v988_v31  ;;  %v13211_v42 = vld [vmem:[#allocation4 + $0x1d0] sm:$0xf0]  ;;  %v642_v4 = vor.u32 %v640_v63, %v14498_v62 }
  0xe0   : > { %v11589_v35 = vld [vmem:[#allocation4 + $0x1b0] sm:$0xf]  ;;  %v1412_v36 = vshrl.u32 %v1066_v32, 16  ;;  %v1415_v37 = vshll.u32 %v1066_v32, 16  ;;  %945 = vst [vmem:[#allocation2 + $0xb0] sm:$0x1] %v944_v33 }
  0xe1   : > { %v1421_v44 = vshll.u32 %v1067_v27, 16  ;;  %v1425_v39 = vshrl.u32 %v1067_v27, 16  ;;  %v11555_v43 = vld [vmem:[#allocation4 + $0x18c] sm:$0xf0]  ;;  %v11590_v46 = vor.u32 %v13211_v42, %v11589_v35  ;;  %v1227_v49 = vrot.slane %v1226_v23, 4  ;;  %v13313_v17 = vld [vmem:[#allocation8 + $0x80] sm:$0xff] }
  0xe2   : > { %v1414_v47 = vrot.slane %v1412_v36, 4  ;;  %v1417_v48 = vrot.slane %v1415_v37, 5  ;;  %v11558_v50 = vor.u32 %v13198_v25, %v11555_v43  ;;  %v887_v38 = vld [vmem:[#allocation2 + $0x50] sm:$0x1]  ;;  %v520_v0 = vld [vmem:[%s14166_s28 + $0x70] sm:$0xf]  ;;  %v643_v41 = vsel %vm14196_vm9, %v635_v58, %v642_v4  ;;  %5124 = vmatpush.bf16.msrb.mxu2 %v13313_v17 }
  0xe3   : > { %v1423_v51 = vrot.slane %v1421_v44, 5  ;;  %v1427_v52 = vrot.slane %v1425_v39, 4  ;;  %4977 = vmatmul.bf16.gmra.mxu0 %v11590_v46  ;;  %v888_v56 = vsel %vm14178_vm2, %v627_v54, %v887_v38  ;;  %v1232_v57 = vsel %vm14218_vm11, %v1227_v49, %v14486_v22  ;;  %v890_v59 = vld [vmem:[#allocation2 + $0x54] sm:$0xf]  ;;  %v521_v11 = vld [vmem:[%s14166_s28 + $0x74] sm:$0xf] }
  0xe4   : > { %v1418_v55 = vor.u32 %v1417_v48, %v1414_v47  ;;  %5061 = vmatmul.bf16.gmra.mxu1 %v11558_v50  ;;  %889 = vst [vmem:[#allocation2 + $0x50] sm:$0x1] %v888_v56  ;;  %v891_v14 = vsel %vm14206_vm10, %v634_v45, %v890_v59  ;;  %v333_v34 = vsel %vm14178_vm2, 0, %v332_v60  ;;  %v765_v15 = vshrl.u32 %v520_v0, 16  ;;  %v382_v25 = vld [vmem:[#allocation2 + $0xbc] sm:$0x1] }
  0xe5   : > { %v1428_v61 = vor.u32 %v1427_v52, %v1423_v51  ;;  %v13283_v54 = vld [vmem:[#allocation4 + $0x410] sm:$0xf0]  ;;  %1503 = vst [vmem:[#allocation4 + $0x1b4] sm:$0xf] %v1232_v57  ;;  %v768_v16 = vshll.u32 %v520_v0, 16  ;;  %v773_v18 = vshrl.u32 %v521_v11, 16 }
  0xe6   : > { %v1419_v1 = vrot.slane %v1418_v55, 4  ;;  %v11877_v2 = vld [vmem:[#allocation4 + $0x3f0] sm:$0xf]  ;;  %892 = vst [vmem:[#allocation2 + $0x54] sm:$0xf] %v891_v14  ;;  %v776_v19 = vshll.u32 %v521_v11, 16 }
  0xe7   : > { %v1429_v3 = vrot.slane %v1428_v61, 4  ;;  %v11878_v7 = vor.u32 %v13283_v54, %v11877_v2  ;;  %v1068_v9 = vld [vmem:[#allocation2 + $0xb0] sm:$0x1]  ;;  %334 = vst [vmem:[#allocation2 + $0xb4] sm:$0x1] %v333_v34  ;;  %v767_v24 = vrot.slane %v765_v15, 7  ;;  %v4948_v34 = vpop.f32.mrf.mxu0 }
  0xe8   : > { %v1424_v6 = vsel %vm14218_vm11, %v1419_v1, %v1423_v51  ;;  %v1431_v12 = vshll.u32 %v1068_v9, 16  ;;  %893 = vst [vmem:[#allocation2 + $0x58] sm:$0xf] %v643_v41  ;;  %v358_v22 = vld [vmem:[#allocation2 + $0x5c] sm:$0x1]  ;;  %v1237_v33 = vrot.slane %v1236_v10, 4 }
  0xe9   : > { %1519 = vst [vmem:[#allocation4 + $0x3f4] sm:$0xf] %v1424_v6  ;;  %5017 = vmatmul.bf16.gmra.mxu2 %v11878_v7  ;;  %v775_v27 = vrot.slane %v773_v18, 7  ;;  %v383_v23 = vsel %vm14187_vm5, 0, %v382_v25  ;;  %v359_v28 = vsel %vm14187_vm5, 0, %v358_v22  ;;  %v770_v32 = vor.u32 %v768_v16, %v767_v24  ;;  %v13321_v39 = vld [vmem:[#allocation8 + $0xc0] sm:$0xff]  ;;  %v5037_v25 = vpop.f32.mrf.mxu1 }
  0xea   : > { %v1433_v21 = vrot.slane %v1431_v12, 5  ;;  %v771_v35 = vrot.slane %v767_v24, 4  ;;  %384 = vst [vmem:[#allocation2 + $0xbc] sm:$0x1] %v383_v23  ;;  %v644_v45 = vrot.slane %v14498_v62, 4  ;;  %5213 = vmatpush.bf16.msrb.mxu3 %v13321_v39  ;;  %v13342_v57 = vld [vmem:[#allocation8 + $0x168] sm:$0xff]  ;;  %v4988_v24 = vpop.f32.mrf.mxu2 }
  0xeb   : > { %v1044_v26 = vld [vmem:[#allocation2 + $0x50] sm:$0x1]  ;;  %v778_v37 = vor.u32 %v776_v19, %v775_v27  ;;  %v780_v43 = vrot.slane %v775_v27, 4  ;;  %360 = vst [vmem:[#allocation2 + $0x5c] sm:$0x1] %v359_v28  ;;  %5386 = vmatpush.bf16.msrb.mxu1 %v13342_v57  ;;  %v13340_v10 = vld [vmem:[#allocation8 + $0x158] sm:$0xff] }
  0xec   : > { %v1434_v30 = vsel %vm14218_vm11, %v1429_v3, %v1433_v21  ;;  %v1239_v31 = vshll.u32 %v1044_v26, 16  ;;  %v13341_v58 = vld [vmem:[#allocation8 + $0x160] sm:$0xff]  ;;  %v13207_v14 = vld [vmem:[#allocation4 + $0x1b4] sm:$0xf]  ;;  %v14531_v7 = vld [vmem:[%s16971_s3] ss:$0 sm:$0xff] }
  0xed   : > { %1520 = vst [vmem:[#allocation4 + $0x418] sm:$0xf] %v1434_v30  ;;  %v974_v36 = vld [vmem:[#allocation2 + $0x54] sm:$0xf]  ;;  %v779_v51 = vsel %vm14196_vm9, %v771_v35, %v778_v37  ;;  %v1523_v11 = vld [vmem:[#allocation2] sm:$0xe]  ;;  %v4949_v17 = vadd.f32 %v14531_v7, %v4948_v34 }
  0xee   : > { %v1241_v42 = vrot.slane %v1239_v31, 5  ;;  %1006 = vst [vmem:[#allocation4 + $0x1f8] sm:$0xf] %v974_v36  ;;  %v946_v44 = vld [vmem:[#allocation2 + $0xb4] sm:$0xf]  ;;  %v11323_v18 = vrot.slane %v1523_v11, 9 }
  0xef   : > { %v947_v46 = vsel %vm14206_vm10, %v770_v32, %v946_v44  ;;  %v1045_v47 = vld [vmem:[#allocation2 + $0x54] sm:$0xf]  ;;  %v975_v50 = vld [vmem:[#allocation2 + $0x58] sm:$0xf]  ;;  %949 = vst [vmem:[#allocation2 + $0xb8] sm:$0xf] %v779_v51  ;;  %5387 = vmatpush.bf16.msrb.mxu1 %v13341_v58  ;;  %v14540_v36 = vadd.f32 %v5037_v25, %v4949_v17  ;;  %v14549_v57 = vpop.f32.mrf.mxu0  ;;  %v5077_v58 = vpop.f32.mrf.mxu3 }
  0xf0   : > { %v13279_v48 = vld [vmem:[#allocation4 + $0x3f4] sm:$0xf]  ;;  %v1242_v49 = vsel %vm14218_vm11, %v1237_v33, %v1241_v42  ;;  %948 = vst [vmem:[#allocation2 + $0xb4] sm:$0xf] %v947_v46  ;;  %v1046_v52 = vld [vmem:[#allocation2 + $0x58] sm:$0xf] }
  0xf1   : > { %1504 = vst [vmem:[#allocation4 + $0x1d8] sm:$0xf] %v1242_v49  ;;  %v1244_v38 = vshrl.u32 %v1045_v47, 16  ;;  %v1247_v53 = vshll.u32 %v1045_v47, 16  ;;  %v1253_v55 = vshll.u32 %v1046_v52, 16  ;;  %v1257_v56 = vshrl.u32 %v1046_v52, 16 }
  0xf2   : > { %1007 = vst [vmem:[#allocation4 + $0x21c] sm:$0xf] %v975_v50  ;;  %v13329_v59 = vld [vmem:[#allocation8 + $0x100] sm:$0xff]  ;;  %v950_v60 = vld [vmem:[#allocation2 + $0xbc] sm:$0x1]  ;;  %v13352_v23 = vld [vmem:[#allocation8 + $0x1b8] sm:$0xff] }
  0xf3   : > { %v1246_v61 = vrot.slane %v1244_v38, 4  ;;  %v1249_v62 = vrot.slane %v1247_v53, 5  ;;  %v951_v0 = vsel %vm14178_vm2, %v780_v43, %v950_v60  ;;  %v1255_v54 = vrot.slane %v1253_v55, 5  ;;  %5302 = vmatpush.bf16.msrb.mxu0 %v13329_v59  ;;  %v894_v9 = vld [vmem:[#allocation2 + $0x5c] sm:$0x1]  ;;  %5473 = vmatpush.bf16.msra.mxu2 %v13352_v23  ;;  %v13339_v11 = vld [vmem:[#allocation8 + $0x150] sm:$0xff] }
  0xf4   : > { %v11879_v63 = vld [vmem:[#allocation4 + $0x414] sm:$0xf0]  ;;  %v1259_v1 = vrot.slane %v1257_v56, 4  ;;  %952 = vst [vmem:[#allocation2 + $0xbc] sm:$0x1] %v951_v0  ;;  %v895_v15 = vsel %vm14178_vm2, %v644_v45, %v894_v9  ;;  %5388 = vmatpush.bf16.msrb.mxu1 %v13340_v10  ;;  %v4989_v56 = vadd.f32 %v14531_v7, %v4988_v24 }
  0xf5   : > { %v11882_v2 = vor.u32 %v13279_v48, %v11879_v63  ;;  %v11625_v3 = vld [vmem:[#allocation4 + $0x1f8] sm:$0xf]  ;;  %v1250_v4 = vor.u32 %v1249_v62, %v1246_v61  ;;  %896 = vst [vmem:[#allocation2 + $0x5c] sm:$0x1] %v895_v15  ;;  %v1524_v44 = vld [vmem:[#allocation2 + $0x4] sm:$0xf] }
  0xf6   : > { %v1260_v6 = vor.u32 %v1259_v1, %v1255_v54  ;;  %v991_v30 = vld [vmem:[#allocation2 + $0xb8] sm:$0xf]  ;;  %v1525_v43 = vld [vmem:[#allocation2 + $0x8] sm:$0x1]  ;;  %v1624_v50 = vrot.slane %v1524_v44, 5 }
  0xf7   : > { %5106 = vmatmul.bf16.gmra.mxu3 %v11882_v2  ;;  %v990_v12 = vld [vmem:[#allocation2 + $0xb4] sm:$0xf]  ;;  %v1251_v16 = vrot.slane %v1250_v4, 4  ;;  %v1070_v31 = vld [vmem:[#allocation2 + $0xb8] sm:$0xf]  ;;  %v1627_v38 = vrot.slane %v1525_v43, 5  ;;  %v14555_v2 = vpop.f32.mrf.mxu2  ;;  %v4953_v44 = vpop.f32.mrf.mxu0 }
  0xf8   : > { %v1069_v41 = vld [vmem:[#allocation2 + $0xb4] sm:$0xf]  ;;  %v11591_v19 = vld [vmem:[#allocation4 + $0x1d4] sm:$0xf0]  ;;  %1022 = vst [vmem:[#allocation4 + $0x438] sm:$0xf] %v990_v12  ;;  %v1625_v62 = vsel %vm14544_vm14, %v11323_v18, %v1624_v50  ;;  %5389 = vmatpush.bf16.msrb.mxu1 %v13339_v11 }
  0xf9   : > { %v1436_v20 = vshrl.u32 %v1069_v41, 16  ;;  %v1439_v21 = vshll.u32 %v1069_v41, 16  ;;  %v11594_v22 = vor.u32 %v13207_v14, %v11591_v19  ;;  %v13220_v26 = vld [vmem:[#allocation4 + $0x218] sm:$0xf0]  ;;  %v1256_v33 = vsel %vm14218_vm11, %v1251_v16, %v1255_v54  ;;  %1023 = vst [vmem:[#allocation4 + $0x45c] sm:$0xf] %v991_v30 }
  0xfa   : > { %v14538_v27 = vrot.slane %v1260_v6, 4  ;;  %v11626_v28 = vor.u32 %v13220_v26, %v11625_v3  ;;  %v1445_v37 = vshll.u32 %v1070_v31, 16  ;;  %v1449_v42 = vshrl.u32 %v1070_v31, 16  ;;  %1505 = vst [vmem:[#allocation4 + $0x1fc] sm:$0xf] %v1256_v33  ;;  %v14557_v3 = vpop.f32.mrf.mxu1 }
  0xfb   : > { %v1438_v32 = vrot.slane %v1436_v20, 4  ;;  %v1441_v35 = vrot.slane %v1439_v21, 5  ;;  %5066 = vmatmul.bf16.gmra.mxu1 %v11594_v22  ;;  %v1071_v39 = vld [vmem:[#allocation2 + $0xbc] sm:$0x1]  ;;  %v6796_v51 = vld [vmem:[#allocation3] sm:$0xe]  ;;  %v14561_v16 = vadd.f32 %v5077_v58, %v4989_v56 }
  0xfc   : > { %4982 = vmatmul.bf16.gmra.mxu0 %v11626_v28  ;;  %v1447_v47 = vrot.slane %v1445_v37, 5  ;;  %v1451_v48 = vrot.slane %v1449_v42, 4  ;;  %v1455_v49 = vshll.u32 %v1071_v39, 16  ;;  %v6797_v53 = vld [vmem:[#allocation3 + $0x4] sm:$0xf]  ;;  %v1626_v63 = vrot.slane %v1624_v50, 4  ;;  %v14570_v39 = vpop.f32.mrf.mxu3 }
  0xfd   : > { %v1442_v45 = vor.u32 %v1441_v35, %v1438_v32  ;;  %v6798_v55 = vld [vmem:[#allocation3 + $0x8] sm:$0x1]  ;;  %v1862_v14 = vld [vmem:[#allocation2 + $0xc] sm:$0xf]  ;;  %v1047_v54 = vld [vmem:[#allocation2 + $0x5c] sm:$0x1] }
  0xfe   : > { %v1452_v60 = vor.u32 %v1451_v48, %v1447_v47  ;;  %v1457_v61 = vrot.slane %v1455_v49, 5  ;;  %1766 = vst [vmem:[#allocation4 + $0x8] sm:$0xf] %v1625_v62  ;;  %v12235_v1 = vrot.slane %v6796_v51, 9  ;;  %v6894_v34 = vrot.slane %v6797_v53, 5  ;;  %v13360_v32 = vld [vmem:[#allocation8 + $0x1f8] sm:$0xff] }
  0xff   : > { %v1443_v52 = vrot.slane %v1442_v45, 4  ;;  %v11913_v59 = vld [vmem:[#allocation4 + $0x438] sm:$0xf]  ;;  %v1263_v9 = vshll.u32 %v1047_v54, 16  ;;  %v1628_v6 = vsel %vm14544_vm14, %v1626_v63, %v1627_v38  ;;  %v6897_v10 = vrot.slane %v6798_v55, 5  ;;  %v13338_v42 = vld [vmem:[#allocation8 + $0x148] sm:$0xff]  ;;  %5562 = vmatpush.bf16.msra.mxu3 %v13360_v32 }
 0x100   : > { %v1453_v4 = vrot.slane %v1452_v60, 4  ;;  %v13292_v12 = vld [vmem:[#allocation4 + $0x458] sm:$0xf0]  ;;  %1767 = vst [vmem:[#allocation4 + $0x2c] sm:$0xf] %v1628_v6  ;;  %v6896_v41 = vrot.slane %v6894_v34, 4  ;;  %v6895_v24 = vsel %vm14544_vm14, %v12235_v1, %v6894_v34  ;;  %5390 = vmatpush.bf16.msrb.mxu1 %v13338_v42 }
 0x101   : > { %v1448_v0 = vsel %vm14218_vm11, %v1443_v52, %v1447_v47  ;;  %v1911_v15 = vshrl.u32 %v1862_v14, 16  ;;  %v11914_v17 = vor.u32 %v13292_v12, %v11913_v59  ;;  %v1265_v19 = vrot.slane %v1263_v9, 5  ;;  %v1863_v20 = vld [vmem:[#allocation2 + $0x10] sm:$0xf]  ;;  %v1864_v25 = vld [vmem:[#allocation2 + $0x14] sm:$0x1]  ;;  %v4993_v52 = vpop.f32.mrf.mxu2 }
 0x102   : > { %1521 = vst [vmem:[#allocation4 + $0x43c] sm:$0xf] %v1448_v0  ;;  %v1458_v18 = vsel %vm14218_vm11, %v1453_v4, %v1457_v61  ;;  %v1914_v21 = vshll.u32 %v1862_v14, 16  ;;  %v1920_v26 = vshll.u32 %v1863_v20, 16  ;;  %v1924_v28 = vshrl.u32 %v1863_v20, 16  ;;  %v13337_v50 = vld [vmem:[#allocation8 + $0x140] sm:$0xff]  ;;  %v5042_v38 = vpop.f32.mrf.mxu1 }
 0x103   : > { %1522 = vst [vmem:[#allocation4 + $0x460] sm:$0xf] %v1458_v18  ;;  %v1913_v22 = vrot.slane %v1911_v15, 4  ;;  %5022 = vmatmul.bf16.gmra.mxu2 %v11914_v17  ;;  %v1266_v33 = vsel %vm14218_vm11, %v14538_v27, %v1265_v19  ;;  %v1930_v30 = vshll.u32 %v1864_v25, 16  ;;  %v1798_v31 = vld [vmem:[#allocation2 + $0xc] sm:$0xf]  ;;  %v6898_v43 = vsel %vm14544_vm14, %v6896_v41, %v6897_v10 }
 0x104   : > { %v1916_v23 = vrot.slane %v1914_v21, 5  ;;  %1506 = vst [vmem:[#allocation4 + $0x220] sm:$0xf] %v1266_v33  ;;  %v1922_v35 = vrot.slane %v1920_v26, 5  ;;  %v1799_v37 = vld [vmem:[#allocation2 + $0x10] sm:$0xf]  ;;  %v4954_v27 = vadd.f32 %v14531_v7, %v4953_v44  ;;  %v4994_v34 = vadd.f32 %v14531_v7, %v4993_v52  ;;  %5391 = vmatpush.bf16.msrb.mxu1 %v13337_v50  ;;  %v14588_v21 = vpop.f32.mrf.mxu0 }
 0x105   : > { %v14572_v45 = vld [vmem:[#allocation4 + $0x8] sm:$0xf]  ;;  %v1926_v48 = vrot.slane %v1924_v28, 4  ;;  %1830 = vst [vmem:[#allocation4 + $0xc] sm:$0xf] %v1798_v31  ;;  %v13368_v51 = vld [vmem:[#allocation8 + $0x238] sm:$0xff] }
 0x106   : > { %v1917_v47 = vor.u32 %v1916_v23, %v1913_v22  ;;  %7036 = vst [vmem:[#allocation4 + $0x8] sm:$0xf] %v6895_v24  ;;  %v13216_v53 = vld [vmem:[#allocation4 + $0x1fc] sm:$0xf]  ;;  %v1932_v59 = vrot.slane %v1930_v30, 5  ;;  %v14579_v60 = vadd.f32 %v5042_v38, %v4954_v27  ;;  %5651 = vmatpush.bf16.msra.mxu0 %v13368_v51  ;;  %v5082_v24 = vpop.f32.mrf.mxu3 }
 0x107   : > { %v14577_v55 = vld [vmem:[#allocation4 + $0x28] sm:$0xf0]  ;;  %v1927_v58 = vor.u32 %v1926_v48, %v1922_v35  ;;  %1831 = vst [vmem:[#allocation4 + $0x30] sm:$0xf] %v1799_v37  ;;  %v2358_v61 = vld [vmem:[#allocation2 + $0xc] sm:$0xe]  ;;  %v14590_v33 = vadd.f32 %v5082_v24, %v4994_v34 }
 0x108   : > { %v1918_v56 = vrot.slane %v1917_v47, 4  ;;  %7037 = vst [vmem:[#allocation4 + $0x2c] sm:$0xf] %v6898_v43  ;;  %v2359_v62 = vld [vmem:[#allocation2 + $0x10] sm:$0xf]  ;;  %v11339_v1 = vrot.slane %v2358_v61, 9 }
 0x109   : > { %v13288_v49 = vld [vmem:[#allocation4 + $0x43c] sm:$0xf]  ;;  %v1928_v0 = vrot.slane %v1927_v58, 4  ;;  %v2360_v54 = vld [vmem:[#allocation2 + $0x14] sm:$0x1]  ;;  %v2456_v9 = vrot.slane %v2359_v62, 5  ;;  %v14594_v31 = vpop.f32.mrf.mxu2 }
 0x10a   : > { %v11915_v63 = vld [vmem:[#allocation4 + $0x45c] sm:$0xf0]  ;;  %v1923_v14 = vsel %vm14218_vm11, %v1918_v56, %v1922_v35  ;;  %v2459_v6 = vrot.slane %v2360_v54, 5  ;;  %v1526_v10 = vld [vmem:[#allocation2 + $0xc] sm:$0xe]  ;;  %16994 = vst [vmem:[#allocation15_spill] sm:$0xff] %v14590_v33  ;;  %v14596_v32 = vpop.f32.mrf.mxu1  ;;  %v11382_v35 = vor.u32 %v14577_v55, %v14572_v45 }
 0x10b   : > { %v11918_v4 = vor.u32 %v13288_v49, %v11915_v63  ;;  %2326 = vst [vmem:[#allocation4 + $0x10] sm:$0xf] %v1923_v14  ;;  %v11627_v11 = vld [vmem:[#allocation4 + $0x21c] sm:$0xf0]  ;;  %v1933_v12 = vsel %vm14218_vm11, %v1928_v0, %v1932_v59  ;;  %v1528_v15 = vld [vmem:[#allocation2 + $0x14] sm:$0x1]  ;;  %v2457_v18 = vsel %vm14544_vm14, %v11339_v1, %v2456_v9 }
 0x10c   : > { %v1527_v41 = vld [vmem:[#allocation2 + $0x10] sm:$0xf]  ;;  %v11630_v17 = vor.u32 %v13216_v53, %v11627_v11  ;;  %2327 = vst [vmem:[#allocation4 + $0x34] sm:$0xf] %v1933_v12  ;;  %v2458_v19 = vrot.slane %v2456_v9, 4  ;;  %v11324_v20 = vrot.slane %v1526_v10, 9  ;;  %v4958_v54 = vpop.f32.mrf.mxu0 }
 0x10d   : > { %5111 = vmatmul.bf16.gmra.mxu3 %v11918_v4  ;;  %2598 = vst [vmem:[#allocation4 + $0x14] sm:$0xf] %v2457_v18  ;;  %v1631_v25 = vrot.slane %v1527_v41, 5  ;;  %v1634_v22 = vrot.slane %v1528_v15, 5  ;;  %v1865_v26 = vld [vmem:[#allocation2 + $0x18] sm:$0xf]  ;;  %v4959_v4 = vadd.f32 %v14531_v7, %v4958_v54 }
 0x10e   : > { %5071 = vmatmul.bf16.gmra.mxu1 %v11630_v17  ;;  %v2460_v23 = vsel %vm14544_vm14, %v2458_v19, %v2459_v6  ;;  %v1866_v28 = vld [vmem:[#allocation2 + $0x1c] sm:$0xf]  ;;  %v1867_v30 = vld [vmem:[#allocation2 + $0x20] sm:$0x1]  ;;  %16995 = vst [vmem:[#allocation16_spill] sm:$0xff] %v14594_v31  ;;  %v1935_v44 = vshrl.u32 %v1865_v26, 16  ;;  %v14604_v34 = vpop.f32.mrf.mxu3 }
 0x10f   : > { %2599 = vst [vmem:[#allocation4 + $0x38] sm:$0xf] %v2460_v23  ;;  %v1632_v37 = vsel %vm14544_vm14, %v11324_v20, %v1631_v25  ;;  %v1633_v42 = vrot.slane %v1631_v25, 4  ;;  %v1800_v43 = vld [vmem:[#allocation2 + $0x18] sm:$0xf]  ;;  %v1938_v47 = vshll.u32 %v1865_v26, 16 }
 0x110   : > { %1768 = vst [vmem:[#allocation4 + $0x50] sm:$0xf] %v1632_v37  ;;  %v1944_v48 = vshll.u32 %v1866_v28, 16  ;;  %v1948_v27 = vshrl.u32 %v1866_v28, 16  ;;  %v1954_v49 = vshll.u32 %v1867_v30, 16  ;;  %v1937_v52 = vrot.slane %v1935_v44, 4 }
 0x111   : > { %v1635_v51 = vsel %vm14544_vm14, %v1633_v42, %v1634_v22  ;;  %v1801_v38 = vld [vmem:[#allocation2 + $0x1c] sm:$0xf]  ;;  %v11383_v45 = vld [vmem:[#allocation4 + $0x2c] sm:$0xf0]  ;;  %v1940_v55 = vrot.slane %v1938_v47, 5  ;;  %16996 = vst [vmem:[#allocation17_spill] sm:$0xff] %v14604_v34  ;;  %v4998_v42 = vpop.f32.mrf.mxu2 }
 0x112   : > { %v11389_v50 = vld [vmem:[#allocation4 + $0x10] sm:$0xf]  ;;  %v13154_v53 = vld [vmem:[#allocation4 + $0xc] sm:$0xf]  ;;  %1769 = vst [vmem:[#allocation4 + $0x74] sm:$0xf] %v1635_v51  ;;  %v4999_v51 = vadd.f32 %v14531_v7, %v4998_v42 }
 0x113   : > { %v1946_v56 = vrot.slane %v1944_v48, 5  ;;  %v1950_v58 = vrot.slane %v1948_v27, 4  ;;  %5125 = vmatmul.bf16.vlgmr.msrb.gmra.mxu2 %v11382_v35  ;;  %v13159_v59 = vld [vmem:[#allocation4 + $0x30] sm:$0xf0]  ;;  %1832 = vst [vmem:[#allocation4 + $0x54] sm:$0xf] %v1800_v43  ;;  %v1941_v63 = vor.u32 %v1940_v55, %v1937_v52  ;;  %v5047_v19 = vpop.f32.mrf.mxu1  ;;  %v11386_v20 = vor.u32 %v13154_v53, %v11383_v45 }
 0x114   : > { %v2361_v61 = vld [vmem:[#allocation2 + $0x18] sm:$0xe]  ;;  %v11390_v62 = vor.u32 %v13159_v59, %v11389_v50  ;;  %v1956_v0 = vrot.slane %v1954_v49, 5  ;;  %1833 = vst [vmem:[#allocation4 + $0x78] sm:$0xf] %v1801_v38  ;;  %v13351_v23 = vld [vmem:[#allocation8 + $0x1b0] sm:$0xff]  ;;  %v14613_v44 = vadd.f32 %v5047_v19, %v4959_v4 }
 0x115   : > { %v1951_v14 = vor.u32 %v1950_v58, %v1946_v56  ;;  %v2362_v1 = vld [vmem:[#allocation2 + $0x1c] sm:$0xf]  ;;  %v2363_v9 = vld [vmem:[#allocation2 + $0x20] sm:$0x1]  ;;  %v11340_v6 = vrot.slane %v2361_v61, 9  ;;  %v1942_v41 = vrot.slane %v1941_v63, 4  ;;  %5474 = vmatpush.bf16.msra.mxu2 %v13351_v23 }
 0x116   : > { %v2463_v10 = vrot.slane %v2362_v1, 5  ;;  %v1529_v11 = vld [vmem:[#allocation2 + $0x18] sm:$0xe]  ;;  %5303 = vmatmul.bf16.vlgmr.msrb.gmra.mxu0 %v11390_v62  ;;  %v13155_v12 = vld [vmem:[#allocation4 + $0x14] sm:$0xf]  ;;  %v2466_v17 = vrot.slane %v2363_v9, 5 }
 0x117   : > { %v1952_v15 = vrot.slane %v1951_v14, 4  ;;  %v11325_v18 = vrot.slane %v1529_v11, 9  ;;  %v11391_v24 = vld [vmem:[#allocation4 + $0x34] sm:$0xf0]  ;;  %v1530_v26 = vld [vmem:[#allocation2 + $0x1c] sm:$0xf]  ;;  %v1947_v28 = vsel %vm14218_vm11, %v1942_v41, %v1946_v56  ;;  %v14622_v56 = vpop.f32.mrf.mxu0  ;;  %v5087_v58 = vpop.f32.mrf.mxu3 }
 0x118   : > { %v2464_v25 = vsel %vm14544_vm14, %v11340_v6, %v2463_v10  ;;  %v2465_v22 = vrot.slane %v2463_v10, 4  ;;  %v1531_v35 = vld [vmem:[#allocation2 + $0x20] sm:$0x1]  ;;  %v1638_v37 = vrot.slane %v1530_v26, 5  ;;  %2328 = vst [vmem:[#allocation4 + $0x58] sm:$0xf] %v1947_v28  ;;  %v11394_v48 = vor.u32 %v13155_v12, %v11391_v24 }
 0x119   : > { %v1957_v30 = vsel %vm14218_vm11, %v1952_v15, %v1956_v0  ;;  %2600 = vst [vmem:[#allocation4 + $0x5c] sm:$0xf] %v2464_v25  ;;  %v1641_v47 = vrot.slane %v1531_v35, 5  ;;  %v11417_v27 = vld [vmem:[#allocation4 + $0x50] sm:$0xf]  ;;  %v14624_v9 = vadd.f32 %v5087_v58, %v4999_v51  ;;  %v14628_v26 = vpop.f32.mrf.mxu2 }
 0x11a   : > { %v2467_v43 = vsel %vm14544_vm14, %v2465_v22, %v2466_v17  ;;  %2329 = vst [vmem:[#allocation4 + $0x7c] sm:$0xf] %v1957_v30  ;;  %v1639_v49 = vsel %vm14544_vm14, %v11325_v18, %v1638_v37  ;;  %v1640_v50 = vrot.slane %v1638_v37, 4  ;;  %v13167_v52 = vld [vmem:[#allocation4 + $0x70] sm:$0xf0] }
 0x11b   : > { %2601 = vst [vmem:[#allocation4 + $0x80] sm:$0xf] %v2467_v43  ;;  %v1868_v38 = vld [vmem:[#allocation2 + $0x24] sm:$0xf]  ;;  %v1869_v45 = vld [vmem:[#allocation2 + $0x28] sm:$0xf]  ;;  %v11418_v14 = vor.u32 %v13167_v52, %v11417_v27  ;;  %v14626_v17 = vpop.f32.mrf.mxu1 }
 0x11c   : > { %v1642_v53 = vsel %vm14544_vm14, %v1640_v50, %v1641_v47  ;;  %1770 = vst [vmem:[#allocation4 + $0x98] sm:$0xf] %v1639_v49  ;;  %v1870_v55 = vld [vmem:[#allocation2 + $0x2c] sm:$0x1]  ;;  %v1959_v59 = vshrl.u32 %v1868_v38, 16  ;;  %v1962_v61 = vshll.u32 %v1868_v38, 16 }
 0x11d   : > { %5214 = vmatmul.bf16.vlgmr.msrb.gmra.mxu3 %v11386_v20  ;;  %1771 = vst [vmem:[#allocation4 + $0xbc] sm:$0xf] %v1642_v53  ;;  %v1968_v62 = vshll.u32 %v1869_v45, 16  ;;  %v1972_v63 = vshrl.u32 %v1869_v45, 16  ;;  %v1978_v0 = vshll.u32 %v1870_v55, 16  ;;  %v13359_v4 = vld [vmem:[#allocation8 + $0x1f0] sm:$0xff] }
 0x11e   : > { %5392 = vmatmul.bf16.vlgmr.msrb.gmra.mxu1 %v11394_v48  ;;  %v1802_v54 = vld [vmem:[#allocation2 + $0x24] sm:$0xf]  ;;  %v1803_v1 = vld [vmem:[#allocation2 + $0x28] sm:$0xf]  ;;  %16997 = vst [vmem:[#allocation18_spill] sm:$0xff] %v14624_v9  ;;  %v1961_v6 = vrot.slane %v1959_v59, 4  ;;  %5563 = vmatpush.bf16.msra.mxu3 %v13359_v4 }
 0x11f   : > { %v1964_v10 = vrot.slane %v1962_v61, 5  ;;  %v1970_v11 = vrot.slane %v1968_v62, 5  ;;  %v1974_v12 = vrot.slane %v1972_v63, 4  ;;  %v11425_v41 = vld [vmem:[#allocation4 + $0x58] sm:$0xf]  ;;  %v1980_v15 = vrot.slane %v1978_v0, 5  ;;  %v4963_v45 = vpop.f32.mrf.mxu0  ;;  %v14636_v59 = vpop.f32.mrf.mxu3 }
 0x120   : > { %1834 = vst [vmem:[#allocation4 + $0x9c] sm:$0xf] %v1802_v54  ;;  %v13367_v18 = vld [vmem:[#allocation8 + $0x230] sm:$0xff]  ;;  %v2365_v23 = vld [vmem:[#allocation2 + $0x28] sm:$0xf]  ;;  %v4964_v63 = vadd.f32 %v14531_v7, %v4963_v45 }
 0x121   : > { %v13168_v19 = vld [vmem:[#allocation4 + $0x78] sm:$0xf0]  ;;  %v1965_v20 = vor.u32 %v1964_v10, %v1961_v6  ;;  %v1975_v24 = vor.u32 %v1974_v12, %v1970_v11  ;;  %1835 = vst [vmem:[#allocation4 + $0xc0] sm:$0xf] %v1803_v1  ;;  %v2364_v25 = vld [vmem:[#allocation2 + $0x24] sm:$0xe]  ;;  %5652 = vmatpush.bf16.msra.mxu0 %v13367_v18 }
 0x122   : > { %v11426_v22 = vor.u32 %v13168_v19, %v11425_v41  ;;  %16998 = vst [vmem:[#allocation19_spill] sm:$0xff] %v14628_v26  ;;  %v2366_v28 = vld [vmem:[#allocation2 + $0x2c] sm:$0x1]  ;;  %v13163_v30 = vld [vmem:[#allocation4 + $0x54] sm:$0xf]  ;;  %v11341_v43 = vrot.slane %v2364_v25, 9 }
 0x123   : > { %5130 = vmatmul.bf16.gmra.mxu2 %v11418_v14  ;;  %v11419_v35 = vld [vmem:[#allocation4 + $0x74] sm:$0xf0]  ;;  %v1966_v37 = vrot.slane %v1965_v20, 4  ;;  %v1976_v42 = vrot.slane %v1975_v24, 4  ;;  %v13164_v47 = vld [vmem:[#allocation4 + $0x5c] sm:$0xf] }
 0x124   : > { %v2470_v48 = vrot.slane %v2365_v23, 5  ;;  %v2473_v27 = vrot.slane %v2366_v28, 5  ;;  %v1532_v49 = vld [vmem:[#allocation2 + $0x24] sm:$0xe]  ;;  %v11427_v50 = vld [vmem:[#allocation4 + $0x7c] sm:$0xf0]  ;;  %v11422_v1 = vor.u32 %v13163_v30, %v11419_v35 }
 0x125   : > { %v1971_v51 = vsel %vm14218_vm11, %v1966_v37, %v1970_v11  ;;  %v1981_v52 = vsel %vm14218_vm11, %v1976_v42, %v1980_v15  ;;  %v1533_v38 = vld [vmem:[#allocation2 + $0x28] sm:$0xf]  ;;  %v1534_v53 = vld [vmem:[#allocation2 + $0x2c] sm:$0x1]  ;;  %16999 = vst [vmem:[#allocation20_spill] sm:$0xff] %v14636_v59  ;;  %v11326_v61 = vrot.slane %v1532_v49, 9  ;;  %v11430_v10 = vor.u32 %v13164_v47, %v11427_v50 }
 0x126   : > { %5308 = vmatmul.bf16.gmra.mxu0 %v11426_v22  ;;  %2330 = vst [vmem:[#allocation4 + $0xa0] sm:$0xf] %v1971_v51  ;;  %v2471_v55 = vsel %vm14544_vm14, %v11341_v43, %v2470_v48  ;;  %v2472_v58 = vrot.slane %v2470_v48, 4  ;;  %v1871_v62 = vld [vmem:[#allocation2 + $0x30] sm:$0xf]  ;;  %v1645_v14 = vrot.slane %v1533_v38, 5 }
 0x127   : > { %2331 = vst [vmem:[#allocation4 + $0xc4] sm:$0xf] %v1981_v52  ;;  %v1648_v0 = vrot.slane %v1534_v53, 5  ;;  %v1872_v54 = vld [vmem:[#allocation2 + $0x34] sm:$0xf]  ;;  %v1983_v41 = vshrl.u32 %v1871_v62, 16 }
 0x128   : > { %v2474_v4 = vsel %vm14544_vm14, %v2472_v58, %v2473_v27  ;;  %2602 = vst [vmem:[#allocation4 + $0xa4] sm:$0xf] %v2471_v55  ;;  %v1873_v6 = vld [vmem:[#allocation2 + $0x38] sm:$0x1]  ;;  %v1646_v11 = vsel %vm14544_vm14, %v11326_v61, %v1645_v14  ;;  %v1647_v12 = vrot.slane %v1645_v14, 4  ;;  %v1986_v20 = vshll.u32 %v1871_v62, 16 }
 0x129   : > { %2603 = vst [vmem:[#allocation4 + $0xc8] sm:$0xf] %v2474_v4  ;;  %v1804_v15 = vld [vmem:[#allocation2 + $0x30] sm:$0xf]  ;;  %v11453_v18 = vld [vmem:[#allocation4 + $0x98] sm:$0xf]  ;;  %v5003_v27 = vpop.f32.mrf.mxu2 }
 0x12a   : > { %v13176_v19 = vld [vmem:[#allocation4 + $0xb8] sm:$0xf0]  ;;  %1772 = vst [vmem:[#allocation4 + $0xe0] sm:$0xf] %v1646_v11  ;;  %v1992_v24 = vshll.u32 %v1872_v54, 16  ;;  %v1996_v25 = vshrl.u32 %v1872_v54, 16  ;;  %v1649_v28 = vsel %vm14544_vm14, %v1647_v12, %v1648_v0  ;;  %v5004_v50 = vadd.f32 %v14531_v7, %v5003_v27 }
 0x12b   : > { %v2002_v22 = vshll.u32 %v1873_v6, 16  ;;  %v5052_v23 = vpop.f32.mrf.mxu1  ;;  %v1985_v30 = vrot.slane %v1983_v41, 4  ;;  %v1805_v37 = vld [vmem:[#allocation2 + $0x34] sm:$0xf]  ;;  %1836 = vst [vmem:[#allocation4 + $0xe4] sm:$0xf] %v1804_v15  ;;  %v11454_v58 = vor.u32 %v13176_v19, %v11453_v18 }
 0x12c   : > { %v14645_v35 = vadd.f32 %v5052_v23, %v4964_v63  ;;  %1773 = vst [vmem:[#allocation4 + $0x104] sm:$0xf] %v1649_v28  ;;  %v1988_v42 = vrot.slane %v1986_v20, 5  ;;  %v1994_v43 = vrot.slane %v1992_v24, 5  ;;  %v1998_v47 = vrot.slane %v1996_v25, 4 }
 0x12d   : > { %5219 = vmatmul.bf16.gmra.mxu3 %v11422_v1  ;;  %v2004_v48 = vrot.slane %v2002_v22, 5  ;;  %v11461_v49 = vld [vmem:[#allocation4 + $0xa0] sm:$0xf]  ;;  %1837 = vst [vmem:[#allocation4 + $0x108] sm:$0xf] %v1805_v37 }
 0x12e   : > { %v2367_v51 = vld [vmem:[#allocation2 + $0x30] sm:$0xe]  ;;  %5397 = vmatmul.bf16.gmra.mxu1 %v11430_v10  ;;  %v13177_v52 = vld [vmem:[#allocation4 + $0xc0] sm:$0xf0]  ;;  %v1989_v38 = vor.u32 %v1988_v42, %v1985_v30  ;;  %v1999_v53 = vor.u32 %v1998_v47, %v1994_v43  ;;  %v2369_v55 = vld [vmem:[#allocation2 + $0x38] sm:$0x1] }
 0x12f   : > { %v2368_v45 = vld [vmem:[#allocation2 + $0x34] sm:$0xf]  ;;  %v11342_v61 = vrot.slane %v2367_v51, 9  ;;  %v2480_v54 = vrot.slane %v2369_v55, 5  ;;  %v1535_v1 = vld [vmem:[#allocation2 + $0x30] sm:$0xe]  ;;  %v11462_v4 = vor.u32 %v13177_v52, %v11461_v49 }
 0x130   : > { %v2477_v62 = vrot.slane %v2368_v45, 5  ;;  %v1990_v63 = vrot.slane %v1989_v38, 4  ;;  %v2000_v14 = vrot.slane %v1999_v53, 4  ;;  %v1536_v10 = vld [vmem:[#allocation2 + $0x34] sm:$0xf]  ;;  %v11327_v19 = vrot.slane %v1535_v1, 9 }
 0x131   : > { %v1537_v12 = vld [vmem:[#allocation2 + $0x38] sm:$0x1]  ;;  %v13172_v20 = vld [vmem:[#allocation4 + $0x9c] sm:$0xf]  ;;  %v1652_v24 = vrot.slane %v1536_v10, 5 }
 0x132   : > { %v2478_v11 = vsel %vm14544_vm14, %v11342_v61, %v2477_v62  ;;  %v1995_v41 = vsel %vm14218_vm11, %v1990_v63, %v1994_v43  ;;  %v2005_v15 = vsel %vm14218_vm11, %v2000_v14, %v2004_v48  ;;  %v2479_v18 = vrot.slane %v2477_v62, 4  ;;  %v11455_v22 = vld [vmem:[#allocation4 + $0xbc] sm:$0xf0]  ;;  %v1874_v28 = vld [vmem:[#allocation2 + $0x3c] sm:$0xf] }
 0x133   : > { %v5092_v0 = vpop.f32.mrf.mxu3  ;;  %2604 = vst [vmem:[#allocation4 + $0xec] sm:$0xf] %v2478_v11  ;;  %5135 = vmatmul.bf16.gmra.mxu2 %v11454_v58  ;;  %v1655_v25 = vrot.slane %v1537_v12, 5  ;;  %v13173_v30 = vld [vmem:[#allocation4 + $0xa4] sm:$0xf]  ;;  %v1653_v42 = vsel %vm14544_vm14, %v11327_v19, %v1652_v24  ;;  %v1654_v43 = vrot.slane %v1652_v24, 4  ;;  %v11458_v58 = vor.u32 %v13172_v20, %v11455_v22  ;;  %v14664_v12 = vpop.f32.mrf.mxu1 }
 0x134   : > { %v14648_v6 = vadd.f32 %v5092_v0, %v5004_v50  ;;  %2332 = vst [vmem:[#allocation4 + $0xe8] sm:$0xf] %v1995_v41  ;;  %v2481_v23 = vsel %vm14544_vm14, %v2479_v18, %v2480_v54  ;;  %v11463_v37 = vld [vmem:[#allocation4 + $0xc4] sm:$0xf0]  ;;  %v1875_v47 = vld [vmem:[#allocation2 + $0x40] sm:$0xf]  ;;  %v14660_v50 = vpop.f32.mrf.mxu0  ;;  %v14666_v19 = vpop.f32.mrf.mxu2 }
 0x135   : > { %2333 = vst [vmem:[#allocation4 + $0x10c] sm:$0xf] %v2005_v15  ;;  %v1876_v48 = vld [vmem:[#allocation2 + $0x44] sm:$0x1]  ;;  %v2007_v27 = vshrl.u32 %v1874_v28, 16  ;;  %v2010_v49 = vshll.u32 %v1874_v28, 16  ;;  %v1656_v51 = vsel %vm14544_vm14, %v1654_v43, %v1655_v25  ;;  %v11466_v1 = vor.u32 %v13173_v30, %v11463_v37 }
 0x136   : > { %17000 = vst [vmem:[#allocation21_spill] sm:$0xff] %v14648_v6  ;;  %5313 = vmatmul.bf16.gmra.mxu0 %v11462_v4  ;;  %v2016_v52 = vshll.u32 %v1875_v47, 16  ;;  %v2020_v38 = vshrl.u32 %v1875_v47, 16  ;;  %v2026_v53 = vshll.u32 %v1876_v48, 16  ;;  %v13350_v45 = vld [vmem:[#allocation8 + $0x1a8] sm:$0xff] }
 0x137   : > { %2605 = vst [vmem:[#allocation4 + $0x110] sm:$0xf] %v2481_v23  ;;  %v1806_v55 = vld [vmem:[#allocation2 + $0x3c] sm:$0xf]  ;;  %v2009_v61 = vrot.slane %v2007_v27, 4  ;;  %v2012_v62 = vrot.slane %v2010_v49, 5  ;;  %5475 = vmatpush.bf16.msra.mxu2 %v13350_v45 }
 0x138   : > { %1774 = vst [vmem:[#allocation4 + $0x128] sm:$0xf] %v1653_v42  ;;  %v1807_v63 = vld [vmem:[#allocation2 + $0x40] sm:$0xf]  ;;  %v11489_v14 = vld [vmem:[#allocation4 + $0xe0] sm:$0xf] }
 0x139   : > { %1775 = vst [vmem:[#allocation4 + $0x14c] sm:$0xf] %v1656_v51  ;;  %v2018_v0 = vrot.slane %v2016_v52, 5  ;;  %v2022_v54 = vrot.slane %v2020_v38, 4  ;;  %v13185_v4 = vld [vmem:[#allocation4 + $0x100] sm:$0xf0]  ;;  %v2013_v11 = vor.u32 %v2012_v62, %v2009_v61 }
 0x13a   : > { %1838 = vst [vmem:[#allocation4 + $0x12c] sm:$0xf] %v1806_v55  ;;  %v2370_v10 = vld [vmem:[#allocation2 + $0x3c] sm:$0xe]  ;;  %v2028_v15 = vrot.slane %v2026_v53, 5  ;;  %v11490_v42 = vor.u32 %v13185_v4, %v11489_v14 }
 0x13b   : > { %v2023_v41 = vor.u32 %v2022_v54, %v2018_v0  ;;  %1839 = vst [vmem:[#allocation4 + $0x150] sm:$0xf] %v1807_v63  ;;  %v2371_v18 = vld [vmem:[#allocation2 + $0x40] sm:$0xf]  ;;  %v2014_v20 = vrot.slane %v2013_v11, 4  ;;  %v13358_v24 = vld [vmem:[#allocation8 + $0x1e8] sm:$0xff]  ;;  %v14674_v45 = vpop.f32.mrf.mxu3 }
 0x13c   : > { %17001 = vst [vmem:[#allocation22_spill] sm:$0xff] %v14666_v19  ;;  %v13366_v25 = vld [vmem:[#allocation8 + $0x228] sm:$0xff]  ;;  %v11343_v22 = vrot.slane %v2370_v10, 9  ;;  %v2372_v30 = vld [vmem:[#allocation2 + $0x44] sm:$0x1]  ;;  %v2484_v37 = vrot.slane %v2371_v18, 5  ;;  %5564 = vmatpush.bf16.msra.mxu3 %v13358_v24  ;;  %v4968_v61 = vpop.f32.mrf.mxu0 }
 0x13d   : > { %5224 = vmatmul.bf16.gmra.mxu3 %v11458_v58  ;;  %v11497_v23 = vld [vmem:[#allocation4 + $0xe8] sm:$0xf]  ;;  %v2024_v28 = vrot.slane %v2023_v41, 4  ;;  %v2019_v43 = vsel %vm14218_vm11, %v2014_v20, %v2018_v0  ;;  %v2487_v47 = vrot.slane %v2372_v30, 5  ;;  %v1538_v48 = vld [vmem:[#allocation2 + $0x3c] sm:$0xe]  ;;  %5653 = vmatpush.bf16.msra.mxu0 %v13366_v25  ;;  %v4969_v0 = vadd.f32 %v14531_v7, %v4968_v61 }
 0x13e   : > { %5402 = vmatmul.bf16.gmra.mxu1 %v11466_v1  ;;  %v1539_v27 = vld [vmem:[#allocation2 + $0x40] sm:$0xf]  ;;  %v13186_v49 = vld [vmem:[#allocation4 + $0x108] sm:$0xf0]  ;;  %2334 = vst [vmem:[#allocation4 + $0x130] sm:$0xf] %v2019_v43  ;;  %v2485_v52 = vsel %vm14544_vm14, %v11343_v22, %v2484_v37 }
 0x13f   : > { %v2029_v51 = vsel %vm14218_vm11, %v2024_v28, %v2028_v15  ;;  %v2486_v38 = vrot.slane %v2484_v37, 4  ;;  %v11328_v53 = vrot.slane %v1538_v48, 9  ;;  %17002 = vst [vmem:[#allocation23_spill] sm:$0xff] %v14674_v45  ;;  %v1540_v55 = vld [vmem:[#allocation2 + $0x44] sm:$0x1]  ;;  %v1659_v58 = vrot.slane %v1539_v27, 5  ;;  %v5008_v37 = vpop.f32.mrf.mxu2 }
 0x140   : > { %2335 = vst [vmem:[#allocation4 + $0x154] sm:$0xf] %v2029_v51  ;;  %v1662_v63 = vrot.slane %v1540_v55, 5  ;;  %v11498_v14 = vor.u32 %v13186_v49, %v11497_v23  ;;  %v13181_v4 = vld [vmem:[#allocation4 + $0xe4] sm:$0xf]  ;;  %v5009_v51 = vadd.f32 %v14531_v7, %v5008_v37 }
 0x141   : > { %v2488_v62 = vsel %vm14544_vm14, %v2486_v38, %v2487_v47  ;;  %2606 = vst [vmem:[#allocation4 + $0x134] sm:$0xf] %v2485_v52  ;;  %v1660_v54 = vsel %vm14544_vm14, %v11328_v53, %v1659_v58  ;;  %v1661_v1 = vrot.slane %v1659_v58, 4  ;;  %v11491_v11 = vld [vmem:[#allocation4 + $0x104] sm:$0xf0] }
 0x142   : > { %2607 = vst [vmem:[#allocation4 + $0x158] sm:$0xf] %v2488_v62  ;;  %v1877_v10 = vld [vmem:[#allocation2 + $0x48] sm:$0xf]  ;;  %v1878_v41 = vld [vmem:[#allocation2 + $0x4c] sm:$0xf]  ;;  %v11494_v53 = vor.u32 %v13181_v4, %v11491_v11 }
 0x143   : > { %5140 = vmatmul.bf16.gmra.mxu2 %v11490_v42  ;;  %1776 = vst [vmem:[#allocation4 + $0x170] sm:$0xf] %v1660_v54  ;;  %v1663_v15 = vsel %vm14544_vm14, %v1661_v1, %v1662_v63  ;;  %v1879_v18 = vld [vmem:[#allocation2 + $0x50] sm:$0x1]  ;;  %v2031_v20 = vshrl.u32 %v1877_v10, 16  ;;  %v2034_v24 = vshll.u32 %v1877_v10, 16 }
 0x144   : > { %v1808_v25 = vld [vmem:[#allocation2 + $0x48] sm:$0xf]  ;;  %1777 = vst [vmem:[#allocation4 + $0x194] sm:$0xf] %v1663_v15  ;;  %v2040_v23 = vshll.u32 %v1878_v41, 16  ;;  %v2044_v28 = vshrl.u32 %v1878_v41, 16 }
 0x145   : > { %v2050_v30 = vshll.u32 %v1879_v18, 16  ;;  %v2033_v43 = vrot.slane %v2031_v20, 4  ;;  %v2036_v47 = vrot.slane %v2034_v24, 5  ;;  %v1809_v48 = vld [vmem:[#allocation2 + $0x4c] sm:$0xf] }
 0x146   : > { %5318 = vmatmul.bf16.gmra.mxu0 %v11498_v14  ;;  %v13182_v27 = vld [vmem:[#allocation4 + $0xec] sm:$0xf]  ;;  %v11499_v49 = vld [vmem:[#allocation4 + $0x10c] sm:$0xf0]  ;;  %v2042_v52 = vrot.slane %v2040_v23, 5  ;;  %v2046_v38 = vrot.slane %v2044_v28, 4 }
 0x147   : > { %v2037_v55 = vor.u32 %v2036_v47, %v2033_v43  ;;  %1840 = vst [vmem:[#allocation4 + $0x174] sm:$0xf] %v1808_v25  ;;  %v2373_v58 = vld [vmem:[#allocation2 + $0x48] sm:$0xe]  ;;  %v2052_v62 = vrot.slane %v2050_v30, 5  ;;  %v11502_v14 = vor.u32 %v13182_v27, %v11499_v49  ;;  %v14690_v30 = vpop.f32.mrf.mxu0 }
 0x148   : > { %v5057_v22 = vpop.f32.mrf.mxu1  ;;  %v2047_v61 = vor.u32 %v2046_v38, %v2042_v52  ;;  %1841 = vst [vmem:[#allocation4 + $0x198] sm:$0xf] %v1809_v48  ;;  %v2374_v63 = vld [vmem:[#allocation2 + $0x4c] sm:$0xf]  ;;  %v13194_v54 = vld [vmem:[#allocation4 + $0x148] sm:$0xf0] }
 0x149   : > { %v14683_v42 = vadd.f32 %v5057_v22, %v4969_v0  ;;  %v11525_v0 = vld [vmem:[#allocation4 + $0x128] sm:$0xf]  ;;  %v2038_v10 = vrot.slane %v2037_v55, 4  ;;  %v2375_v41 = vld [vmem:[#allocation2 + $0x50] sm:$0x1]  ;;  %v11344_v15 = vrot.slane %v2373_v58, 9  ;;  %v14698_v55 = vpop.f32.mrf.mxu2 }
 0x14a   : > { %v2048_v7 = vrot.slane %v2047_v61, 4  ;;  %v2491_v20 = vrot.slane %v2374_v63, 5  ;;  %v2494_v24 = vrot.slane %v2375_v41, 5  ;;  %v1541_v4 = vld [vmem:[#allocation2 + $0x48] sm:$0xe]  ;;  %v11526_v38 = vor.u32 %v13194_v54, %v11525_v0  ;;  %17004 = vst [vmem:[#allocation25_spill] sm:$0xff] %v14698_v55 }
 0x14b   : > { %v11533_v11 = vld [vmem:[#allocation4 + $0x130] sm:$0xf]  ;;  %v13195_v25 = vld [vmem:[#allocation4 + $0x150] sm:$0xf0]  ;;  %v2043_v22 = vsel %vm14218_vm11, %v2038_v10, %v2042_v52  ;;  %v1542_v23 = vld [vmem:[#allocation2 + $0x4c] sm:$0xf] }
 0x14c   : > { %v1543_v28 = vld [vmem:[#allocation2 + $0x50] sm:$0x1]  ;;  %v2053_v37 = vsel %vm14218_vm11, %v2048_v7, %v2052_v62  ;;  %2336 = vst [vmem:[#allocation4 + $0x178] sm:$0xf] %v2043_v22  ;;  %v2492_v43 = vsel %vm14544_vm14, %v11344_v15, %v2491_v20  ;;  %v2493_v47 = vrot.slane %v2491_v20, 4  ;;  %v11329_v27 = vrot.slane %v1541_v4, 9 }
 0x14d   : > { %v5097_v1 = vpop.f32.mrf.mxu3  ;;  %5229 = vmatmul.bf16.gmra.mxu3 %v11494_v53  ;;  %v1880_v48 = vld [vmem:[#allocation2 + $0x54] sm:$0xf]  ;;  %2337 = vst [vmem:[#allocation4 + $0x19c] sm:$0xf] %v2053_v37  ;;  %v1666_v49 = vrot.slane %v1542_v23, 5  ;;  %v11534_v63 = vor.u32 %v13195_v25, %v11533_v11 }
 0x14e   : > { %v14686_v18 = vadd.f32 %v5097_v1, %v5009_v51  ;;  %5407 = vmatmul.bf16.gmra.mxu1 %v11502_v14  ;;  %v1669_v51 = vrot.slane %v1543_v28, 5  ;;  %v2495_v52 = vsel %vm14544_vm14, %v2493_v47, %v2494_v24  ;;  %2608 = vst [vmem:[#allocation4 + $0x17c] sm:$0xf] %v2492_v43  ;;  %v1881_v53 = vld [vmem:[#allocation2 + $0x58] sm:$0xf]  ;;  %v2055_v62 = vshrl.u32 %v1880_v48, 16 }
 0x14f   : > { %2609 = vst [vmem:[#allocation4 + $0x1a0] sm:$0xf] %v2495_v52  ;;  %v1667_v58 = vsel %vm14544_vm14, %v11329_v27, %v1666_v49  ;;  %v1668_v61 = vrot.slane %v1666_v49, 4  ;;  %v1882_v14 = vld [vmem:[#allocation2 + $0x5c] sm:$0x1]  ;;  %v2058_v1 = vshll.u32 %v1880_v48, 16 }
 0x150   : > { %17003 = vst [vmem:[#allocation24_spill] sm:$0xff] %v14686_v18  ;;  %v2064_v10 = vshll.u32 %v1881_v53, 16  ;;  %v2057_v54 = vrot.slane %v2055_v62, 4  ;;  %v2068_v41 = vshrl.u32 %v1881_v53, 16  ;;  %v2074_v15 = vshll.u32 %v1882_v14, 16  ;;  %v14706_v28 = vpop.f32.mrf.mxu1  ;;  %v13349_v49 = vld [vmem:[#allocation8 + $0x1a0] sm:$0xff] }
 0x151   : > { %1778 = vst [vmem:[#allocation4 + $0x1b8] sm:$0xf] %v1667_v58  ;;  %v1670_v0 = vsel %vm14544_vm14, %v1668_v61, %v1669_v51  ;;  %v1810_v7 = vld [vmem:[#allocation2 + $0x54] sm:$0xf]  ;;  %v2060_v20 = vrot.slane %v2058_v1, 5  ;;  %5476 = vmatpush.bf16.msra.mxu2 %v13349_v49 }
 0x152   : > { %1779 = vst [vmem:[#allocation4 + $0x1dc] sm:$0xf] %v1670_v0  ;;  %v2066_v24 = vrot.slane %v2064_v10, 5  ;;  %v1811_v4 = vld [vmem:[#allocation2 + $0x58] sm:$0xf]  ;;  %v2070_v11 = vrot.slane %v2068_v41, 4 }
 0x153   : > { %5145 = vmatmul.bf16.gmra.mxu2 %v11526_v38  ;;  %v13190_v22 = vld [vmem:[#allocation4 + $0x12c] sm:$0xf]  ;;  %1842 = vst [vmem:[#allocation4 + $0x1bc] sm:$0xf] %v1810_v7  ;;  %v11527_v25 = vld [vmem:[#allocation4 + $0x14c] sm:$0xf0]  ;;  %v2061_v37 = vor.u32 %v2060_v20, %v2057_v54  ;;  %v4973_v38 = vpop.f32.mrf.mxu0 }
 0x154   : > { %1843 = vst [vmem:[#allocation4 + $0x1e0] sm:$0xf] %v1811_v4  ;;  %v14708_v43 = vld [vmem:[#allocation2 + $0x60] sm:$0xf]  ;;  %v13191_v47 = vld [vmem:[#allocation4 + $0x134] sm:$0xf]  ;;  %v2071_v48 = vor.u32 %v2070_v11, %v2066_v24  ;;  %v11530_v62 = vor.u32 %v13190_v22, %v11527_v25 }
 0x155   : > { %v14704_v23 = vpop.f32.mrf.mxu3  ;;  %v2076_v27 = vrot.slane %v2074_v15, 5  ;;  %v2377_v51 = vld [vmem:[#allocation2 + $0x58] sm:$0xf]  ;;  %v11535_v52 = vld [vmem:[#allocation4 + $0x154] sm:$0xf0]  ;;  %v2062_v53 = vrot.slane %v2061_v37, 4 }
 0x156   : > { %17005 = vst [vmem:[#allocation26_spill] sm:$0xff] %v14704_v23  ;;  %5323 = vmatmul.bf16.gmra.mxu0 %v11534_v63  ;;  %v2498_v58 = vrot.slane %v2377_v51, 5  ;;  %v1545_v61 = vld [vmem:[#allocation2 + $0x58] sm:$0xf]  ;;  %v2072_v14 = vrot.slane %v2071_v48, 4  ;;  %v2079_v0 = vshrl.u32 %v14708_v43, 16  ;;  %v11538_v20 = vor.u32 %v13191_v47, %v11535_v52 }
 0x157   : > { %v2376_v1 = vld [vmem:[#allocation2 + $0x54] sm:$0xe]  ;;  %v1673_v10 = vrot.slane %v1545_v61, 5  ;;  %v2067_v63 = vsel %vm14218_vm11, %v2062_v53, %v2066_v24  ;;  %v2378_v54 = vld [vmem:[#allocation2 + $0x5c] sm:$0x1]  ;;  %v5013_v4 = vpop.f32.mrf.mxu2 }
 0x158   : > { %v11345_v41 = vrot.slane %v2376_v1, 9  ;;  %v2500_v15 = vrot.slane %v2498_v58, 4  ;;  %v1544_v7 = vld [vmem:[#allocation2 + $0x54] sm:$0xe]  ;;  %v2077_v11 = vsel %vm14218_vm11, %v2072_v14, %v2076_v27  ;;  %2338 = vst [vmem:[#allocation4 + $0x1c0] sm:$0xf] %v2067_v63 }
 0x159   : > { %v2501_v22 = vrot.slane %v2378_v54, 5  ;;  %v11330_v25 = vrot.slane %v1544_v7, 9  ;;  %v11561_v37 = vld [vmem:[#allocation4 + $0x170] sm:$0xf]  ;;  %2339 = vst [vmem:[#allocation4 + $0x1e4] sm:$0xf] %v2077_v11 }
 0x15a   : > { %v14718_v48 = vld [vmem:[%s16971_s3] ss:$0 sm:$0xff]  ;;  %v2499_v49 = vsel %vm14544_vm14, %v11345_v41, %v2498_v58  ;;  %v1546_v47 = vld [vmem:[#allocation2 + $0x5c] sm:$0x1]  ;;  %v13203_v27 = vld [vmem:[#allocation4 + $0x190] sm:$0xf0] }
 0x15b   : > { %v5014_v24 = vadd.f32 %v14718_v48, %v5013_v4  ;;  %v4974_v51 = vadd.f32 %v14718_v48, %v4973_v38  ;;  %v13357_v52 = vld [vmem:[#allocation8 + $0x1e0] sm:$0xff]  ;;  %v2502_v53 = vsel %vm14544_vm14, %v2500_v15, %v2501_v22  ;;  %2610 = vst [vmem:[#allocation4 + $0x1c4] sm:$0xf] %v2499_v49  ;;  %v1674_v61 = vsel %vm14544_vm14, %v11330_v25, %v1673_v10  ;;  %v11569_v1 = vld [vmem:[#allocation4 + $0x178] sm:$0xf] }
 0x15c   : > { %v1675_v14 = vrot.slane %v1673_v10, 4  ;;  %2611 = vst [vmem:[#allocation4 + $0x1e8] sm:$0xf] %v2502_v53  ;;  %v1676_v63 = vrot.slane %v1546_v47, 5  ;;  %v1884_v54 = vld [vmem:[#allocation2 + $0x64] sm:$0xf]  ;;  %5565 = vmatpush.bf16.msra.mxu3 %v13357_v52  ;;  %v11562_v4 = vor.u32 %v13203_v27, %v11561_v37  ;;  %v14735_v53 = vpop.f32.mrf.mxu0 }
 0x15d   : > { %5234 = vmatmul.bf16.gmra.mxu3 %v11530_v62  ;;  %v2081_v7 = vrot.slane %v2079_v0, 4  ;;  %1780 = vst [vmem:[#allocation4 + $0x200] sm:$0xf] %v1674_v61  ;;  %v1885_v38 = vld [vmem:[#allocation2 + $0x68] sm:$0x1]  ;;  %v2082_v62 = vshll.u32 %v14708_v43, 16 }
 0x15e   : > { %5412 = vmatmul.bf16.gmra.mxu1 %v11538_v20  ;;  %v2088_v41 = vshll.u32 %v1884_v54, 16  ;;  %v13204_v15 = vld [vmem:[#allocation4 + $0x198] sm:$0xf0]  ;;  %v13365_v25 = vld [vmem:[#allocation8 + $0x220] sm:$0xff]  ;;  %v1677_v10 = vsel %vm14544_vm14, %v1675_v14, %v1676_v63  ;;  %v2092_v49 = vshrl.u32 %v1884_v54, 16  ;;  %v2098_v52 = vshll.u32 %v1885_v38, 16 }
 0x15f   : > { %1781 = vst [vmem:[#allocation4 + $0x224] sm:$0xf] %v1677_v10  ;;  %v2084_v0 = vrot.slane %v2082_v62, 5  ;;  %5654 = vmatpush.bf16.msra.mxu0 %v13365_v25  ;;  %v1812_v37 = vld [vmem:[#allocation2 + $0x60] sm:$0xf]  ;;  %v11570_v27 = vor.u32 %v13204_v15, %v11569_v1 }
 0x160   : > { %v2090_v20 = vrot.slane %v2088_v41, 5  ;;  %v2094_v43 = vrot.slane %v2092_v49, 4  ;;  %v2100_v23 = vrot.slane %v2098_v52, 5  ;;  %1844 = vst [vmem:[#allocation4 + $0x204] sm:$0xf] %v1812_v37 }
 0x161   : > { %v5102_v58 = vpop.f32.mrf.mxu3  ;;  %v5062_v11 = vpop.f32.mrf.mxu1  ;;  %v2085_v61 = vor.u32 %v2084_v0, %v2081_v7  ;;  %v1886_v14 = vld [vmem:[#allocation2 + $0x6c] sm:$0xf]  ;;  %v1887_v41 = vld [vmem:[#allocation2 + $0x70] sm:$0xf]  ;;  %v2380_v7 = vld [vmem:[#allocation2 + $0x64] sm:$0xf] }
 0x162   : > { %v14729_v22 = vadd.f32 %v5102_v58, %v5014_v24  ;;  %v14733_v47 = vadd.f32 %v5062_v11, %v4974_v51  ;;  %v1813_v24 = vld [vmem:[#allocation2 + $0x64] sm:$0xf]  ;;  %v11563_v51 = vld [vmem:[#allocation4 + $0x194] sm:$0xf0]  ;;  %v2103_v54 = vshrl.u32 %v1886_v14, 16  ;;  %v2106_v11 = vshll.u32 %v1886_v14, 16 }
 0x163   : > { %5150 = vmatmul.bf16.gmra.mxu2 %v11562_v4  ;;  %v13199_v58 = vld [vmem:[#allocation4 + $0x174] sm:$0xf]  ;;  %v2086_v63 = vrot.slane %v2085_v61, 4  ;;  %1845 = vst [vmem:[#allocation4 + $0x228] sm:$0xf] %v1813_v24  ;;  %v2505_v10 = vrot.slane %v2380_v7, 5 }
 0x164   : > { %17006 = vst [vmem:[#allocation27_spill] sm:$0xff] %v14729_v22  ;;  %v2095_v22 = vor.u32 %v2094_v43, %v2090_v20  ;;  %v13200_v62 = vld [vmem:[#allocation4 + $0x17c] sm:$0xf]  ;;  %v11571_v25 = vld [vmem:[#allocation4 + $0x19c] sm:$0xf0]  ;;  %v2105_v4 = vrot.slane %v2103_v54, 4  ;;  %v11566_v52 = vor.u32 %v13199_v58, %v11563_v51  ;;  %v14741_v43 = vpop.f32.mrf.mxu2  ;;  %v4978_v18 = vpop.f32.mrf.mxu0 }
 0x165   : > { %v2091_v1 = vsel %vm14218_vm11, %v2086_v63, %v2090_v20  ;;  %v2112_v49 = vshll.u32 %v1887_v41, 16  ;;  %v2116_v0 = vshrl.u32 %v1887_v41, 16  ;;  %17007 = vst [vmem:[#allocation28_spill] sm:$0xff] %v14741_v43  ;;  %v2381_v37 = vld [vmem:[#allocation2 + $0x68] sm:$0x1]  ;;  %v2507_v61 = vrot.slane %v2505_v10, 4 }
 0x166   : > { %v2096_v38 = vrot.slane %v2095_v22, 4  ;;  %5328 = vmatmul.bf16.gmra.mxu0 %v11570_v27  ;;  %2340 = vst [vmem:[#allocation4 + $0x208] sm:$0xf] %v2091_v1  ;;  %v2379_v22 = vld [vmem:[#allocation2 + $0x60] sm:$0xe]  ;;  %v2508_v24 = vrot.slane %v2381_v37, 5  ;;  %v11574_v63 = vor.u32 %v13200_v62, %v11571_v25 }
 0x167   : > { %v11346_v27 = vrot.slane %v2379_v22, 9  ;;  %v1547_v14 = vld [vmem:[#allocation2 + $0x60] sm:$0xe]  ;;  %v2108_v20 = vrot.slane %v2106_v11, 5  ;;  %v1548_v54 = vld [vmem:[#allocation2 + $0x64] sm:$0xf] }
 0x168   : > { %v2101_v15 = vsel %vm14218_vm11, %v2096_v38, %v2100_v23  ;;  %v1549_v55 = vld [vmem:[#allocation2 + $0x68] sm:$0x1]  ;;  %v2509_v58 = vsel %vm14544_vm14, %v2507_v61, %v2508_v24  ;;  %v11331_v51 = vrot.slane %v1547_v14, 9  ;;  %v1888_v41 = vld [vmem:[#allocation2 + $0x74] sm:$0x1]  ;;  %v2114_v25 = vrot.slane %v2112_v49, 5 }
 0x169   : > { %2341 = vst [vmem:[#allocation4 + $0x22c] sm:$0xf] %v2101_v15  ;;  %v11597_v23 = vld [vmem:[#allocation4 + $0x1b8] sm:$0xf]  ;;  %v2506_v38 = vsel %vm14544_vm14, %v11346_v27, %v2505_v10  ;;  %v14747_v1 = vpop.f32.mrf.mxu1  ;;  %v13212_v7 = vld [vmem:[#allocation4 + $0x1d8] sm:$0xf0]  ;;  %v2109_v62 = vor.u32 %v2108_v20, %v2105_v4  ;;  %v14749_v43 = vpop.f32.mrf.mxu3 }
 0x16a   : > { %2612 = vst [vmem:[#allocation4 + $0x20c] sm:$0xf] %v2506_v38  ;;  %v1680_v15 = vrot.slane %v1548_v54, 5  ;;  %v1683_v11 = vrot.slane %v1549_v55, 5  ;;  %v2118_v22 = vrot.slane %v2116_v0, 4  ;;  %v2122_v37 = vshll.u32 %v1888_v41, 16 }
 0x16b   : > { %2613 = vst [vmem:[#allocation4 + $0x230] sm:$0xf] %v2509_v58  ;;  %v11605_v10 = vld [vmem:[#allocation4 + $0x1c0] sm:$0xf]  ;;  %v11598_v24 = vor.u32 %v13212_v7, %v11597_v23  ;;  %v13213_v14 = vld [vmem:[#allocation4 + $0x1e0] sm:$0xf0] }
 0x16c   : > { %17008 = vst [vmem:[#allocation29_spill] sm:$0xff] %v14749_v43  ;;  %v1681_v27 = vsel %vm14544_vm14, %v11331_v51, %v1680_v15  ;;  %v1682_v61 = vrot.slane %v1680_v15, 4  ;;  %v2119_v38 = vor.u32 %v2118_v22, %v2114_v25  ;;  %v2124_v54 = vrot.slane %v2122_v37, 5  ;;  %v1814_v0 = vld [vmem:[#allocation2 + $0x6c] sm:$0xf] }
 0x16d   : > { %5239 = vmatmul.bf16.gmra.mxu3 %v11566_v52  ;;  %v2110_v52 = vrot.slane %v2109_v62, 4  ;;  %1782 = vst [vmem:[#allocation4 + $0x248] sm:$0xf] %v1681_v27  ;;  %v11606_v20 = vor.u32 %v13213_v14, %v11605_v10  ;;  %v1815_v58 = vld [vmem:[#allocation2 + $0x70] sm:$0xf]  ;;  %v4979_v51 = vadd.f32 %v14718_v48, %v4978_v18  ;;  %v14761_v62 = vpop.f32.mrf.mxu0 }
 0x16e   : > { %5417 = vmatmul.bf16.gmra.mxu1 %v11574_v63  ;;  %v1684_v55 = vsel %vm14544_vm14, %v1682_v61, %v1683_v11  ;;  %v2120_v49 = vrot.slane %v2119_v38, 4  ;;  %v5018_v63 = vpop.f32.mrf.mxu2  ;;  %1846 = vst [vmem:[#allocation4 + $0x24c] sm:$0xf] %v1814_v0  ;;  %v1889_v41 = vld [vmem:[#allocation2 + $0x78] sm:$0xf] }
 0x16f   : > { %v2115_v4 = vsel %vm14218_vm11, %v2110_v52, %v2114_v25  ;;  %1783 = vst [vmem:[#allocation4 + $0x26c] sm:$0xf] %v1684_v55  ;;  %v13208_v7 = vld [vmem:[#allocation4 + $0x1bc] sm:$0xf]  ;;  %v11599_v15 = vld [vmem:[#allocation4 + $0x1dc] sm:$0xf0]  ;;  %v5019_v11 = vadd.f32 %v14718_v48, %v5018_v63 }
 0x170   : > { %2342 = vst [vmem:[#allocation4 + $0x250] sm:$0xf] %v2115_v4  ;;  %v2125_v23 = vsel %vm14218_vm11, %v2120_v49, %v2124_v54  ;;  %v1890_v25 = vld [vmem:[#allocation2 + $0x7c] sm:$0xf]  ;;  %v2127_v22 = vshrl.u32 %v1889_v41, 16  ;;  %v2130_v14 = vshll.u32 %v1889_v41, 16  ;;  %v11602_v38 = vor.u32 %v13208_v7, %v11599_v15 }
 0x171   : > { %2343 = vst [vmem:[#allocation4 + $0x274] sm:$0xf] %v2125_v23  ;;  %v13209_v10 = vld [vmem:[#allocation4 + $0x1c4] sm:$0xf]  ;;  %v2383_v18 = vld [vmem:[#allocation2 + $0x70] sm:$0xf] }
 0x172   : > { %1847 = vst [vmem:[#allocation4 + $0x270] sm:$0xf] %v1815_v58  ;;  %v11607_v61 = vld [vmem:[#allocation4 + $0x1e4] sm:$0xf0]  ;;  %v2512_v52 = vrot.slane %v2383_v18, 5  ;;  %v13348_v55 = vld [vmem:[#allocation8 + $0x198] sm:$0xff] }
 0x173   : > { %5155 = vmatmul.bf16.gmra.mxu2 %v11598_v24  ;;  %v1551_v24 = vld [vmem:[#allocation2 + $0x70] sm:$0xf]  ;;  %v2382_v4 = vld [vmem:[#allocation2 + $0x6c] sm:$0xe]  ;;  %v2136_v0 = vshll.u32 %v1890_v25, 16  ;;  %v2129_v43 = vrot.slane %v2127_v22, 4  ;;  %v11610_v45 = vor.u32 %v13209_v10, %v11607_v61 }
 0x174   : > { %v1687_v49 = vrot.slane %v1551_v24, 5  ;;  %v2384_v58 = vld [vmem:[#allocation2 + $0x74] sm:$0x1]  ;;  %v11347_v23 = vrot.slane %v2382_v4, 9  ;;  %v11633_v19 = vld [vmem:[#allocation4 + $0x200] sm:$0xf]  ;;  %5477 = vmatpush.bf16.msra.mxu2 %v13348_v55 }
 0x175   : > { %v2140_v6 = vshrl.u32 %v1890_v25, 16  ;;  %v1552_v7 = vld [vmem:[#allocation2 + $0x74] sm:$0x1]  ;;  %v1891_v24 = vld [vmem:[#allocation2 + $0x80] sm:$0x1]  ;;  %v2132_v59 = vrot.slane %v2130_v14, 5 }
 0x176   : > { %5333 = vmatmul.bf16.gmra.mxu0 %v11606_v20  ;;  %v2514_v20 = vrot.slane %v2512_v52, 4  ;;  %v1689_v18 = vrot.slane %v1687_v49, 4  ;;  %v2513_v41 = vsel %vm14544_vm14, %v11347_v23, %v2512_v52  ;;  %v13356_v4 = vld [vmem:[#allocation8 + $0x1d8] sm:$0xff]  ;;  %v1690_v10 = vrot.slane %v1552_v7, 5  ;;  %v11641_v52 = vld [vmem:[#allocation4 + $0x208] sm:$0xf] }
 0x177   : > { %2614 = vst [vmem:[#allocation4 + $0x254] sm:$0xf] %v2513_v41  ;;  %v2133_v61 = vor.u32 %v2132_v59, %v2129_v43  ;;  %v2138_v55 = vrot.slane %v2136_v0, 5  ;;  %5566 = vmatpush.bf16.msra.mxu3 %v13356_v4  ;;  %v11669_v9 = vld [vmem:[#allocation4 + $0x248] sm:$0xf] }
 0x178   : > { %v5067_v37 = vpop.f32.mrf.mxu1  ;;  %v1691_v14 = vsel %vm14544_vm14, %v1689_v18, %v1690_v10  ;;  %v1816_v18 = vld [vmem:[#allocation2 + $0x78] sm:$0xf]  ;;  %v1559_v33 = vld [vmem:[#allocation2 + $0x90] sm:$0xe] }
 0x179   : > { %v14763_v27 = vadd.f32 %v5067_v37, %v4979_v51  ;;  %v2515_v51 = vrot.slane %v2384_v58, 5  ;;  %v1550_v37 = vld [vmem:[#allocation2 + $0x6c] sm:$0xe]  ;;  %v2146_v58 = vshll.u32 %v1891_v24, 16  ;;  %1785 = vst [vmem:[#allocation4 + $0x2b4] sm:$0xf] %v1691_v14 }
 0x17a   : > { %v5107_v54 = vpop.f32.mrf.mxu3  ;;  %v11332_v15 = vrot.slane %v1550_v37, 9  ;;  %v13222_v37 = vld [vmem:[#allocation4 + $0x228] sm:$0xf0]  ;;  %v2134_v41 = vrot.slane %v2133_v61, 4  ;;  %1848 = vst [vmem:[#allocation4 + $0x294] sm:$0xf] %v1816_v18 }
 0x17b   : > { %v14765_v63 = vadd.f32 %v5107_v54, %v5019_v11  ;;  %v5020_v11 = vpop.f32.mrf.mxu2  ;;  %v13221_v54 = vld [vmem:[#allocation4 + $0x220] sm:$0xf0]  ;;  %v2516_v22 = vsel %vm14544_vm14, %v2514_v20, %v2515_v51  ;;  %v4983_v20 = vpop.f32.mrf.mxu0  ;;  %v2148_v59 = vrot.slane %v2146_v58, 5  ;;  %v11635_v10 = vld [vmem:[#allocation4 + $0x224] sm:$0xf0] }
 0x17c   : > { %2615 = vst [vmem:[#allocation4 + $0x278] sm:$0xf] %v2516_v22  ;;  %v1688_v25 = vsel %vm14544_vm14, %v11332_v15, %v1687_v49  ;;  %v5021_v23 = vadd.f32 %v14718_v48, %v5020_v11  ;;  %v11634_v51 = vor.u32 %v13221_v54, %v11633_v19  ;;  %v2139_v0 = vsel %vm14218_vm11, %v2134_v41, %v2138_v55  ;;  %v1892_v19 = vld [vmem:[#allocation2 + $0x84] sm:$0xf]  ;;  %v13217_v11 = vld [vmem:[#allocation4 + $0x204] sm:$0xf] }
 0x17d   : > { %17009 = vst [vmem:[#allocation30_spill] sm:$0xff] %v14765_v63  ;;  %5244 = vmatmul.bf16.gmra.mxu3 %v11602_v38  ;;  %v2142_v38 = vrot.slane %v2140_v6, 4  ;;  %v1817_v6 = vld [vmem:[#allocation2 + $0x7c] sm:$0xf]  ;;  %v11642_v15 = vor.u32 %v13222_v37, %v11641_v52  ;;  %v13364_v54 = vld [vmem:[#allocation8 + $0x218] sm:$0xff]  ;;  %v2151_v22 = vshrl.u32 %v1892_v19, 16  ;;  %v4984_v41 = vadd.f32 %v14718_v48, %v4983_v20 }
 0x17e   : > { %5422 = vmatmul.bf16.gmra.mxu1 %v11610_v45  ;;  %1784 = vst [vmem:[#allocation4 + $0x290] sm:$0xf] %v1688_v25  ;;  %v1893_v25 = vld [vmem:[#allocation2 + $0x88] sm:$0xf]  ;;  %v2386_v14 = vld [vmem:[#allocation2 + $0x7c] sm:$0xf]  ;;  %5655 = vmatpush.bf16.msra.mxu0 %v13364_v54 }
 0x17f   : > { %v2143_v49 = vor.u32 %v2142_v38, %v2138_v55  ;;  %2344 = vst [vmem:[#allocation4 + $0x298] sm:$0xf] %v2139_v0  ;;  %v13218_v55 = vld [vmem:[#allocation4 + $0x20c] sm:$0xf]  ;;  %v2153_v52 = vrot.slane %v2151_v22, 4  ;;  %v2154_v38 = vshll.u32 %v1892_v19, 16 }
 0x180   : > { %v14776_v43 = vpop.f32.mrf.mxu1  ;;  %1849 = vst [vmem:[#allocation4 + $0x2b8] sm:$0xf] %v1817_v6  ;;  %v11643_v58 = vld [vmem:[#allocation4 + $0x22c] sm:$0xf0]  ;;  %v2160_v37 = vshll.u32 %v1893_v25, 16 }
 0x181   : > { %v2144_v24 = vrot.slane %v2143_v49, 4  ;;  %v2385_v49 = vld [vmem:[#allocation2 + $0x78] sm:$0xe]  ;;  %v2156_v18 = vrot.slane %v2154_v38, 5  ;;  %v11646_v19 = vor.u32 %v13218_v55, %v11643_v58  ;;  %v1555_v54 = vld [vmem:[#allocation2 + $0x80] sm:$0x1] }
 0x182   : > { %v5109_v7 = vpop.f32.mrf.mxu3  ;;  %v13230_v20 = vld [vmem:[#allocation4 + $0x268] sm:$0xf0]  ;;  %v2162_v58 = vrot.slane %v2160_v37, 5  ;;  %v13239_v31 = vld [vmem:[#allocation4 + $0x2b0] sm:$0xf0] }
 0x183   : > { %v14778_v45 = vadd.f32 %v5109_v7, %v5021_v23  ;;  %5160 = vmatmul.bf16.gmra.mxu2 %v11634_v51  ;;  %v2149_v4 = vsel %vm14218_vm11, %v2144_v24, %v2148_v59  ;;  %v2519_v23 = vrot.slane %v2386_v14, 5  ;;  %v1554_v51 = vld [vmem:[#allocation2 + $0x7c] sm:$0xf]  ;;  %v11638_v7 = vor.u32 %v13217_v11, %v11635_v10  ;;  %v2387_v59 = vld [vmem:[#allocation2 + $0x80] sm:$0x1]  ;;  %v14785_v6 = vpop.f32.mrf.mxu0 }
 0x184   : > { %2345 = vst [vmem:[#allocation4 + $0x2bc] sm:$0xf] %v2149_v4  ;;  %v1694_v0 = vrot.slane %v1554_v51, 5  ;;  %v2522_v4 = vrot.slane %v2387_v59, 5  ;;  %v1894_v14 = vld [vmem:[#allocation2 + $0x8c] sm:$0x1]  ;;  %v2157_v63 = vor.u32 %v2156_v18, %v2153_v52 }
 0x185   : > { %17010 = vst [vmem:[#allocation31_spill] sm:$0xff] %v14778_v45  ;;  %v2521_v24 = vrot.slane %v2519_v23, 4  ;;  %v1553_v45 = vld [vmem:[#allocation2 + $0x78] sm:$0xe]  ;;  %v2164_v59 = vshrl.u32 %v1893_v25, 16  ;;  %v2170_v18 = vshll.u32 %v1894_v14, 16 }
 0x186   : > { %5338 = vmatmul.bf16.gmra.mxu0 %v11642_v15  ;;  %v5023_v61 = vpop.f32.mrf.mxu2  ;;  %v11348_v15 = vrot.slane %v2385_v49, 9  ;;  %v11333_v38 = vrot.slane %v1553_v45, 9  ;;  %v1696_v51 = vrot.slane %v1694_v0, 4  ;;  %v2158_v55 = vrot.slane %v2157_v63, 4  ;;  %v13231_v63 = vld [vmem:[#allocation4 + $0x270] sm:$0xf0] }
 0x187   : > { %v5024_v22 = vadd.f32 %v14718_v48, %v5023_v61  ;;  %v2523_v10 = vsel %vm14544_vm14, %v2521_v24, %v2522_v4  ;;  %v1697_v61 = vrot.slane %v1555_v54, 5  ;;  %v2166_v37 = vrot.slane %v2164_v59, 4  ;;  %v1818_v24 = vld [vmem:[#allocation2 + $0x84] sm:$0xf]  ;;  %v1819_v4 = vld [vmem:[#allocation2 + $0x88] sm:$0xf] }
 0x188   : > { %v2520_v11 = vsel %vm14544_vm14, %v11348_v15, %v2519_v23  ;;  %2617 = vst [vmem:[#allocation4 + $0x2c0] sm:$0xf] %v2523_v10  ;;  %v1695_v52 = vsel %vm14544_vm14, %v11333_v38, %v1694_v0  ;;  %v11677_v23 = vld [vmem:[#allocation4 + $0x250] sm:$0xf]  ;;  %v2172_v0 = vrot.slane %v2170_v18, 5 }
 0x189   : > { %2616 = vst [vmem:[#allocation4 + $0x29c] sm:$0xf] %v2520_v11  ;;  %v1698_v45 = vsel %vm14544_vm14, %v1696_v51, %v1697_v61  ;;  %v2167_v25 = vor.u32 %v2166_v37, %v2162_v58  ;;  %v11671_v10 = vld [vmem:[#allocation4 + $0x26c] sm:$0xf0]  ;;  %v13227_v38 = vld [vmem:[#allocation4 + $0x254] sm:$0xf] }
 0x18a   : > { %1786 = vst [vmem:[#allocation4 + $0x2d8] sm:$0xf] %v1695_v52  ;;  %v11679_v52 = vld [vmem:[#allocation4 + $0x274] sm:$0xf0] }
 0x18b   : > { %v5072_v26 = vpop.f32.mrf.mxu1  ;;  %1787 = vst [vmem:[#allocation4 + $0x2fc] sm:$0xf] %v1698_v45  ;;  %v2168_v11 = vrot.slane %v2167_v25, 4  ;;  %v2389_v59 = vld [vmem:[#allocation2 + $0x88] sm:$0xf] }
 0x18c   : > { %v14792_v49 = vadd.f32 %v5072_v26, %v4984_v41  ;;  %v2163_v26 = vsel %vm14218_vm11, %v2158_v55, %v2162_v58  ;;  %1850 = vst [vmem:[#allocation4 + $0x2dc] sm:$0xf] %v1818_v24  ;;  %v2526_v45 = vrot.slane %v2389_v59, 5  ;;  %v13520_v25 = vld [vmem:[#allocation10 + $0x38] sm:$0xff]  ;;  %v2388_v24 = vld [vmem:[#allocation2 + $0x84] sm:$0xe] }
 0x18d   : > { %5249 = vmatmul.bf16.gmra.mxu3 %v11638_v7  ;;  %v11670_v7 = vor.u32 %v13230_v20, %v11669_v9  ;;  %2346 = vst [vmem:[#allocation4 + $0x2e0] sm:$0xf] %v2163_v26  ;;  %v13226_v9 = vld [vmem:[#allocation4 + $0x24c] sm:$0xf]  ;;  %v1895_v20 = vld [vmem:[#allocation2 + $0x90] sm:$0xf]  ;;  %10273 = vmatpush.bf16.msra.mxu1 %v13520_v25 }
 0x18e   : > { %v5025_v34 = vpop.f32.mrf.mxu2  ;;  %5427 = vmatmul.bf16.gmra.mxu1 %v11646_v19  ;;  %v11678_v19 = vor.u32 %v13231_v63, %v11677_v23  ;;  %1851 = vst [vmem:[#allocation4 + $0x300] sm:$0xf] %v1819_v4  ;;  %v2175_v51 = vshrl.u32 %v1895_v20, 16  ;;  %v2178_v61 = vshll.u32 %v1895_v20, 16  ;;  %v1557_v26 = vld [vmem:[#allocation2 + $0x88] sm:$0xf]  ;;  %v11674_v37 = vor.u32 %v13226_v9, %v11671_v10 }
 0x18f   : > { %v5026_v55 = vadd.f32 %v14718_v48, %v5025_v34  ;;  %v1701_v4 = vrot.slane %v1557_v26, 5  ;;  %v2528_v20 = vrot.slane %v2526_v45, 4  ;;  %v1897_v26 = vld [vmem:[#allocation2 + $0x98] sm:$0x1] }
 0x190   : > { %v5112_v41 = vpop.f32.mrf.mxu3  ;;  %v2180_v34 = vrot.slane %v2178_v61, 5 }
 0x191   : > { %v14800_v15 = vadd.f32 %v5112_v41, %v5024_v22  ;;  %v2173_v22 = vsel %vm14218_vm11, %v2168_v11, %v2172_v0  ;;  %v1896_v41 = vld [vmem:[#allocation2 + $0x94] sm:$0xf]  ;;  %v13347_v0 = vld [vmem:[#allocation8 + $0x190] sm:$0xff]  ;;  %v11349_v11 = vrot.slane %v2388_v24, 9  ;;  %v1703_v59 = vrot.slane %v1701_v4, 4 }
 0x192   : > { %2347 = vst [vmem:[#allocation4 + $0x304] sm:$0xf] %v2173_v22  ;;  %v11682_v22 = vor.u32 %v13227_v38, %v11679_v52  ;;  %5478 = vmatpush.bf16.msra.mxu2 %v13347_v0  ;;  %v2184_v24 = vshll.u32 %v1896_v41, 16  ;;  %v13355_v38 = vld [vmem:[#allocation8 + $0x1d0] sm:$0xff] }
 0x193   : > { %17011 = vst [vmem:[#allocation32_spill] sm:$0xff] %v14800_v15  ;;  %v14802_v54 = vpop.f32.mrf.mxu1  ;;  %v14804_v14 = vpop.f32.mrf.mxu0  ;;  %5165 = vmatmul.bf16.gmra.mxu2 %v11670_v7  ;;  %v2177_v7 = vrot.slane %v2175_v51, 4  ;;  %v11705_v15 = vld [vmem:[#allocation4 + $0x290] sm:$0xf]  ;;  %v2527_v10 = vsel %vm14544_vm14, %v11349_v11, %v2526_v45  ;;  %5567 = vmatpush.bf16.msra.mxu3 %v13355_v38 }
 0x194   : > { %2618 = vst [vmem:[#allocation4 + $0x2e4] sm:$0xf] %v2527_v10  ;;  %v13240_v10 = vld [vmem:[#allocation4 + $0x2b8] sm:$0xf0] }
 0x195   : > { %v2181_v51 = vor.u32 %v2180_v34, %v2177_v7  ;;  %v2186_v34 = vrot.slane %v2184_v24, 5 }
 0x196   : > { %5343 = vmatmul.bf16.gmra.mxu0 %v11678_v19  ;;  %v5126_v58 = vpop.f32.mrf.mxu2  ;;  %v2390_v19 = vld [vmem:[#allocation2 + $0x8c] sm:$0x1] }
 0x197   : > { %v5127_v23 = vadd.f32 %v5126_v58, %v14540_v36  ;;  %v2529_v36 = vrot.slane %v2390_v19, 5  ;;  %v1556_v58 = vld [vmem:[#allocation2 + $0x84] sm:$0xe]  ;;  %v2182_v0 = vrot.slane %v2181_v51, 4  ;;  %v2188_v19 = vshrl.u32 %v1896_v41, 16 }
 0x198   : > { %v5114_v18 = vpop.f32.mrf.mxu3  ;;  %v11334_v61 = vrot.slane %v1556_v58, 9 }
 0x199   : > { %v14810_v63 = vadd.f32 %v5114_v18, %v5026_v55  ;;  %v1558_v18 = vld [vmem:[#allocation2 + $0x8c] sm:$0x1]  ;;  %v2530_v52 = vsel %vm14544_vm14, %v2528_v20, %v2529_v36  ;;  %v2190_v11 = vrot.slane %v2188_v19, 4  ;;  %v11706_v20 = vor.u32 %v13239_v31, %v11705_v15  ;;  %v11713_v36 = vld [vmem:[#allocation4 + $0x298] sm:$0xf] }
 0x19a   : > { %v1704_v25 = vrot.slane %v1558_v18, 5  ;;  %2619 = vst [vmem:[#allocation4 + $0x308] sm:$0xf] %v2530_v52  ;;  %v1702_v7 = vsel %vm14544_vm14, %v11334_v61, %v1701_v4  ;;  %v2187_v41 = vsel %vm14218_vm11, %v2182_v0, %v2186_v34  ;;  %v4951_v4 = vadd.f32 %v14718_v48, %v14549_v57  ;;  %v1820_v61 = vld [vmem:[#allocation2 + $0x90] sm:$0xf]  ;;  %v13363_v0 = vld [vmem:[#allocation8 + $0x210] sm:$0xff] }
 0x19b   : > { %17012 = vst [vmem:[#allocation33_spill] sm:$0xff] %v14810_v63  ;;  %v14812_v55 = vpop.f32.mrf.mxu0  ;;  %v5393_v9 = vpop.f32.mrf.mxu1  ;;  %v2194_v63 = vshll.u32 %v1897_v26, 16  ;;  %v2191_v18 = vor.u32 %v2190_v11, %v2186_v34  ;;  %v1821_v26 = vld [vmem:[#allocation2 + $0x94] sm:$0xf]  ;;  %v11714_v24 = vor.u32 %v13240_v10, %v11713_v36  ;;  %v13235_v52 = vld [vmem:[#allocation4 + $0x294] sm:$0xf]  ;;  %5656 = vmatpush.bf16.msra.mxu0 %v13363_v0 }
 0x19c   : > { %1788 = vst [vmem:[#allocation4 + $0x320] sm:$0xf] %v1702_v7  ;;  %v5040_v57 = vadd.f32 %v14557_v3, %v4951_v4  ;;  %v13236_v34 = vld [vmem:[#allocation4 + $0x29c] sm:$0xf]  ;;  %v2392_v36 = vld [vmem:[#allocation2 + $0x94] sm:$0xf] }
 0x19d   : > { %5254 = vmatmul.bf16.gmra.mxu3 %v11674_v37  ;;  %v1705_v37 = vsel %vm14544_vm14, %v1703_v59, %v1704_v25  ;;  %2348 = vst [vmem:[#allocation4 + $0x328] sm:$0xf] %v2187_v41  ;;  %v2192_v38 = vrot.slane %v2191_v18, 4  ;;  %v1898_v25 = vld [vmem:[#allocation2 + $0x9c] sm:$0xf] }
 0x19e   : > { %v5128_v45 = vpop.f32.mrf.mxu2  ;;  %5432 = vmatmul.bf16.gmra.mxu1 %v11682_v22  ;;  %1789 = vst [vmem:[#allocation4 + $0x344] sm:$0xf] %v1705_v37  ;;  %v2196_v22 = vrot.slane %v2194_v63, 5  ;;  %v11707_v63 = vld [vmem:[#allocation4 + $0x2b4] sm:$0xf0]  ;;  %v2199_v7 = vshrl.u32 %v1898_v25, 16 }
 0x19f   : > { %1852 = vst [vmem:[#allocation4 + $0x324] sm:$0xf] %v1820_v61  ;;  %v2202_v37 = vshll.u32 %v1898_v25, 16  ;;  %v5129_v11 = vadd.f32 %v5128_v45, %v5040_v57  ;;  %v1560_v4 = vld [vmem:[#allocation2 + $0x94] sm:$0xf]  ;;  %v11710_v61 = vor.u32 %v13235_v52, %v11707_v63 }
 0x1a0   : > { %v5215_v58 = vpop.f32.mrf.mxu3  ;;  %1853 = vst [vmem:[#allocation4 + $0x348] sm:$0xf] %v1821_v26  ;;  %v2197_v19 = vsel %vm14218_vm11, %v2192_v38, %v2196_v22  ;;  %v2201_v10 = vrot.slane %v2199_v7, 4  ;;  %v2391_v26 = vld [vmem:[#allocation2 + $0x90] sm:$0xe]  ;;  %v1708_v38 = vrot.slane %v1560_v4, 5 }
 0x1a1   : > { %v5216_v51 = vadd.f32 %v5215_v58, %v5127_v23  ;;  %2349 = vst [vmem:[#allocation4 + $0x34c] sm:$0xf] %v2197_v19  ;;  %v11350_v45 = vrot.slane %v2391_v26, 9  ;;  %v13249_v26 = vld [vmem:[#allocation4 + $0x300] sm:$0xf0] }
 0x1a3   : > { %v5305_v59 = vadd.f32 %v14804_v14, %v5216_v51  ;;  %v14827_v31 = vpop.f32.mrf.mxu0  ;;  %5170 = vmatmul.bf16.gmra.mxu2 %v11706_v20  ;;  %v5395_v15 = vpop.f32.mrf.mxu1  ;;  %v1899_v14 = vld [vmem:[#allocation2 + $0xa0] sm:$0xf]  ;;  %v11715_v20 = vld [vmem:[#allocation4 + $0x2bc] sm:$0xf0]  ;;  %v2204_v51 = vrot.slane %v2202_v37, 5 }
 0x1a4   : > { %v2208_v18 = vshll.u32 %v1899_v14, 16  ;;  %v2212_v25 = vshrl.u32 %v1899_v14, 16  ;;  %v11741_v37 = vld [vmem:[#allocation4 + $0x2d8] sm:$0xf]  ;;  %v11335_v14 = vrot.slane %v1559_v33, 9 }
 0x1a5   : > { %v14830_v23 = vadd.f32 %v5393_v9, %v5305_v59  ;;  %v2533_v9 = vrot.slane %v2392_v36, 5  ;;  %v2393_v59 = vld [vmem:[#allocation2 + $0x98] sm:$0x1]  ;;  %v2205_v19 = vor.u32 %v2204_v51, %v2201_v10 }
 0x1a6   : > { %5348 = vmatmul.bf16.gmra.mxu0 %v11714_v24  ;;  %v5131_v58 = vpop.f32.mrf.mxu2  ;;  %v2536_v57 = vrot.slane %v2393_v59, 5  ;;  %v2210_v36 = vrot.slane %v2208_v18, 5  ;;  %v1709_v10 = vsel %vm14544_vm14, %v11335_v14, %v1708_v38  ;;  %v2214_v51 = vrot.slane %v2212_v25, 4  ;;  %v1901_v14 = vld [vmem:[#allocation2 + $0xa8] sm:$0xf] }
 0x1a7   : > { %17013 = vst [vmem:[#allocation34_spill] sm:$0xff] %v14830_v23  ;;  %v5132_v3 = vadd.f32 %v5131_v58, %v14579_v60  ;;  %v2535_v24 = vrot.slane %v2533_v9, 4  ;;  %v11718_v23 = vor.u32 %v13236_v34, %v11715_v20  ;;  %v1561_v60 = vld [vmem:[#allocation2 + $0x98] sm:$0x1]  ;;  %v2534_v52 = vsel %vm14544_vm14, %v11350_v45, %v2533_v9 }
 0x1a8   : > { %v5217_v41 = vpop.f32.mrf.mxu3  ;;  %2620 = vst [vmem:[#allocation4 + $0x32c] sm:$0xf] %v2534_v52  ;;  %v1710_v34 = vrot.slane %v1708_v38, 4  ;;  %v1711_v20 = vrot.slane %v1561_v60, 5  ;;  %v2206_v4 = vrot.slane %v2205_v19, 4  ;;  %v2215_v45 = vor.u32 %v2214_v51, %v2210_v36 }
 0x1a9   : > { %v5218_v22 = vadd.f32 %v5217_v41, %v5129_v11  ;;  %v2537_v63 = vsel %vm14544_vm14, %v2535_v24, %v2536_v57  ;;  %v1900_v11 = vld [vmem:[#allocation2 + $0xa4] sm:$0x1]  ;;  %1790 = vst [vmem:[#allocation4 + $0x368] sm:$0xf] %v1709_v10  ;;  %v4956_v38 = vadd.f32 %v14718_v48, %v14588_v21  ;;  %v1822_v57 = vld [vmem:[#allocation2 + $0x9c] sm:$0xf] }
 0x1aa   : > { %2621 = vst [vmem:[#allocation4 + $0x350] sm:$0xf] %v2537_v63  ;;  %v1712_v33 = vsel %vm14544_vm14, %v1710_v34, %v1711_v20  ;;  %v2218_v18 = vshll.u32 %v1900_v11, 16  ;;  %v2211_v59 = vsel %vm14218_vm11, %v2206_v4, %v2210_v36  ;;  %v1823_v19 = vld [vmem:[#allocation2 + $0xa0] sm:$0xf] }
 0x1ab   : > { %v5307_v7 = vadd.f32 %v14812_v55, %v5218_v22  ;;  %v14836_v0 = vpop.f32.mrf.mxu0  ;;  %v5398_v58 = vpop.f32.mrf.mxu1  ;;  %v13248_v55 = vld [vmem:[#allocation4 + $0x2f8] sm:$0xf0]  ;;  %1791 = vst [vmem:[#allocation4 + $0x38c] sm:$0xf] %v1712_v33  ;;  %v5045_v21 = vadd.f32 %v14596_v32, %v4956_v38  ;;  %v11743_v36 = vld [vmem:[#allocation4 + $0x2fc] sm:$0xf0] }
 0x1ac   : > { %v11742_v22 = vor.u32 %v13248_v55, %v11741_v37  ;;  %v2220_v24 = vrot.slane %v2218_v18, 5  ;;  %2350 = vst [vmem:[#allocation4 + $0x370] sm:$0xf] %v2211_v59  ;;  %v13244_v11 = vld [vmem:[#allocation4 + $0x2dc] sm:$0xf]  ;;  %v2226_v55 = vshll.u32 %v1901_v14, 16 }
 0x1ad   : > { %v14842_v41 = vadd.f32 %v5395_v15, %v5307_v7  ;;  %5259 = vmatmul.bf16.gmra.mxu3 %v11710_v61  ;;  %v11749_v61 = vld [vmem:[#allocation4 + $0x2e0] sm:$0xf]  ;;  %1854 = vst [vmem:[#allocation4 + $0x36c] sm:$0xf] %v1822_v57  ;;  %v13245_v10 = vld [vmem:[#allocation4 + $0x2e4] sm:$0xf] }
 0x1ae   : > { %v5133_v9 = vpop.f32.mrf.mxu2  ;;  %5437 = vmatmul.bf16.gmra.mxu1 %v11718_v23  ;;  %v2216_v23 = vrot.slane %v2215_v45, 4  ;;  %v11750_v60 = vor.u32 %v13249_v26, %v11749_v61  ;;  %1855 = vst [vmem:[#allocation4 + $0x390] sm:$0xf] %v1823_v19  ;;  %v11751_v4 = vld [vmem:[#allocation4 + $0x304] sm:$0xf0]  ;;  %v11746_v26 = vor.u32 %v13244_v11, %v11743_v36  ;;  %v13519_v59 = vld [vmem:[#allocation10 + $0x30] sm:$0xff] }
 0x1af   : > { %v5134_v34 = vadd.f32 %v5133_v9, %v5045_v21  ;;  %v2395_v51 = vld [vmem:[#allocation2 + $0xa0] sm:$0xf]  ;;  %v13346_v45 = vld [vmem:[#allocation8 + $0x188] sm:$0xff]  ;;  %v11754_v9 = vor.u32 %v13245_v10, %v11751_v4  ;;  %10274 = vmatpush.bf16.msra.mxu1 %v13519_v59 }
 0x1b0   : > { %v5220_v15 = vpop.f32.mrf.mxu3  ;;  %v2221_v63 = vsel %vm14218_vm11, %v2216_v23, %v2220_v24  ;;  %v2394_v38 = vld [vmem:[#allocation2 + $0x9c] sm:$0xe]  ;;  %v2228_v24 = vrot.slane %v2226_v55, 5  ;;  %v2396_v23 = vld [vmem:[#allocation2 + $0xa4] sm:$0x1]  ;;  %5479 = vmatpush.bf16.msra.mxu2 %v13346_v45 }
 0x1b1   : > { %v5221_v25 = vadd.f32 %v5220_v15, %v5132_v3  ;;  %2351 = vst [vmem:[#allocation4 + $0x394] sm:$0xf] %v2221_v63  ;;  %v1902_v3 = vld [vmem:[#allocation2 + $0xac] sm:$0xf]  ;;  %v2540_v15 = vrot.slane %v2395_v51, 5  ;;  %v11351_v57 = vrot.slane %v2394_v38, 9 }
 0x1b2   : > { %v11777_v63 = vld [vmem:[#allocation4 + $0x320] sm:$0xf] }
 0x1b3   : > { %v5310_v7 = vadd.f32 %v14827_v31, %v5221_v25  ;;  %v14853_v37 = vpop.f32.mrf.mxu0  ;;  %5175 = vmatmul.bf16.gmra.mxu2 %v11742_v22  ;;  %v5400_v52 = vpop.f32.mrf.mxu1  ;;  %v2223_v31 = vshrl.u32 %v1901_v14, 16  ;;  %v1563_v22 = vld [vmem:[#allocation2 + $0xa0] sm:$0xf]  ;;  %v2542_v19 = vrot.slane %v2540_v15, 4  ;;  %v1562_v14 = vld [vmem:[#allocation2 + $0x9c] sm:$0xe]  ;;  %v2541_v55 = vsel %vm14544_vm14, %v11351_v57, %v2540_v15 }
 0x1b4   : > { %v1715_v25 = vrot.slane %v1563_v22, 5  ;;  %v11336_v10 = vrot.slane %v1562_v14, 9  ;;  %2622 = vst [vmem:[#allocation4 + $0x374] sm:$0xf] %v2541_v55  ;;  %v1903_v22 = vld [vmem:[#allocation2 + $0xb0] sm:$0x1] }
 0x1b5   : > { %v14858_v48 = vadd.f32 %v5398_v58, %v5310_v7  ;;  %v2225_v32 = vrot.slane %v2223_v31, 4  ;;  %v2232_v58 = vshll.u32 %v1902_v3, 16  ;;  %v2236_v7 = vshrl.u32 %v1902_v3, 16  ;;  %v13253_v55 = vld [vmem:[#allocation4 + $0x324] sm:$0xf] }
 0x1b6   : > { %5353 = vmatmul.bf16.gmra.mxu0 %v11750_v60  ;;  %v5136_v20 = vpop.f32.mrf.mxu2  ;;  %v1717_v21 = vrot.slane %v1715_v25, 4  ;;  %v2242_v15 = vshll.u32 %v1903_v22, 16 }
 0x1b7   : > { %v5137_v18 = vadd.f32 %v5136_v20, %v14613_v44  ;;  %v2543_v44 = vrot.slane %v2396_v23, 5  ;;  %v2229_v31 = vor.u32 %v2228_v24, %v2225_v32  ;;  %v1564_v20 = vld [vmem:[#allocation2 + $0xa4] sm:$0x1]  ;;  %v2234_v4 = vrot.slane %v2232_v58, 5  ;;  %v11785_v58 = vld [vmem:[#allocation4 + $0x328] sm:$0xf] }
 0x1b8   : > { %v5222_v33 = vpop.f32.mrf.mxu3  ;;  %v1716_v32 = vsel %vm14544_vm14, %v11336_v10, %v1715_v25  ;;  %v2238_v59 = vrot.slane %v2236_v7, 4  ;;  %v13258_v24 = vld [vmem:[#allocation4 + $0x348] sm:$0xf0]  ;;  %v2244_v25 = vrot.slane %v2242_v15, 5  ;;  %v1904_v10 = vld [vmem:[#allocation2 + $0xb4] sm:$0xf] }
 0x1b9   : > { %v5223_v61 = vadd.f32 %v5222_v33, %v5134_v34  ;;  %v13257_v34 = vld [vmem:[#allocation4 + $0x340] sm:$0xf0]  ;;  %v2544_v51 = vsel %vm14544_vm14, %v2542_v19, %v2543_v44  ;;  %v1718_v33 = vrot.slane %v1564_v20, 5  ;;  %1792 = vst [vmem:[#allocation4 + $0x3b0] sm:$0xf] %v1716_v32  ;;  %v2250_v22 = vshll.u32 %v1904_v10, 16 }
 0x1ba   : > { %2623 = vst [vmem:[#allocation4 + $0x398] sm:$0xf] %v2544_v51  ;;  %v11778_v38 = vor.u32 %v13257_v34, %v11777_v63  ;;  %v2239_v57 = vor.u32 %v2238_v59, %v2234_v4  ;;  %v14879_v19 = vld [vmem:[%s16971_s3] ss:$0 sm:$0xff]  ;;  %v1824_v44 = vld [vmem:[#allocation2 + $0xa8] sm:$0xf] }
 0x1bb   : > { %v5312_v60 = vadd.f32 %v14836_v0, %v5223_v61  ;;  %v14862_v11 = vpop.f32.mrf.mxu0  ;;  %v5403_v36 = vpop.f32.mrf.mxu1  ;;  %v13354_v0 = vld [vmem:[#allocation8 + $0x1c8] sm:$0xff]  ;;  %v2230_v61 = vrot.slane %v2229_v31, 4  ;;  %v1825_v63 = vld [vmem:[#allocation2 + $0xac] sm:$0xf]  ;;  %1856 = vst [vmem:[#allocation4 + $0x3b4] sm:$0xf] %v1824_v44 }
 0x1bc   : > { %5568 = vmatpush.bf16.msra.mxu3 %v13354_v0  ;;  %1857 = vst [vmem:[#allocation4 + $0x3d8] sm:$0xf] %v1825_v63  ;;  %v13362_v0 = vld [vmem:[#allocation8 + $0x208] sm:$0xff]  ;;  %v11787_v59 = vld [vmem:[#allocation4 + $0x34c] sm:$0xf0] }
 0x1bd   : > { %v14866_v3 = vadd.f32 %v5400_v52, %v5312_v60  ;;  %5264 = vmatmul.bf16.gmra.mxu3 %v11746_v26  ;;  %v1719_v52 = vsel %vm14544_vm14, %v1717_v21, %v1718_v33  ;;  %v2235_v23 = vsel %vm14218_vm11, %v2230_v61, %v2234_v4  ;;  %v2240_v60 = vrot.slane %v2239_v57, 4  ;;  %v11779_v4 = vld [vmem:[#allocation4 + $0x344] sm:$0xf0]  ;;  %v13254_v51 = vld [vmem:[#allocation4 + $0x32c] sm:$0xf]  ;;  %5657 = vmatpush.bf16.msra.mxu0 %v13362_v0 }
 0x1be   : > { %v5138_v45 = vpop.f32.mrf.mxu2  ;;  %5442 = vmatmul.bf16.gmra.mxu1 %v11754_v9  ;;  %1793 = vst [vmem:[#allocation4 + $0x3d4] sm:$0xf] %v1719_v52  ;;  %v4961_v9 = vadd.f32 %v14879_v19, %v14622_v56  ;;  %v11786_v21 = vor.u32 %v13258_v24, %v11785_v58  ;;  %v14891_v33 = vld [vmem:[#allocation2 + $0xb8] sm:$0xf]  ;;  %v2398_v15 = vld [vmem:[#allocation2 + $0xac] sm:$0xf]  ;;  %v11782_v57 = vor.u32 %v13253_v55, %v11779_v4 }
 0x1bf   : > { %2352 = vst [vmem:[#allocation4 + $0x3b8] sm:$0xf] %v2235_v23  ;;  %v2245_v20 = vsel %vm14218_vm11, %v2240_v60, %v2244_v25  ;;  %v2256_v24 = vshll.u32 %v14891_v33, 16  ;;  %v2397_v25 = vld [vmem:[#allocation2 + $0xa8] sm:$0xe] }
 0x1c0   : > { %v5225_v26 = vpop.f32.mrf.mxu3  ;;  %v5050_v56 = vadd.f32 %v14626_v17, %v4961_v9  ;;  %2353 = vst [vmem:[#allocation4 + $0x3dc] sm:$0xf] %v2245_v20  ;;  %v2547_v17 = vrot.slane %v2398_v15, 5  ;;  %v2399_v9 = vld [vmem:[#allocation2 + $0xb0] sm:$0x1] }
 0x1c1   : > { %v5226_v7 = vadd.f32 %v5225_v26, %v5137_v18  ;;  %v2550_v44 = vrot.slane %v2399_v9, 5  ;;  %v11813_v20 = vld [vmem:[#allocation4 + $0x368] sm:$0xf]  ;;  %v335_v15 = vld [vmem:[#allocation2 + $0xc0] sm:$0x1] }
 0x1c2   : > { %v5139_v32 = vadd.f32 %v5138_v45, %v5050_v56  ;;  %v11352_v45 = vrot.slane %v2397_v25, 9  ;;  %v2549_v60 = vrot.slane %v2547_v17, 4  ;;  %v1567_v56 = vld [vmem:[#allocation2 + $0xb0] sm:$0x1]  ;;  %v522_v9 = vld [vmem:[%s14166_s28 + $0x78] sm:$0xf] }
 0x1c3   : > { %v5315_v14 = vadd.f32 %v14853_v37, %v5226_v7  ;;  %v14884_v31 = vpop.f32.mrf.mxu0  ;;  %5180 = vmatmul.bf16.gmra.mxu2 %v11778_v38  ;;  %v5405_v34 = vpop.f32.mrf.mxu1  ;;  %v2247_v37 = vshrl.u32 %v1904_v10, 16  ;;  %v2252_v38 = vrot.slane %v2250_v22, 5  ;;  %v1565_v10 = vld [vmem:[#allocation2 + $0xa8] sm:$0xe] }
 0x1c4   : > { %v2548_v55 = vsel %vm14544_vm14, %v11352_v45, %v2547_v17  ;;  %v2551_v4 = vsel %vm14544_vm14, %v2549_v60, %v2550_v44  ;;  %v11337_v22 = vrot.slane %v1565_v10, 9  ;;  %v4966_v45 = vadd.f32 %v14879_v19, %v14660_v50 }
 0x1c5   : > { %v14889_v18 = vadd.f32 %v5403_v36, %v5315_v14  ;;  %v2249_v58 = vrot.slane %v2247_v37, 4  ;;  %v1566_v36 = vld [vmem:[#allocation2 + $0xac] sm:$0xf]  ;;  %2624 = vst [vmem:[#allocation4 + $0x3bc] sm:$0xf] %v2548_v55 }
 0x1c6   : > { %5358 = vmatmul.bf16.gmra.mxu0 %v11786_v21  ;;  %v5141_v61 = vpop.f32.mrf.mxu2  ;;  %v1722_v7 = vrot.slane %v1566_v36, 5  ;;  %v11790_v21 = vor.u32 %v13254_v51, %v11787_v59  ;;  %v1725_v51 = vrot.slane %v1567_v56, 5  ;;  %v385_v59 = vld [vmem:[#allocation2 + $0xc8] sm:$0x1]  ;;  %v13267_v36 = vld [vmem:[#allocation4 + $0x390] sm:$0xf0] }
 0x1c7   : > { %v5142_v26 = vadd.f32 %v5141_v61, %v14645_v35  ;;  %v2253_v63 = vor.u32 %v2252_v38, %v2249_v58  ;;  %v13266_v35 = vld [vmem:[#allocation4 + $0x388] sm:$0xf0]  ;;  %v2258_v61 = vrot.slane %v2256_v24, 5  ;;  %2625 = vst [vmem:[#allocation4 + $0x3e0] sm:$0xf] %v2551_v4  ;;  %v386_v10 = vsel %vm14187_vm5, 0, %v385_v59 }
 0x1c8   : > { %v5227_v52 = vpop.f32.mrf.mxu3  ;;  %v1723_v17 = vsel %vm14544_vm14, %v11337_v22, %v1722_v7  ;;  %v782_v56 = vshrl.u32 %v522_v9, 16  ;;  %v1826_v4 = vld [vmem:[#allocation2 + $0xb4] sm:$0xf]  ;;  %v1827_v22 = vld [vmem:[#allocation2 + $0xb8] sm:$0xf] }
 0x1c9   : > { %v5228_v23 = vadd.f32 %v5227_v52, %v5139_v32  ;;  %v1906_v32 = vld [vmem:[#allocation2 + $0xbc] sm:$0x1]  ;;  %v11821_v52 = vld [vmem:[#allocation4 + $0x370] sm:$0xf]  ;;  %v2254_v38 = vrot.slane %v2253_v63, 4 }
 0x1ca   : > { %v2266_v24 = vshll.u32 %v1906_v32, 16  ;;  %1794 = vst [vmem:[#allocation4 + $0x3f8] sm:$0xf] %v1723_v17  ;;  %v523_v63 = vld [vmem:[%s14166_s28 + $0x7c] sm:$0xf] }
 0x1cb   : > { %v5317_v14 = vadd.f32 %v14862_v11, %v5228_v23  ;;  %v14896_v0 = vpop.f32.mrf.mxu0  ;;  %v5408_v37 = vpop.f32.mrf.mxu1  ;;  %v1724_v11 = vrot.slane %v1722_v7, 4  ;;  %v2260_v23 = vshrl.u32 %v14891_v33, 16  ;;  %v11814_v7 = vor.u32 %v13266_v35, %v11813_v20  ;;  %1858 = vst [vmem:[#allocation4 + $0x3fc] sm:$0xf] %v1826_v4  ;;  %v13262_v59 = vld [vmem:[#allocation4 + $0x36c] sm:$0xf] }
 0x1cc   : > { %v2259_v33 = vsel %vm14218_vm11, %v2254_v38, %v2258_v61  ;;  %v11822_v20 = vor.u32 %v13267_v36, %v11821_v52  ;;  %v790_v35 = vshrl.u32 %v523_v63, 16  ;;  %1859 = vst [vmem:[#allocation4 + $0x420] sm:$0xf] %v1827_v22  ;;  %v13263_v17 = vld [vmem:[#allocation4 + $0x374] sm:$0xf]  ;;  %v784_v52 = vrot.slane %v782_v56, 7 }
 0x1cd   : > { %v14902_v58 = vadd.f32 %v5405_v34, %v5317_v14  ;;  %5269 = vmatmul.bf16.gmra.mxu3 %v11782_v57  ;;  %v1726_v34 = vsel %vm14544_vm14, %v1724_v11, %v1725_v51  ;;  %v336_v57 = vsel %vm14178_vm2, 0, %v335_v15  ;;  %v2262_v44 = vrot.slane %v2260_v23, 4  ;;  %2354 = vst [vmem:[#allocation4 + $0x400] sm:$0xf] %v2259_v33  ;;  %v11823_v38 = vld [vmem:[#allocation4 + $0x394] sm:$0xf0] }
 0x1ce   : > { %v5143_v25 = vpop.f32.mrf.mxu2  ;;  %5447 = vmatmul.bf16.gmra.mxu1 %v11790_v21  ;;  %1795 = vst [vmem:[#allocation4 + $0x41c] sm:$0xf] %v1726_v34  ;;  %v2268_v21 = vrot.slane %v2266_v24, 5  ;;  %v5055_v11 = vadd.f32 %v14664_v12, %v4966_v45  ;;  %v785_v36 = vshll.u32 %v522_v9, 16  ;;  %v2401_v34 = vld [vmem:[#allocation2 + $0xb8] sm:$0xf] }
 0x1cf   : > { %v2263_v55 = vor.u32 %v2262_v44, %v2258_v61  ;;  %337 = vst [vmem:[#allocation2 + $0xc0] sm:$0x1] %v336_v57  ;;  %v11815_v61 = vld [vmem:[#allocation4 + $0x38c] sm:$0xf0]  ;;  %v792_v57 = vrot.slane %v790_v35, 7  ;;  %v2554_v45 = vrot.slane %v2401_v34, 5 }
 0x1d0   : > { %v5230_v60 = vpop.f32.mrf.mxu3  ;;  %387 = vst [vmem:[#allocation2 + $0xc8] sm:$0x1] %v386_v10  ;;  %v5144_v23 = vadd.f32 %v5143_v25, %v5055_v11  ;;  %v11818_v44 = vor.u32 %v13262_v59, %v11815_v61  ;;  %v13518_v10 = vld [vmem:[#allocation10 + $0x28] sm:$0xff]  ;;  %v787_v22 = vor.u32 %v785_v36, %v784_v52  ;;  %v13275_v35 = vld [vmem:[#allocation4 + $0x3d0] sm:$0xf0] }
 0x1d1   : > { %v5231_v14 = vadd.f32 %v5230_v60, %v5142_v26  ;;  %v2264_v26 = vrot.slane %v2263_v55, 4  ;;  %v793_v60 = vshll.u32 %v523_v63, 16  ;;  %v13345_v55 = vld [vmem:[#allocation8 + $0x180] sm:$0xff]  ;;  %v2402_v9 = vld [vmem:[#allocation2 + $0xbc] sm:$0x1]  ;;  %v2556_v4 = vrot.slane %v2554_v45, 4  ;;  %10275 = vmatpush.bf16.msra.mxu1 %v13518_v10 }
 0x1d2   : > { %v11849_v63 = vld [vmem:[#allocation4 + $0x3b0] sm:$0xf]  ;;  %5480 = vmatpush.bf16.msra.mxu2 %v13345_v55  ;;  %v797_v36 = vrot.slane %v792_v57, 4  ;;  %v11857_v55 = vld [vmem:[#allocation4 + $0x3b8] sm:$0xf] }
 0x1d3   : > { %v5320_v50 = vadd.f32 %v14884_v31, %v5231_v14  ;;  %v14920_v32 = vpop.f32.mrf.mxu0  ;;  %5185 = vmatmul.bf16.gmra.mxu2 %v11814_v7  ;;  %v5410_v15 = vpop.f32.mrf.mxu1  ;;  %v2269_v31 = vsel %vm14218_vm11, %v2264_v26, %v2268_v21  ;;  %v1569_v7 = vld [vmem:[#allocation2 + $0xb8] sm:$0xf]  ;;  %v11826_v14 = vor.u32 %v13263_v17, %v11823_v38  ;;  %v2400_v21 = vld [vmem:[#allocation2 + $0xb4] sm:$0xe]  ;;  %v795_v59 = vor.u32 %v793_v60, %v792_v57 }
 0x1d4   : > { %2355 = vst [vmem:[#allocation4 + $0x424] sm:$0xf] %v2269_v31  ;;  %v1729_v56 = vrot.slane %v1569_v7, 5  ;;  %v11353_v25 = vrot.slane %v2400_v21, 9  ;;  %v1568_v26 = vld [vmem:[#allocation2 + $0xb4] sm:$0xe]  ;;  %v11850_v10 = vor.u32 %v13275_v35, %v11849_v63 }
 0x1d5   : > { %v14923_v51 = vadd.f32 %v5408_v37, %v5320_v50  ;;  %v788_v50 = vrot.slane %v784_v52, 4  ;;  %v1570_v31 = vld [vmem:[#allocation2 + $0xbc] sm:$0x1]  ;;  %v13276_v21 = vld [vmem:[#allocation4 + $0x3d8] sm:$0xf0]  ;;  %v13361_v35 = vld [vmem:[#allocation8 + $0x200] sm:$0xff] }
 0x1d6   : > { %5363 = vmatmul.bf16.gmra.mxu0 %v11822_v20  ;;  %v5146_v24 = vpop.f32.mrf.mxu2  ;;  %v1731_v11 = vrot.slane %v1729_v56, 4  ;;  %v2555_v38 = vsel %vm14544_vm14, %v11353_v25, %v2554_v45  ;;  %v953_v52 = vld [vmem:[#allocation2 + $0xc0] sm:$0xf] }
 0x1d7   : > { %v5147_v37 = vadd.f32 %v5146_v24, %v14683_v42  ;;  %v2557_v42 = vrot.slane %v2402_v9, 5  ;;  %2626 = vst [vmem:[#allocation4 + $0x404] sm:$0xf] %v2555_v38  ;;  %v957_v60 = vld [vmem:[#allocation2 + $0xc8] sm:$0x1]  ;;  %v954_v45 = vsel %vm14206_vm10, %v787_v22, %v953_v52  ;;  %v796_v57 = vsel %vm14196_vm9, %v788_v50, %v795_v59  ;;  %5658 = vmatpush.bf16.msra.mxu0 %v13361_v35 }
 0x1d8   : > { %v5232_v12 = vpop.f32.mrf.mxu3  ;;  %v4971_v9 = vadd.f32 %v14879_v19, %v14690_v30  ;;  %955 = vst [vmem:[#allocation2 + $0xc0] sm:$0xf] %v954_v45  ;;  %v11859_v59 = vld [vmem:[#allocation4 + $0x3dc] sm:$0xf0] }
 0x1d9   : > { %v5233_v33 = vadd.f32 %v5232_v12, %v5144_v23  ;;  %v11338_v23 = vrot.slane %v1568_v26, 9  ;;  %v2558_v34 = vsel %vm14544_vm14, %v2556_v4, %v2557_v42  ;;  %v1732_v12 = vrot.slane %v1570_v31, 5  ;;  %956 = vst [vmem:[#allocation2 + $0xc4] sm:$0xf] %v796_v57  ;;  %v13271_v42 = vld [vmem:[#allocation4 + $0x3b4] sm:$0xf] }
 0x1da   : > { %2627 = vst [vmem:[#allocation4 + $0x428] sm:$0xf] %v2558_v34  ;;  %v11858_v4 = vor.u32 %v13276_v21, %v11857_v55  ;;  %v11851_v26 = vld [vmem:[#allocation4 + $0x3d4] sm:$0xf0] }
 0x1db   : > { %v5322_v20 = vadd.f32 %v14896_v0, %v5233_v33  ;;  %v14929_v61 = vpop.f32.mrf.mxu0  ;;  %v5413_v17 = vpop.f32.mrf.mxu1  ;;  %v13353_v0 = vld [vmem:[#allocation8 + $0x1c0] sm:$0xff]  ;;  %v1730_v7 = vsel %vm14544_vm14, %v11338_v23, %v1729_v56  ;;  %v958_v56 = vsel %vm14178_vm2, %v797_v36, %v957_v60  ;;  %v11854_v52 = vor.u32 %v13271_v42, %v11851_v26  ;;  %v11885_v57 = vld [vmem:[#allocation4 + $0x3f8] sm:$0xf] }
 0x1dc   : > { %5569 = vmatpush.bf16.msra.mxu3 %v13353_v0  ;;  %1796 = vst [vmem:[#allocation4 + $0x440] sm:$0xf] %v1730_v7 }
 0x1dd   : > { %v14933_v24 = vadd.f32 %v5410_v15, %v5322_v20  ;;  %5274 = vmatmul.bf16.gmra.mxu3 %v11818_v44  ;;  %v1733_v15 = vsel %vm14544_vm14, %v1731_v11, %v1732_v12  ;;  %959 = vst [vmem:[#allocation2 + $0xc8] sm:$0x1] %v958_v56  ;;  %v5060_v20 = vadd.f32 %v14706_v28, %v4971_v9  ;;  %v13272_v11 = vld [vmem:[#allocation4 + $0x3bc] sm:$0xf] }
 0x1de   : > { %v5148_v33 = vpop.f32.mrf.mxu2  ;;  %5452 = vmatmul.bf16.gmra.mxu1 %v11826_v14  ;;  %1797 = vst [vmem:[#allocation4 + $0x464] sm:$0xf] %v1733_v15  ;;  %v11862_v12 = vor.u32 %v13272_v11, %v11859_v59 }
 0x1df   : > { %v5149_v30 = vadd.f32 %v5148_v33, %v5060_v20  ;;  %v1907_v31 = vld [vmem:[#allocation2 + $0xc0] sm:$0xf]  ;;  %v3192_v33 = vld [vmem:[#allocation2 + $0x1c] sm:$0xf] }
 0x1e0   : > { %v5235_v44 = vpop.f32.mrf.mxu3  ;;  %v1828_v23 = vld [vmem:[#allocation2 + $0xc0] sm:$0xf]  ;;  %v1908_v0 = vld [vmem:[#allocation2 + $0xc4] sm:$0xf]  ;;  %v2271_v28 = vshrl.u32 %v1907_v31, 16 }
 0x1e1   : > { %v5236_v14 = vadd.f32 %v5235_v44, %v5147_v37  ;;  %v1829_v34 = vld [vmem:[#allocation2 + $0xc4] sm:$0xf]  ;;  %v2280_v7 = vshll.u32 %v1908_v0, 16  ;;  %v2284_v45 = vshrl.u32 %v1908_v0, 16  ;;  %1860 = vst [vmem:[#allocation4 + $0x444] sm:$0xf] %v1828_v23  ;;  %v4976_v23 = vadd.f32 %v14879_v19, %v14735_v53 }
 0x1e2   : > { %v2273_v44 = vrot.slane %v2271_v28, 4  ;;  %1861 = vst [vmem:[#allocation4 + $0x468] sm:$0xf] %v1829_v34  ;;  %v3289_v28 = vrot.slane %v3192_v33, 5 }
 0x1e3   : > { %v5325_v25 = vadd.f32 %v14920_v32, %v5236_v14  ;;  %v14950_v22 = vpop.f32.mrf.mxu0  ;;  %5190 = vmatmul.bf16.gmra.mxu2 %v11850_v10  ;;  %v14952_v50 = vpop.f32.mrf.mxu1  ;;  %v2282_v9 = vrot.slane %v2280_v7, 5  ;;  %v2286_v14 = vrot.slane %v2284_v45, 4 }
 0x1e4   : > { %v1909_v60 = vld [vmem:[#allocation2 + $0xc8] sm:$0x1] }
 0x1e5   : > { %v14955_v63 = vadd.f32 %v5413_v17, %v5325_v25  ;;  %v2274_v17 = vshll.u32 %v1907_v31, 16  ;;  %v2290_v55 = vshll.u32 %v1909_v60, 16  ;;  %v2403_v25 = vld [vmem:[#allocation2 + $0xc0] sm:$0xe]  ;;  %v2405_v42 = vld [vmem:[#allocation2 + $0xc8] sm:$0x1]  ;;  %v2287_v11 = vor.u32 %v2286_v14, %v2282_v9 }
 0x1e6   : > { %5368 = vmatmul.bf16.gmra.mxu0 %v11858_v4  ;;  %v5151_v37 = vpop.f32.mrf.mxu2  ;;  %v2404_v4 = vld [vmem:[#allocation2 + $0xc4] sm:$0xf]  ;;  %v11354_v26 = vrot.slane %v2403_v25, 9  ;;  %v2632_v31 = vld [vmem:[#allocation2 + $0x1c] sm:$0xf] }
 0x1e7   : > { %v5152_v38 = vadd.f32 %v5151_v37, %v14733_v47  ;;  %v13284_v47 = vld [vmem:[#allocation4 + $0x418] sm:$0xf0]  ;;  %v2276_v10 = vrot.slane %v2274_v17, 5  ;;  %v2292_v35 = vrot.slane %v2290_v55, 5  ;;  %v13285_v37 = vld [vmem:[#allocation4 + $0x420] sm:$0xf0] }
 0x1e8   : > { %v5237_v32 = vpop.f32.mrf.mxu3  ;;  %v2561_v59 = vrot.slane %v2404_v4, 5  ;;  %2664 = vst [vmem:[#allocation4 + $0x3c] sm:$0xf] %v2632_v31  ;;  %v11886_v34 = vor.u32 %v13284_v47, %v11885_v57  ;;  %v2288_v60 = vrot.slane %v2287_v11, 4  ;;  %v11887_v31 = vld [vmem:[#allocation4 + $0x41c] sm:$0xf0] }
 0x1e9   : > { %v5238_v36 = vadd.f32 %v5237_v32, %v5149_v30  ;;  %v2277_v20 = vor.u32 %v2276_v10, %v2273_v44  ;;  %v11893_v30 = vld [vmem:[#allocation4 + $0x400] sm:$0xf]  ;;  %v2564_v32 = vrot.slane %v2405_v42, 5  ;;  %v3193_v44 = vld [vmem:[#allocation2 + $0x20] sm:$0x1] }
 0x1ea   : > { %v2562_v7 = vsel %vm14544_vm14, %v11354_v26, %v2561_v59  ;;  %v2563_v45 = vrot.slane %v2561_v59, 4  ;;  %v2695_v10 = vld [vmem:[#allocation2 + $0x18] sm:$0xf]  ;;  %v2293_v25 = vsel %vm14218_vm11, %v2288_v60, %v2292_v35  ;;  %v3292_v57 = vrot.slane %v3193_v44, 5  ;;  %v13280_v42 = vld [vmem:[#allocation4 + $0x3fc] sm:$0xf] }
 0x1eb   : > { %v14959_v15 = vadd.f32 %v14929_v61, %v5238_v36  ;;  %v14961_v21 = vpop.f32.mrf.mxu0  ;;  %v5418_v56 = vpop.f32.mrf.mxu1  ;;  %v2631_v61 = vld [vmem:[#allocation2 + $0x18] sm:$0xf]  ;;  %v2278_v0 = vrot.slane %v2277_v20, 4  ;;  %2628 = vst [vmem:[#allocation4 + $0x44c] sm:$0xf] %v2562_v7  ;;  %v2744_v47 = vshrl.u32 %v2695_v10, 16  ;;  %v11894_v20 = vor.u32 %v13285_v37, %v11893_v30 }
 0x1ec   : > { %2663 = vst [vmem:[#allocation4 + $0x18] sm:$0xf] %v2631_v61  ;;  %v2565_v33 = vsel %vm14544_vm14, %v2563_v45, %v2564_v32  ;;  %v2697_v26 = vld [vmem:[#allocation2 + $0x20] sm:$0x1]  ;;  %v2747_v32 = vshll.u32 %v2695_v10, 16  ;;  %v5065_v30 = vadd.f32 %v14747_v1, %v4976_v23 }
 0x1ed   : > { %5279 = vmatmul.bf16.gmra.mxu3 %v11854_v52  ;;  %v3191_v52 = vld [vmem:[#allocation2 + $0x18] sm:$0xe]  ;;  %v2283_v14 = vsel %vm14218_vm11, %v2278_v0, %v2282_v9  ;;  %2357 = vst [vmem:[#allocation4 + $0x46c] sm:$0xf] %v2293_v25  ;;  %v2696_v9 = vld [vmem:[#allocation2 + $0x1c] sm:$0xf] }
 0x1ee   : > { %v5153_v36 = vpop.f32.mrf.mxu2  ;;  %5457 = vmatmul.bf16.gmra.mxu1 %v11862_v12  ;;  %v11355_v53 = vrot.slane %v3191_v52, 9  ;;  %v3291_v12 = vrot.slane %v3289_v28, 4  ;;  %2356 = vst [vmem:[#allocation4 + $0x448] sm:$0xf] %v2283_v14  ;;  %v2746_v59 = vrot.slane %v2744_v47, 4  ;;  %v2757_v0 = vshrl.u32 %v2696_v9, 16 }
 0x1ef   : > { %2629 = vst [vmem:[#allocation4 + $0x470] sm:$0xf] %v2565_v33  ;;  %v2763_v52 = vshll.u32 %v2697_v26, 16  ;;  %v13281_v7 = vld [vmem:[#allocation4 + $0x404] sm:$0xf]  ;;  %v11890_v14 = vor.u32 %v13280_v42, %v11887_v31 }
 0x1f0   : > { %v5240_v17 = vpop.f32.mrf.mxu3  ;;  %v3293_v11 = vsel %vm14544_vm14, %v3291_v12, %v3292_v57  ;;  %v11895_v45 = vld [vmem:[#allocation4 + $0x424] sm:$0xf0]  ;;  %v2759_v44 = vrot.slane %v2757_v0, 4  ;;  %v2698_v57 = vld [vmem:[#allocation2 + $0x24] sm:$0xf] }
 0x1f1   : > { %v5241_v55 = vadd.f32 %v5240_v17, %v5152_v38  ;;  %v3290_v38 = vsel %vm14544_vm14, %v11355_v53, %v3289_v28  ;;  %3432 = vst [vmem:[#allocation4 + $0x44] sm:$0xf] %v3293_v11  ;;  %v2749_v28 = vrot.slane %v2747_v32, 5  ;;  %v13517_v53 = vld [vmem:[#allocation10 + $0x20] sm:$0xff]  ;;  %v2765_v25 = vrot.slane %v2763_v52, 5 }
 0x1f2   : > { %3431 = vst [vmem:[#allocation4 + $0x20] sm:$0xf] %v3290_v38  ;;  %v11898_v47 = vor.u32 %v13281_v7, %v11895_v45  ;;  %10276 = vmatpush.bf16.msra.mxu1 %v13517_v53  ;;  %v3196_v42 = vld [vmem:[#allocation2 + $0x2c] sm:$0x1]  ;;  %v2768_v11 = vshrl.u32 %v2698_v57, 16 }
 0x1f3   : > { %v5330_v4 = vadd.f32 %v14950_v22, %v5241_v55  ;;  %v14976_v61 = vpop.f32.mrf.mxu0  ;;  %5195 = vmatmul.bf16.gmra.mxu2 %v11886_v34  ;;  %v14978_v35 = vpop.f32.mrf.mxu1  ;;  %v2753_v22 = vshll.u32 %v2696_v9, 16  ;;  %v5154_v34 = vadd.f32 %v5153_v36, %v5065_v30  ;;  %v2750_v1 = vor.u32 %v2749_v28, %v2746_v59  ;;  %v11921_v9 = vld [vmem:[#allocation4 + $0x440] sm:$0xf]  ;;  %v2699_v0 = vld [vmem:[#allocation2 + $0x28] sm:$0xf] }
 0x1f4   : > { %v4981_v36 = vadd.f32 %v14879_v19, %v14761_v62  ;;  %v3299_v31 = vrot.slane %v3196_v42, 5  ;;  %v13294_v52 = vld [vmem:[#allocation4 + $0x468] sm:$0xf0]  ;;  %v2634_v7 = vld [vmem:[#allocation2 + $0x28] sm:$0xf] }
 0x1f5   : > { %v14983_v37 = vadd.f32 %v5418_v56, %v5330_v4  ;;  %v2755_v17 = vrot.slane %v2753_v22, 5  ;;  %v3195_v56 = vld [vmem:[#allocation2 + $0x28] sm:$0xf]  ;;  %v2751_v4 = vrot.slane %v2750_v1, 4  ;;  %v13293_v22 = vld [vmem:[#allocation4 + $0x460] sm:$0xf0] }
 0x1f6   : > { %5373 = vmatmul.bf16.gmra.mxu0 %v11894_v20  ;;  %v5156_v60 = vpop.f32.mrf.mxu2  ;;  %v3296_v33 = vrot.slane %v3195_v56, 5  ;;  %v3194_v20 = vld [vmem:[#allocation2 + $0x24] sm:$0xe]  ;;  %v2771_v1 = vshll.u32 %v2698_v57, 16  ;;  %v2777_v56 = vshll.u32 %v2699_v0, 16 }
 0x1f7   : > { %v5157_v10 = vadd.f32 %v5156_v60, %v14763_v27  ;;  %v2760_v12 = vor.u32 %v2759_v44, %v2755_v17  ;;  %v11356_v26 = vrot.slane %v3194_v20, 9  ;;  %v2756_v62 = vsel %vm14218_vm11, %v2751_v4, %v2755_v17  ;;  %v2700_v44 = vld [vmem:[#allocation2 + $0x2c] sm:$0x1]  ;;  %2666 = vst [vmem:[#allocation4 + $0x84] sm:$0xf] %v2634_v7 }
 0x1f8   : > { %v5242_v55 = vpop.f32.mrf.mxu3  ;;  %v3298_v30 = vrot.slane %v3296_v33, 4  ;;  %3159 = vst [vmem:[#allocation4 + $0x1c] sm:$0xf] %v2756_v62  ;;  %v5070_v60 = vadd.f32 %v14776_v43, %v4981_v36  ;;  %v2787_v43 = vshll.u32 %v2700_v44, 16  ;;  %v2773_v4 = vrot.slane %v2771_v1, 5 }
 0x1f9   : > { %v5243_v23 = vadd.f32 %v5242_v55, %v5154_v34  ;;  %v2761_v27 = vrot.slane %v2760_v12, 4  ;;  %v2633_v34 = vld [vmem:[#allocation2 + $0x24] sm:$0xf]  ;;  %v3297_v45 = vsel %vm14544_vm14, %v11356_v26, %v3296_v33  ;;  %v2779_v33 = vrot.slane %v2777_v56, 5  ;;  %v3199_v1 = vld [vmem:[#allocation2 + $0x38] sm:$0x1] }
 0x1fa   : > { %v3300_v17 = vsel %vm14544_vm14, %v3298_v30, %v3299_v31  ;;  %2665 = vst [vmem:[#allocation4 + $0x60] sm:$0xf] %v2633_v34  ;;  %v2789_v57 = vrot.slane %v2787_v43, 5  ;;  %v11923_v30 = vld [vmem:[#allocation4 + $0x464] sm:$0xf0]  ;;  %v4986_v7 = vadd.f32 %v14879_v19, %v14785_v6 }
 0x1fb   : > { %v14989_v38 = vadd.f32 %v14961_v21, %v5243_v23  ;;  %v14991_v59 = vpop.f32.mrf.mxu0  ;;  %v14993_v32 = vpop.f32.mrf.mxu1  ;;  %v11929_v21 = vld [vmem:[#allocation4 + $0x448] sm:$0xf]  ;;  %v2766_v28 = vsel %vm14218_vm11, %v2761_v27, %v2765_v25  ;;  %v2781_v23 = vshrl.u32 %v2699_v0, 16  ;;  %v11922_v25 = vor.u32 %v13293_v22, %v11921_v9  ;;  %3433 = vst [vmem:[#allocation4 + $0x68] sm:$0xf] %v3297_v45 }
 0x1fc   : > { %3160 = vst [vmem:[#allocation4 + $0x40] sm:$0xf] %v2766_v28  ;;  %v11930_v27 = vor.u32 %v13294_v52, %v11929_v21  ;;  %v13290_v0 = vld [vmem:[#allocation4 + $0x44c] sm:$0xf]  ;;  %v11931_v21 = vld [vmem:[#allocation4 + $0x46c] sm:$0xf0] }
 0x1fd   : > { %5284 = vmatmul.bf16.gmra.mxu3 %v11890_v14  ;;  %v2770_v14 = vrot.slane %v2768_v11, 4  ;;  %v2783_v20 = vrot.slane %v2781_v23, 4  ;;  %3434 = vst [vmem:[#allocation4 + $0x8c] sm:$0xf] %v3300_v17  ;;  %v2701_v56 = vld [vmem:[#allocation2 + $0x30] sm:$0xf] }
 0x1fe   : > { %v5158_v55 = vpop.f32.mrf.mxu2  ;;  %5462 = vmatmul.bf16.gmra.mxu1 %v11898_v47  ;;  %v13160_v6 = vld [vmem:[#allocation4 + $0x38] sm:$0xf0] }
 0x1ff   : > { %v5159_v12 = vadd.f32 %v5158_v55, %v5070_v60  ;;  %v2774_v47 = vor.u32 %v2773_v4, %v2770_v14  ;;  %v2784_v26 = vor.u32 %v2783_v20, %v2779_v33  ;;  %v3198_v60 = vld [vmem:[#allocation2 + $0x34] sm:$0xf]  ;;  %v11934_v55 = vor.u32 %v13290_v0, %v11931_v21  ;;  %v3197_v14 = vld [vmem:[#allocation2 + $0x30] sm:$0xe] }
 0x200   : > { %v5245_v53 = vpop.f32.mrf.mxu3  ;;  %v3303_v44 = vrot.slane %v3198_v60, 5  ;;  %v2795_v20 = vshll.u32 %v2701_v56, 16 }
 0x201   : > { %v5246_v36 = vadd.f32 %v5245_v53, %v5157_v10  ;;  %v2775_v9 = vrot.slane %v2774_v47, 4  ;;  %v2785_v22 = vrot.slane %v2784_v26, 4  ;;  %v13289_v10 = vld [vmem:[#allocation4 + $0x444] sm:$0xf]  ;;  %v11397_v53 = vld [vmem:[#allocation4 + $0x18] sm:$0xf]  ;;  %v5075_v26 = vadd.f32 %v14802_v54, %v4986_v7 }
 0x202   : > { %v11926_v17 = vor.u32 %v13289_v10, %v11923_v30  ;;  %v3305_v43 = vrot.slane %v3303_v44, 4  ;;  %v2703_v10 = vld [vmem:[#allocation2 + $0x38] sm:$0x1]  ;;  %v11398_v60 = vor.u32 %v13160_v6, %v11397_v53  ;;  %v11405_v7 = vld [vmem:[#allocation4 + $0x20] sm:$0xf] }
 0x203   : > { %v15005_v42 = vadd.f32 %v14976_v61, %v5246_v36  ;;  %v15007_v11 = vpop.f32.mrf.mxu0  ;;  %5200 = vmatmul.bf16.gmra.mxu2 %v11922_v25  ;;  %v15009_v62 = vpop.f32.mrf.mxu1  ;;  %v2780_v61 = vsel %vm14218_vm11, %v2775_v9, %v2779_v33  ;;  %v2790_v52 = vsel %vm14218_vm11, %v2785_v22, %v2789_v57  ;;  %v11357_v25 = vrot.slane %v3197_v14, 9  ;;  %v2702_v36 = vld [vmem:[#allocation2 + $0x34] sm:$0xf]  ;;  %v2635_v57 = vld [vmem:[#allocation2 + $0x30] sm:$0xf] }
 0x204   : > { %3161 = vst [vmem:[#allocation4 + $0x64] sm:$0xf] %v2780_v61  ;;  %v2805_v47 = vshrl.u32 %v2702_v36, 16  ;;  %v2636_v9 = vld [vmem:[#allocation2 + $0x34] sm:$0xf] }
 0x205   : > { %3162 = vst [vmem:[#allocation4 + $0x88] sm:$0xf] %v2790_v52  ;;  %v2811_v52 = vshll.u32 %v2703_v10, 16  ;;  %v2704_v10 = vld [vmem:[#allocation2 + $0x3c] sm:$0xf] }
 0x206   : > { %5378 = vmatmul.bf16.gmra.mxu0 %v11930_v27  ;;  %v5161_v31 = vpop.f32.mrf.mxu2  ;;  %v2801_v27 = vshll.u32 %v2702_v36, 16  ;;  %2667 = vst [vmem:[#allocation4 + $0xa8] sm:$0xf] %v2635_v57  ;;  %v2807_v21 = vrot.slane %v2805_v47, 4 }
 0x207   : > { %v5162_v34 = vadd.f32 %v5161_v31, %v14792_v49  ;;  %v3306_v49 = vrot.slane %v3199_v1, 5  ;;  %v2797_v31 = vrot.slane %v2795_v20, 5  ;;  %2668 = vst [vmem:[#allocation4 + $0xcc] sm:$0xf] %v2636_v9  ;;  %v2813_v1 = vrot.slane %v2811_v52, 5 }
 0x208   : > { %v5247_v28 = vpop.f32.mrf.mxu3  ;;  %v2803_v0 = vrot.slane %v2801_v27, 5  ;;  %v11399_v20 = vld [vmem:[#allocation4 + $0x3c] sm:$0xf0] }
 0x209   : > { %v5248_v45 = vadd.f32 %v5247_v28, %v5159_v12  ;;  %v2792_v12 = vshrl.u32 %v2701_v56, 16  ;;  %v3307_v22 = vsel %vm14544_vm14, %v3305_v43, %v3306_v49 }
 0x20a   : > { %3436 = vst [vmem:[#allocation4 + $0xd4] sm:$0xf] %v3307_v22 }
 0x20b   : > { %v15019_v23 = vadd.f32 %v14991_v59, %v5248_v45  ;;  %v15021_v4 = vpop.f32.mrf.mxu0  ;;  %v5428_v33 = vpop.f32.mrf.mxu1  ;;  %v3304_v59 = vsel %vm14544_vm14, %v11357_v25, %v3303_v44  ;;  %v2794_v30 = vrot.slane %v2792_v12, 4  ;;  %v13161_v45 = vld [vmem:[#allocation4 + $0x40] sm:$0xf0]  ;;  %v2808_v44 = vor.u32 %v2807_v21, %v2803_v0 }
 0x20c   : > { %3435 = vst [vmem:[#allocation4 + $0xb0] sm:$0xf] %v3304_v59  ;;  %v11406_v49 = vor.u32 %v13161_v45, %v11405_v7  ;;  %v13516_v59 = vld [vmem:[#allocation10 + $0x18] sm:$0xff]  ;;  %v2819_v21 = vshll.u32 %v2704_v10, 16 }
 0x20d   : > { %5289 = vmatmul.bf16.gmra.mxu3 %v11926_v17  ;;  %v2798_v17 = vor.u32 %v2797_v31, %v2794_v30  ;;  %v2809_v25 = vrot.slane %v2808_v44, 4  ;;  %v2705_v30 = vld [vmem:[#allocation2 + $0x40] sm:$0xf]  ;;  %v3200_v31 = vld [vmem:[#allocation2 + $0x3c] sm:$0xe]  ;;  %10277 = vmatpush.bf16.msra.mxu1 %v13516_v59 }
 0x20e   : > { %v5163_v61 = vpop.f32.mrf.mxu2  ;;  %5467 = vmatmul.bf16.gmra.mxu1 %v11934_v55  ;;  %v11358_v52 = vrot.slane %v3200_v31, 9  ;;  %v2825_v44 = vshll.u32 %v2705_v30, 16 }
 0x20f   : > { %v5164_v28 = vadd.f32 %v5163_v61, %v5075_v26  ;;  %v2799_v56 = vrot.slane %v2798_v17, 4  ;;  %v2814_v6 = vsel %vm14218_vm11, %v2809_v25, %v2813_v1  ;;  %v3201_v26 = vld [vmem:[#allocation2 + $0x40] sm:$0xf]  ;;  %v2637_v25 = vld [vmem:[#allocation2 + $0x3c] sm:$0xf] }
 0x210   : > { %v5250_v54 = vpop.f32.mrf.mxu3  ;;  %3164 = vst [vmem:[#allocation4 + $0xd0] sm:$0xf] %v2814_v6  ;;  %v3310_v22 = vrot.slane %v3201_v26, 5 }
 0x211   : > { %v5251_v14 = vadd.f32 %v5250_v54, %v5162_v34  ;;  %v2804_v53 = vsel %vm14218_vm11, %v2799_v56, %v2803_v0  ;;  %v13156_v34 = vld [vmem:[#allocation4 + $0x1c] sm:$0xf]  ;;  %v3202_v0 = vld [vmem:[#allocation2 + $0x44] sm:$0x1]  ;;  %v13169_v56 = vld [vmem:[#allocation4 + $0x80] sm:$0xf0] }
 0x212   : > { %3163 = vst [vmem:[#allocation4 + $0xac] sm:$0xf] %v2804_v53  ;;  %v11402_v9 = vor.u32 %v13156_v34, %v11399_v20  ;;  %v3312_v54 = vrot.slane %v3310_v22, 4  ;;  %v2706_v53 = vld [vmem:[#allocation2 + $0x44] sm:$0x1]  ;;  %v2827_v34 = vrot.slane %v2825_v44, 5 }
 0x213   : > { %v5340_v43 = vadd.f32 %v15007_v11, %v5251_v14  ;;  %v15029_v36 = vpop.f32.mrf.mxu0  ;;  %5481 = vmatmul.bf16.vlgmr.msra.gmra.mxu2 %v11398_v60  ;;  %v5430_v55 = vpop.f32.mrf.mxu1  ;;  %v3313_v60 = vrot.slane %v3202_v0, 5  ;;  %v2829_v14 = vshrl.u32 %v2705_v30, 16  ;;  %2669 = vst [vmem:[#allocation4 + $0xf0] sm:$0xf] %v2637_v25 }
 0x215   : > { %v15035_v12 = vadd.f32 %v5428_v33, %v5340_v43  ;;  %v2816_v33 = vshrl.u32 %v2704_v10, 16  ;;  %v2638_v43 = vld [vmem:[#allocation2 + $0x40] sm:$0xf]  ;;  %v2831_v20 = vrot.slane %v2829_v14, 4 }
 0x216   : > { %5659 = vmatmul.bf16.vlgmr.msra.gmra.mxu0 %v11406_v49  ;;  %v5166_v27 = vpop.f32.mrf.mxu2  ;;  %v3314_v49 = vsel %vm14544_vm14, %v3312_v54, %v3313_v60  ;;  %2670 = vst [vmem:[#allocation4 + $0x114] sm:$0xf] %v2638_v43 }
 0x217   : > { %v5167_v47 = vadd.f32 %v5166_v27, %v14561_v16  ;;  %v11433_v16 = vld [vmem:[#allocation4 + $0x60] sm:$0xf]  ;;  %v2818_v17 = vrot.slane %v2816_v33, 4  ;;  %v2832_v10 = vor.u32 %v2831_v20, %v2827_v34  ;;  %3438 = vst [vmem:[#allocation4 + $0x11c] sm:$0xf] %v3314_v49  ;;  %v4991_v33 = vadd.f32 %v14879_v19, %v14555_v2 }
 0x218   : > { %v5252_v11 = vpop.f32.mrf.mxu3  ;;  %v2707_v49 = vld [vmem:[#allocation2 + $0x48] sm:$0xf] }
 0x219   : > { %v5253_v57 = vadd.f32 %v5252_v11, %v5164_v28  ;;  %v2821_v28 = vrot.slane %v2819_v21, 5  ;;  %v11441_v11 = vld [vmem:[#allocation4 + $0x68] sm:$0xf]  ;;  %v2833_v0 = vrot.slane %v2832_v10, 4  ;;  %v5080_v60 = vadd.f32 %v14570_v39, %v4991_v33 }
 0x21b   : > { %v5342_v61 = vadd.f32 %v15021_v4, %v5253_v57  ;;  %v5346_v7 = vpop.f32.mrf.mxu0  ;;  %v5433_v45 = vpop.f32.mrf.mxu1  ;;  %v3311_v4 = vsel %vm14544_vm14, %v11358_v52, %v3310_v22  ;;  %v2822_v6 = vor.u32 %v2821_v28, %v2818_v17  ;;  %v11434_v57 = vor.u32 %v13169_v56, %v11433_v16  ;;  %v13165_v17 = vld [vmem:[#allocation4 + $0x64] sm:$0xf]  ;;  %v11435_v28 = vld [vmem:[#allocation4 + $0x84] sm:$0xf0]  ;;  %v3204_v56 = vld [vmem:[#allocation2 + $0x4c] sm:$0xf] }
 0x21c   : > { %3437 = vst [vmem:[#allocation4 + $0xf8] sm:$0xf] %v3311_v4  ;;  %v11438_v43 = vor.u32 %v13165_v17, %v11435_v28  ;;  %v3317_v4 = vrot.slane %v3204_v56, 5 }
 0x21d   : > { %v15039_v1 = vadd.f32 %v5430_v55, %v5342_v61  ;;  %5570 = vmatmul.bf16.vlgmr.msra.gmra.mxu3 %v11402_v9  ;;  %v2835_v55 = vshll.u32 %v2706_v53, 16  ;;  %v13170_v9 = vld [vmem:[#allocation4 + $0x88] sm:$0xf0]  ;;  %v2823_v59 = vrot.slane %v2822_v6, 4  ;;  %v2708_v53 = vld [vmem:[#allocation2 + $0x4c] sm:$0xf] }
 0x21e   : > { %v5168_v27 = vpop.f32.mrf.mxu2  ;;  %v11442_v61 = vor.u32 %v13170_v9, %v11441_v11  ;;  %v3203_v6 = vld [vmem:[#allocation2 + $0x48] sm:$0xe]  ;;  %v3319_v11 = vrot.slane %v3317_v4, 4  ;;  %v2840_v9 = vshrl.u32 %v2707_v49, 16  ;;  %v2849_v10 = vshll.u32 %v2708_v53, 16 }
 0x21f   : > { %v2837_v22 = vrot.slane %v2835_v55, 5  ;;  %v2828_v31 = vsel %vm14218_vm11, %v2823_v59, %v2827_v34  ;;  %v5169_v44 = vadd.f32 %v5168_v27, %v5080_v60  ;;  %v3205_v34 = vld [vmem:[#allocation2 + $0x50] sm:$0x1]  ;;  %v11359_v20 = vrot.slane %v3203_v6, 9  ;;  %v15069_v6 = vld [vmem:[%s16971_s3] ss:$0 sm:$0xff] }
 0x220   : > { %v5255_v26 = vpop.f32.mrf.mxu3  ;;  %3165 = vst [vmem:[#allocation4 + $0xf4] sm:$0xf] %v2828_v31  ;;  %v3320_v55 = vrot.slane %v3205_v34, 5  ;;  %v2843_v59 = vshll.u32 %v2707_v49, 16  ;;  %v2639_v31 = vld [vmem:[#allocation2 + $0x48] sm:$0xf] }
 0x221   : > { %v5256_v30 = vadd.f32 %v5255_v26, %v5167_v47  ;;  %v2838_v47 = vsel %vm14218_vm11, %v2833_v0, %v2837_v22  ;;  %v2640_v0 = vld [vmem:[#allocation2 + $0x4c] sm:$0xf]  ;;  %2671 = vst [vmem:[#allocation4 + $0x138] sm:$0xf] %v2639_v31  ;;  %v2851_v60 = vrot.slane %v2849_v10, 5  ;;  %v17015_v34 = vld [vmem:[#allocation16_spill] sm:$0xff] }
 0x222   : > { %3166 = vst [vmem:[#allocation4 + $0x118] sm:$0xf] %v2838_v47  ;;  %v3321_v33 = vsel %vm14544_vm14, %v3319_v11, %v3320_v55  ;;  %v2845_v47 = vrot.slane %v2843_v59, 5  ;;  %v11471_v31 = vld [vmem:[#allocation4 + $0xcc] sm:$0xf0] }
 0x223   : > { %v5345_v21 = vadd.f32 %v15029_v36, %v5256_v30  ;;  %v15050_v52 = vpop.f32.mrf.mxu0  ;;  %5486 = vmatmul.bf16.gmra.mxu2 %v11434_v57  ;;  %v5435_v54 = vpop.f32.mrf.mxu1  ;;  %v17014_v36 = vld [vmem:[#allocation15_spill] sm:$0xff]  ;;  %v13178_v57 = vld [vmem:[#allocation4 + $0xc8] sm:$0xf0]  ;;  %v2853_v30 = vshrl.u32 %v2708_v53, 16  ;;  %2672 = vst [vmem:[#allocation4 + $0x15c] sm:$0xf] %v2640_v0 }
 0x224   : > { %3440 = vst [vmem:[#allocation4 + $0x164] sm:$0xf] %v3321_v33  ;;  %v17017_v33 = vld [vmem:[#allocation18_spill] sm:$0xff] }
 0x225   : > { %v15055_v16 = vadd.f32 %v5433_v45, %v5345_v21  ;;  %v11469_v45 = vld [vmem:[#allocation4 + $0xa8] sm:$0xf]  ;;  %v2709_v21 = vld [vmem:[#allocation2 + $0x50] sm:$0x1]  ;;  %v2855_v17 = vrot.slane %v2853_v30, 4 }
 0x226   : > { %5664 = vmatmul.bf16.gmra.mxu0 %v11442_v61  ;;  %v5171_v2 = vpop.f32.mrf.mxu2  ;;  %v2842_v61 = vrot.slane %v2840_v9, 4  ;;  %v17016_v9 = vld [vmem:[#allocation17_spill] sm:$0xff]  ;;  %v13174_v30 = vld [vmem:[#allocation4 + $0xac] sm:$0xf] }
 0x227   : > { %v5172_v14 = vadd.f32 %v5171_v2, %v17014_v36  ;;  %v11470_v2 = vor.u32 %v13178_v57, %v11469_v45  ;;  %v13179_v36 = vld [vmem:[#allocation4 + $0xd0] sm:$0xf0] }
 0x228   : > { %v5257_v19 = vpop.f32.mrf.mxu3  ;;  %v2846_v56 = vor.u32 %v2845_v47, %v2842_v61  ;;  %v3207_v61 = vld [vmem:[#allocation2 + $0x58] sm:$0xf] }
 0x229   : > { %v5258_v25 = vadd.f32 %v5257_v19, %v5169_v44  ;;  %v2859_v44 = vshll.u32 %v2709_v21, 16  ;;  %v11477_v19 = vld [vmem:[#allocation4 + $0xb0] sm:$0xf] }
 0x22a   : > { %v2847_v49 = vrot.slane %v2846_v56, 4 }
 0x22b   : > { %v5347_v39 = vadd.f32 %v5346_v7, %v5258_v25  ;;  %v15058_v26 = vpop.f32.mrf.mxu0  ;;  %v5438_v27 = vpop.f32.mrf.mxu1  ;;  %v3318_v7 = vsel %vm14544_vm14, %v11359_v20, %v3317_v4  ;;  %v2856_v25 = vor.u32 %v2855_v17, %v2851_v60  ;;  %v2861_v4 = vrot.slane %v2859_v44, 5  ;;  %v13515_v17 = vld [vmem:[#allocation10 + $0x10] sm:$0xff] }
 0x22c   : > { %3439 = vst [vmem:[#allocation4 + $0x140] sm:$0xf] %v3318_v7  ;;  %v11478_v20 = vor.u32 %v13179_v36, %v11477_v19  ;;  %v3324_v44 = vrot.slane %v3207_v61, 5  ;;  %v3206_v19 = vld [vmem:[#allocation2 + $0x54] sm:$0xe]  ;;  %10278 = vmatpush.bf16.msra.mxu1 %v13515_v17 }
 0x22d   : > { %v15060_v22 = vadd.f32 %v5435_v54, %v5347_v39  ;;  %5575 = vmatmul.bf16.gmra.mxu3 %v11438_v43  ;;  %v2857_v53 = vrot.slane %v2856_v25, 4  ;;  %v4996_v39 = vadd.f32 %v15069_v6, %v17015_v34  ;;  %v11505_v34 = vld [vmem:[#allocation4 + $0xf0] sm:$0xf] }
 0x22e   : > { %v5173_v28 = vpop.f32.mrf.mxu2 }
 0x22f   : > { %v2862_v57 = vsel %vm14218_vm11, %v2857_v53, %v2861_v4  ;;  %v5085_v59 = vadd.f32 %v17016_v9, %v4996_v39  ;;  %v13187_v9 = vld [vmem:[#allocation4 + $0x110] sm:$0xf0] }
 0x230   : > { %v5260_v54 = vpop.f32.mrf.mxu3  ;;  %3168 = vst [vmem:[#allocation4 + $0x160] sm:$0xf] %v2862_v57 }
 0x231   : > { %v5261_v43 = vadd.f32 %v5260_v54, %v5172_v14  ;;  %v2852_v14 = vsel %vm14218_vm11, %v2847_v49, %v2851_v60  ;;  %v11474_v60 = vor.u32 %v13174_v30, %v11471_v31  ;;  %v2710_v54 = vld [vmem:[#allocation2 + $0x54] sm:$0xf]  ;;  %v2642_v30 = vld [vmem:[#allocation2 + $0x58] sm:$0xf] }
 0x232   : > { %3167 = vst [vmem:[#allocation4 + $0x13c] sm:$0xf] %v2852_v14  ;;  %v2864_v36 = vshrl.u32 %v2710_v54, 16  ;;  %v2867_v56 = vshll.u32 %v2710_v54, 16  ;;  %v13188_v54 = vld [vmem:[#allocation4 + $0x118] sm:$0xf0] }
 0x233   : > { %v5350_v45 = vadd.f32 %v15050_v52, %v5261_v43  ;;  %v15074_v11 = vpop.f32.mrf.mxu0  ;;  %5491 = vmatmul.bf16.gmra.mxu2 %v11470_v2  ;;  %v5440_v55 = vpop.f32.mrf.mxu1  ;;  %v5174_v52 = vadd.f32 %v5173_v28, %v5085_v59  ;;  %v2711_v2 = vld [vmem:[#allocation2 + $0x58] sm:$0xf]  ;;  %v11360_v28 = vrot.slane %v3206_v19, 9  ;;  %v3326_v43 = vrot.slane %v3324_v44, 4  ;;  %v2641_v59 = vld [vmem:[#allocation2 + $0x54] sm:$0xf] }
 0x234   : > { %v2866_v39 = vrot.slane %v2864_v36, 4  ;;  %v2877_v14 = vshrl.u32 %v2711_v2, 16  ;;  %2673 = vst [vmem:[#allocation4 + $0x180] sm:$0xf] %v2641_v59  ;;  %v11507_v59 = vld [vmem:[#allocation4 + $0x114] sm:$0xf0] }
 0x235   : > { %v15081_v10 = vadd.f32 %v5438_v27, %v5350_v45  ;;  %v3208_v27 = vld [vmem:[#allocation2 + $0x5c] sm:$0x1]  ;;  %v2869_v45 = vrot.slane %v2867_v56, 5  ;;  %2674 = vst [vmem:[#allocation4 + $0x1a4] sm:$0xf] %v2642_v30 }
 0x236   : > { %5669 = vmatmul.bf16.gmra.mxu0 %v11478_v20  ;;  %v5176_v0 = vpop.f32.mrf.mxu2  ;;  %v3327_v4 = vrot.slane %v3208_v27, 5  ;;  %v2873_v20 = vshll.u32 %v2711_v2, 16 }
 0x237   : > { %v5177_v21 = vadd.f32 %v5176_v0, %v17017_v33  ;;  %v2870_v0 = vor.u32 %v2869_v45, %v2866_v39  ;;  %v2879_v33 = vrot.slane %v2877_v14, 4 }
 0x238   : > { %v5262_v7 = vpop.f32.mrf.mxu3  ;;  %v3328_v31 = vsel %vm14544_vm14, %v3326_v43, %v3327_v4 }
 0x239   : > { %v5263_v47 = vadd.f32 %v5262_v7, %v5174_v52  ;;  %v2712_v52 = vld [vmem:[#allocation2 + $0x5c] sm:$0x1]  ;;  %v2875_v7 = vrot.slane %v2873_v20, 5  ;;  %v2871_v2 = vrot.slane %v2870_v0, 4  ;;  %3442 = vst [vmem:[#allocation4 + $0x1ac] sm:$0xf] %v3328_v31 }
 0x23a   : > { %v3210_v0 = vld [vmem:[#allocation2 + $0x64] sm:$0xf] }
 0x23b   : > { %v5352_v25 = vadd.f32 %v15058_v26, %v5263_v47  ;;  %v5356_v49 = vpop.f32.mrf.mxu0  ;;  %v5443_v53 = vpop.f32.mrf.mxu1  ;;  %v3325_v26 = vsel %vm14544_vm14, %v11360_v28, %v3324_v44  ;;  %v11513_v47 = vld [vmem:[#allocation4 + $0xf8] sm:$0xf]  ;;  %v2880_v19 = vor.u32 %v2879_v33, %v2875_v7  ;;  %v2876_v36 = vsel %vm14218_vm11, %v2871_v2, %v2875_v7 }
 0x23c   : > { %3441 = vst [vmem:[#allocation4 + $0x188] sm:$0xf] %v3325_v26  ;;  %v11514_v4 = vor.u32 %v13188_v54, %v11513_v47  ;;  %v3331_v47 = vrot.slane %v3210_v0, 5  ;;  %v3211_v54 = vld [vmem:[#allocation2 + $0x68] sm:$0x1] }
 0x23d   : > { %v15085_v57 = vadd.f32 %v5440_v55, %v5352_v25  ;;  %5580 = vmatmul.bf16.gmra.mxu3 %v11474_v60  ;;  %v2883_v55 = vshll.u32 %v2712_v52, 16  ;;  %v11506_v60 = vor.u32 %v13187_v9, %v11505_v34  ;;  %v2881_v56 = vrot.slane %v2880_v19, 4  ;;  %v17018_v25 = vld [vmem:[#allocation19_spill] sm:$0xff]  ;;  %3169 = vst [vmem:[#allocation4 + $0x184] sm:$0xf] %v2876_v36 }
 0x23e   : > { %v5178_v61 = vpop.f32.mrf.mxu2  ;;  %v5001_v28 = vadd.f32 %v15069_v6, %v17018_v25  ;;  %v13183_v9 = vld [vmem:[#allocation4 + $0xf4] sm:$0xf] }
 0x23f   : > { %v2885_v44 = vrot.slane %v2883_v55, 5  ;;  %v11510_v33 = vor.u32 %v13183_v9, %v11507_v59  ;;  %v2713_v55 = vld [vmem:[#allocation2 + $0x60] sm:$0xf]  ;;  %v2715_v59 = vld [vmem:[#allocation2 + $0x68] sm:$0x1] }
 0x240   : > { %v5265_v17 = vpop.f32.mrf.mxu3  ;;  %v2888_v25 = vshrl.u32 %v2713_v55, 16 }
 0x241   : > { %v5266_v27 = vadd.f32 %v5265_v17, %v5177_v21  ;;  %v2886_v45 = vsel %vm14218_vm11, %v2881_v56, %v2885_v44  ;;  %v17019_v21 = vld [vmem:[#allocation20_spill] sm:$0xff]  ;;  %v2714_v17 = vld [vmem:[#allocation2 + $0x64] sm:$0xf]  ;;  %v3334_v44 = vrot.slane %v3211_v54, 5  ;;  %v13196_v56 = vld [vmem:[#allocation4 + $0x158] sm:$0xf0] }
 0x242   : > { %v5090_v20 = vadd.f32 %v17019_v21, %v5001_v28  ;;  %3170 = vst [vmem:[#allocation4 + $0x1a8] sm:$0xf] %v2886_v45  ;;  %v2891_v28 = vshll.u32 %v2713_v55, 16  ;;  %v2643_v21 = vld [vmem:[#allocation2 + $0x60] sm:$0xf] }
 0x243   : > { %v5355_v43 = vadd.f32 %v15074_v11, %v5266_v27  ;;  %v5359_v39 = vpop.f32.mrf.mxu0  ;;  %5496 = vmatmul.bf16.gmra.mxu2 %v11506_v60  ;;  %v5445_v34 = vpop.f32.mrf.mxu1  ;;  %v17020_v11 = vld [vmem:[#allocation21_spill] sm:$0xff]  ;;  %v3333_v27 = vrot.slane %v3331_v47, 4  ;;  %2675 = vst [vmem:[#allocation4 + $0x1c8] sm:$0xf] %v2643_v21 }
 0x244   : > { %v5179_v30 = vadd.f32 %v5178_v61, %v5090_v20  ;;  %v3209_v60 = vld [vmem:[#allocation2 + $0x60] sm:$0xe]  ;;  %v2644_v20 = vld [vmem:[#allocation2 + $0x64] sm:$0xf] }
 0x245   : > { %v15099_v14 = vadd.f32 %v5443_v53, %v5355_v43  ;;  %v11541_v53 = vld [vmem:[#allocation4 + $0x138] sm:$0xf]  ;;  %v11361_v19 = vrot.slane %v3209_v60, 9  ;;  %v2897_v43 = vshll.u32 %v2714_v17, 16  ;;  %v3335_v9 = vsel %vm14544_vm14, %v3333_v27, %v3334_v44  ;;  %2676 = vst [vmem:[#allocation4 + $0x1ec] sm:$0xf] %v2644_v20 }
 0x246   : > { %5674 = vmatmul.bf16.gmra.mxu0 %v11514_v4  ;;  %v5181_v26 = vpop.f32.mrf.mxu2  ;;  %v2901_v4 = vshrl.u32 %v2714_v17, 16  ;;  %v11542_v55 = vor.u32 %v13196_v56, %v11541_v53  ;;  %v13197_v17 = vld [vmem:[#allocation4 + $0x160] sm:$0xf0]  ;;  %3444 = vst [vmem:[#allocation4 + $0x1f4] sm:$0xf] %v3335_v9  ;;  %v17021_v44 = vld [vmem:[#allocation22_spill] sm:$0xff] }
 0x247   : > { %v5182_v52 = vadd.f32 %v5181_v26, %v17020_v11  ;;  %v2893_v26 = vrot.slane %v2891_v28, 5  ;;  %v13192_v9 = vld [vmem:[#allocation4 + $0x13c] sm:$0xf] }
 0x248   : > { %v5267_v31 = vpop.f32.mrf.mxu3  ;;  %v2903_v11 = vrot.slane %v2901_v4, 4 }
 0x249   : > { %v5268_v7 = vadd.f32 %v5267_v31, %v5179_v30  ;;  %v2890_v30 = vrot.slane %v2888_v25, 4  ;;  %v2899_v31 = vrot.slane %v2897_v43, 5  ;;  %v5006_v25 = vadd.f32 %v15069_v6, %v17021_v44 }
 0x24b   : > { %v5357_v2 = vadd.f32 %v5356_v49, %v5268_v7  ;;  %v15102_v36 = vpop.f32.mrf.mxu0  ;;  %v5448_v61 = vpop.f32.mrf.mxu1  ;;  %v3332_v49 = vsel %vm14544_vm14, %v11361_v19, %v3331_v47  ;;  %v2907_v7 = vshll.u32 %v2715_v59, 16  ;;  %v2894_v60 = vor.u32 %v2893_v26, %v2890_v30  ;;  %v11543_v59 = vld [vmem:[#allocation4 + $0x15c] sm:$0xf0] }
 0x24c   : > { %3443 = vst [vmem:[#allocation4 + $0x1d0] sm:$0xf] %v3332_v49  ;;  %v2904_v54 = vor.u32 %v2903_v11, %v2899_v31  ;;  %v17023_v11 = vld [vmem:[#allocation24_spill] sm:$0xff] }
 0x24d   : > { %v15104_v45 = vadd.f32 %v5445_v34, %v5357_v2  ;;  %5585 = vmatmul.bf16.gmra.mxu3 %v11510_v33  ;;  %v11549_v33 = vld [vmem:[#allocation4 + $0x140] sm:$0xf]  ;;  %v2909_v2 = vrot.slane %v2907_v7, 5  ;;  %v2895_v19 = vrot.slane %v2894_v60, 4  ;;  %v2716_v60 = vld [vmem:[#allocation2 + $0x6c] sm:$0xf] }
 0x24e   : > { %v5183_v0 = vpop.f32.mrf.mxu2  ;;  %v2905_v27 = vrot.slane %v2904_v54, 4  ;;  %v11550_v43 = vor.u32 %v13197_v17, %v11549_v33  ;;  %v13514_v33 = vld [vmem:[#allocation10 + $0x8] sm:$0xff]  ;;  %v2717_v54 = vld [vmem:[#allocation2 + $0x70] sm:$0xf] }
 0x24f   : > { %v2900_v53 = vsel %vm14218_vm11, %v2895_v19, %v2899_v31  ;;  %v11546_v31 = vor.u32 %v13192_v9, %v11543_v59  ;;  %v2915_v19 = vshll.u32 %v2716_v60, 16  ;;  %10279 = vmatpush.bf16.msra.mxu1 %v13514_v33  ;;  %v2925_v9 = vshrl.u32 %v2717_v54, 16 }
 0x250   : > { %v5270_v34 = vpop.f32.mrf.mxu3  ;;  %v2910_v56 = vsel %vm14218_vm11, %v2905_v27, %v2909_v2  ;;  %3171 = vst [vmem:[#allocation4 + $0x1cc] sm:$0xf] %v2900_v53  ;;  %v2912_v2 = vshrl.u32 %v2716_v60, 16  ;;  %v11577_v53 = vld [vmem:[#allocation4 + $0x180] sm:$0xf] }
 0x251   : > { %v5271_v47 = vadd.f32 %v5270_v34, %v5182_v52  ;;  %v17022_v52 = vld [vmem:[#allocation23_spill] sm:$0xff]  ;;  %3172 = vst [vmem:[#allocation4 + $0x1f0] sm:$0xf] %v2910_v56  ;;  %v2927_v60 = vrot.slane %v2925_v9, 4 }
 0x252   : > { %v5095_v20 = vadd.f32 %v17022_v52, %v5006_v25  ;;  %v3213_v34 = vld [vmem:[#allocation2 + $0x70] sm:$0xf]  ;;  %v2914_v56 = vrot.slane %v2912_v2, 4  ;;  %v2917_v52 = vrot.slane %v2915_v19, 5  ;;  %v13206_v2 = vld [vmem:[#allocation4 + $0x1a8] sm:$0xf0] }
 0x253   : > { %v5360_v28 = vadd.f32 %v5359_v39, %v5271_v47  ;;  %v15112_v4 = vpop.f32.mrf.mxu0  ;;  %5501 = vmatmul.bf16.gmra.mxu2 %v11542_v55  ;;  %v5450_v21 = vpop.f32.mrf.mxu1  ;;  %v3338_v17 = vrot.slane %v3213_v34, 5  ;;  %v3212_v47 = vld [vmem:[#allocation2 + $0x6c] sm:$0xe]  ;;  %v2718_v34 = vld [vmem:[#allocation2 + $0x74] sm:$0x1] }
 0x254   : > { %v5184_v39 = vadd.f32 %v5183_v0, %v5095_v20  ;;  %v11362_v0 = vrot.slane %v3212_v47, 9  ;;  %v2921_v20 = vshll.u32 %v2717_v54, 16 }
 0x255   : > { %v15119_v49 = vadd.f32 %v5448_v61, %v5360_v28  ;;  %v3214_v61 = vld [vmem:[#allocation2 + $0x74] sm:$0x1]  ;;  %v3340_v44 = vrot.slane %v3338_v17, 4 }
 0x256   : > { %5679 = vmatmul.bf16.gmra.mxu0 %v11550_v43  ;;  %v5186_v30 = vpop.f32.mrf.mxu2  ;;  %v3341_v25 = vrot.slane %v3214_v61, 5  ;;  %v2923_v33 = vrot.slane %v2921_v20, 5  ;;  %v11585_v61 = vld [vmem:[#allocation4 + $0x188] sm:$0xf] }
 0x257   : > { %v5187_v7 = vadd.f32 %v5186_v30, %v17023_v11  ;;  %v2645_v30 = vld [vmem:[#allocation2 + $0x6c] sm:$0xf]  ;;  %v11586_v20 = vor.u32 %v13206_v2, %v11585_v61  ;;  %v2720_v2 = vld [vmem:[#allocation2 + $0x7c] sm:$0xf] }
 0x258   : > { %v5272_v26 = vpop.f32.mrf.mxu3  ;;  %2677 = vst [vmem:[#allocation4 + $0x210] sm:$0xf] %v2645_v30  ;;  %v3342_v11 = vsel %vm14544_vm14, %v3340_v44, %v3341_v25  ;;  %v17025_v25 = vld [vmem:[#allocation25_spill] sm:$0xff] }
 0x259   : > { %v5273_v55 = vadd.f32 %v5272_v26, %v5184_v39  ;;  %v13205_v39 = vld [vmem:[#allocation4 + $0x1a0] sm:$0xf0]  ;;  %v2646_v26 = vld [vmem:[#allocation2 + $0x70] sm:$0xf]  ;;  %3446 = vst [vmem:[#allocation4 + $0x23c] sm:$0xf] %v3342_v11 }
 0x25a   : > { %2678 = vst [vmem:[#allocation4 + $0x234] sm:$0xf] %v2646_v26  ;;  %v11579_v11 = vld [vmem:[#allocation4 + $0x1a4] sm:$0xf0] }
 0x25b   : > { %v5362_v27 = vadd.f32 %v15102_v36, %v5273_v55  ;;  %v5366_v28 = vpop.f32.mrf.mxu0  ;;  %v5453_v43 = vpop.f32.mrf.mxu1  ;;  %v3339_v36 = vsel %vm14544_vm14, %v11362_v0, %v3338_v17  ;;  %v2918_v55 = vor.u32 %v2917_v52, %v2914_v56  ;;  %v5011_v56 = vadd.f32 %v15069_v6, %v17025_v25 }
 0x25c   : > { %3445 = vst [vmem:[#allocation4 + $0x218] sm:$0xf] %v3339_v36  ;;  %v13201_v36 = vld [vmem:[#allocation4 + $0x184] sm:$0xf] }
 0x25d   : > { %v15123_v59 = vadd.f32 %v5450_v21, %v5362_v27  ;;  %5590 = vmatmul.bf16.gmra.mxu3 %v11546_v31  ;;  %v2931_v21 = vshll.u32 %v2718_v34, 16  ;;  %v11578_v31 = vor.u32 %v13205_v39, %v11577_v53  ;;  %v2919_v19 = vrot.slane %v2918_v55, 4 }
 0x25e   : > { %v5188_v47 = vpop.f32.mrf.mxu2  ;;  %v2928_v27 = vor.u32 %v2927_v60, %v2923_v33  ;;  %v3216_v60 = vld [vmem:[#allocation2 + $0x7c] sm:$0xf] }
 0x25f   : > { %17024 = vst [vmem:[#allocation15_spill] sm:$0xff] %v15123_v59  ;;  %v2933_v17 = vrot.slane %v2931_v21, 5  ;;  %v2924_v0 = vsel %vm14218_vm11, %v2919_v19, %v2923_v33  ;;  %v11582_v21 = vor.u32 %v13201_v36, %v11579_v11  ;;  %v3215_v19 = vld [vmem:[#allocation2 + $0x78] sm:$0xe]  ;;  %v2648_v11 = vld [vmem:[#allocation2 + $0x7c] sm:$0xf] }
 0x260   : > { %v5275_v54 = vpop.f32.mrf.mxu3  ;;  %v2929_v44 = vrot.slane %v2928_v27, 4  ;;  %3173 = vst [vmem:[#allocation4 + $0x214] sm:$0xf] %v2924_v0  ;;  %v3217_v27 = vld [vmem:[#allocation2 + $0x80] sm:$0x1]  ;;  %v11363_v0 = vrot.slane %v3215_v19, 9 }
 0x261   : > { %v5276_v59 = vadd.f32 %v5275_v54, %v5187_v7  ;;  %v17026_v7 = vld [vmem:[#allocation26_spill] sm:$0xff]  ;;  %v3345_v54 = vrot.slane %v3216_v60, 5  ;;  %v3348_v25 = vrot.slane %v3217_v27, 5  ;;  %v2647_v36 = vld [vmem:[#allocation2 + $0x78] sm:$0xf] }
 0x262   : > { %v2934_v39 = vsel %vm14218_vm11, %v2929_v44, %v2933_v17  ;;  %v5100_v30 = vadd.f32 %v17026_v7, %v5011_v56  ;;  %v2945_v7 = vshll.u32 %v2720_v2, 16  ;;  %2679 = vst [vmem:[#allocation4 + $0x258] sm:$0xf] %v2647_v36  ;;  %v17030_v36 = vld [vmem:[#allocation28_spill] sm:$0xff] }
 0x263   : > { %v5365_v52 = vadd.f32 %v15112_v4, %v5276_v59  ;;  %v5369_v9 = vpop.f32.mrf.mxu0  ;;  %5506 = vmatmul.bf16.gmra.mxu2 %v11578_v31  ;;  %v5455_v53 = vpop.f32.mrf.mxu1  ;;  %3174 = vst [vmem:[#allocation4 + $0x238] sm:$0xf] %v2934_v39  ;;  %v17028_v4 = vld [vmem:[#allocation27_spill] sm:$0xff]  ;;  %v2719_v31 = vld [vmem:[#allocation2 + $0x78] sm:$0xf]  ;;  %v3347_v44 = vrot.slane %v3345_v54, 4 }
 0x264   : > { %v5189_v34 = vadd.f32 %v5188_v47, %v5100_v30  ;;  %v2939_v39 = vshll.u32 %v2719_v31, 16  ;;  %v2949_v30 = vshrl.u32 %v2720_v2, 16  ;;  %2680 = vst [vmem:[#allocation4 + $0x27c] sm:$0xf] %v2648_v11 }
 0x265   : > { %v15137_v26 = vadd.f32 %v5453_v43, %v5365_v52  ;;  %v11613_v43 = vld [vmem:[#allocation4 + $0x1c8] sm:$0xf]  ;;  %v13214_v52 = vld [vmem:[#allocation4 + $0x1e8] sm:$0xf0] }
 0x266   : > { %5684 = vmatmul.bf16.gmra.mxu0 %v11586_v20  ;;  %v5191_v55 = vpop.f32.mrf.mxu2  ;;  %v2936_v20 = vshrl.u32 %v2719_v31, 16  ;;  %v2941_v60 = vrot.slane %v2939_v39, 5  ;;  %v2951_v19 = vrot.slane %v2949_v30, 4  ;;  %v11614_v27 = vor.u32 %v13214_v52, %v11613_v43 }
 0x267   : > { %17027 = vst [vmem:[#allocation16_spill] sm:$0xff] %v15137_v26  ;;  %v5192_v59 = vadd.f32 %v5191_v55, %v17028_v4 }
 0x268   : > { %v5277_v33 = vpop.f32.mrf.mxu3  ;;  %v2938_v4 = vrot.slane %v2936_v20, 4  ;;  %v5016_v20 = vadd.f32 %v15069_v6, %v17030_v36  ;;  %v11657_v36 = vld [vmem:[#allocation4 + $0x218] sm:$0xf] }
 0x269   : > { %v5278_v61 = vadd.f32 %v5277_v33, %v5189_v34  ;;  %v3346_v34 = vsel %vm14544_vm14, %v11363_v0, %v3345_v54  ;;  %v2721_v33 = vld [vmem:[#allocation2 + $0x80] sm:$0x1] }
 0x26a   : > { %v2955_v2 = vshll.u32 %v2721_v33, 16  ;;  %3447 = vst [vmem:[#allocation4 + $0x260] sm:$0xf] %v3346_v34 }
 0x26b   : > { %v5367_v17 = vadd.f32 %v5366_v28, %v5278_v61  ;;  %v5371_v56 = vpop.f32.mrf.mxu0  ;;  %v5458_v47 = vpop.f32.mrf.mxu1  ;;  %v3349_v28 = vsel %vm14544_vm14, %v3347_v44, %v3348_v25  ;;  %v2947_v61 = vrot.slane %v2945_v7, 5 }
 0x26c   : > { %3448 = vst [vmem:[#allocation4 + $0x284] sm:$0xf] %v3349_v28  ;;  %v2957_v0 = vrot.slane %v2955_v2, 5 }
 0x26d   : > { %v15140_v55 = vadd.f32 %v5455_v53, %v5367_v17  ;;  %5595 = vmatmul.bf16.gmra.mxu3 %v11582_v21  ;;  %v11621_v21 = vld [vmem:[#allocation4 + $0x1d0] sm:$0xf]  ;;  %v13215_v17 = vld [vmem:[#allocation4 + $0x1f0] sm:$0xf0]  ;;  %v2952_v26 = vor.u32 %v2951_v19, %v2947_v61 }
 0x26e   : > { %v5193_v31 = vpop.f32.mrf.mxu2  ;;  %v11622_v7 = vor.u32 %v13215_v17, %v11621_v21 }
 0x26f   : > { %17029 = vst [vmem:[#allocation17_spill] sm:$0xff] %v15140_v55  ;;  %v2942_v55 = vor.u32 %v2941_v60, %v2938_v4  ;;  %v2953_v25 = vrot.slane %v2952_v26, 4  ;;  %v13210_v26 = vld [vmem:[#allocation4 + $0x1cc] sm:$0xf]  ;;  %v17034_v4 = vld [vmem:[#allocation30_spill] sm:$0xff] }
 0x270   : > { %v5280_v53 = vpop.f32.mrf.mxu3 }
 0x271   : > { %v5281_v54 = vadd.f32 %v5280_v53, %v5192_v59  ;;  %v2943_v44 = vrot.slane %v2942_v55, 4  ;;  %v2958_v52 = vsel %vm14218_vm11, %v2953_v25, %v2957_v0  ;;  %v17032_v59 = vld [vmem:[#allocation29_spill] sm:$0xff] }
 0x272   : > { %v5105_v34 = vadd.f32 %v17032_v59, %v5016_v20  ;;  %v11615_v55 = vld [vmem:[#allocation4 + $0x1ec] sm:$0xf0]  ;;  %3176 = vst [vmem:[#allocation4 + $0x280] sm:$0xf] %v2958_v52  ;;  %v13223_v0 = vld [vmem:[#allocation4 + $0x230] sm:$0xf0] }
 0x273   : > { %v5370_v39 = vadd.f32 %v5369_v9, %v5281_v54  ;;  %v5374_v30 = vpop.f32.mrf.mxu0  ;;  %5511 = vmatmul.bf16.gmra.mxu2 %v11614_v27  ;;  %v15148_v11 = vpop.f32.mrf.mxu1  ;;  %v2948_v43 = vsel %vm14218_vm11, %v2943_v44, %v2947_v61  ;;  %v11618_v2 = vor.u32 %v13210_v26, %v11615_v55  ;;  %v13513_v61 = vld [vmem:[#allocation10] sm:$0xff]  ;;  %v3219_v27 = vld [vmem:[#allocation2 + $0x88] sm:$0xf]  ;;  %v2722_v54 = vld [vmem:[#allocation2 + $0x84] sm:$0xf] }
 0x274   : > { %17031 = vst [vmem:[#allocation18_spill] sm:$0xff] %v15148_v11  ;;  %v5194_v6 = vadd.f32 %v5193_v31, %v5105_v34  ;;  %10280 = vmatpush.bf16.msra.mxu1 %v13513_v61  ;;  %v3352_v17 = vrot.slane %v3219_v27, 5  ;;  %v396_v31 = vld [vmem:[#allocation3 + $0xc] sm:$0x1]  ;;  %v3218_v44 = vld [vmem:[#allocation2 + $0x84] sm:$0xe] }
 0x275   : > { %v15155_v28 = vadd.f32 %v5458_v47, %v5370_v39  ;;  %3175 = vst [vmem:[#allocation4 + $0x25c] sm:$0xf] %v2948_v43  ;;  %v11649_v47 = vld [vmem:[#allocation4 + $0x210] sm:$0xf]  ;;  %v13224_v20 = vld [vmem:[#allocation4 + $0x238] sm:$0xf0] }
 0x276   : > { %5689 = vmatmul.bf16.gmra.mxu0 %v11622_v7  ;;  %v5196_v9 = vpop.f32.mrf.mxu2  ;;  %v397_v39 = vsel %vm14178_vm2, 0, %v396_v31  ;;  %v3220_v7 = vld [vmem:[#allocation2 + $0x8c] sm:$0x1]  ;;  %v3354_v43 = vrot.slane %v3352_v17, 4  ;;  %v2723_v34 = vld [vmem:[#allocation2 + $0x88] sm:$0xf] }
 0x277   : > { %17033 = vst [vmem:[#allocation19_spill] sm:$0xff] %v15155_v28  ;;  %v5197_v60 = vadd.f32 %v5196_v9, %v17034_v4  ;;  %v3355_v59 = vrot.slane %v3220_v7, 5  ;;  %v2960_v26 = vshrl.u32 %v2722_v54, 16  ;;  %v2649_v4 = vld [vmem:[#allocation2 + $0x84] sm:$0xf]  ;;  %v2969_v7 = vshll.u32 %v2723_v34, 16 }
 0x278   : > { %v5282_v33 = vpop.f32.mrf.mxu3  ;;  %398 = vst [vmem:[#allocation3 + $0xc] sm:$0x1] %v397_v39  ;;  %v2724_v61 = vld [vmem:[#allocation2 + $0x8c] sm:$0x1]  ;;  %v2963_v39 = vshll.u32 %v2722_v54, 16  ;;  %v2973_v11 = vshrl.u32 %v2723_v34, 16 }
 0x279   : > { %v5283_v19 = vadd.f32 %v5282_v33, %v5194_v6  ;;  %v17036_v6 = vld [vmem:[#allocation31_spill] sm:$0xff]  ;;  %v11650_v33 = vor.u32 %v13223_v0, %v11649_v47  ;;  %2681 = vst [vmem:[#allocation4 + $0x2a0] sm:$0xf] %v2649_v4  ;;  %v3356_v31 = vsel %vm14544_vm14, %v3354_v43, %v3355_v59  ;;  %v13219_v43 = vld [vmem:[#allocation4 + $0x214] sm:$0xf] }
 0x27a   : > { %v2965_v47 = vrot.slane %v2963_v39, 5  ;;  %3450 = vst [vmem:[#allocation4 + $0x2cc] sm:$0xf] %v3356_v31  ;;  %v11651_v59 = vld [vmem:[#allocation4 + $0x234] sm:$0xf0] }
 0x27b   : > { %v15158_v53 = vadd.f32 %v5371_v56, %v5283_v19  ;;  %v15160_v21 = vpop.f32.mrf.mxu0  ;;  %v5463_v25 = vpop.f32.mrf.mxu1  ;;  %v11364_v56 = vrot.slane %v3218_v44, 9  ;;  %v2650_v19 = vld [vmem:[#allocation2 + $0x88] sm:$0xf]  ;;  %v2962_v44 = vrot.slane %v2960_v26, 4  ;;  %v13232_v31 = vld [vmem:[#allocation4 + $0x278] sm:$0xf0] }
 0x27c   : > { %2682 = vst [vmem:[#allocation4 + $0x2c4] sm:$0xf] %v2650_v19  ;;  %v2725_v39 = vld [vmem:[#allocation2 + $0x90] sm:$0xf] }
 0x27d   : > { %17035 = vst [vmem:[#allocation20_spill] sm:$0xff] %v15158_v53  ;;  %5600 = vmatmul.bf16.gmra.mxu3 %v11618_v2  ;;  %v3353_v2 = vsel %vm14544_vm14, %v11364_v56, %v3352_v17  ;;  %v2979_v53 = vshll.u32 %v2724_v61, 16  ;;  %v2971_v17 = vrot.slane %v2969_v7, 5  ;;  %v3222_v61 = vld [vmem:[#allocation2 + $0x94] sm:$0xf] }
 0x27e   : > { %v5198_v52 = vpop.f32.mrf.mxu2  ;;  %3449 = vst [vmem:[#allocation4 + $0x2a8] sm:$0xf] %v3353_v2  ;;  %v11654_v2 = vor.u32 %v13219_v43, %v11651_v59  ;;  %v3221_v7 = vld [vmem:[#allocation2 + $0x90] sm:$0xe]  ;;  %v2984_v43 = vshrl.u32 %v2725_v39, 16 }
 0x27f   : > { %v5199_v9 = vadd.f32 %v5198_v52, %v17036_v6  ;;  %v11658_v52 = vor.u32 %v13224_v20, %v11657_v36  ;;  %v2981_v26 = vrot.slane %v2979_v53, 5  ;;  %v17038_v36 = vld [vmem:[#allocation32_spill] sm:$0xff] }
 0x280   : > { %v5285_v55 = vpop.f32.mrf.mxu3 }
 0x281   : > { %v5286_v27 = vadd.f32 %v5285_v55, %v5197_v60  ;;  %v2975_v60 = vrot.slane %v2973_v11, 4  ;;  %v2966_v55 = vor.u32 %v2965_v47, %v2962_v44  ;;  %v3359_v44 = vrot.slane %v3222_v61, 5  ;;  %v11693_v47 = vld [vmem:[#allocation4 + $0x260] sm:$0xf] }
 0x283   : > { %v5375_v28 = vadd.f32 %v5374_v30, %v5286_v27  ;;  %v15169_v0 = vpop.f32.mrf.mxu0  ;;  %5516 = vmatmul.bf16.gmra.mxu2 %v11650_v33  ;;  %v2976_v54 = vor.u32 %v2975_v60, %v2971_v17  ;;  %v2967_v6 = vrot.slane %v2966_v55, 4  ;;  %v15174_v4 = vpop.f32.mrf.mxu1  ;;  %v3223_v60 = vld [vmem:[#allocation2 + $0x98] sm:$0x1]  ;;  %v11365_v55 = vrot.slane %v3221_v7, 9 }
 0x284   : > { %17039 = vst [vmem:[#allocation22_spill] sm:$0xff] %v15174_v4  ;;  %v2727_v7 = vld [vmem:[#allocation2 + $0x98] sm:$0x1]  ;;  %v2986_v4 = vrot.slane %v2984_v43, 4 }
 0x285   : > { %v15171_v56 = vadd.f32 %v5463_v25, %v5375_v28  ;;  %v2977_v19 = vrot.slane %v2976_v54, 4  ;;  %v2972_v11 = vsel %vm14218_vm11, %v2967_v6, %v2971_v17  ;;  %v11685_v25 = vld [vmem:[#allocation4 + $0x258] sm:$0xf]  ;;  %v13233_v54 = vld [vmem:[#allocation4 + $0x280] sm:$0xf0] }
 0x286   : > { %5694 = vmatmul.bf16.gmra.mxu0 %v11658_v52  ;;  %v5201_v34 = vpop.f32.mrf.mxu2  ;;  %3177 = vst [vmem:[#allocation4 + $0x2a4] sm:$0xf] %v2972_v11  ;;  %v2726_v52 = vld [vmem:[#allocation2 + $0x94] sm:$0xf] }
 0x287   : > { %17037 = vst [vmem:[#allocation21_spill] sm:$0xff] %v15171_v56  ;;  %v5202_v20 = vadd.f32 %v5201_v34, %v17038_v36  ;;  %v2982_v28 = vsel %vm14218_vm11, %v2977_v19, %v2981_v26  ;;  %v3362_v26 = vrot.slane %v3223_v60, 5  ;;  %v2987_v34 = vshll.u32 %v2725_v39, 16  ;;  %v13373_v60 = vld [vmem:[#allocation4 + $0x20] sm:$0xf0] }
 0x288   : > { %v5287_v30 = vpop.f32.mrf.mxu3  ;;  %3178 = vst [vmem:[#allocation4 + $0x2c8] sm:$0xf] %v2982_v28  ;;  %v11686_v19 = vor.u32 %v13232_v31, %v11685_v25  ;;  %v2993_v11 = vshll.u32 %v2726_v52, 16  ;;  %v2997_v28 = vshrl.u32 %v2726_v52, 16  ;;  %v11694_v31 = vor.u32 %v13233_v54, %v11693_v47  ;;  %v399_v47 = vld [vmem:[#allocation3 + $0x18] sm:$0x1] }
 0x289   : > { %v5288_v33 = vadd.f32 %v5287_v30, %v5199_v9  ;;  %v444_v9 = vld [vmem:[#allocation3 + $0x14] sm:$0x1]  ;;  %v17041_v30 = vld [vmem:[#allocation33_spill] sm:$0xff] }
 0x28a   : > { %v445_v17 = vsel %vm14187_vm5, 0, %v444_v9  ;;  %v3360_v9 = vsel %vm14544_vm14, %v11365_v55, %v3359_v44  ;;  %v3003_v55 = vshll.u32 %v2727_v7, 16  ;;  %v13241_v7 = vld [vmem:[#allocation4 + $0x2c0] sm:$0xf0] }
 0x28b   : > { %v15181_v53 = vadd.f32 %v15160_v21, %v5288_v33  ;;  %v15183_v27 = vpop.f32.mrf.mxu0  ;;  %v3361_v21 = vrot.slane %v3359_v44, 4  ;;  %446 = vst [vmem:[#allocation3 + $0x14] sm:$0x1] %v445_v17  ;;  %v2651_v33 = vld [vmem:[#allocation2 + $0x90] sm:$0xf]  ;;  %v5468_v56 = vpop.f32.mrf.mxu1  ;;  %v2999_v44 = vrot.slane %v2997_v28, 4 }
 0x28c   : > { %2683 = vst [vmem:[#allocation4 + $0x2e8] sm:$0xf] %v2651_v33  ;;  %v12285_v17 = vld [vmem:[#allocation4] sm:$0xf] }
 0x28d   : > { %17040 = vst [vmem:[#allocation23_spill] sm:$0xff] %v15181_v53  ;;  %5605 = vmatmul.bf16.gmra.mxu3 %v11654_v2  ;;  %v2652_v2 = vld [vmem:[#allocation2 + $0x94] sm:$0xf]  ;;  %v2989_v53 = vrot.slane %v2987_v34, 5  ;;  %v3363_v39 = vsel %vm14544_vm14, %v3361_v21, %v3362_v26  ;;  %v11687_v33 = vld [vmem:[#allocation4 + $0x27c] sm:$0xf0] }
 0x28e   : > { %v5203_v59 = vpop.f32.mrf.mxu2  ;;  %2684 = vst [vmem:[#allocation4 + $0x30c] sm:$0xf] %v2652_v2  ;;  %v3005_v26 = vrot.slane %v3003_v55, 5 }
 0x28f   : > { %v5204_v36 = vadd.f32 %v5203_v59, %v17041_v30  ;;  %v12286_v59 = vor.u32 %v13373_v60, %v12285_v17  ;;  %v2990_v52 = vor.u32 %v2989_v53, %v2986_v4  ;;  %3451 = vst [vmem:[#allocation4 + $0x2f0] sm:$0xf] %v3360_v9  ;;  %v13228_v30 = vld [vmem:[#allocation4 + $0x25c] sm:$0xf]  ;;  %v11721_v9 = vld [vmem:[#allocation4 + $0x2a0] sm:$0xf] }
 0x290   : > { %v5290_v6 = vpop.f32.mrf.mxu3  ;;  %3452 = vst [vmem:[#allocation4 + $0x314] sm:$0xf] %v3363_v39  ;;  %v11690_v2 = vor.u32 %v13228_v30, %v11687_v33  ;;  %v3225_v17 = vld [vmem:[#allocation2 + $0xa0] sm:$0xf]  ;;  %v13242_v60 = vld [vmem:[#allocation4 + $0x2c8] sm:$0xf0] }
 0x291   : > { %v5291_v61 = vadd.f32 %v5290_v6, %v5202_v20  ;;  %v2995_v6 = vrot.slane %v2993_v11, 5  ;;  %10281 = vmatmul.bf16.vlgmr.msra.gmra.mxu1 %v12286_v59  ;;  %v2991_v34 = vrot.slane %v2990_v52, 4  ;;  %v3366_v39 = vrot.slane %v3225_v17, 5  ;;  %v3224_v59 = vld [vmem:[#allocation2 + $0x9c] sm:$0xe] }
 0x292   : > { %v3226_v52 = vld [vmem:[#allocation2 + $0xa4] sm:$0x1]  ;;  %v11366_v55 = vrot.slane %v3224_v59, 9  ;;  %v2729_v30 = vld [vmem:[#allocation2 + $0xa0] sm:$0xf] }
 0x293   : > { %v5380_v25 = vadd.f32 %v15169_v0, %v5291_v61  ;;  %v5660_v20 = vpop.f32.mrf.mxu0  ;;  %5521 = vmatmul.bf16.gmra.mxu2 %v11686_v19  ;;  %v3000_v21 = vor.u32 %v2999_v44, %v2995_v6  ;;  %v2996_v4 = vsel %vm14218_vm11, %v2991_v34, %v2995_v6  ;;  %v2728_v6 = vld [vmem:[#allocation2 + $0x9c] sm:$0xf]  ;;  %v3368_v34 = vrot.slane %v3366_v39, 4 }
 0x294   : > { %3179 = vst [vmem:[#allocation4 + $0x2ec] sm:$0xf] %v2996_v4  ;;  %v3008_v33 = vshrl.u32 %v2728_v6, 16  ;;  %v447_v4 = vld [vmem:[#allocation3 + $0x20] sm:$0x1] }
 0x295   : > { %v15193_v43 = vadd.f32 %v5468_v56, %v5380_v25  ;;  %v3001_v54 = vrot.slane %v3000_v21, 4  ;;  %v400_v56 = vsel %vm14178_vm2, 0, %v399_v47  ;;  %v17042_v25 = vld [vmem:[#allocation34_spill] sm:$0xff]  ;;  %v3017_v47 = vshll.u32 %v2729_v30, 16 }
 0x296   : > { %5699 = vmatmul.bf16.gmra.mxu0 %v11694_v31  ;;  %v5482_v0 = vpop.f32.mrf.mxu2  ;;  %401 = vst [vmem:[#allocation3 + $0x18] sm:$0x1] %v400_v56  ;;  %v2654_v56 = vld [vmem:[#allocation2 + $0xa0] sm:$0xf] }
 0x297   : > { %v3006_v11 = vsel %vm14218_vm11, %v3001_v54, %v3005_v26  ;;  %v5483_v31 = vadd.f32 %v5482_v0, %v17042_v25  ;;  %v11722_v26 = vor.u32 %v13241_v7, %v11721_v9  ;;  %v2730_v9 = vld [vmem:[#allocation2 + $0xa4] sm:$0x1]  ;;  %v3010_v7 = vrot.slane %v3008_v33, 4  ;;  %2686 = vst [vmem:[#allocation4 + $0x354] sm:$0xf] %v2654_v56 }
 0x298   : > { %v5292_v53 = vpop.f32.mrf.mxu3  ;;  %3180 = vst [vmem:[#allocation4 + $0x310] sm:$0xf] %v3006_v11  ;;  %v3367_v11 = vsel %vm14544_vm14, %v11366_v55, %v3366_v39  ;;  %v11723_v39 = vld [vmem:[#allocation4 + $0x2c4] sm:$0xf0] }
 0x299   : > { %v5293_v19 = vadd.f32 %v5292_v53, %v5204_v36  ;;  %v11729_v36 = vld [vmem:[#allocation4 + $0x2a8] sm:$0xf]  ;;  %v3011_v53 = vshll.u32 %v2728_v6, 16  ;;  %v3021_v6 = vshrl.u32 %v2729_v30, 16  ;;  %3453 = vst [vmem:[#allocation4 + $0x338] sm:$0xf] %v3367_v11 }
 0x29a   : > { %v11730_v0 = vor.u32 %v13242_v60, %v11729_v36  ;;  %v3027_v36 = vshll.u32 %v2730_v9, 16  ;;  %v6124_v9 = vld [vmem:[#allocation3 + $0xc] sm:$0xf] }
 0x29b   : > { %v15202_v28 = vadd.f32 %v15183_v27, %v5293_v19  ;;  %v15204_v61 = vpop.f32.mrf.mxu0  ;;  %v3369_v27 = vrot.slane %v3226_v52, 5  ;;  %v448_v19 = vsel %vm14187_vm5, 0, %v447_v4  ;;  %v3013_v59 = vrot.slane %v3011_v53, 5 }
 0x29c   : > { %449 = vst [vmem:[#allocation3 + $0x20] sm:$0x1] %v448_v19  ;;  %v3023_v55 = vrot.slane %v3021_v6, 4  ;;  %v3029_v30 = vrot.slane %v3027_v36, 5 }
 0x29d   : > { %5610 = vmatmul.bf16.gmra.mxu3 %v11690_v2  ;;  %v2653_v2 = vld [vmem:[#allocation2 + $0x9c] sm:$0xf]  ;;  %v3370_v25 = vsel %vm14544_vm14, %v3368_v34, %v3369_v27  ;;  %v3014_v4 = vor.u32 %v3013_v59, %v3010_v7  ;;  %v11757_v59 = vld [vmem:[#allocation4 + $0x2e8] sm:$0xf] }
 0x29e   : > { %v5484_v44 = vpop.f32.mrf.mxu2  ;;  %2685 = vst [vmem:[#allocation4 + $0x330] sm:$0xf] %v2653_v2 }
 0x29f   : > { %3454 = vst [vmem:[#allocation4 + $0x35c] sm:$0xf] %v3370_v25  ;;  %v5485_v34 = vadd.f32 %v5484_v44, %v14842_v41  ;;  %v3015_v33 = vrot.slane %v3014_v4, 4  ;;  %v11765_v4 = vld [vmem:[#allocation4 + $0x2f0] sm:$0xf] }
 0x2a0   : > { %v5571_v21 = vpop.f32.mrf.mxu3 }
 0x2a1   : > { %v5572_v54 = vadd.f32 %v5571_v21, %v5483_v31  ;;  %v3019_v31 = vrot.slane %v3017_v47, 5  ;;  %v13237_v21 = vld [vmem:[#allocation4 + $0x2a4] sm:$0xf] }
 0x2a2   : > { %v11726_v56 = vor.u32 %v13237_v21, %v11723_v39  ;;  %v13250_v21 = vld [vmem:[#allocation4 + $0x308] sm:$0xf0] }
 0x2a3   : > { %v5661_v17 = vadd.f32 %v5660_v20, %v5572_v54  ;;  %v15213_v52 = vpop.f32.mrf.mxu0  ;;  %5526 = vmatmul.bf16.gmra.mxu2 %v11722_v26  ;;  %v13528_v20 = vld [vmem:[#allocation10 + $0x78] sm:$0xff]  ;;  %v402_v26 = vld [vmem:[#allocation3 + $0x24] sm:$0x1]  ;;  %v3024_v47 = vor.u32 %v3023_v55, %v3019_v31 }
 0x2a4   : > { %10362 = vmatpush.bf16.msrb.mxu2 %v13528_v20  ;;  %v403_v11 = vsel %vm14178_vm2, 0, %v402_v26  ;;  %v13536_v55 = vld [vmem:[#allocation10 + $0xb8] sm:$0xff]  ;;  %v11758_v26 = vor.u32 %v13250_v21, %v11757_v59 }
 0x2a5   : > { %v5740_v60 = vmax.f32 %v5661_v17, 0.0  ;;  %404 = vst [vmem:[#allocation3 + $0x24] sm:$0x1] %v403_v11  ;;  %v3020_v17 = vsel %vm14218_vm11, %v3015_v33, %v3019_v31  ;;  %v3025_v25 = vrot.slane %v3024_v47, 4  ;;  %v3228_v31 = vld [vmem:[#allocation2 + $0xac] sm:$0xf]  ;;  %10451 = vmatpush.bf16.msrb.mxu3 %v13536_v55 }
 0x2a6   : > { %5704 = vmatmul.bf16.gmra.mxu0 %v11730_v0  ;;  %v5487_v27 = vpop.f32.mrf.mxu2  ;;  %3181 = vst [vmem:[#allocation4 + $0x334] sm:$0xf] %v3020_v17  ;;  %v3227_v33 = vld [vmem:[#allocation2 + $0xa8] sm:$0xe]  ;;  %v3373_v11 = vrot.slane %v3228_v31, 5 }
 0x2a7   : > { %v5772_v54 = vpack.c.bf16 %v5740_v60, %v5740_v60  ;;  %v3030_v6 = vsel %vm14218_vm11, %v3025_v25, %v3029_v30  ;;  %v11367_v47 = vrot.slane %v3227_v33, 9  ;;  %v11759_v55 = vld [vmem:[#allocation4 + $0x30c] sm:$0xf0] }
 0x2a8   : > { %v5573_v53 = vpop.f32.mrf.mxu3  ;;  %3182 = vst [vmem:[#allocation4 + $0x358] sm:$0xf] %v3030_v6 }
 0x2a9   : > { %v5805_v19 = vshrl.u32 %v5772_v54, 16  ;;  %v5574_v2 = vadd.f32 %v5573_v53, %v5485_v34  ;;  %v5808_v44 = vshll.u32 %v5772_v54, 16  ;;  %v13251_v34 = vld [vmem:[#allocation4 + $0x310] sm:$0xf0]  ;;  %v3374_v59 = vsel %vm14544_vm14, %v11367_v47, %v3373_v11 }
 0x2aa   : > { %v11766_v17 = vor.u32 %v13251_v34, %v11765_v4  ;;  %3455 = vst [vmem:[#allocation4 + $0x380] sm:$0xf] %v3374_v59 }
 0x2ab   : > { %v5807_v41 = vrot.slane %v5805_v19, 7  ;;  %v5663_v0 = vadd.f32 %v15204_v61, %v5574_v2  ;;  %v15221_v7 = vpop.f32.mrf.mxu0  ;;  %v5488_v61 = vadd.f32 %v5487_v27, %v14858_v48  ;;  %v450_v2 = vld [vmem:[#allocation3 + $0x2c] sm:$0x1] }
 0x2ac   : > { %v451_v25 = vsel %vm14187_vm5, 0, %v450_v2 }
 0x2ad   : > { %v5810_v36 = vor.u32 %v5808_v44, %v5807_v41  ;;  %v5741_v60 = vmax.f32 %v5663_v0, 0.0  ;;  %5615 = vmatmul.bf16.gmra.mxu3 %v11726_v56  ;;  %v3229_v56 = vld [vmem:[#allocation2 + $0xb0] sm:$0x1]  ;;  %v2655_v44 = vld [vmem:[#allocation2 + $0xa8] sm:$0xf]  ;;  %v5811_v6 = vrot.slane %v5807_v41, 4 }
 0x2ae   : > { %v5489_v54 = vpop.f32.mrf.mxu2  ;;  %452 = vst [vmem:[#allocation3 + $0x2c] sm:$0x1] %v451_v25  ;;  %v3376_v21 = vrot.slane %v3229_v56, 5 }
 0x2af   : > { %v6125_v39 = vsel %vm14206_vm10, %v5810_v36, %v6124_v9  ;;  %v5773_v20 = vpack.c.bf16 %v5741_v60, %v5741_v60  ;;  %v2656_v9 = vld [vmem:[#allocation2 + $0xac] sm:$0xf]  ;;  %2687 = vst [vmem:[#allocation4 + $0x378] sm:$0xf] %v2655_v44  ;;  %v5490_v33 = vadd.f32 %v5489_v54, %v14866_v3  ;;  %v6131_v54 = vld [vmem:[#allocation3 + $0x18] sm:$0xf] }
 0x2b0   : > { %6126 = vst [vmem:[#allocation3 + $0xc] sm:$0xf] %v6125_v39  ;;  %v5576_v53 = vpop.f32.mrf.mxu3  ;;  %v6128_v36 = vld [vmem:[#allocation3 + $0x14] sm:$0x1] }
 0x2b1   : > { %v5813_v30 = vshrl.u32 %v5773_v20, 16  ;;  %v5577_v19 = vadd.f32 %v5576_v53, %v5488_v61  ;;  %v5816_v27 = vshll.u32 %v5773_v20, 16  ;;  %2688 = vst [vmem:[#allocation4 + $0x39c] sm:$0xf] %v2656_v9  ;;  %v3375_v61 = vrot.slane %v3373_v11, 4  ;;  %v13544_v53 = vld [vmem:[#allocation10 + $0xf8] sm:$0xff] }
 0x2b2   : > { %v13246_v20 = vld [vmem:[#allocation4 + $0x2ec] sm:$0xf]  ;;  %10540 = vmatpush.bf16.msrb.mxu0 %v13544_v53  ;;  %v2732_v53 = vld [vmem:[#allocation2 + $0xac] sm:$0xf] }
 0x2b3   : > { %v5815_v48 = vrot.slane %v5813_v30, 7  ;;  %v5666_v0 = vadd.f32 %v15213_v52, %v5577_v19  ;;  %v15233_v60 = vpop.f32.mrf.mxu0  ;;  %5531 = vmatmul.bf16.gmra.mxu2 %v11758_v26  ;;  %v13552_v30 = vld [vmem:[#allocation10 + $0x138] sm:$0xff]  ;;  %v11762_v11 = vor.u32 %v13246_v20, %v11759_v55  ;;  %v3377_v44 = vsel %vm14544_vm14, %v3375_v61, %v3376_v21  ;;  %v13259_v21 = vld [vmem:[#allocation4 + $0x350] sm:$0xf0] }
 0x2b4   : > { %v2731_v19 = vld [vmem:[#allocation2 + $0xa8] sm:$0xf]  ;;  %10629 = vmatpush.bf16.msrb.mxu1 %v13552_v30  ;;  %3456 = vst [vmem:[#allocation4 + $0x3a4] sm:$0xf] %v3377_v44 }
 0x2b5   : > { %v5818_v4 = vor.u32 %v5816_v27, %v5815_v48  ;;  %v5820_v31 = vrot.slane %v5815_v48, 4  ;;  %v5742_v39 = vmax.f32 %v5666_v0, 0.0  ;;  %v11793_v27 = vld [vmem:[#allocation4 + $0x330] sm:$0xf]  ;;  %v405_v0 = vld [vmem:[#allocation3 + $0x30] sm:$0x1] }
 0x2b6   : > { %5709 = vmatmul.bf16.gmra.mxu0 %v11766_v17  ;;  %v5492_v26 = vpop.f32.mrf.mxu2  ;;  %v406_v59 = vsel %vm14178_vm2, 0, %v405_v0  ;;  %v11801_v55 = vld [vmem:[#allocation4 + $0x338] sm:$0xf] }
 0x2b7   : > { %v5819_v52 = vsel %vm14196_vm9, %v5811_v6, %v5818_v4  ;;  %v6129_v41 = vsel %vm14178_vm2, %v5820_v31, %v6128_v36  ;;  %v5774_v34 = vpack.c.bf16 %v5742_v39, %v5742_v39  ;;  %v6238_v25 = vld [vmem:[#allocation3 + $0xc] sm:$0xf]  ;;  %v3032_v6 = vshrl.u32 %v2731_v19, 16  ;;  %407 = vst [vmem:[#allocation3 + $0x30] sm:$0x1] %v406_v59 }
 0x2b8   : > { %6127 = vst [vmem:[#allocation3 + $0x10] sm:$0xf] %v5819_v52  ;;  %v5578_v47 = vpop.f32.mrf.mxu3  ;;  %v3035_v36 = vshll.u32 %v2731_v19, 16  ;;  %v5493_v20 = vadd.f32 %v5492_v26, %v14889_v18  ;;  %v3041_v18 = vshll.u32 %v2732_v53, 16  ;;  %v3045_v59 = vshrl.u32 %v2732_v53, 16 }
 0x2b9   : > { %6130 = vst [vmem:[#allocation3 + $0x14] sm:$0x1] %v6129_v41  ;;  %v5822_v2 = vshrl.u32 %v5774_v34, 16  ;;  %v5579_v56 = vadd.f32 %v5578_v47, %v5490_v33  ;;  %v5825_v3 = vshll.u32 %v5774_v34, 16  ;;  %v11794_v34 = vor.u32 %v13259_v21, %v11793_v27  ;;  %v13260_v33 = vld [vmem:[#allocation4 + $0x358] sm:$0xf0] }
 0x2ba   : > { %6270 = vst [vmem:[#allocation4 + $0x48] sm:$0xf] %v6238_v25  ;;  %v3034_v47 = vrot.slane %v3032_v6, 4  ;;  %v3037_v30 = vrot.slane %v3035_v36, 5  ;;  %v11802_v44 = vor.u32 %v13260_v33, %v11801_v55  ;;  %v13527_v27 = vld [vmem:[#allocation10 + $0x70] sm:$0xff] }
 0x2bb   : > { %v5824_v48 = vrot.slane %v5822_v2, 7  ;;  %v5668_v17 = vadd.f32 %v15221_v7, %v5579_v56  ;;  %v15243_v9 = vpop.f32.mrf.mxu0  ;;  %v6135_v56 = vld [vmem:[#allocation3 + $0x20] sm:$0x1]  ;;  %10363 = vmatpush.bf16.msrb.mxu2 %v13527_v27 }
 0x2bc   : > { %v3038_v0 = vor.u32 %v3037_v30, %v3034_v47  ;;  %v3047_v30 = vrot.slane %v3045_v59, 4 }
 0x2bd   : > { %v5827_v4 = vor.u32 %v5825_v3, %v5824_v48  ;;  %v5743_v31 = vmax.f32 %v5668_v17, 0.0  ;;  %5620 = vmatmul.bf16.gmra.mxu3 %v11762_v11  ;;  %v13255_v17 = vld [vmem:[#allocation4 + $0x334] sm:$0xf]  ;;  %v5828_v6 = vrot.slane %v5824_v48, 4  ;;  %v2733_v48 = vld [vmem:[#allocation2 + $0xb0] sm:$0x1] }
 0x2be   : > { %v5494_v7 = vpop.f32.mrf.mxu2  ;;  %v3039_v47 = vrot.slane %v3038_v0, 4 }
 0x2bf   : > { %v7069_v39 = vld [vmem:[#allocation3 + $0x10] sm:$0xf]  ;;  %v5775_v61 = vpack.c.bf16 %v5743_v31, %v5743_v31  ;;  %v6132_v52 = vsel %vm14206_vm10, %v5827_v4, %v6131_v54  ;;  %v13535_v31 = vld [vmem:[#allocation10 + $0xb0] sm:$0xff]  ;;  %v5495_v55 = vadd.f32 %v5494_v7, %v14902_v58 }
 0x2c0   : > { %v5581_v41 = vpop.f32.mrf.mxu3  ;;  %7101 = vst [vmem:[#allocation4 + $0x30] sm:$0xf] %v7069_v39  ;;  %v6239_v54 = vld [vmem:[#allocation3 + $0x10] sm:$0xf]  ;;  %10452 = vmatpush.bf16.msrb.mxu3 %v13535_v31 }
 0x2c1   : > { %v5830_v19 = vshrl.u32 %v5775_v61, 16  ;;  %v5582_v2 = vadd.f32 %v5581_v41, %v5493_v20  ;;  %6133 = vst [vmem:[#allocation3 + $0x18] sm:$0xf] %v6132_v52  ;;  %v5833_v25 = vshll.u32 %v5775_v61, 16  ;;  %v11795_v39 = vld [vmem:[#allocation4 + $0x354] sm:$0xf0] }
 0x2c2   : > { %6271 = vst [vmem:[#allocation4 + $0x6c] sm:$0xf] %v6239_v54  ;;  %v453_v61 = vld [vmem:[#allocation3 + $0x38] sm:$0x1]  ;;  %v3043_v41 = vrot.slane %v3041_v18, 5 }
 0x2c3   : > { %v5832_v11 = vrot.slane %v5830_v19, 7  ;;  %v5671_v26 = vadd.f32 %v15233_v60, %v5582_v2  ;;  %v15251_v3 = vpop.f32.mrf.mxu0  ;;  %5536 = vmatmul.bf16.gmra.mxu2 %v11794_v34  ;;  %v454_v53 = vsel %vm14187_vm5, 0, %v453_v61  ;;  %v11798_v2 = vor.u32 %v13255_v17, %v11795_v39  ;;  %v12321_v7 = vld [vmem:[#allocation4 + $0x48] sm:$0xf]  ;;  %v13268_v17 = vld [vmem:[#allocation4 + $0x398] sm:$0xf0] }
 0x2c4   : > { %455 = vst [vmem:[#allocation3 + $0x38] sm:$0x1] %v454_v53  ;;  %v3048_v59 = vor.u32 %v3047_v30, %v3043_v41  ;;  %v11837_v39 = vld [vmem:[#allocation4 + $0x380] sm:$0xf]  ;;  %v15265_v61 = vld [vmem:[#allocation2 + $0xb8] sm:$0xf] }
 0x2c5   : > { %v5835_v36 = vor.u32 %v5833_v25, %v5832_v11  ;;  %v5837_v4 = vrot.slane %v5832_v11, 4  ;;  %v5744_v21 = vmax.f32 %v5671_v26, 0.0  ;;  %v11829_v25 = vld [vmem:[#allocation4 + $0x378] sm:$0xf]  ;;  %v3230_v30 = vld [vmem:[#allocation2 + $0xb4] sm:$0xe] }
 0x2c6   : > { %5714 = vmatmul.bf16.gmra.mxu0 %v11802_v44  ;;  %v5497_v52 = vpop.f32.mrf.mxu2  ;;  %v3044_v44 = vsel %vm14218_vm11, %v3039_v47, %v3043_v41 }
 0x2c7   : > { %v5836_v60 = vsel %vm14196_vm9, %v5828_v6, %v5835_v36  ;;  %v6136_v20 = vsel %vm14178_vm2, %v5837_v4, %v6135_v56  ;;  %v5776_v34 = vpack.c.bf16 %v5744_v21, %v5744_v21  ;;  %v3051_v56 = vshll.u32 %v2733_v48, 16  ;;  %3183 = vst [vmem:[#allocation4 + $0x37c] sm:$0xf] %v3044_v44  ;;  %v13269_v48 = vld [vmem:[#allocation4 + $0x3a0] sm:$0xf0] }
 0x2c8   : > { %6134 = vst [vmem:[#allocation3 + $0x1c] sm:$0xf] %v5836_v60  ;;  %v5583_v33 = vpop.f32.mrf.mxu3  ;;  %v6240_v0 = vld [vmem:[#allocation3 + $0x18] sm:$0xf]  ;;  %v5498_v47 = vadd.f32 %v5497_v52, %v14923_v51  ;;  %v408_v51 = vld [vmem:[#allocation3 + $0x3c] sm:$0x1] }
 0x2c9   : > { %6137 = vst [vmem:[#allocation3 + $0x20] sm:$0x1] %v6136_v20  ;;  %v5584_v19 = vadd.f32 %v5583_v33, %v5495_v55  ;;  %v5839_v11 = vshrl.u32 %v5776_v34, 16  ;;  %v5842_v26 = vshll.u32 %v5776_v34, 16  ;;  %v13382_v54 = vld [vmem:[#allocation4 + $0x68] sm:$0xf0]  ;;  %v11830_v55 = vor.u32 %v13268_v17, %v11829_v25 }
 0x2ca   : > { %v12322_v36 = vor.u32 %v13382_v54, %v12321_v7  ;;  %6272 = vst [vmem:[#allocation4 + $0x90] sm:$0xf] %v6240_v0  ;;  %v3049_v34 = vrot.slane %v3048_v59, 4  ;;  %v3053_v41 = vrot.slane %v3051_v56, 5  ;;  %v13543_v54 = vld [vmem:[#allocation10 + $0xf0] sm:$0xff]  ;;  %v11368_v52 = vrot.slane %v3230_v30, 9 }
 0x2cb   : > { %v5673_v58 = vadd.f32 %v15243_v9, %v5584_v19  ;;  %v5841_v18 = vrot.slane %v5839_v11, 7  ;;  %v15263_v27 = vpop.f32.mrf.mxu0  ;;  %v6138_v9 = vld [vmem:[#allocation3 + $0x24] sm:$0xf]  ;;  %v6142_v19 = vld [vmem:[#allocation3 + $0x2c] sm:$0x1]  ;;  %v3380_v11 = vrot.slane %v15265_v61, 5  ;;  %10541 = vmatpush.bf16.msrb.mxu0 %v13543_v54 }
 0x2cc   : > { %10286 = vmatmul.bf16.gmra.mxu1 %v12322_v36  ;;  %v3054_v56 = vsel %vm14218_vm11, %v3049_v34, %v3053_v41  ;;  %v2735_v34 = vld [vmem:[#allocation2 + $0xb8] sm:$0xf] }
 0x2cd   : > { %v5745_v6 = vmax.f32 %v5673_v58, 0.0  ;;  %5625 = vmatmul.bf16.gmra.mxu3 %v11798_v2  ;;  %v5844_v4 = vor.u32 %v5842_v26, %v5841_v18  ;;  %v11838_v2 = vor.u32 %v13269_v48, %v11837_v39  ;;  %v3232_v26 = vld [vmem:[#allocation2 + $0xbc] sm:$0x1]  ;;  %v5845_v59 = vrot.slane %v5841_v18, 4  ;;  %3184 = vst [vmem:[#allocation4 + $0x3a0] sm:$0xf] %v3054_v56 }
 0x2ce   : > { %v5499_v21 = vpop.f32.mrf.mxu2  ;;  %v456_v39 = vld [vmem:[#allocation3 + $0x44] sm:$0x1]  ;;  %v3382_v61 = vrot.slane %v3380_v11, 4  ;;  %v3381_v54 = vsel %vm14544_vm14, %v11368_v52, %v3380_v11  ;;  %v6145_v52 = vld [vmem:[#allocation3 + $0x30] sm:$0xf] }
 0x2cf   : > { %v5777_v31 = vpack.c.bf16 %v5745_v6, %v5745_v6  ;;  %v7902_v60 = vld [vmem:[#allocation3 + $0x1c] sm:$0xf]  ;;  %v6139_v33 = vsel %vm14206_vm10, %v5844_v4, %v6138_v9  ;;  %v13551_v4 = vld [vmem:[#allocation10 + $0x130] sm:$0xff]  ;;  %v5500_v9 = vadd.f32 %v5499_v21, %v14933_v24  ;;  %3457 = vst [vmem:[#allocation4 + $0x3c8] sm:$0xf] %v3381_v54 }
 0x2d0   : > { %v5586_v20 = vpop.f32.mrf.mxu3  ;;  %7934 = vst [vmem:[#allocation4 + $0x3c] sm:$0xf] %v7902_v60  ;;  %v6241_v0 = vld [vmem:[#allocation3 + $0x1c] sm:$0xf]  ;;  %v3383_v60 = vrot.slane %v3232_v26, 5  ;;  %10630 = vmatpush.bf16.msrb.mxu1 %v13551_v4 }
 0x2d1   : > { %v5847_v53 = vshrl.u32 %v5777_v31, 16  ;;  %6140 = vst [vmem:[#allocation3 + $0x24] sm:$0xf] %v6139_v33  ;;  %v5850_v7 = vshll.u32 %v5777_v31, 16  ;;  %v5587_v44 = vadd.f32 %v5586_v20, %v5498_v47  ;;  %v2657_v24 = vld [vmem:[#allocation2 + $0xb4] sm:$0xf] }
 0x2d2   : > { %6273 = vst [vmem:[#allocation4 + $0xb4] sm:$0xf] %v6241_v0  ;;  %v2734_v21 = vld [vmem:[#allocation2 + $0xb4] sm:$0xf]  ;;  %v457_v33 = vsel %vm14187_vm5, 0, %v456_v39  ;;  %v3384_v11 = vsel %vm14544_vm14, %v3382_v61, %v3383_v60 }
 0x2d3   : > { %v5849_v58 = vrot.slane %v5847_v53, 7  ;;  %v15271_v25 = vpop.f32.mrf.mxu0  ;;  %5541 = vmatmul.bf16.gmra.mxu2 %v11830_v55  ;;  %v5676_v17 = vadd.f32 %v15251_v3, %v5587_v44  ;;  %v409_v3 = vsel %vm14178_vm2, 0, %v408_v51  ;;  %v2658_v53 = vld [vmem:[#allocation2 + $0xb8] sm:$0xf]  ;;  %v2736_v47 = vld [vmem:[#allocation2 + $0xbc] sm:$0x1] }
 0x2d4   : > { %v3056_v30 = vshrl.u32 %v2734_v21, 16  ;;  %v12357_v56 = vld [vmem:[#allocation4 + $0x90] sm:$0xf]  ;;  %v13264_v26 = vld [vmem:[#allocation4 + $0x37c] sm:$0xf] }
 0x2d5   : > { %v5852_v6 = vor.u32 %v5850_v7, %v5849_v58  ;;  %v5854_v36 = vrot.slane %v5849_v58, 4  ;;  %v5746_v55 = vmax.f32 %v5676_v17, 0.0  ;;  %v3059_v58 = vshll.u32 %v2734_v21, 16  ;;  %410 = vst [vmem:[#allocation3 + $0x3c] sm:$0x1] %v409_v3 }
 0x2d6   : > { %v5502_v31 = vpop.f32.mrf.mxu2  ;;  %5719 = vmatmul.bf16.gmra.mxu0 %v11838_v2  ;;  %v3065_v7 = vshll.u32 %v2735_v34, 16  ;;  %v3069_v2 = vshrl.u32 %v2735_v34, 16  ;;  %v3058_v0 = vrot.slane %v3056_v30, 4  ;;  %458 = vst [vmem:[#allocation3 + $0x44] sm:$0x1] %v457_v33  ;;  %v3075_v17 = vshll.u32 %v2736_v47, 16 }
 0x2d7   : > { %v5853_v20 = vsel %vm14196_vm9, %v5845_v59, %v5852_v6  ;;  %v6143_v18 = vsel %vm14178_vm2, %v5854_v36, %v6142_v19  ;;  %v5778_v19 = vpack.c.bf16 %v5746_v55, %v5746_v55  ;;  %v3061_v6 = vrot.slane %v3059_v58, 5  ;;  %2689 = vst [vmem:[#allocation4 + $0x3c0] sm:$0xf] %v2657_v24  ;;  %v11831_v55 = vld [vmem:[#allocation4 + $0x39c] sm:$0xf0] }
 0x2d8   : > { %v5588_v48 = vpop.f32.mrf.mxu3  ;;  %6141 = vst [vmem:[#allocation3 + $0x28] sm:$0xf] %v5853_v20  ;;  %v3067_v36 = vrot.slane %v3065_v7, 5  ;;  %v3071_v39 = vrot.slane %v3069_v2, 4  ;;  %v11834_v3 = vor.u32 %v13264_v26, %v11831_v55  ;;  %v5503_v33 = vadd.f32 %v5502_v31, %v14955_v63  ;;  %v6242_v61 = vld [vmem:[#allocation3 + $0x24] sm:$0xf] }
 0x2d9   : > { %v5589_v41 = vadd.f32 %v5588_v48, %v5500_v9  ;;  %6144 = vst [vmem:[#allocation3 + $0x2c] sm:$0x1] %v6143_v18  ;;  %v5856_v51 = vshrl.u32 %v5778_v19, 16  ;;  %v13391_v9 = vld [vmem:[#allocation4 + $0xb0] sm:$0xf0]  ;;  %v3062_v34 = vor.u32 %v3061_v6, %v3058_v0  ;;  %v3077_v60 = vrot.slane %v3075_v17, 5 }
 0x2da   : > { %v12358_v18 = vor.u32 %v13391_v9, %v12357_v56  ;;  %2690 = vst [vmem:[#allocation4 + $0x3e4] sm:$0xf] %v2658_v53  ;;  %v3072_v47 = vor.u32 %v3071_v39, %v3067_v36  ;;  %v6149_v7 = vld [vmem:[#allocation3 + $0x38] sm:$0x1]  ;;  %v13534_v9 = vld [vmem:[#allocation10 + $0xa8] sm:$0xff] }
 0x2db   : > { %v5678_v44 = vadd.f32 %v15263_v27, %v5589_v41  ;;  %v15288_v59 = vpop.f32.mrf.mxu0  ;;  %v5858_v20 = vrot.slane %v5856_v51, 7  ;;  %v5859_v27 = vshll.u32 %v5778_v19, 16  ;;  %3458 = vst [vmem:[#allocation4 + $0x3ec] sm:$0xf] %v3384_v11  ;;  %v5416_v51 = vadd.f32 %v14952_v50, %v14959_v15  ;;  %v11873_v55 = vld [vmem:[#allocation4 + $0x3c8] sm:$0xf]  ;;  %10453 = vmatpush.bf16.msrb.mxu3 %v13534_v9 }
 0x2dc   : > { %10291 = vmatmul.bf16.gmra.mxu1 %v12358_v18  ;;  %v3073_v0 = vrot.slane %v3072_v47, 4  ;;  %6274 = vst [vmem:[#allocation4 + $0xd8] sm:$0xf] %v6242_v61  ;;  %v459_v50 = vld [vmem:[#allocation3 + $0x50] sm:$0x1] }
 0x2dd   : > { %v5747_v4 = vmax.f32 %v5678_v44, 0.0  ;;  %v5861_v41 = vor.u32 %v5859_v27, %v5858_v20  ;;  %5630 = vmatmul.bf16.gmra.mxu3 %v11834_v3  ;;  %v5862_v58 = vrot.slane %v5858_v20, 4  ;;  %v3063_v44 = vrot.slane %v3062_v34, 4 }
 0x2de   : > { %v5504_v21 = vpop.f32.mrf.mxu2  ;;  %v11865_v54 = vld [vmem:[#allocation4 + $0x3c0] sm:$0xf] }
 0x2df   : > { %v5779_v48 = vpack.c.bf16 %v5747_v4, %v5747_v4  ;;  %v6146_v53 = vsel %vm14206_vm10, %v5861_v41, %v6145_v52  ;;  %v6243_v2 = vld [vmem:[#allocation3 + $0x28] sm:$0xf]  ;;  %v3068_v17 = vsel %vm14218_vm11, %v3063_v44, %v3067_v36  ;;  %v13526_v4 = vld [vmem:[#allocation10 + $0x68] sm:$0xff]  ;;  %v3078_v41 = vsel %vm14218_vm11, %v3073_v0, %v3077_v60 }
 0x2e0   : > { %v5591_v24 = vpop.f32.mrf.mxu3  ;;  %6147 = vst [vmem:[#allocation3 + $0x30] sm:$0xf] %v6146_v53  ;;  %10364 = vmatpush.bf16.msrb.mxu2 %v13526_v4  ;;  %v411_v52 = vld [vmem:[#allocation3 + $0x48] sm:$0x1] }
 0x2e1   : > { %v5864_v30 = vshrl.u32 %v5779_v48, 16  ;;  %v5592_v19 = vadd.f32 %v5591_v24, %v5503_v33  ;;  %v5867_v26 = vshll.u32 %v5779_v48, 16  ;;  %v13277_v6 = vld [vmem:[#allocation4 + $0x3e0] sm:$0xf0]  ;;  %6275 = vst [vmem:[#allocation4 + $0xfc] sm:$0xf] %v6243_v2 }
 0x2e2   : > { %v11866_v18 = vor.u32 %v13277_v6, %v11865_v54  ;;  %3185 = vst [vmem:[#allocation4 + $0x3c4] sm:$0xf] %v3068_v17  ;;  %v13278_v34 = vld [vmem:[#allocation4 + $0x3e8] sm:$0xf0]  ;;  %v3234_v33 = vld [vmem:[#allocation2 + $0xc4] sm:$0xf] }
 0x2e3   : > { %v5866_v56 = vrot.slane %v5864_v30, 7  ;;  %v5681_v63 = vadd.f32 %v15271_v25, %v5592_v19  ;;  %v15296_v31 = vpop.f32.mrf.mxu0  ;;  %v5505_v25 = vadd.f32 %v5504_v21, %v5416_v51  ;;  %v3233_v21 = vld [vmem:[#allocation2 + $0xc0] sm:$0xe]  ;;  %v11874_v47 = vor.u32 %v13278_v34, %v11873_v55  ;;  %v3235_v19 = vld [vmem:[#allocation2 + $0xc8] sm:$0x1]  ;;  %v13542_v6 = vld [vmem:[#allocation10 + $0xe8] sm:$0xff] }
 0x2e4   : > { %5546 = vmatmul.bf16.gmra.mxu2 %v11866_v18  ;;  %v412_v53 = vsel %vm14178_vm2, 0, %v411_v52  ;;  %v2659_v30 = vld [vmem:[#allocation2 + $0xc0] sm:$0xf]  ;;  %v3387_v2 = vrot.slane %v3234_v33, 5  ;;  %3186 = vst [vmem:[#allocation4 + $0x3e8] sm:$0xf] %v3078_v41  ;;  %10542 = vmatpush.bf16.msrb.mxu0 %v13542_v6 }
 0x2e5   : > { %v5869_v39 = vor.u32 %v5867_v26, %v5866_v56  ;;  %v5871_v20 = vrot.slane %v5866_v56, 4  ;;  %v5748_v27 = vmax.f32 %v5681_v63, 0.0  ;;  %v6152_v56 = vld [vmem:[#allocation3 + $0x3c] sm:$0xf]  ;;  %v11369_v26 = vrot.slane %v3233_v21, 9  ;;  %v13550_v21 = vld [vmem:[#allocation10 + $0x128] sm:$0xff] }
 0x2e6   : > { %v5507_v11 = vpop.f32.mrf.mxu2  ;;  %5724 = vmatmul.bf16.gmra.mxu0 %v11874_v47  ;;  %v3390_v63 = vrot.slane %v3235_v19, 5  ;;  %v12393_v0 = vld [vmem:[#allocation4 + $0xd8] sm:$0xf]  ;;  %413 = vst [vmem:[#allocation3 + $0x48] sm:$0x1] %v412_v53  ;;  %v3389_v9 = vrot.slane %v3387_v2, 4  ;;  %10631 = vmatpush.bf16.msrb.mxu1 %v13550_v21 }
 0x2e7   : > { %v5870_v15 = vsel %vm14196_vm9, %v5862_v58, %v5869_v39  ;;  %v6150_v36 = vsel %vm14178_vm2, %v5871_v20, %v6149_v7  ;;  %v5780_v48 = vpack.c.bf16 %v5748_v27, %v5748_v27  ;;  %v460_v58 = vsel %vm14187_vm5, 0, %v459_v50  ;;  %v2660_v7 = vld [vmem:[#allocation2 + $0xc4] sm:$0xf]  ;;  %2691 = vst [vmem:[#allocation4 + $0x408] sm:$0xf] %v2659_v30 }
 0x2e8   : > { %v5593_v3 = vpop.f32.mrf.mxu3  ;;  %6148 = vst [vmem:[#allocation3 + $0x34] sm:$0xf] %v5870_v15  ;;  %v13400_v4 = vld [vmem:[#allocation4 + $0xf8] sm:$0xf0]  ;;  %v3388_v18 = vsel %vm14544_vm14, %v11369_v26, %v3387_v2  ;;  %v6244_v15 = vld [vmem:[#allocation3 + $0x30] sm:$0xf] }
 0x2e9   : > { %v5594_v24 = vadd.f32 %v5593_v3, %v5505_v25  ;;  %6151 = vst [vmem:[#allocation3 + $0x38] sm:$0x1] %v6150_v36  ;;  %v5873_v61 = vshrl.u32 %v5780_v48, 16  ;;  %v5876_v44 = vshll.u32 %v5780_v48, 16  ;;  %v12394_v20 = vor.u32 %v13400_v4, %v12393_v0  ;;  %v13273_v52 = vld [vmem:[#allocation4 + $0x3c4] sm:$0xf] }
 0x2ea   : > { %461 = vst [vmem:[#allocation3 + $0x50] sm:$0x1] %v460_v58  ;;  %v5508_v25 = vadd.f32 %v5507_v11, %v14983_v37  ;;  %v3391_v48 = vsel %vm14544_vm14, %v3389_v9, %v3390_v63  ;;  %v2737_v3 = vld [vmem:[#allocation2 + $0xc0] sm:$0xf]  ;;  %v6156_v53 = vld [vmem:[#allocation3 + $0x44] sm:$0x1]  ;;  %v5421_v37 = vadd.f32 %v14978_v35, %v14989_v38 }
 0x2eb   : > { %v5683_v60 = vadd.f32 %v15288_v59, %v5594_v24  ;;  %v5875_v54 = vrot.slane %v5873_v61, 7  ;;  %v15313_v51 = vpop.f32.mrf.mxu0  ;;  %2692 = vst [vmem:[#allocation4 + $0x42c] sm:$0xf] %v2660_v7  ;;  %v11867_v34 = vld [vmem:[#allocation4 + $0x3e4] sm:$0xf0]  ;;  %v3083_v35 = vshll.u32 %v2737_v3, 16 }
 0x2ec   : > { %10296 = vmatmul.bf16.gmra.mxu1 %v12394_v20  ;;  %3459 = vst [vmem:[#allocation4 + $0x410] sm:$0xf] %v3388_v18  ;;  %v11870_v11 = vor.u32 %v13273_v52, %v11867_v34  ;;  %v2738_v58 = vld [vmem:[#allocation2 + $0xc4] sm:$0xf]  ;;  %v2739_v6 = vld [vmem:[#allocation2 + $0xc8] sm:$0x1] }
 0x2ed   : > { %v5749_v17 = vmax.f32 %v5683_v60, 0.0  ;;  %v5878_v39 = vor.u32 %v5876_v44, %v5875_v54  ;;  %v5879_v33 = vrot.slane %v5875_v54, 4  ;;  %3460 = vst [vmem:[#allocation4 + $0x434] sm:$0xf] %v3391_v48  ;;  %v414_v4 = vld [vmem:[#allocation3 + $0x54] sm:$0x1] }
 0x2ee   : > { %v5509_v59 = vpop.f32.mrf.mxu2  ;;  %v11901_v44 = vld [vmem:[#allocation4 + $0x408] sm:$0xf]  ;;  %6276 = vst [vmem:[#allocation4 + $0x120] sm:$0xf] %v6244_v15  ;;  %5635 = vmatmul.bf16.gmra.mxu3 %v11870_v11  ;;  %v13525_v9 = vld [vmem:[#allocation10 + $0x60] sm:$0xff]  ;;  %v3093_v52 = vshrl.u32 %v2738_v58, 16 }
 0x2ef   : > { %v5781_v27 = vpack.c.bf16 %v5749_v17, %v5749_v17  ;;  %v6153_v55 = vsel %vm14206_vm10, %v5878_v39, %v6152_v56  ;;  %v6245_v61 = vld [vmem:[#allocation3 + $0x34] sm:$0xf]  ;;  %v3080_v56 = vshrl.u32 %v2737_v3, 16  ;;  %v5510_v26 = vadd.f32 %v5509_v59, %v5421_v37  ;;  %v13541_v18 = vld [vmem:[#allocation10 + $0xe0] sm:$0xff]  ;;  %10365 = vmatpush.bf16.msrb.mxu2 %v13525_v9  ;;  %v6159_v3 = vld [vmem:[#allocation3 + $0x48] sm:$0xf] }
 0x2f0   : > { %v5596_v50 = vpop.f32.mrf.mxu3  ;;  %6154 = vst [vmem:[#allocation3 + $0x3c] sm:$0xf] %v6153_v55  ;;  %v3089_v59 = vshll.u32 %v2738_v58, 16  ;;  %10543 = vmatpush.bf16.msrb.mxu0 %v13541_v18  ;;  %v462_v48 = vld [vmem:[#allocation3 + $0x5c] sm:$0x1]  ;;  %v3095_v21 = vrot.slane %v3093_v52, 4 }
 0x2f1   : > { %v5881_v36 = vshrl.u32 %v5781_v27, 16  ;;  %v5597_v41 = vadd.f32 %v5596_v50, %v5508_v25  ;;  %v5884_v47 = vshll.u32 %v5781_v27, 16  ;;  %6277 = vst [vmem:[#allocation4 + $0x144] sm:$0xf] %v6245_v61  ;;  %v3082_v17 = vrot.slane %v3080_v56, 4 }
 0x2f2   : > { %v13286_v63 = vld [vmem:[#allocation4 + $0x428] sm:$0xf0]  ;;  %v3085_v27 = vrot.slane %v3083_v35, 5  ;;  %v5424_v61 = vadd.f32 %v14993_v32, %v15005_v42 }
 0x2f3   : > { %v5883_v24 = vrot.slane %v5881_v36, 7  ;;  %v5686_v30 = vadd.f32 %v15296_v31, %v5597_v41  ;;  %v15325_v19 = vpop.f32.mrf.mxu0  ;;  %v11902_v54 = vor.u32 %v13286_v63, %v11901_v44  ;;  %v11909_v25 = vld [vmem:[#allocation4 + $0x410] sm:$0xf]  ;;  %v3091_v36 = vrot.slane %v3089_v59, 5 }
 0x2f4   : > { %v3086_v15 = vor.u32 %v3085_v27, %v3082_v17  ;;  %v13287_v41 = vld [vmem:[#allocation4 + $0x430] sm:$0xf0]  ;;  %v463_v44 = vsel %vm14187_vm5, 0, %v462_v48  ;;  %v13524_v17 = vld [vmem:[#allocation10 + $0x58] sm:$0xff] }
 0x2f5   : > { %v5886_v7 = vor.u32 %v5884_v47, %v5883_v24  ;;  %v5888_v2 = vrot.slane %v5883_v24, 4  ;;  %v5750_v60 = vmax.f32 %v5686_v30, 0.0  ;;  %5551 = vmatmul.bf16.gmra.mxu2 %v11902_v54  ;;  %v415_v24 = vsel %vm14178_vm2, 0, %v414_v4  ;;  %464 = vst [vmem:[#allocation3 + $0x5c] sm:$0x1] %v463_v44  ;;  %v13540_v27 = vld [vmem:[#allocation10 + $0xd8] sm:$0xff] }
 0x2f6   : > { %v5512_v0 = vpop.f32.mrf.mxu2  ;;  %v11910_v37 = vor.u32 %v13287_v41, %v11909_v25  ;;  %v3087_v11 = vrot.slane %v3086_v15, 4  ;;  %416 = vst [vmem:[#allocation3 + $0x54] sm:$0x1] %v415_v24  ;;  %v2661_v54 = vld [vmem:[#allocation2 + $0xcc] sm:$0xf]  ;;  %10366 = vmatpush.bf16.msrb.mxu2 %v13524_v17  ;;  %v5426_v25 = vadd.f32 %v15009_v62, %v15019_v23  ;;  %10544 = vmatpush.bf16.msrb.mxu0 %v13540_v27 }
 0x2f7   : > { %v5887_v38 = vsel %vm14196_vm9, %v5879_v33, %v5886_v7  ;;  %v6157_v31 = vsel %vm14178_vm2, %v5888_v2, %v6156_v53  ;;  %v5782_v39 = vpack.c.bf16 %v5750_v60, %v5750_v60  ;;  %v3099_v33 = vshll.u32 %v2739_v6, 16  ;;  %v12429_v7 = vld [vmem:[#allocation4 + $0x120] sm:$0xf]  ;;  %2693 = vst [vmem:[#allocation4 + $0x450] sm:$0xf] %v2661_v54 }
 0x2f8   : > { %6155 = vst [vmem:[#allocation3 + $0x40] sm:$0xf] %v5887_v38  ;;  %v5598_v20 = vpop.f32.mrf.mxu3  ;;  %v13409_v2 = vld [vmem:[#allocation4 + $0x140] sm:$0xf0]  ;;  %5729 = vmatmul.bf16.gmra.mxu0 %v11910_v37  ;;  %v5513_v35 = vadd.f32 %v5512_v0, %v5424_v61  ;;  %v2662_v6 = vld [vmem:[#allocation2 + $0xd0] sm:$0xf] }
 0x2f9   : > { %6158 = vst [vmem:[#allocation3 + $0x44] sm:$0x1] %v6157_v31  ;;  %v5599_v55 = vadd.f32 %v5598_v20, %v5510_v26  ;;  %v5890_v50 = vshrl.u32 %v5782_v39, 16  ;;  %v5893_v53 = vshll.u32 %v5782_v39, 16  ;;  %v12430_v60 = vor.u32 %v13409_v2, %v12429_v7  ;;  %v13533_v20 = vld [vmem:[#allocation10 + $0xa0] sm:$0xff]  ;;  %v13532_v7 = vld [vmem:[#allocation10 + $0x98] sm:$0xff] }
 0x2fa   : > { %v3092_v26 = vsel %vm14218_vm11, %v3087_v11, %v3091_v36  ;;  %v3101_v38 = vrot.slane %v3099_v33, 5  ;;  %2694 = vst [vmem:[#allocation4 + $0x474] sm:$0xf] %v2662_v6  ;;  %10454 = vmatpush.bf16.msrb.mxu3 %v13533_v20  ;;  %v3236_v41 = vld [vmem:[#allocation2 + $0xcc] sm:$0xe] }
 0x2fb   : > { %v5688_v34 = vadd.f32 %v15313_v51, %v5599_v55  ;;  %v5892_v47 = vrot.slane %v5890_v50, 7  ;;  %v15334_v30 = vpop.f32.mrf.mxu0  ;;  %v3096_v51 = vor.u32 %v3095_v21, %v3091_v36  ;;  %3187 = vst [vmem:[#allocation4 + $0x40c] sm:$0xf] %v3092_v26  ;;  %v6163_v50 = vld [vmem:[#allocation3 + $0x50] sm:$0x1] }
 0x2fc   : > { %10301 = vmatmul.bf16.gmra.mxu1 %v12430_v60  ;;  %v3237_v33 = vld [vmem:[#allocation2 + $0xd0] sm:$0xf]  ;;  %v3238_v24 = vld [vmem:[#allocation2 + $0xd4] sm:$0x1]  ;;  %v7932_v11 = vld [vmem:[#allocation3 + $0xd0] sm:$0xf] }
 0x2fd   : > { %v5751_v58 = vmax.f32 %v5688_v34, 0.0  ;;  %v5895_v56 = vor.u32 %v5893_v53, %v5892_v47  ;;  %v3097_v9 = vrot.slane %v3096_v51, 4  ;;  %v5896_v52 = vrot.slane %v5892_v47, 4  ;;  %v7931_v34 = vld [vmem:[#allocation3 + $0xcc] sm:$0xf] }
 0x2fe   : > { %v5514_v31 = vpop.f32.mrf.mxu2  ;;  %v13523_v53 = vld [vmem:[#allocation10 + $0x50] sm:$0xff]  ;;  %v3394_v61 = vrot.slane %v3237_v33, 5  ;;  %v3397_v51 = vrot.slane %v3238_v24, 5  ;;  %10455 = vmatpush.bf16.msrb.mxu3 %v13532_v7 }
 0x2ff   : > { %v5783_v63 = vpack.c.bf16 %v5751_v58, %v5751_v58  ;;  %v6160_v32 = vsel %vm14206_vm10, %v5895_v56, %v6159_v3  ;;  %v3102_v18 = vsel %vm14218_vm11, %v3097_v9, %v3101_v38  ;;  %v5515_v21 = vadd.f32 %v5514_v31, %v5426_v25  ;;  %v8506_v44 = vld [vmem:[#allocation3 + $0xcc] sm:$0xe]  ;;  %v8507_v56 = vld [vmem:[#allocation3 + $0xd0] sm:$0xf]  ;;  %10367 = vmatpush.bf16.msrb.mxu2 %v13523_v53  ;;  %v6166_v31 = vld [vmem:[#allocation3 + $0x54] sm:$0xf] }
 0x300   : > { %v5601_v42 = vpop.f32.mrf.mxu3  ;;  %6161 = vst [vmem:[#allocation3 + $0x48] sm:$0xf] %v6160_v32  ;;  %v3396_v32 = vrot.slane %v3394_v61, 4 }
 0x301   : > { %v5898_v4 = vshrl.u32 %v5783_v63, 16  ;;  %v5602_v39 = vadd.f32 %v5601_v42, %v5513_v35  ;;  %v5901_v59 = vshll.u32 %v5783_v63, 16  ;;  %3188 = vst [vmem:[#allocation4 + $0x430] sm:$0xf] %v3102_v18  ;;  %v11937_v35 = vld [vmem:[#allocation4 + $0x450] sm:$0xf] }
 0x302   : > { %v13282_v23 = vld [vmem:[#allocation4 + $0x40c] sm:$0xf]  ;;  %v13295_v54 = vld [vmem:[#allocation4 + $0x470] sm:$0xf0]  ;;  %7963 = vst [vmem:[#allocation4 + $0x450] sm:$0xf] %v7931_v34  ;;  %v3398_v27 = vsel %vm14544_vm14, %v3396_v32, %v3397_v51 }
 0x303   : > { %v5900_v0 = vrot.slane %v5898_v4, 7  ;;  %v5691_v55 = vadd.f32 %v15325_v19, %v5602_v39  ;;  %v15349_v15 = vpop.f32.mrf.mxu0  ;;  %v11370_v19 = vrot.slane %v3236_v41, 9  ;;  %v8664_v42 = vrot.slane %v8507_v56, 5  ;;  %7964 = vst [vmem:[#allocation4 + $0x474] sm:$0xf] %v7932_v11  ;;  %v13539_v39 = vld [vmem:[#allocation10 + $0xd0] sm:$0xff] }
 0x304   : > { %v11938_v9 = vor.u32 %v13295_v54, %v11937_v35  ;;  %v13522_v18 = vld [vmem:[#allocation10 + $0x48] sm:$0xff]  ;;  %3462 = vst [vmem:[#allocation4 + $0x47c] sm:$0xf] %v3398_v27  ;;  %10545 = vmatpush.bf16.msrb.mxu0 %v13539_v39  ;;  %v2742_v56 = vld [vmem:[#allocation2 + $0xd4] sm:$0x1] }
 0x305   : > { %v5903_v36 = vor.u32 %v5901_v59, %v5900_v0  ;;  %v5905_v48 = vrot.slane %v5900_v0, 4  ;;  %v5752_v3 = vmax.f32 %v5691_v55, 0.0  ;;  %v3395_v38 = vsel %vm14544_vm14, %v11370_v19, %v3394_v61  ;;  %v8508_v0 = vld [vmem:[#allocation3 + $0xd4] sm:$0x1]  ;;  %10368 = vmatpush.bf16.msrb.mxu2 %v13522_v18  ;;  %v6170_v61 = vld [vmem:[#allocation3 + $0x5c] sm:$0x1] }
 0x306   : > { %v5517_v58 = vpop.f32.mrf.mxu2  ;;  %3461 = vst [vmem:[#allocation4 + $0x458] sm:$0xf] %v3395_v38  ;;  %5556 = vmatmul.bf16.gmra.mxu2 %v11938_v9  ;;  %v3123_v9 = vshll.u32 %v2742_v56, 16  ;;  %v8011_v39 = vld [vmem:[#allocation3 + $0xd0] sm:$0xf] }
 0x307   : > { %v5904_v37 = vsel %vm14196_vm9, %v5896_v52, %v5903_v36  ;;  %v6164_v62 = vsel %vm14178_vm2, %v5905_v48, %v6163_v50  ;;  %v5784_v47 = vpack.c.bf16 %v5752_v3, %v5752_v3  ;;  %v12282_v52 = vrot.slane %v8506_v44, 9  ;;  %v6246_v48 = vld [vmem:[#allocation3 + $0x3c] sm:$0xf]  ;;  %v2740_v3 = vld [vmem:[#allocation2 + $0xcc] sm:$0xf] }
 0x308   : > { %6162 = vst [vmem:[#allocation3 + $0x4c] sm:$0xf] %v5904_v37  ;;  %v5603_v2 = vpop.f32.mrf.mxu3  ;;  %v11903_v6 = vld [vmem:[#allocation4 + $0x42c] sm:$0xf0]  ;;  %v8666_v50 = vrot.slane %v8664_v42, 4  ;;  %v8667_v36 = vrot.slane %v8508_v0, 5 }
 0x309   : > { %6165 = vst [vmem:[#allocation3 + $0x50] sm:$0x1] %v6164_v62  ;;  %v5907_v60 = vshrl.u32 %v5784_v47, 16  ;;  %v5910_v26 = vshll.u32 %v5784_v47, 16  ;;  %v5604_v63 = vadd.f32 %v5603_v2, %v5515_v21  ;;  %v11906_v20 = vor.u32 %v13282_v23, %v11903_v6  ;;  %v6247_v21 = vld [vmem:[#allocation3 + $0x40] sm:$0xf] }
 0x30a   : > { %v3104_v24 = vshrl.u32 %v2740_v3, 16  ;;  %v8665_v37 = vsel %vm14544_vm14, %v12282_v52, %v8664_v42  ;;  %6278 = vst [vmem:[#allocation4 + $0x168] sm:$0xf] %v6246_v48  ;;  %v5518_v62 = vadd.f32 %v5517_v58, %v15035_v12  ;;  %v2741_v23 = vld [vmem:[#allocation2 + $0xd0] sm:$0xf]  ;;  %v8668_v7 = vsel %vm14544_vm14, %v8666_v50, %v8667_v36  ;;  %v13538_v52 = vld [vmem:[#allocation10 + $0xc8] sm:$0xff] }
 0x30b   : > { %v15357_v17 = vrot.slane %v5907_v60, 7  ;;  %v5693_v4 = vadd.f32 %v15334_v30, %v5604_v63  ;;  %v15362_v59 = vpop.f32.mrf.mxu0  ;;  %v13531_v30 = vld [vmem:[#allocation10 + $0x90] sm:$0xff]  ;;  %5640 = vmatmul.bf16.gmra.mxu3 %v11906_v20  ;;  %6279 = vst [vmem:[#allocation4 + $0x18c] sm:$0xf] %v6247_v21  ;;  %v3107_v60 = vshll.u32 %v2740_v3, 16  ;;  %v3113_v63 = vshll.u32 %v2741_v23, 16  ;;  %10546 = vmatpush.bf16.msrb.mxu0 %v13538_v52 }
 0x30c   : > { %10456 = vmatpush.bf16.msrb.mxu3 %v13531_v30  ;;  %v3106_v2 = vrot.slane %v3104_v24, 4  ;;  %v3117_v35 = vshrl.u32 %v2741_v23, 16  ;;  %v8010_v6 = vld [vmem:[#allocation3 + $0xcc] sm:$0xf]  ;;  %v8012_v18 = vld [vmem:[#allocation3 + $0xd4] sm:$0x1] }
 0x30d   : > { %v5912_v55 = vor.u32 %v5910_v26, %v15357_v17  ;;  %v5753_v25 = vmax.f32 %v5693_v4, 0.0  ;;  %v5913_v47 = vrot.slane %v15357_v17, 4  ;;  %v11945_v44 = vld [vmem:[#allocation4 + $0x458] sm:$0xf]  ;;  %v13296_v26 = vld [vmem:[#allocation4 + $0x478] sm:$0xf0] }
 0x30e   : > { %v5519_v33 = vpop.f32.mrf.mxu2  ;;  %8731 = vst [vmem:[#allocation4 + $0x458] sm:$0xf] %v8665_v37  ;;  %v11946_v32 = vor.u32 %v13296_v26, %v11945_v44  ;;  %v3109_v42 = vrot.slane %v3107_v60, 5  ;;  %v3115_v17 = vrot.slane %v3113_v63, 5  ;;  %v3119_v4 = vrot.slane %v3117_v35, 4 }
 0x30f   : > { %v6167_v34 = vsel %vm14206_vm10, %v5912_v55, %v6166_v31  ;;  %v5785_v41 = vpack.c.bf16 %v5753_v25, %v5753_v25  ;;  %v5520_v12 = vadd.f32 %v5519_v33, %v15039_v1  ;;  %8732 = vst [vmem:[#allocation4 + $0x47c] sm:$0xf] %v8668_v7  ;;  %v8374_v20 = vshrl.u32 %v8010_v6, 16  ;;  %v417_v25 = vld [vmem:[#allocation3 + $0x60] sm:$0x1] }
 0x310   : > { %6168 = vst [vmem:[#allocation3 + $0x54] sm:$0xf] %v6167_v34  ;;  %v5606_v19 = vpop.f32.mrf.mxu3  ;;  %5734 = vmatmul.bf16.gmra.mxu0 %v11946_v32  ;;  %v3110_v1 = vor.u32 %v3109_v42, %v3106_v2  ;;  %v8377_v55 = vshll.u32 %v8010_v6, 16  ;;  %v3120_v36 = vor.u32 %v3119_v4, %v3115_v17  ;;  %v3125_v48 = vrot.slane %v3123_v9, 5  ;;  %v465_v44 = vld [vmem:[#allocation3 + $0x68] sm:$0x1] }
 0x311   : > { %v5915_v53 = vshrl.u32 %v5785_v41, 16  ;;  %v5918_v11 = vshll.u32 %v5785_v41, 16  ;;  %v5607_v38 = vadd.f32 %v5606_v19, %v5518_v62  ;;  %v12465_v50 = vld [vmem:[#allocation4 + $0x168] sm:$0xf]  ;;  %v8376_v3 = vrot.slane %v8374_v20, 4  ;;  %v13529_v42 = vld [vmem:[#allocation10 + $0x80] sm:$0xff] }
 0x312   : > { %v13418_v21 = vld [vmem:[#allocation4 + $0x188] sm:$0xf0]  ;;  %v3111_v33 = vrot.slane %v3110_v1, 4  ;;  %v8379_v24 = vrot.slane %v8377_v55, 5  ;;  %v3121_v37 = vrot.slane %v3120_v36, 4  ;;  %v8383_v62 = vshll.u32 %v8011_v39, 16 }
 0x313   : > { %v5917_v51 = vrot.slane %v5915_v53, 7  ;;  %v15374_v58 = vpop.f32.mrf.mxu0  ;;  %v5696_v34 = vadd.f32 %v15349_v15, %v5607_v38  ;;  %v12466_v53 = vor.u32 %v13418_v21, %v12465_v50  ;;  %v8387_v23 = vshrl.u32 %v8011_v39, 16  ;;  %v13369_v56 = vld [vmem:[#allocation4 + $0x4] sm:$0xf]  ;;  %v7068_v38 = vld [vmem:[#allocation3 + $0xc] sm:$0xf] }
 0x314   : > { %v3116_v7 = vsel %vm14218_vm11, %v3111_v33, %v3115_v17  ;;  %v8380_v2 = vor.u32 %v8379_v24, %v8376_v3  ;;  %v418_v15 = vsel %vm14178_vm2, 0, %v417_v25  ;;  %v3126_v60 = vsel %vm14218_vm11, %v3121_v37, %v3125_v48  ;;  %v13549_v6 = vld [vmem:[#allocation10 + $0x120] sm:$0xff]  ;;  %v12287_v39 = vld [vmem:[#allocation4 + $0x24] sm:$0xf0]  ;;  %v15392_v20 = vld [vmem:[#allocation3 + $0x10] sm:$0xf] }
 0x315   : > { %v5920_v31 = vor.u32 %v5918_v11, %v5917_v51  ;;  %v5922_v54 = vrot.slane %v5917_v51, 4  ;;  %v13530_v11 = vld [vmem:[#allocation10 + $0x88] sm:$0xff]  ;;  %v8393_v51 = vshll.u32 %v8012_v18, 16  ;;  %10306 = vmatmul.bf16.gmra.mxu1 %v12466_v53  ;;  %3189 = vst [vmem:[#allocation4 + $0x454] sm:$0xf] %v3116_v7  ;;  %v8385_v26 = vrot.slane %v8383_v62, 5 }
 0x316   : > { %v5522_v30 = vpop.f32.mrf.mxu2  ;;  %v8389_v63 = vrot.slane %v8387_v23, 4  ;;  %v5754_v35 = vmax.f32 %v5696_v34, 0.0  ;;  %3190 = vst [vmem:[#allocation4 + $0x478] sm:$0xf] %v3126_v60  ;;  %10457 = vmatpush.bf16.msrb.mxu3 %v13530_v11  ;;  %10632 = vmatpush.bf16.msrb.mxu1 %v13549_v6  ;;  %v6386_v36 = vshrl.u32 %v15392_v20, 16 }
 0x317   : > { %v5921_v27 = vsel %vm14196_vm9, %v5913_v47, %v5920_v31  ;;  %v6171_v0 = vsel %vm14178_vm2, %v5922_v54, %v6170_v61  ;;  %v13521_v47 = vld [vmem:[#allocation10 + $0x40] sm:$0xff]  ;;  %v8381_v31 = vrot.slane %v8380_v2, 4  ;;  %v466_v54 = vsel %vm14187_vm5, 0, %v465_v44  ;;  %419 = vst [vmem:[#allocation3 + $0x60] sm:$0x1] %v418_v15 }
 0x318   : > { %6169 = vst [vmem:[#allocation3 + $0x58] sm:$0xf] %v5921_v27  ;;  %v5608_v41 = vpop.f32.mrf.mxu3  ;;  %v13537_v61 = vld [vmem:[#allocation10 + $0xc0] sm:$0xff]  ;;  %10369 = vmatpush.bf16.msrb.mxu2 %v13521_v47  ;;  %v8390_v17 = vor.u32 %v8389_v63, %v8385_v26  ;;  %v8395_v4 = vrot.slane %v8393_v51, 5  ;;  %v5786_v9 = vpack.c.bf16 %v5754_v35, %v5754_v35  ;;  %v12290_v27 = vor.u32 %v13369_v56, %v12287_v39  ;;  %v12295_v24 = vld [vmem:[#allocation4 + $0x2c] sm:$0xf0] }
 0x319   : > { %6172 = vst [vmem:[#allocation3 + $0x5c] sm:$0x1] %v6171_v0  ;;  %v5609_v19 = vadd.f32 %v5608_v41, %v5520_v12  ;;  %10547 = vmatpush.bf16.msrb.mxu0 %v13537_v61  ;;  %v5523_v0 = vadd.f32 %v5522_v30, %v15055_v16  ;;  %v6248_v41 = vld [vmem:[#allocation3 + $0x48] sm:$0xf]  ;;  %v6388_v11 = vrot.slane %v6386_v36, 4  ;;  %v6382_v44 = vshll.u32 %v15392_v20, 16 }
 0x31a   : > { %v8391_v18 = vrot.slane %v8390_v17, 4  ;;  %467 = vst [vmem:[#allocation3 + $0x68] sm:$0x1] %v466_v54  ;;  %v5924_v25 = vshrl.u32 %v5786_v9, 16  ;;  %10458 = vmatpush.bf16.msrb.mxu3 %v13529_v42  ;;  %v5927_v30 = vshll.u32 %v5786_v9, 16 }
 0x31b   : > { %v15387_v12 = vpop.f32.mrf.mxu0  ;;  %v5698_v32 = vadd.f32 %v15362_v59, %v5609_v19  ;;  %v8386_v59 = vsel %vm14218_vm11, %v8381_v31, %v8385_v26  ;;  %10370 = vmatmul.bf16.vlgmr.msrb.gmra.mxu2 %v12290_v27  ;;  %7100 = vst [vmem:[#allocation4 + $0xc] sm:$0xf] %v7068_v38  ;;  %v6249_v19 = vld [vmem:[#allocation3 + $0x4c] sm:$0xf]  ;;  %v468_v6 = vld [vmem:[#allocation3 + $0x74] sm:$0x1] }
 0x31c   : > { %v8396_v48 = vsel %vm14218_vm11, %v8391_v18, %v8395_v4  ;;  %v13291_v3 = vld [vmem:[#allocation4 + $0x454] sm:$0xf]  ;;  %v5926_v16 = vrot.slane %v5924_v25, 7  ;;  %6280 = vst [vmem:[#allocation4 + $0x1b0] sm:$0xf] %v6248_v41  ;;  %v469_v39 = vsel %vm14187_vm5, 0, %v468_v6 }
 0x31d   : > { %v5755_v52 = vmax.f32 %v5698_v32, 0.0  ;;  %v11939_v33 = vld [vmem:[#allocation4 + $0x474] sm:$0xf0]  ;;  %8459 = vst [vmem:[#allocation4 + $0x454] sm:$0xf] %v8386_v59  ;;  %v6384_v25 = vrot.slane %v6382_v44, 5 }
 0x31e   : > { %v5524_v1 = vpop.f32.mrf.mxu2  ;;  %v11942_v37 = vor.u32 %v13291_v3, %v11939_v33  ;;  %8460 = vst [vmem:[#allocation4 + $0x478] sm:$0xf] %v8396_v48  ;;  %v5929_v62 = vor.u32 %v5927_v30, %v5926_v16  ;;  %v6173_v23 = vld [vmem:[#allocation3 + $0x60] sm:$0xf]  ;;  %v5930_v61 = vrot.slane %v5926_v16, 4 }
 0x31f   : > { %v5787_v34 = vpack.c.bf16 %v5755_v52, %v5755_v52  ;;  %6281 = vst [vmem:[#allocation4 + $0x1d4] sm:$0xf] %v6249_v19  ;;  %v420_v26 = vld [vmem:[#allocation3 + $0x6c] sm:$0x1]  ;;  %v5525_v35 = vadd.f32 %v5524_v1, %v15060_v22  ;;  %v15420_v36 = vld [vmem:[#allocation3 + $0x1c] sm:$0xf]  ;;  %v6389_v33 = vor.u32 %v6388_v11, %v6384_v25  ;;  %v15424_v11 = vpop.f32.mrf.mxu1 }
 0x320   : > { %v5611_v55 = vpop.f32.mrf.mxu3  ;;  %5645 = vmatmul.bf16.gmra.mxu3 %v11942_v37  ;;  %v421_v42 = vsel %vm14178_vm2, 0, %v420_v26  ;;  %v6303_v17 = vld [vmem:[#allocation3 + $0xc] sm:$0xf]  ;;  %470 = vst [vmem:[#allocation3 + $0x74] sm:$0x1] %v469_v39  ;;  %v6410_v26 = vshrl.u32 %v15420_v36, 16 }
 0x321   : > { %v5612_v50 = vadd.f32 %v5611_v55, %v5523_v0  ;;  %v5932_v47 = vshrl.u32 %v5787_v34, 16  ;;  %v5935_v7 = vshll.u32 %v5787_v34, 16  ;;  %v6177_v15 = vld [vmem:[#allocation3 + $0x68] sm:$0x1]  ;;  %422 = vst [vmem:[#allocation3 + $0x6c] sm:$0x1] %v421_v42 }
 0x322   : > { %v13370_v60 = vld [vmem:[#allocation4 + $0xc] sm:$0xf]  ;;  %v6305_v0 = vld [vmem:[#allocation3 + $0x14] sm:$0x1]  ;;  %v6373_v1 = vshrl.u32 %v6303_v17, 16  ;;  %v6376_v18 = vshll.u32 %v6303_v17, 16 }
 0x323   : > { %v5701_v21 = vadd.f32 %v15374_v58, %v5612_v50  ;;  %v15401_v53 = vpop.f32.mrf.mxu0  ;;  %v6174_v58 = vsel %vm14206_vm10, %v5929_v62, %v6173_v23  ;;  %v5934_v51 = vrot.slane %v5932_v47, 7  ;;  %v12298_v32 = vor.u32 %v13370_v60, %v12295_v24  ;;  %v12501_v48 = vld [vmem:[#allocation4 + $0x1b0] sm:$0xf]  ;;  %v12293_v34 = vld [vmem:[#allocation4 + $0x8] sm:$0xf] }
 0x324   : > { %6175 = vst [vmem:[#allocation3 + $0x60] sm:$0xf] %v6174_v58  ;;  %v6392_v52 = vshll.u32 %v6305_v0, 16  ;;  %v6375_v3 = vrot.slane %v6373_v1, 4  ;;  %v6378_v16 = vrot.slane %v6376_v18, 5  ;;  %v15437_v39 = vrot.slane %v6410_v26, 4 }
 0x325   : > { %v5756_v2 = vmax.f32 %v5701_v21, 0.0  ;;  %v5937_v31 = vor.u32 %v5935_v7, %v5934_v51  ;;  %v5939_v54 = vrot.slane %v5934_v51, 4  ;;  %10548 = vmatmul.bf16.vlgmr.msrb.gmra.mxu0 %v12298_v32  ;;  %v7070_v24 = vld [vmem:[#allocation3 + $0x18] sm:$0xf]  ;;  %v13374_v37 = vld [vmem:[#allocation4 + $0x28] sm:$0xf0] }
 0x326   : > { %v5527_v56 = vpop.f32.mrf.mxu2  ;;  %v13427_v30 = vld [vmem:[#allocation4 + $0x1d0] sm:$0xf0]  ;;  %v7071_v62 = vld [vmem:[#allocation3 + $0x1c] sm:$0xf]  ;;  %7102 = vst [vmem:[#allocation4 + $0x54] sm:$0xf] %v7070_v24 }
 0x327   : > { %v5788_v63 = vpack.c.bf16 %v5756_v2, %v5756_v2  ;;  %v5938_v27 = vsel %vm14196_vm9, %v5930_v61, %v5937_v31  ;;  %v6178_v22 = vsel %vm14178_vm2, %v5939_v54, %v6177_v15  ;;  %v12502_v19 = vor.u32 %v13427_v30, %v12501_v48  ;;  %7103 = vst [vmem:[#allocation4 + $0x78] sm:$0xf] %v7071_v62  ;;  %v6250_v2 = vld [vmem:[#allocation3 + $0x54] sm:$0xf]  ;;  %v6251_v42 = vld [vmem:[#allocation3 + $0x58] sm:$0xf] }
 0x328   : > { %v5613_v38 = vpop.f32.mrf.mxu3  ;;  %6176 = vst [vmem:[#allocation3 + $0x64] sm:$0xf] %v5938_v27  ;;  %v5528_v23 = vadd.f32 %v5527_v56, %v15081_v10  ;;  %v6390_v7 = vrot.slane %v6389_v33, 4  ;;  %v6180_v51 = vld [vmem:[#allocation3 + $0x6c] sm:$0xf]  ;;  %v6394_v44 = vrot.slane %v6392_v52, 5  ;;  %v12294_v10 = vor.u32 %v13374_v37, %v12293_v34 }
 0x329   : > { %v5941_v4 = vshrl.u32 %v5788_v63, 16  ;;  %v5944_v9 = vshll.u32 %v5788_v63, 16  ;;  %v5614_v20 = vadd.f32 %v5613_v38, %v5525_v35  ;;  %6179 = vst [vmem:[#allocation3 + $0x68] sm:$0x1] %v6178_v22  ;;  %10311 = vmatmul.bf16.gmra.mxu1 %v12502_v19  ;;  %v6406_v31 = vshll.u32 %v15420_v36, 16  ;;  %v15451_v19 = vpop.f32.mrf.mxu1 }
 0x32a   : > { %6282 = vst [vmem:[#allocation4 + $0x1f8] sm:$0xf] %v6250_v2  ;;  %v6395_v38 = vsel %vm14218_vm11, %v6390_v7, %v6394_v44  ;;  %v6184_v22 = vld [vmem:[#allocation3 + $0x74] sm:$0x1]  ;;  %v423_v62 = vld [vmem:[#allocation3 + $0x78] sm:$0x1] }
 0x32b   : > { %v15415_v55 = vrot.slane %v5941_v4, 7  ;;  %v5703_v59 = vadd.f32 %v15387_v12, %v5614_v20  ;;  %v15418_v50 = vpop.f32.mrf.mxu0  ;;  %v6379_v12 = vor.u32 %v6378_v16, %v6375_v3  ;;  %v6799_v4 = vld [vmem:[#allocation3 + $0xc] sm:$0xe]  ;;  %6767 = vst [vmem:[#allocation4 + $0x70] sm:$0xf] %v6395_v38  ;;  %v424_v2 = vsel %vm14178_vm2, 0, %v423_v62 }
 0x32c   : > { %6283 = vst [vmem:[#allocation4 + $0x21c] sm:$0xf] %v6251_v42  ;;  %v6801_v36 = vld [vmem:[#allocation3 + $0x14] sm:$0x1] }
 0x32d   : > { %v5946_v41 = vor.u32 %v5944_v9, %v15415_v55  ;;  %v5757_v21 = vmax.f32 %v5703_v59, 0.0  ;;  %v6380_v15 = vrot.slane %v6379_v12, 4  ;;  %v6800_v9 = vld [vmem:[#allocation3 + $0x10] sm:$0xf]  ;;  %v5947_v20 = vrot.slane %v15415_v55, 4 }
 0x32e   : > { %v5529_v47 = vpop.f32.mrf.mxu2  ;;  %v13379_v1 = vld [vmem:[#allocation4 + $0x54] sm:$0xf]  ;;  %v12331_v18 = vld [vmem:[#allocation4 + $0x74] sm:$0xf0]  ;;  %v12236_v59 = vrot.slane %v6799_v4, 9  ;;  %v6901_v48 = vrot.slane %v6800_v9, 5 }
 0x32f   : > { %v5789_v61 = vpack.c.bf16 %v5757_v21, %v5757_v21  ;;  %v6181_v63 = vsel %vm14206_vm10, %v5946_v41, %v6180_v51  ;;  %v6385_v56 = vsel %vm14218_vm11, %v6380_v15, %v6384_v25  ;;  %v5530_v25 = vadd.f32 %v5529_v47, %v15085_v57  ;;  %v15443_v55 = vld [vmem:[#allocation3 + $0x28] sm:$0xf]  ;;  %v13548_v12 = vld [vmem:[#allocation10 + $0x118] sm:$0xff]  ;;  %v6306_v51 = vld [vmem:[#allocation3 + $0x18] sm:$0xf] }
 0x330   : > { %v5616_v58 = vpop.f32.mrf.mxu3  ;;  %6182 = vst [vmem:[#allocation3 + $0x6c] sm:$0xf] %v6181_v63  ;;  %10459 = vmatmul.bf16.vlgmr.msrb.gmra.mxu3 %v12294_v10  ;;  %v12334_v34 = vor.u32 %v13379_v1, %v12331_v18  ;;  %v15447_v21 = vrot.slane %v6406_v31, 5  ;;  %v6902_v57 = vsel %vm14544_vm14, %v12236_v59, %v6901_v48  ;;  %v6903_v33 = vrot.slane %v6901_v48, 4  ;;  %10633 = vmatpush.bf16.msrb.mxu1 %v13548_v12  ;;  %v6308_v9 = vld [vmem:[#allocation3 + $0x20] sm:$0x1] }
 0x331   : > { %v5617_v60 = vadd.f32 %v5616_v58, %v5528_v23  ;;  %v5949_v35 = vshrl.u32 %v5789_v61, 16  ;;  %v5952_v32 = vshll.u32 %v5789_v61, 16  ;;  %6766 = vst [vmem:[#allocation4 + $0x4c] sm:$0xf] %v6385_v56  ;;  %v6904_v24 = vrot.slane %v6801_v36, 5 }
 0x332   : > { %7038 = vst [vmem:[#allocation4 + $0x50] sm:$0xf] %v6902_v57  ;;  %v471_v23 = vld [vmem:[#allocation3 + $0x80] sm:$0x1]  ;;  %v6434_v44 = vshrl.u32 %v15443_v55, 16  ;;  %v6397_v38 = vshrl.u32 %v6306_v51, 16 }
 0x333   : > { %v5951_v54 = vrot.slane %v5949_v35, 7  ;;  %v5706_v6 = vadd.f32 %v15401_v53, %v5617_v60  ;;  %v15435_v17 = vpop.f32.mrf.mxu0  ;;  %v6905_v7 = vsel %vm14544_vm14, %v6903_v33, %v6904_v24  ;;  %v12323_v60 = vld [vmem:[#allocation4 + $0x6c] sm:$0xf0]  ;;  %v472_v26 = vsel %vm14187_vm5, 0, %v471_v23  ;;  %v12537_v63 = vld [vmem:[#allocation4 + $0x1f8] sm:$0xf] }
 0x334   : > { %7039 = vst [vmem:[#allocation4 + $0x74] sm:$0xf] %v6905_v7  ;;  %v13436_v56 = vld [vmem:[#allocation4 + $0x218] sm:$0xf0]  ;;  %v6400_v31 = vshll.u32 %v6306_v51, 16  ;;  %v6399_v59 = vrot.slane %v6397_v38, 4 }
 0x335   : > { %v5954_v27 = vor.u32 %v5952_v32, %v5951_v54  ;;  %v5956_v0 = vrot.slane %v5951_v54, 4  ;;  %v5758_v3 = vmax.f32 %v5706_v6, 0.0  ;;  %10553 = vmatmul.bf16.gmra.mxu0 %v12334_v34  ;;  %425 = vst [vmem:[#allocation3 + $0x78] sm:$0x1] %v424_v2  ;;  %v6413_v54 = vor.u32 %v15437_v39, %v15447_v21  ;;  %v7073_v48 = vld [vmem:[#allocation3 + $0x28] sm:$0xf] }
 0x336   : > { %v5532_v53 = vpop.f32.mrf.mxu2  ;;  %473 = vst [vmem:[#allocation3 + $0x80] sm:$0x1] %v472_v26  ;;  %v12538_v42 = vor.u32 %v13436_v56, %v12537_v63  ;;  %v6416_v39 = vshll.u32 %v6308_v9, 16  ;;  %v6252_v2 = vld [vmem:[#allocation3 + $0x60] sm:$0xf] }
 0x337   : > { %v5955_v52 = vsel %vm14196_vm9, %v5947_v20, %v5954_v27  ;;  %v6185_v30 = vsel %vm14178_vm2, %v5956_v0, %v6184_v22  ;;  %v5790_v37 = vpack.c.bf16 %v5758_v3, %v5758_v3  ;;  %v15465_v27 = vrot.slane %v6434_v44, 4  ;;  %v7072_v22 = vld [vmem:[#allocation3 + $0x24] sm:$0xf]  ;;  %7105 = vst [vmem:[#allocation4 + $0xc0] sm:$0xf] %v7073_v48 }
 0x338   : > { %v5618_v16 = vpop.f32.mrf.mxu3  ;;  %6183 = vst [vmem:[#allocation3 + $0x70] sm:$0xf] %v5955_v52  ;;  %v13378_v61 = vld [vmem:[#allocation4 + $0x4c] sm:$0xf]  ;;  %v5533_v0 = vadd.f32 %v5532_v53, %v15099_v14  ;;  %v6414_v36 = vrot.slane %v6413_v54, 4 }
 0x339   : > { %v5619_v41 = vadd.f32 %v5618_v16, %v5530_v25  ;;  %6186 = vst [vmem:[#allocation3 + $0x74] sm:$0x1] %v6185_v30  ;;  %v5958_v58 = vshrl.u32 %v5790_v37, 16  ;;  %v5961_v6 = vshll.u32 %v5790_v37, 16  ;;  %10316 = vmatmul.bf16.gmra.mxu1 %v12538_v42  ;;  %v6402_v25 = vrot.slane %v6400_v31, 5  ;;  %v15468_v16 = vpop.f32.mrf.mxu1 }
 0x33a   : > { %v12329_v52 = vld [vmem:[#allocation4 + $0x50] sm:$0xf]  ;;  %17043 = vst [vmem:[#allocation24_spill] sm:$0xff] %v15468_v16  ;;  %v6418_v37 = vrot.slane %v6416_v39, 5  ;;  %v6804_v63 = vld [vmem:[#allocation3 + $0x20] sm:$0x1] }
 0x33b   : > { %v5708_v47 = vadd.f32 %v15418_v50, %v5619_v41  ;;  %v15458_v15 = vpop.f32.mrf.mxu0  ;;  %v12326_v50 = vor.u32 %v13378_v61, %v12323_v60  ;;  %v5960_v35 = vrot.slane %v5958_v58, 7  ;;  %v13383_v3 = vld [vmem:[#allocation4 + $0x70] sm:$0xf0]  ;;  %v6403_v41 = vor.u32 %v6402_v25, %v6399_v59  ;;  %7104 = vst [vmem:[#allocation4 + $0x9c] sm:$0xf] %v7072_v22 }
 0x33c   : > { %v12330_v14 = vor.u32 %v13383_v3, %v12329_v52  ;;  %v6187_v24 = vld [vmem:[#allocation3 + $0x78] sm:$0xf]  ;;  %v6419_v7 = vsel %vm14218_vm11, %v6414_v36, %v6418_v37  ;;  %v6430_v31 = vshll.u32 %v15443_v55, 16  ;;  %v6253_v42 = vld [vmem:[#allocation3 + $0x64] sm:$0xf] }
 0x33d   : > { %v5759_v10 = vmax.f32 %v5708_v47, 0.0  ;;  %10375 = vmatmul.bf16.gmra.mxu2 %v12326_v50  ;;  %v5963_v1 = vor.u32 %v5961_v6, %v5960_v35  ;;  %v5964_v53 = vrot.slane %v5960_v35, 4  ;;  %v6191_v47 = vld [vmem:[#allocation3 + $0x80] sm:$0x1]  ;;  %v6404_v61 = vrot.slane %v6403_v41, 4 }
 0x33e   : > { %v5534_v32 = vpop.f32.mrf.mxu2  ;;  %v6802_v58 = vld [vmem:[#allocation3 + $0x18] sm:$0xe]  ;;  %6769 = vst [vmem:[#allocation4 + $0xb8] sm:$0xf] %v6419_v7  ;;  %v6803_v50 = vld [vmem:[#allocation3 + $0x1c] sm:$0xf] }
 0x33f   : > { %v5791_v4 = vpack.c.bf16 %v5759_v10, %v5759_v10  ;;  %v6188_v12 = vsel %vm14206_vm10, %v5963_v1, %v6187_v24  ;;  %v6409_v26 = vsel %vm14218_vm11, %v6404_v61, %v15447_v21  ;;  %v5535_v35 = vadd.f32 %v5534_v32, %v15104_v45  ;;  %v426_v6 = vld [vmem:[#allocation3 + $0x84] sm:$0x1]  ;;  %v474_v45 = vld [vmem:[#allocation3 + $0x8c] sm:$0x1]  ;;  %6284 = vst [vmem:[#allocation4 + $0x240] sm:$0xf] %v6252_v2 }
 0x340   : > { %v5621_v20 = vpop.f32.mrf.mxu3  ;;  %10464 = vmatmul.bf16.gmra.mxu3 %v12330_v14  ;;  %6189 = vst [vmem:[#allocation3 + $0x78] sm:$0xf] %v6188_v12  ;;  %v12237_v56 = vrot.slane %v6802_v58, 9  ;;  %v6908_v38 = vrot.slane %v6803_v50, 5  ;;  %v6309_v52 = vld [vmem:[#allocation3 + $0x24] sm:$0xf] }
 0x341   : > { %v5966_v18 = vshrl.u32 %v5791_v4, 16  ;;  %v5969_v34 = vshll.u32 %v5791_v4, 16  ;;  %v5622_v57 = vadd.f32 %v5621_v20, %v5533_v0  ;;  %6768 = vst [vmem:[#allocation4 + $0x94] sm:$0xf] %v6409_v26  ;;  %v6911_v20 = vrot.slane %v6804_v63, 5 }
 0x342   : > { %v6909_v21 = vsel %vm14544_vm14, %v12237_v56, %v6908_v38  ;;  %v6910_v9 = vrot.slane %v6908_v38, 4  ;;  %v13388_v32 = vld [vmem:[#allocation4 + $0x9c] sm:$0xf]  ;;  %v12367_v0 = vld [vmem:[#allocation4 + $0xbc] sm:$0xf0]  ;;  %v15493_v36 = vrot.slane %v6430_v31, 5 }
 0x343   : > { %v5968_v30 = vrot.slane %v5966_v18, 7  ;;  %v15470_v33 = vpop.f32.mrf.mxu0  ;;  %v5711_v51 = vadd.f32 %v15435_v17, %v5622_v57  ;;  %v12370_v18 = vor.u32 %v13388_v32, %v12367_v0  ;;  %6285 = vst [vmem:[#allocation4 + $0x264] sm:$0xf] %v6253_v42  ;;  %v427_v39 = vsel %vm14178_vm2, 0, %v426_v6  ;;  %v6311_v37 = vld [vmem:[#allocation3 + $0x2c] sm:$0x1] }
 0x344   : > { %v6912_v59 = vsel %vm14544_vm14, %v6910_v9, %v6911_v20  ;;  %7040 = vst [vmem:[#allocation4 + $0x98] sm:$0xf] %v6909_v21  ;;  %v6421_v57 = vshrl.u32 %v6309_v52, 16  ;;  %v6424_v14 = vshll.u32 %v6309_v52, 16  ;;  %v6437_v12 = vor.u32 %v15465_v27, %v15493_v36  ;;  %v15504_v7 = vld [vmem:[#allocation3 + $0x34] sm:$0xf] }
 0x345   : > { %v5971_v62 = vor.u32 %v5969_v34, %v5968_v30  ;;  %v5973_v23 = vrot.slane %v5968_v30, 4  ;;  %v5760_v17 = vmax.f32 %v5711_v51, 0.0  ;;  %10558 = vmatmul.bf16.gmra.mxu0 %v12370_v18  ;;  %7041 = vst [vmem:[#allocation4 + $0xbc] sm:$0xf] %v6912_v59  ;;  %v12359_v34 = vld [vmem:[#allocation4 + $0xb4] sm:$0xf0] }
 0x346   : > { %v5537_v54 = vpop.f32.mrf.mxu2  ;;  %428 = vst [vmem:[#allocation3 + $0x84] sm:$0x1] %v427_v39  ;;  %v12573_v58 = vld [vmem:[#allocation4 + $0x240] sm:$0xf]  ;;  %v6423_v50 = vrot.slane %v6421_v57, 4  ;;  %v6426_v63 = vrot.slane %v6424_v14, 5 }
 0x347   : > { %v5972_v44 = vsel %vm14196_vm9, %v5964_v53, %v5971_v62  ;;  %v6192_v60 = vsel %vm14178_vm2, %v5973_v23, %v6191_v47  ;;  %v5792_v22 = vpack.c.bf16 %v5760_v17, %v5760_v17  ;;  %v5538_v53 = vadd.f32 %v5537_v54, %v15119_v49  ;;  %v7074_v31 = vld [vmem:[#allocation3 + $0x30] sm:$0xf]  ;;  %v7075_v21 = vld [vmem:[#allocation3 + $0x34] sm:$0xf]  ;;  %v17045_v32 = vld [vmem:[#allocation15_spill] sm:$0xff] }
 0x348   : > { %v5623_v10 = vpop.f32.mrf.mxu3  ;;  %6190 = vst [vmem:[#allocation3 + $0x7c] sm:$0xf] %v5972_v44  ;;  %v13387_v62 = vld [vmem:[#allocation4 + $0x94] sm:$0xf]  ;;  %v6438_v38 = vrot.slane %v6437_v12, 4  ;;  %v6440_v17 = vshll.u32 %v6311_v37, 16 }
 0x349   : > { %6193 = vst [vmem:[#allocation3 + $0x80] sm:$0x1] %v6192_v60  ;;  %v5624_v4 = vadd.f32 %v5623_v10, %v5535_v35  ;;  %v15488_v1 = vpop.f32.mrf.mxu1  ;;  %v5975_v25 = vshrl.u32 %v5792_v22, 16  ;;  %v12362_v2 = vor.u32 %v13387_v62, %v12359_v34  ;;  %v5978_v51 = vshll.u32 %v5792_v22, 16  ;;  %v6805_v14 = vld [vmem:[#allocation3 + $0x24] sm:$0xe] }
 0x34a   : > { %v13445_v60 = vld [vmem:[#allocation4 + $0x260] sm:$0xf0]  ;;  %v6458_v20 = vshrl.u32 %v15504_v7, 16  ;;  %7106 = vst [vmem:[#allocation4 + $0xe4] sm:$0xf] %v7074_v31 }
 0x34b   : > { %v5713_v55 = vadd.f32 %v15458_v15, %v5624_v4  ;;  %v15497_v3 = vpop.f32.mrf.mxu0  ;;  %v5977_v30 = vrot.slane %v5975_v25, 7  ;;  %v475_v15 = vsel %vm14187_vm5, 0, %v474_v45  ;;  %v12574_v27 = vor.u32 %v13445_v60, %v12573_v58  ;;  %v12365_v10 = vld [vmem:[#allocation4 + $0x98] sm:$0xf]  ;;  %7107 = vst [vmem:[#allocation4 + $0x108] sm:$0xf] %v7075_v21 }
 0x34c   : > { %476 = vst [vmem:[#allocation3 + $0x8c] sm:$0x1] %v475_v15  ;;  %v13392_v54 = vld [vmem:[#allocation4 + $0xb8] sm:$0xf0]  ;;  %v6427_v4 = vor.u32 %v6426_v63, %v6423_v50  ;;  %v6442_v45 = vrot.slane %v6440_v17, 5 }
 0x34d   : > { %v5761_v48 = vmax.f32 %v5713_v55, 0.0  ;;  %v5981_v44 = vrot.slane %v5977_v30, 4  ;;  %10380 = vmatmul.bf16.gmra.mxu2 %v12362_v2  ;;  %v5980_v56 = vor.u32 %v5978_v51, %v5977_v30  ;;  %10321 = vmatmul.bf16.gmra.mxu1 %v12574_v27  ;;  %v12366_v22 = vor.u32 %v13392_v54, %v12365_v10  ;;  %v6194_v55 = vld [vmem:[#allocation3 + $0x84] sm:$0xf]  ;;  %v6254_v30 = vld [vmem:[#allocation3 + $0x6c] sm:$0xf] }
 0x34e   : > { %v5539_v61 = vpop.f32.mrf.mxu2  ;;  %v6428_v59 = vrot.slane %v6427_v4, 4  ;;  %v6443_v57 = vsel %vm14218_vm11, %v6438_v38, %v6442_v45  ;;  %v6807_v37 = vld [vmem:[#allocation3 + $0x2c] sm:$0x1]  ;;  %v429_v51 = vld [vmem:[#allocation3 + $0x90] sm:$0x1]  ;;  %v6460_v10 = vrot.slane %v6458_v20, 4 }
 0x34f   : > { %v5793_v41 = vpack.c.bf16 %v5761_v48, %v5761_v48  ;;  %v5540_v0 = vadd.f32 %v5539_v61, %v17045_v32  ;;  %v12238_v61 = vrot.slane %v6805_v14, 9  ;;  %v6918_v2 = vrot.slane %v6807_v37, 5  ;;  %6771 = vst [vmem:[#allocation4 + $0x100] sm:$0xf] %v6443_v57  ;;  %v477_v27 = vld [vmem:[#allocation3 + $0x98] sm:$0x1] }
 0x350   : > { %v5626_v24 = vpop.f32.mrf.mxu3  ;;  %10469 = vmatmul.bf16.gmra.mxu3 %v12366_v22  ;;  %6286 = vst [vmem:[#allocation4 + $0x288] sm:$0xf] %v6254_v30  ;;  %v430_v17 = vsel %vm14178_vm2, 0, %v429_v51  ;;  %v478_v54 = vsel %vm14187_vm5, 0, %v477_v27 }
 0x351   : > { %v5983_v23 = vshrl.u32 %v5793_v41, 16  ;;  %v5627_v47 = vadd.f32 %v5626_v24, %v5538_v53  ;;  %v5986_v49 = vshll.u32 %v5793_v41, 16  ;;  %v15506_v35 = vpop.f32.mrf.mxu1  ;;  %v6433_v41 = vsel %vm14218_vm11, %v6428_v59, %v15493_v36  ;;  %v6806_v53 = vld [vmem:[#allocation3 + $0x28] sm:$0xf]  ;;  %v13397_v60 = vld [vmem:[#allocation4 + $0xe4] sm:$0xf] }
 0x352   : > { %17044 = vst [vmem:[#allocation25_spill] sm:$0xff] %v15506_v35  ;;  %v6915_v12 = vrot.slane %v6806_v53, 5 }
 0x353   : > { %v5985_v26 = vrot.slane %v5983_v23, 7  ;;  %v5716_v9 = vadd.f32 %v15470_v33, %v5627_v47  ;;  %v15513_v52 = vpop.f32.mrf.mxu0  ;;  %v6195_v33 = vsel %vm14206_vm10, %v5980_v56, %v6194_v55  ;;  %v6198_v48 = vld [vmem:[#allocation3 + $0x8c] sm:$0x1]  ;;  %v6454_v23 = vshll.u32 %v15504_v7, 16  ;;  %6770 = vst [vmem:[#allocation4 + $0xdc] sm:$0xf] %v6433_v41 }
 0x354   : > { %6196 = vst [vmem:[#allocation3 + $0x84] sm:$0xf] %v6195_v33  ;;  %v6255_v47 = vld [vmem:[#allocation3 + $0x70] sm:$0xf]  ;;  %v6917_v36 = vrot.slane %v6915_v12, 4 }
 0x355   : > { %v5988_v42 = vor.u32 %v5986_v49, %v5985_v26  ;;  %v5990_v6 = vrot.slane %v5985_v26, 4  ;;  %v5762_v25 = vmax.f32 %v5716_v9, 0.0  ;;  %v6916_v26 = vsel %vm14544_vm14, %v12238_v61, %v6915_v12  ;;  %v12403_v7 = vld [vmem:[#allocation4 + $0x104] sm:$0xf0]  ;;  %6287 = vst [vmem:[#allocation4 + $0x2ac] sm:$0xf] %v6255_v47 }
 0x356   : > { %v5542_v58 = vpop.f32.mrf.mxu2  ;;  %v6919_v63 = vsel %vm14544_vm14, %v6917_v36, %v6918_v2  ;;  %v12406_v56 = vor.u32 %v13397_v60, %v12403_v7  ;;  %7042 = vst [vmem:[#allocation4 + $0xe0] sm:$0xf] %v6916_v26  ;;  %v12395_v20 = vld [vmem:[#allocation4 + $0xfc] sm:$0xf0]  ;;  %v7076_v12 = vld [vmem:[#allocation3 + $0x3c] sm:$0xf] }
 0x357   : > { %v5989_v18 = vsel %vm14196_vm9, %v5981_v44, %v5988_v42  ;;  %v6199_v34 = vsel %vm14178_vm2, %v5990_v6, %v6198_v48  ;;  %v15524_v24 = vpack.c.bf16 %v5762_v25, %v5762_v25  ;;  %v13547_v44 = vld [vmem:[#allocation10 + $0x110] sm:$0xff]  ;;  %7043 = vst [vmem:[#allocation4 + $0x104] sm:$0xf] %v6919_v63  ;;  %v15539_v6 = vrot.slane %v6454_v23, 5  ;;  %v12609_v25 = vld [vmem:[#allocation4 + $0x288] sm:$0xf] }
 0x358   : > { %v5628_v39 = vpop.f32.mrf.mxu3  ;;  %6197 = vst [vmem:[#allocation3 + $0x88] sm:$0xf] %v5989_v18  ;;  %10634 = vmatpush.bf16.msrb.mxu1 %v13547_v44  ;;  %10563 = vmatmul.bf16.gmra.mxu0 %v12406_v56  ;;  %v6316_v26 = vld [vmem:[#allocation3 + $0x40] sm:$0xf] }
 0x359   : > { %v5629_v15 = vadd.f32 %v5628_v39, %v5540_v0  ;;  %6200 = vst [vmem:[#allocation3 + $0x8c] sm:$0x1] %v6199_v34  ;;  %v5992_v49 = vshrl.u32 %v15524_v24, 16  ;;  %v15531_v50 = vpop.f32.mrf.mxu1  ;;  %v5995_v9 = vshll.u32 %v15524_v24, 16  ;;  %v6461_v32 = vor.u32 %v6460_v10, %v15539_v6  ;;  %v17046_v0 = vld [vmem:[#allocation16_spill] sm:$0xff] }
 0x35a   : > { %v13396_v21 = vld [vmem:[#allocation4 + $0xdc] sm:$0xf]  ;;  %431 = vst [vmem:[#allocation3 + $0x90] sm:$0x1] %v430_v17  ;;  %v5543_v55 = vadd.f32 %v5542_v58, %v17046_v0  ;;  %v6312_v39 = vld [vmem:[#allocation3 + $0x30] sm:$0xf] }
 0x35b   : > { %v5718_v62 = vadd.f32 %v15497_v3, %v5629_v15  ;;  %v5994_v31 = vrot.slane %v5992_v49, 7  ;;  %v15541_v4 = vpop.f32.mrf.mxu0  ;;  %v12398_v59 = vor.u32 %v13396_v21, %v12395_v20  ;;  %479 = vst [vmem:[#allocation3 + $0x98] sm:$0x1] %v478_v54  ;;  %v6314_v15 = vld [vmem:[#allocation3 + $0x38] sm:$0x1]  ;;  %v6445_v34 = vshrl.u32 %v6312_v39, 16 }
 0x35c   : > { %v13454_v33 = vld [vmem:[#allocation4 + $0x2a8] sm:$0xf0]  ;;  %v6448_v53 = vshll.u32 %v6312_v39, 16  ;;  %v6462_v24 = vrot.slane %v6461_v32, 4  ;;  %v6464_v37 = vshll.u32 %v6314_v15, 16  ;;  %v6482_v32 = vshrl.u32 %v6316_v26, 16 }
 0x35d   : > { %v5763_v3 = vmax.f32 %v5718_v62, 0.0  ;;  %v5998_v48 = vrot.slane %v5994_v31, 4  ;;  %10385 = vmatmul.bf16.gmra.mxu2 %v12398_v59  ;;  %v12610_v14 = vor.u32 %v13454_v33, %v12609_v25  ;;  %v12401_v62 = vld [vmem:[#allocation4 + $0xe0] sm:$0xf]  ;;  %v5997_v23 = vor.u32 %v5995_v9, %v5994_v31  ;;  %v7077_v58 = vld [vmem:[#allocation3 + $0x40] sm:$0xf] }
 0x35e   : > { %v5544_v57 = vpop.f32.mrf.mxu2  ;;  %v6447_v2 = vrot.slane %v6445_v34, 4  ;;  %v13401_v51 = vld [vmem:[#allocation4 + $0x100] sm:$0xf0]  ;;  %v6450_v44 = vrot.slane %v6448_v53, 5  ;;  %v6466_v60 = vrot.slane %v6464_v37, 5  ;;  %v6478_v33 = vshll.u32 %v6316_v26, 16 }
 0x35f   : > { %v5795_v38 = vpack.c.bf16 %v5763_v3, %v5763_v3  ;;  %10326 = vmatmul.bf16.gmra.mxu1 %v12610_v14  ;;  %v12402_v49 = vor.u32 %v13401_v51, %v12401_v62  ;;  %7108 = vst [vmem:[#allocation4 + $0x12c] sm:$0xf] %v7076_v12  ;;  %v6256_v3 = vld [vmem:[#allocation3 + $0x78] sm:$0xf]  ;;  %v6808_v10 = vld [vmem:[#allocation3 + $0x30] sm:$0xe] }
 0x360   : > { %v5631_v18 = vpop.f32.mrf.mxu3  ;;  %v6451_v63 = vor.u32 %v6450_v44, %v6447_v2  ;;  %v6467_v27 = vsel %vm14218_vm11, %v6462_v24, %v6466_v60  ;;  %7109 = vst [vmem:[#allocation4 + $0x150] sm:$0xf] %v7077_v58  ;;  %v12239_v59 = vrot.slane %v6808_v10, 9  ;;  %v432_v39 = vld [vmem:[#allocation3 + $0x9c] sm:$0x1]  ;;  %v6484_v37 = vrot.slane %v6482_v32, 4 }
 0x361   : > { %v6000_v42 = vshrl.u32 %v5795_v38, 16  ;;  %v6003_v45 = vshll.u32 %v5795_v38, 16  ;;  %v5632_v41 = vadd.f32 %v5631_v18, %v5543_v55  ;;  %v15548_v36 = vpop.f32.mrf.mxu1  ;;  %v6201_v7 = vld [vmem:[#allocation3 + $0x90] sm:$0xf]  ;;  %v17048_v38 = vld [vmem:[#allocation17_spill] sm:$0xff]  ;;  %10474 = vmatmul.bf16.gmra.mxu3 %v12402_v49  ;;  %v15576_v44 = vrot.slane %v6478_v33, 5 }
 0x362   : > { %17047 = vst [vmem:[#allocation26_spill] sm:$0xff] %v15548_v36  ;;  %v5545_v17 = vadd.f32 %v5544_v57, %v17048_v38  ;;  %v6202_v31 = vsel %vm14206_vm10, %v5997_v23, %v6201_v7  ;;  %v6205_v54 = vld [vmem:[#allocation3 + $0x98] sm:$0x1]  ;;  %v6257_v18 = vld [vmem:[#allocation3 + $0x7c] sm:$0xf]  ;;  %v433_v23 = vsel %vm14178_vm2, 0, %v432_v39 }
 0x363   : > { %v6002_v22 = vrot.slane %v6000_v42, 7  ;;  %v5721_v56 = vadd.f32 %v15513_v52, %v5632_v41  ;;  %6773 = vst [vmem:[#allocation4 + $0x148] sm:$0xf] %v6467_v27  ;;  %v6809_v42 = vld [vmem:[#allocation3 + $0x34] sm:$0xf]  ;;  %v15556_v21 = vpop.f32.mrf.mxu0  ;;  %v6485_v38 = vor.u32 %v6484_v37, %v15576_v44 }
 0x364   : > { %6203 = vst [vmem:[#allocation3 + $0x90] sm:$0xf] %v6202_v31  ;;  %v6810_v52 = vld [vmem:[#allocation3 + $0x38] sm:$0x1]  ;;  %v6922_v0 = vrot.slane %v6809_v42, 5 }
 0x365   : > { %v6005_v30 = vor.u32 %v6003_v45, %v6002_v22  ;;  %v6007_v61 = vrot.slane %v6002_v22, 4  ;;  %v6452_v22 = vrot.slane %v6451_v63, 4  ;;  %6288 = vst [vmem:[#allocation4 + $0x2d0] sm:$0xf] %v6256_v3  ;;  %v5764_v25 = vmax.f32 %v5721_v56, 0.0 }
 0x366   : > { %v6924_v15 = vrot.slane %v6922_v0, 4  ;;  %v6925_v34 = vrot.slane %v6810_v52, 5  ;;  %v480_v41 = vld [vmem:[#allocation3 + $0xa4] sm:$0x1]  ;;  %6289 = vst [vmem:[#allocation4 + $0x2f4] sm:$0xf] %v6257_v18 }
 0x367   : > { %v6006_v47 = vsel %vm14196_vm9, %v5998_v48, %v6005_v30  ;;  %v6206_v20 = vsel %vm14178_vm2, %v6007_v61, %v6205_v54  ;;  %v6457_v55 = vsel %vm14218_vm11, %v6452_v22, %v15539_v6  ;;  %v5547_v48 = vpop.f32.mrf.mxu2  ;;  %v6923_v30 = vsel %vm14544_vm14, %v12239_v59, %v6922_v0  ;;  %v13406_v14 = vld [vmem:[#allocation4 + $0x12c] sm:$0xf]  ;;  %v12439_v53 = vld [vmem:[#allocation4 + $0x14c] sm:$0xf0]  ;;  %v15568_v12 = vld [vmem:[#allocation3 + $0x4c] sm:$0xf] }
 0x368   : > { %6204 = vst [vmem:[#allocation3 + $0x94] sm:$0xf] %v6006_v47  ;;  %v5633_v9 = vpop.f32.mrf.mxu3  ;;  %v5796_v6 = vpack.c.bf16 %v5764_v25, %v5764_v25  ;;  %v12442_v62 = vor.u32 %v13406_v14, %v12439_v53  ;;  %v6926_v61 = vsel %vm14544_vm14, %v6924_v15, %v6925_v34  ;;  %v6315_v51 = vld [vmem:[#allocation3 + $0x3c] sm:$0xf]  ;;  %v6506_v60 = vshrl.u32 %v15568_v12, 16 }
 0x369   : > { %v5634_v45 = vadd.f32 %v5633_v9, %v5545_v17  ;;  %6207 = vst [vmem:[#allocation3 + $0x98] sm:$0x1] %v6206_v20  ;;  %v15566_v24 = vpop.f32.mrf.mxu1  ;;  %v6469_v3 = vshrl.u32 %v6315_v51, 16  ;;  %v6317_v10 = vld [vmem:[#allocation3 + $0x44] sm:$0x1]  ;;  %v6472_v56 = vshll.u32 %v6315_v51, 16 }
 0x36a   : > { %6772 = vst [vmem:[#allocation4 + $0x124] sm:$0xf] %v6457_v55  ;;  %v12431_v47 = vld [vmem:[#allocation4 + $0x144] sm:$0xf0]  ;;  %v6009_v2 = vshrl.u32 %v5796_v6, 16  ;;  %10568 = vmatmul.bf16.gmra.mxu0 %v12442_v62  ;;  %v6012_v49 = vshll.u32 %v5796_v6, 16 }
 0x36b   : > { %v5723_v57 = vadd.f32 %v15541_v4, %v5634_v45  ;;  %7044 = vst [vmem:[#allocation4 + $0x128] sm:$0xf] %v6923_v30  ;;  %v481_v4 = vsel %vm14187_vm5, 0, %v480_v41  ;;  %v15579_v7 = vpop.f32.mrf.mxu0  ;;  %v17049_v17 = vld [vmem:[#allocation19_spill] sm:$0xff]  ;;  %v6471_v20 = vrot.slane %v6469_v3, 4  ;;  %v6488_v22 = vshll.u32 %v6317_v10, 16 }
 0x36c   : > { %7045 = vst [vmem:[#allocation4 + $0x14c] sm:$0xf] %v6926_v61  ;;  %v6011_v26 = vrot.slane %v6009_v2, 7  ;;  %v12645_v63 = vld [vmem:[#allocation4 + $0x2d0] sm:$0xf]  ;;  %v5548_v31 = vadd.f32 %v5547_v48, %v17049_v17  ;;  %v6474_v55 = vrot.slane %v6472_v56, 5 }
 0x36d   : > { %v5765_v58 = vmax.f32 %v5723_v57, 0.0  ;;  %434 = vst [vmem:[#allocation3 + $0x9c] sm:$0x1] %v433_v23  ;;  %v13463_v32 = vld [vmem:[#allocation4 + $0x2f0] sm:$0xf0]  ;;  %v6486_v25 = vrot.slane %v6485_v38, 4 }
 0x36e   : > { %482 = vst [vmem:[#allocation3 + $0xa4] sm:$0x1] %v481_v4  ;;  %v6014_v42 = vor.u32 %v6012_v49, %v6011_v26  ;;  %v6015_v9 = vrot.slane %v6011_v26, 4  ;;  %v12646_v59 = vor.u32 %v13463_v32, %v12645_v63  ;;  %v6490_v39 = vrot.slane %v6488_v22, 5  ;;  %v7078_v33 = vld [vmem:[#allocation3 + $0x48] sm:$0xf] }
 0x36f   : > { %v5797_v27 = vpack.c.bf16 %v5765_v58, %v5765_v58  ;;  %v7079_v30 = vld [vmem:[#allocation3 + $0x4c] sm:$0xf]  ;;  %v5549_v34 = vpop.f32.mrf.mxu2  ;;  %v6475_v57 = vor.u32 %v6474_v55, %v6471_v20  ;;  %7110 = vst [vmem:[#allocation4 + $0x174] sm:$0xf] %v7078_v33  ;;  %v6502_v14 = vshll.u32 %v15568_v12, 16  ;;  %v17050_v51 = vld [vmem:[#allocation20_spill] sm:$0xff] }
 0x370   : > { %10331 = vmatmul.bf16.gmra.mxu1 %v12646_v59  ;;  %v6491_v6 = vsel %vm14218_vm11, %v6486_v25, %v6490_v39  ;;  %7111 = vst [vmem:[#allocation4 + $0x198] sm:$0xf] %v7079_v30  ;;  %v6258_v37 = vld [vmem:[#allocation3 + $0x84] sm:$0xf]  ;;  %v17051_v26 = vld [vmem:[#allocation18_spill] sm:$0xff] }
 0x371   : > { %v13405_v54 = vld [vmem:[#allocation4 + $0x124] sm:$0xf]  ;;  %v6017_v52 = vshrl.u32 %v5797_v27, 16  ;;  %v6020_v0 = vshll.u32 %v5797_v27, 16  ;;  %v5636_v18 = vpop.f32.mrf.mxu3  ;;  %v15586_v62 = vpop.f32.mrf.mxu1  ;;  %v6476_v58 = vrot.slane %v6475_v57, 4  ;;  %v5461_v49 = vadd.f32 %v17051_v26, %v17050_v51 }
 0x372   : > { %v12434_v45 = vor.u32 %v13405_v54, %v12431_v47  ;;  %v5637_v15 = vadd.f32 %v5636_v18, %v5548_v31  ;;  %v12437_v48 = vld [vmem:[#allocation4 + $0x128] sm:$0xf]  ;;  %6775 = vst [vmem:[#allocation4 + $0x190] sm:$0xf] %v6491_v6  ;;  %v6259_v27 = vld [vmem:[#allocation3 + $0x88] sm:$0xf] }
 0x373   : > { %v6019_v41 = vrot.slane %v6017_v52, 7  ;;  %v13410_v53 = vld [vmem:[#allocation4 + $0x148] sm:$0xf0]  ;;  %6290 = vst [vmem:[#allocation4 + $0x318] sm:$0xf] %v6258_v37  ;;  %v6481_v38 = vsel %vm14218_vm11, %v6476_v58, %v15576_v44  ;;  %v5550_v22 = vadd.f32 %v5549_v34, %v5461_v49  ;;  %v6508_v37 = vrot.slane %v6506_v60, 4 }
 0x374   : > { %10390 = vmatmul.bf16.gmra.mxu2 %v12434_v45  ;;  %v5726_v23 = vadd.f32 %v15556_v21, %v5637_v15  ;;  %v12438_v47 = vor.u32 %v13410_v53, %v12437_v48  ;;  %v6208_v61 = vld [vmem:[#allocation3 + $0x9c] sm:$0xf]  ;;  %v15593_v10 = vld [vmem:[#allocation3 + $0xc] sm:$0xf]  ;;  %v6812_v31 = vld [vmem:[#allocation3 + $0x40] sm:$0xf] }
 0x375   : > { %v6022_v2 = vor.u32 %v6020_v0, %v6019_v41  ;;  %v6024_v4 = vrot.slane %v6019_v41, 4  ;;  %v6209_v3 = vsel %vm14206_vm10, %v6014_v42, %v6208_v61  ;;  %v6212_v63 = vld [vmem:[#allocation3 + $0xa4] sm:$0x1]  ;;  %v6811_v17 = vld [vmem:[#allocation3 + $0x3c] sm:$0xe]  ;;  %v6929_v20 = vrot.slane %v6812_v31, 5  ;;  %v15602_v45 = vpop.f32.mrf.mxu0 }
 0x376   : > { %10479 = vmatmul.bf16.gmra.mxu3 %v12438_v47  ;;  %6210 = vst [vmem:[#allocation3 + $0x9c] sm:$0xf] %v6209_v3  ;;  %v6813_v54 = vld [vmem:[#allocation3 + $0x44] sm:$0x1]  ;;  %v12240_v42 = vrot.slane %v6811_v17, 9  ;;  %v7181_v15 = vshrl.u32 %v15593_v10, 16 }
 0x377   : > { %v6023_v21 = vsel %vm14196_vm9, %v6015_v9, %v6022_v2  ;;  %v6213_v56 = vsel %vm14178_vm2, %v6024_v4, %v6212_v63  ;;  %v6932_v32 = vrot.slane %v6813_v54, 5  ;;  %v435_v52 = vld [vmem:[#allocation3 + $0xa8] sm:$0x1]  ;;  %v5766_v9 = vmax.f32 %v5726_v23, 0.0  ;;  %6774 = vst [vmem:[#allocation4 + $0x16c] sm:$0xf] %v6481_v38 }
 0x378   : > { %6211 = vst [vmem:[#allocation3 + $0xa0] sm:$0xf] %v6023_v21  ;;  %v13415_v55 = vld [vmem:[#allocation4 + $0x174] sm:$0xf]  ;;  %v6930_v18 = vsel %vm14544_vm14, %v12240_v42, %v6929_v20  ;;  %v6931_v44 = vrot.slane %v6929_v20, 4  ;;  %v436_v59 = vsel %vm14178_vm2, 0, %v435_v52  ;;  %v15614_v6 = vpop.f32.mrf.mxu2 }
 0x379   : > { %6214 = vst [vmem:[#allocation3 + $0xa4] sm:$0x1] %v6213_v56  ;;  %v5638_v0 = vpop.f32.mrf.mxu3  ;;  %v12475_v39 = vld [vmem:[#allocation4 + $0x194] sm:$0xf0]  ;;  %v5798_v33 = vpack.c.bf16 %v5766_v9, %v5766_v9  ;;  %v15609_v34 = vld [vmem:[#allocation3 + $0xc] sm:$0xe]  ;;  %v15620_v61 = vpop.f32.mrf.mxu1 }
 0x37a   : > { %v5639_v25 = vadd.f32 %v5638_v0, %v5550_v22  ;;  %6291 = vst [vmem:[#allocation4 + $0x33c] sm:$0xf] %v6259_v27  ;;  %v483_v30 = vld [vmem:[#allocation3 + $0xb0] sm:$0x1]  ;;  %v12478_v48 = vor.u32 %v13415_v55, %v12475_v39  ;;  %v6933_v41 = vsel %vm14544_vm14, %v6931_v44, %v6932_v32  ;;  %v13546_v53 = vld [vmem:[#allocation10 + $0x108] sm:$0xff]  ;;  %v7184_v58 = vshll.u32 %v15593_v10, 16 }
 0x37b   : > { %7046 = vst [vmem:[#allocation4 + $0x170] sm:$0xf] %v6930_v18  ;;  %v6026_v23 = vshrl.u32 %v5798_v33, 16  ;;  %v484_v47 = vsel %vm14187_vm5, 0, %v483_v30  ;;  %v6318_v4 = vld [vmem:[#allocation3 + $0x48] sm:$0xf]  ;;  %10635 = vmatpush.bf16.msrb.mxu1 %v13546_v53 }
 0x37c   : > { %v5728_v57 = vadd.f32 %v15579_v7, %v5639_v25  ;;  %7047 = vst [vmem:[#allocation4 + $0x194] sm:$0xf] %v6933_v41  ;;  %10573 = vmatmul.bf16.gmra.mxu0 %v12478_v48  ;;  %v15624_v7 = vrot.slane %v6502_v14, 5  ;;  %v12467_v51 = vld [vmem:[#allocation4 + $0x18c] sm:$0xf0]  ;;  %v15628_v26 = vrot.slane %v7181_v15, 4 }
 0x37d   : > { %437 = vst [vmem:[#allocation3 + $0xa8] sm:$0x1] %v436_v59  ;;  %v15630_v49 = vld [vmem:[#allocation3 + $0x10] sm:$0xf]  ;;  %v6028_v3 = vrot.slane %v6026_v23, 7  ;;  %v6029_v21 = vshll.u32 %v5798_v33, 16  ;;  %v15635_v42 = vpop.f32.mrf.mxu0 }
 0x37e   : > { %v5767_v2 = vmax.f32 %v5728_v57, 0.0  ;;  %485 = vst [vmem:[#allocation3 + $0xb0] sm:$0x1] %v484_v47  ;;  %v15632_v63 = vld [vmem:[#allocation3 + $0x58] sm:$0xf]  ;;  %v6493_v12 = vshrl.u32 %v6318_v4, 16  ;;  %v6509_v54 = vor.u32 %v6508_v37, %v15624_v7 }
 0x37f   : > { %v13414_v27 = vld [vmem:[#allocation4 + $0x16c] sm:$0xf]  ;;  %v6496_v14 = vshll.u32 %v6318_v4, 16  ;;  %v12681_v17 = vld [vmem:[#allocation4 + $0x318] sm:$0xf]  ;;  %v15637_v20 = vrot.slane %v7184_v58, 5  ;;  %v6031_v52 = vor.u32 %v6029_v21, %v6028_v3 }
 0x380   : > { %v5799_v56 = vpack.c.bf16 %v5767_v2, %v5767_v2  ;;  %v12470_v38 = vor.u32 %v13414_v27, %v12467_v51  ;;  %v6320_v10 = vld [vmem:[#allocation3 + $0x50] sm:$0x1]  ;;  %v7080_v0 = vld [vmem:[#allocation3 + $0x54] sm:$0xf]  ;;  %v7190_v55 = vshll.u32 %v15630_v49, 16  ;;  %v6495_v59 = vrot.slane %v6493_v12, 4  ;;  %v5554_v47 = vpop.f32.mrf.mxu2 }
 0x381   : > { %v13472_v31 = vld [vmem:[#allocation4 + $0x338] sm:$0xf0]  ;;  %v6498_v25 = vrot.slane %v6496_v14, 5  ;;  %v6512_v15 = vshll.u32 %v6320_v10, 16  ;;  %v7081_v48 = vld [vmem:[#allocation3 + $0x58] sm:$0xf]  ;;  %v15643_v12 = vpop.f32.mrf.mxu1 }
 0x382   : > { %v12682_v22 = vor.u32 %v13472_v31, %v12681_v17  ;;  %v12473_v32 = vld [vmem:[#allocation4 + $0x170] sm:$0xf]  ;;  %v6034_v9 = vshrl.u32 %v5799_v56, 16  ;;  %v6037_v44 = vshll.u32 %v5799_v56, 16  ;;  %v6530_v41 = vshrl.u32 %v15632_v63, 16 }
 0x383   : > { %v13419_v18 = vld [vmem:[#allocation4 + $0x190] sm:$0xf0]  ;;  %v6499_v53 = vor.u32 %v6498_v25, %v6495_v59  ;;  %v6510_v37 = vrot.slane %v6509_v54, 4  ;;  %7112 = vst [vmem:[#allocation4 + $0x1bc] sm:$0xf] %v7080_v0  ;;  %v6032_v2 = vrot.slane %v6028_v3, 4 }
 0x384   : > { %10395 = vmatmul.bf16.gmra.mxu2 %v12470_v38  ;;  %10336 = vmatmul.bf16.gmra.mxu1 %v12682_v22  ;;  %v12474_v39 = vor.u32 %v13419_v18, %v12473_v32  ;;  %v6215_v33 = vld [vmem:[#allocation3 + $0xa8] sm:$0xf]  ;;  %v6036_v30 = vrot.slane %v6034_v9, 7  ;;  %v6260_v23 = vld [vmem:[#allocation3 + $0x90] sm:$0xf]  ;;  %v6514_v21 = vrot.slane %v6512_v15, 5 }
 0x385   : > { %v6216_v57 = vsel %vm14206_vm10, %v6031_v52, %v6215_v33  ;;  %v6219_v51 = vld [vmem:[#allocation3 + $0xb0] sm:$0x1]  ;;  %v6500_v27 = vrot.slane %v6499_v53, 4  ;;  %7113 = vst [vmem:[#allocation4 + $0x1e0] sm:$0xf] %v7081_v48  ;;  %v17052_v17 = vld [vmem:[#allocation21_spill] sm:$0xff] }
 0x386   : > { %10484 = vmatmul.bf16.gmra.mxu3 %v12474_v39  ;;  %6217 = vst [vmem:[#allocation3 + $0xa8] sm:$0xf] %v6216_v57  ;;  %v6039_v4 = vor.u32 %v6037_v44, %v6036_v30  ;;  %v6041_v58 = vrot.slane %v6036_v30, 4  ;;  %v6814_v56 = vld [vmem:[#allocation3 + $0x48] sm:$0xe]  ;;  %v5553_v3 = vadd.f32 %v15614_v6, %v17052_v17  ;;  %v6515_v32 = vsel %vm14218_vm11, %v6510_v37, %v6514_v21 }
 0x387   : > { %6292 = vst [vmem:[#allocation4 + $0x360] sm:$0xf] %v6260_v23  ;;  %v6815_v31 = vld [vmem:[#allocation3 + $0x4c] sm:$0xf]  ;;  %v6816_v10 = vld [vmem:[#allocation3 + $0x50] sm:$0x1]  ;;  %v6505_v22 = vsel %vm14218_vm11, %v6500_v27, %v15624_v7 }
 0x388   : > { %v6040_v14 = vsel %vm14196_vm9, %v6032_v2, %v6039_v4  ;;  %v6220_v38 = vsel %vm14178_vm2, %v6041_v58, %v6219_v51  ;;  %v6261_v52 = vld [vmem:[#allocation3 + $0x94] sm:$0xf]  ;;  %v12241_v9 = vrot.slane %v6814_v56, 9  ;;  %v6936_v0 = vrot.slane %v6815_v31, 5  ;;  %6776 = vst [vmem:[#allocation4 + $0x1b4] sm:$0xf] %v6505_v22 }
 0x389   : > { %6218 = vst [vmem:[#allocation3 + $0xac] sm:$0xf] %v6040_v14  ;;  %v7194_v18 = vshrl.u32 %v15630_v49, 16  ;;  %v438_v44 = vld [vmem:[#allocation3 + $0xb4] sm:$0x1]  ;;  %v6526_v6 = vshll.u32 %v15632_v63, 16  ;;  %v15675_v31 = vpop.f32.mrf.mxu2 }
 0x38a   : > { %6221 = vst [vmem:[#allocation3 + $0xb0] sm:$0x1] %v6220_v38  ;;  %v15658_v25 = vld [vmem:[#allocation3 + $0x14] sm:$0x1]  ;;  %v6937_v39 = vsel %vm14544_vm14, %v12241_v9, %v6936_v0  ;;  %v6938_v7 = vrot.slane %v6936_v0, 4  ;;  %v6939_v33 = vrot.slane %v6816_v10, 5 }
 0x38b   : > { %v486_v15 = vld [vmem:[#allocation3 + $0xbc] sm:$0x1]  ;;  %v6532_v48 = vrot.slane %v6530_v41, 4  ;;  %6777 = vst [vmem:[#allocation4 + $0x1d8] sm:$0xf] %v6515_v32  ;;  %v439_v57 = vsel %vm14178_vm2, 0, %v438_v44 }
 0x38c   : > { %v6321_v37 = vld [vmem:[#allocation3 + $0x54] sm:$0xf]  ;;  %v15667_v63 = vld [vmem:[#allocation3 + $0x64] sm:$0xf]  ;;  %6293 = vst [vmem:[#allocation4 + $0x384] sm:$0xf] %v6261_v52  ;;  %v6940_v2 = vsel %vm14544_vm14, %v6938_v7, %v6939_v33 }
 0x38d   : > { %v15662_v30 = vpop.f32.mrf.mxu0  ;;  %v13424_v23 = vld [vmem:[#allocation4 + $0x1bc] sm:$0xf]  ;;  %v6517_v4 = vshrl.u32 %v6321_v37, 16  ;;  %v6520_v58 = vshll.u32 %v6321_v37, 16  ;;  %v17053_v51 = vld [vmem:[#allocation23_spill] sm:$0xff]  ;;  %v6528_v14 = vrot.slane %v6526_v6, 5 }
 0x38e   : > { %v5641_v54 = vpop.f32.mrf.mxu3  ;;  %v17054_v27 = vld [vmem:[#allocation22_spill] sm:$0xff]  ;;  %v12511_v41 = vld [vmem:[#allocation4 + $0x1dc] sm:$0xf0]  ;;  %7048 = vst [vmem:[#allocation4 + $0x1b8] sm:$0xf] %v6937_v39  ;;  %v7200_v10 = vshll.u32 %v15658_v25, 16 }
 0x38f   : > { %v5642_v59 = vadd.f32 %v5641_v54, %v5553_v3  ;;  %v5466_v21 = vadd.f32 %v17054_v27, %v17053_v51  ;;  %v12514_v38 = vor.u32 %v13424_v23, %v12511_v41  ;;  %7049 = vst [vmem:[#allocation4 + $0x1dc] sm:$0xf] %v6940_v2  ;;  %v6519_v17 = vrot.slane %v6517_v4, 4  ;;  %v15684_v44 = vld [vmem:[#allocation3 + $0x10] sm:$0xf] }
 0x390   : > { %v6522_v3 = vrot.slane %v6520_v58, 5  ;;  %v6533_v52 = vor.u32 %v6532_v48, %v6528_v14  ;;  %v15680_v9 = vrot.slane %v7190_v55, 5  ;;  %v15682_v0 = vrot.slane %v7194_v18, 4  ;;  %440 = vst [vmem:[#allocation3 + $0xb4] sm:$0x1] %v439_v57 }
 0x391   : > { %v5731_v53 = vadd.f32 %v15602_v45, %v5642_v59  ;;  %v487_v45 = vsel %vm14187_vm5, 0, %v486_v15  ;;  %v5555_v22 = vadd.f32 %v5554_v47, %v5466_v21  ;;  %10578 = vmatmul.bf16.gmra.mxu0 %v12514_v38  ;;  %v6323_v6 = vld [vmem:[#allocation3 + $0x5c] sm:$0x1]  ;;  %v6554_v39 = vshrl.u32 %v15667_v63, 16  ;;  %v12717_v25 = vld [vmem:[#allocation4 + $0x360] sm:$0xf] }
 0x392   : > { %v15686_v59 = vpop.f32.mrf.mxu1  ;;  %488 = vst [vmem:[#allocation3 + $0xbc] sm:$0x1] %v487_v45  ;;  %v6523_v33 = vor.u32 %v6522_v3, %v6519_v17  ;;  %v13423_v15 = vld [vmem:[#allocation4 + $0x1b4] sm:$0xf]  ;;  %v12503_v49 = vld [vmem:[#allocation4 + $0x1d4] sm:$0xf0] }
 0x393   : > { %v5768_v56 = vmax.f32 %v5731_v53, 0.0  ;;  %v6534_v48 = vrot.slane %v6533_v52, 4  ;;  %v12506_v18 = vor.u32 %v13423_v15, %v12503_v49  ;;  %v13481_v53 = vld [vmem:[#allocation4 + $0x380] sm:$0xf0]  ;;  %v7082_v2 = vld [vmem:[#allocation3 + $0x60] sm:$0xf]  ;;  %v15709_v15 = vpop.f32.mrf.mxu2 }
 0x394   : > { %v6524_v23 = vrot.slane %v6523_v33, 4  ;;  %v15692_v4 = vld [vmem:[#allocation3 + $0x14] sm:$0x1]  ;;  %v12718_v58 = vor.u32 %v13481_v53, %v12717_v25  ;;  %v6536_v27 = vshll.u32 %v6323_v6, 16  ;;  %v7083_v21 = vld [vmem:[#allocation3 + $0x64] sm:$0xf] }
 0x395   : > { %v5800_v54 = vpack.c.bf16 %v5768_v56, %v5768_v56  ;;  %v12509_v51 = vld [vmem:[#allocation4 + $0x1b8] sm:$0xf]  ;;  %v15694_v41 = vpop.f32.mrf.mxu0  ;;  %v6550_v56 = vshll.u32 %v15667_v63, 16  ;;  %v16975_v38 = vrot.slane %v15684_v44, 5  ;;  %10400 = vmatmul.bf16.gmra.mxu2 %v12506_v18  ;;  %7114 = vst [vmem:[#allocation4 + $0x204] sm:$0xf] %v7082_v2 }
 0x396   : > { %v5643_v32 = vpop.f32.mrf.mxu3  ;;  %v13428_v45 = vld [vmem:[#allocation4 + $0x1d8] sm:$0xf0]  ;;  %10341 = vmatmul.bf16.gmra.mxu1 %v12718_v58  ;;  %v6262_v52 = vld [vmem:[#allocation3 + $0x9c] sm:$0xf]  ;;  %v6556_v6 = vrot.slane %v6554_v39, 4 }
 0x397   : > { %v6043_v7 = vshrl.u32 %v5800_v54, 16  ;;  %v5644_v47 = vadd.f32 %v5643_v32, %v5555_v22  ;;  %v6046_v55 = vshll.u32 %v5800_v54, 16  ;;  %v15701_v54 = vrot.slane %v7200_v10, 5  ;;  %v6222_v63 = vld [vmem:[#allocation3 + $0xb4] sm:$0xf] }
 0x398   : > { %v12510_v22 = vor.u32 %v13428_v45, %v12509_v51  ;;  %v6538_v32 = vrot.slane %v6536_v27, 5  ;;  %7115 = vst [vmem:[#allocation4 + $0x228] sm:$0xf] %v7083_v21  ;;  %v6263_v10 = vld [vmem:[#allocation3 + $0xa0] sm:$0xf] }
 0x399   : > { %v15689_v37 = vrot.slane %v6043_v7, 7  ;;  %v5733_v57 = vadd.f32 %v15635_v42, %v5644_v47  ;;  %v6529_v42 = vsel %vm14218_vm11, %v6524_v23, %v6528_v14  ;;  %v15703_v7 = vrot.slane %v6550_v56, 5  ;;  %6294 = vst [vmem:[#allocation4 + $0x3a8] sm:$0xf] %v6262_v52  ;;  %v6817_v33 = vld [vmem:[#allocation3 + $0x54] sm:$0xe] }
 0x39a   : > { %6778 = vst [vmem:[#allocation4 + $0x1fc] sm:$0xf] %v6529_v42  ;;  %10489 = vmatmul.bf16.gmra.mxu3 %v12510_v22  ;;  %v6539_v14 = vsel %vm14218_vm11, %v6534_v48, %v6538_v32  ;;  %v6226_v18 = vld [vmem:[#allocation3 + $0xbc] sm:$0x1]  ;;  %v15712_v2 = vpop.f32.mrf.mxu1  ;;  %v15717_v48 = vld [vmem:[%s16972_s4] ss:$0 sm:$0xff] }
 0x39b   : > { %v6048_v17 = vor.u32 %v6046_v55, %v15689_v37  ;;  %v5769_v3 = vmax.f32 %v5733_v57, 0.0  ;;  %v6818_v55 = vld [vmem:[#allocation3 + $0x58] sm:$0xf]  ;;  %6779 = vst [vmem:[#allocation4 + $0x220] sm:$0xf] %v6539_v14  ;;  %v12242_v57 = vrot.slane %v6817_v33, 9  ;;  %v6557_v21 = vor.u32 %v6556_v6, %v15703_v7 }
 0x39c   : > { %v6819_v53 = vld [vmem:[#allocation3 + $0x5c] sm:$0x1]  ;;  %v6943_v23 = vrot.slane %v6818_v55, 5  ;;  %6295 = vst [vmem:[#allocation4 + $0x3cc] sm:$0xf] %v6263_v10  ;;  %v6049_v22 = vrot.slane %v15689_v37, 4 }
 0x39d   : > { %v5801_v25 = vpack.c.bf16 %v5769_v3, %v5769_v3  ;;  %v6223_v47 = vsel %vm14206_vm10, %v6048_v17, %v6222_v63  ;;  %v441_v27 = vld [vmem:[#allocation3 + $0xc0] sm:$0x1]  ;;  %v6946_v17 = vrot.slane %v6819_v53, 5  ;;  %v489_v42 = vld [vmem:[#allocation3 + $0xc8] sm:$0x1] }
 0x39e   : > { %6224 = vst [vmem:[#allocation3 + $0xb4] sm:$0xf] %v6223_v47  ;;  %v6944_v56 = vsel %vm14544_vm14, %v12242_v57, %v6943_v23  ;;  %v6945_v45 = vrot.slane %v6943_v23, 4  ;;  %v442_v3 = vsel %vm14178_vm2, 0, %v441_v27  ;;  %v13433_v63 = vld [vmem:[#allocation4 + $0x204] sm:$0xf]  ;;  %v5558_v47 = vadd.f32 %v15675_v31, %v15193_v43 }
 0x39f   : > { %v6051_v39 = vshrl.u32 %v5801_v25, 16  ;;  %v6054_v51 = vshll.u32 %v5801_v25, 16  ;;  %7050 = vst [vmem:[#allocation4 + $0x200] sm:$0xf] %v6944_v56  ;;  %v12547_v25 = vld [vmem:[#allocation4 + $0x224] sm:$0xf0] }
 0x3a0   : > { %v6947_v6 = vsel %vm14544_vm14, %v6945_v45, %v6946_v17  ;;  %443 = vst [vmem:[#allocation3 + $0xc0] sm:$0x1] %v442_v3  ;;  %v6324_v10 = vld [vmem:[#allocation3 + $0x60] sm:$0xf]  ;;  %v15731_v33 = vld [vmem:[#allocation3 + $0x18] sm:$0xf]  ;;  %v12550_v57 = vor.u32 %v13433_v63, %v12547_v25  ;;  %v10283_v17 = vadd.f32 %v15717_v48, %v15451_v19  ;;  %v10371_v63 = vpop.f32.mrf.mxu2  ;;  %v7197_v19 = vor.u32 %v15682_v0, %v15680_v9 }
 0x3a1   : > { %v6053_v58 = vrot.slane %v6051_v39, 7  ;;  %v15733_v39 = vld [vmem:[#allocation3 + $0x70] sm:$0xf]  ;;  %v13432_v53 = vld [vmem:[#allocation4 + $0x1fc] sm:$0xf]  ;;  %v490_v43 = vsel %vm14187_vm5, 0, %v489_v42 }
 0x3a2   : > { %v15729_v14 = vpop.f32.mrf.mxu0  ;;  %7051 = vst [vmem:[#allocation4 + $0x224] sm:$0xf] %v6947_v6  ;;  %v6326_v31 = vld [vmem:[#allocation3 + $0x68] sm:$0x1]  ;;  %v12753_v23 = vld [vmem:[#allocation4 + $0x3a8] sm:$0xf]  ;;  %10583 = vmatmul.bf16.gmra.mxu0 %v12550_v57 }
 0x3a3   : > { %v6056_v32 = vor.u32 %v6054_v51, %v6053_v58  ;;  %v6058_v52 = vrot.slane %v6053_v58, 4  ;;  %v5646_v58 = vpop.f32.mrf.mxu3  ;;  %v6541_v51 = vshrl.u32 %v6324_v10, 16  ;;  %v6544_v27 = vshll.u32 %v6324_v10, 16  ;;  %v12539_v3 = vld [vmem:[#allocation4 + $0x21c] sm:$0xf0] }
 0x3a4   : > { %v6558_v56 = vrot.slane %v6557_v21, 4  ;;  %v6560_v45 = vshll.u32 %v6326_v31, 16  ;;  %491 = vst [vmem:[#allocation3 + $0xc8] sm:$0x1] %v490_v43  ;;  %v7085_v21 = vld [vmem:[#allocation3 + $0x70] sm:$0xf]  ;;  %v15744_v31 = vadd.f32 %v10371_v63, %v10283_v17 }
 0x3a5   : > { %v6057_v37 = vsel %vm14196_vm9, %v6049_v22, %v6056_v32  ;;  %v6227_v55 = vsel %vm14178_vm2, %v6058_v52, %v6226_v18  ;;  %v5647_v18 = vadd.f32 %v5646_v58, %v5558_v47  ;;  %v7084_v22 = vld [vmem:[#allocation3 + $0x6c] sm:$0xf]  ;;  %v12542_v32 = vor.u32 %v13432_v53, %v12539_v3  ;;  %v13490_v52 = vld [vmem:[#allocation4 + $0x3c8] sm:$0xf0]  ;;  %v15750_v53 = vld [vmem:[#allocation3 + $0x7c] sm:$0xf] }
 0x3a6   : > { %6225 = vst [vmem:[#allocation3 + $0xb8] sm:$0xf] %v6057_v37  ;;  %v6543_v13 = vrot.slane %v6541_v51, 4  ;;  %v6546_v42 = vrot.slane %v6544_v27, 5  ;;  %v12754_v25 = vor.u32 %v13490_v52, %v12753_v23  ;;  %v6562_v10 = vrot.slane %v6560_v45, 5  ;;  %v13545_v37 = vld [vmem:[#allocation10 + $0x100] sm:$0xff]  ;;  %v15752_v57 = vpop.f32.mrf.mxu1 }
 0x3a7   : > { %6228 = vst [vmem:[#allocation3 + $0xbc] sm:$0x1] %v6227_v55  ;;  %v5736_v6 = vadd.f32 %v15662_v30, %v5647_v18  ;;  %v8014_v47 = vshrl.u32 %v15731_v33, 16  ;;  %v6578_v55 = vshrl.u32 %v15733_v39, 16  ;;  %v5471_v30 = vadd.f32 %v15424_v11, %v15202_v28  ;;  %10405 = vmatmul.bf16.gmra.mxu2 %v12542_v32  ;;  %v12545_v58 = vld [vmem:[#allocation4 + $0x200] sm:$0xf]  ;;  %10636 = vmatpush.bf16.msrb.mxu1 %v13545_v37 }
 0x3a8   : > { %7116 = vst [vmem:[#allocation4 + $0x24c] sm:$0xf] %v7084_v22  ;;  %v6547_v43 = vor.u32 %v6546_v42, %v6543_v13  ;;  %v8017_v23 = vshll.u32 %v15731_v33, 16  ;;  %v6563_v0 = vsel %vm14218_vm11, %v6558_v56, %v6562_v10  ;;  %v6264_v27 = vld [vmem:[#allocation3 + $0xa8] sm:$0xf]  ;;  %10346 = vmatmul.bf16.gmra.mxu1 %v12754_v25  ;;  %v6574_v18 = vshll.u32 %v15733_v39, 16 }
 0x3a9   : > { %7117 = vst [vmem:[#allocation4 + $0x270] sm:$0xf] %v7085_v21  ;;  %v5770_v51 = vmax.f32 %v5736_v6, 0.0  ;;  %v13437_v45 = vld [vmem:[#allocation4 + $0x220] sm:$0xf0]  ;;  %v15764_v28 = vrot.slane %v16975_v38, 4  ;;  %v5560_v32 = vadd.f32 %v15709_v15, %v5471_v30 }
 0x3aa   : > { %v6548_v17 = vrot.slane %v6547_v43, 4  ;;  %6781 = vst [vmem:[#allocation4 + $0x268] sm:$0xf] %v6563_v0  ;;  %v15759_v3 = vpop.f32.mrf.mxu0  ;;  %v15766_v11 = vld [vmem:[#allocation3 + $0x1c] sm:$0xf]  ;;  %v12546_v22 = vor.u32 %v13437_v45, %v12545_v58  ;;  %v15771_v52 = vrot.slane %v7197_v19, 4 }
 0x3ab   : > { %17055 = vst [vmem:[#allocation27_spill] sm:$0xff] %v15759_v3  ;;  %v15768_v33 = vld [vmem:[#allocation3 + $0x1c] sm:$0xf]  ;;  %v5802_v56 = vpack.c.bf16 %v5770_v51, %v5770_v51  ;;  %v6580_v13 = vrot.slane %v6578_v55, 4  ;;  %v5648_v42 = vpop.f32.mrf.mxu3  ;;  %v6265_v63 = vld [vmem:[#allocation3 + $0xac] sm:$0xf]  ;;  %10985 = vmatpush.bf16.msra.mxu1 %v13584_v5 }
 0x3ac   : > { %v6553_v39 = vsel %vm14218_vm11, %v6548_v17, %v15703_v7  ;;  %6296 = vst [vmem:[#allocation4 + $0x3f0] sm:$0xf] %v6264_v27  ;;  %v15776_v25 = vrot.slane %v8014_v47, 4  ;;  %v6602_v6 = vshrl.u32 %v15750_v53, 16  ;;  %10494 = vmatmul.bf16.gmra.mxu3 %v12546_v22  ;;  %v5649_v21 = vadd.f32 %v5648_v42, %v5560_v32  ;;  %v6229_v55 = vld [vmem:[#allocation3 + $0xc0] sm:$0xf] }
 0x3ad   : > { %v6060_v10 = vshrl.u32 %v5802_v56, 16  ;;  %6780 = vst [vmem:[#allocation4 + $0x244] sm:$0xf] %v6553_v39  ;;  %v15779_v37 = vrot.slane %v8017_v23, 5  ;;  %v15783_v43 = vrot.slane %v6574_v18, 5  ;;  %v6063_v30 = vshll.u32 %v5802_v56, 16 }
 0x3ae   : > { %v5738_v47 = vadd.f32 %v15694_v41, %v5649_v21  ;;  %6297 = vst [vmem:[#allocation4 + $0x414] sm:$0xf] %v6265_v63  ;;  %v6820_v51 = vld [vmem:[#allocation3 + $0x60] sm:$0xe]  ;;  %v6821_v0 = vld [vmem:[#allocation3 + $0x64] sm:$0xf]  ;;  %v15788_v45 = vpop.f32.mrf.mxu1 }
 0x3af   : > { %v15785_v7 = vrot.slane %v6060_v10, 7  ;;  %v6822_v27 = vld [vmem:[#allocation3 + $0x68] sm:$0x1]  ;;  %v6581_v23 = vor.u32 %v6580_v13, %v15783_v43  ;;  %v15792_v22 = vrot.slane %v6602_v6, 4  ;;  %v13442_v42 = vld [vmem:[#allocation4 + $0x24c] sm:$0xf]  ;;  %v15797_v13 = vpop.f32.mrf.mxu2 }
 0x3b0   : > { %v12583_v58 = vld [vmem:[#allocation4 + $0x26c] sm:$0xf0]  ;;  %v5771_v32 = vmax.f32 %v5738_v47, 0.0  ;;  %v13560_v56 = vld [vmem:[#allocation10 + $0x178] sm:$0xff]  ;;  %v12243_v10 = vrot.slane %v6820_v51, 9  ;;  %v6950_v63 = vrot.slane %v6821_v0, 5 }
 0x3b1   : > { %v6065_v18 = vor.u32 %v6063_v30, %v15785_v7  ;;  %v12575_v39 = vld [vmem:[#allocation4 + $0x264] sm:$0xf0]  ;;  %v12586_v41 = vor.u32 %v13442_v42, %v12583_v58  ;;  %v6953_v21 = vrot.slane %v6822_v27, 5  ;;  %v6327_v49 = vld [vmem:[#allocation3 + $0x6c] sm:$0xf]  ;;  %17056 = vst [vmem:[#allocation28_spill] sm:$0xff] %v15797_v13  ;;  %10718 = vmatpush.bf16.msra.mxu2 %v13560_v56 }
 0x3b2   : > { %v5803_v38 = vpack.c.bf16 %v5771_v32, %v5771_v32  ;;  %v15799_v17 = vpop.f32.mrf.mxu0  ;;  %v6329_v6 = vld [vmem:[#allocation3 + $0x74] sm:$0x1]  ;;  %v6565_v19 = vshrl.u32 %v6327_v49, 16  ;;  %v6568_v30 = vshll.u32 %v6327_v49, 16  ;;  %v7086_v47 = vld [vmem:[#allocation3 + $0x78] sm:$0xf]  ;;  %v6951_v51 = vsel %vm14544_vm14, %v12243_v10, %v6950_v63 }
 0x3b3   : > { %v6230_v60 = vsel %vm14206_vm10, %v6065_v18, %v6229_v55  ;;  %v12789_v58 = vld [vmem:[#allocation4 + $0x3f0] sm:$0xf]  ;;  %v6952_v0 = vrot.slane %v6950_v63, 4  ;;  %v10460_v27 = vpop.f32.mrf.mxu3  ;;  %v6582_v40 = vrot.slane %v6581_v23, 4  ;;  %10588 = vmatmul.bf16.gmra.mxu0 %v12586_v41  ;;  %7052 = vst [vmem:[#allocation4 + $0x248] sm:$0xf] %v6951_v51 }
 0x3b4   : > { %6231 = vst [vmem:[#allocation3 + $0xc0] sm:$0xf] %v6230_v60  ;;  %v13441_v15 = vld [vmem:[#allocation4 + $0x244] sm:$0xf]  ;;  %v6068_v55 = vshrl.u32 %v5803_v38, 16  ;;  %v6071_v18 = vshll.u32 %v5803_v38, 16  ;;  %v15804_v32 = vadd.f32 %v10460_v27, %v15744_v31 }
 0x3b5   : > { %v7087_v42 = vld [vmem:[#allocation3 + $0x7c] sm:$0xf]  ;;  %v13499_v49 = vld [vmem:[#allocation4 + $0x410] sm:$0xf0]  ;;  %v6954_v60 = vsel %vm14544_vm14, %v6952_v0, %v6953_v21  ;;  %v6567_v56 = vrot.slane %v6565_v19, 4  ;;  %v6570_v35 = vrot.slane %v6568_v30, 5  ;;  %v12578_v23 = vor.u32 %v13441_v15, %v12575_v39 }
 0x3b6   : > { %v6584_v3 = vshll.u32 %v6329_v6, 16  ;;  %v13568_v13 = vld [vmem:[#allocation10 + $0x1b8] sm:$0xff]  ;;  %v15808_v10 = vld [vmem:[#allocation3 + $0x20] sm:$0x1]  ;;  %v6070_v63 = vrot.slane %v6068_v55, 7  ;;  %v12790_v16 = vor.u32 %v13499_v49, %v12789_v58  ;;  %v6598_v36 = vshll.u32 %v15750_v53, 16  ;;  %v15812_v15 = vpop.f32.mrf.mxu1 }
 0x3b7   : > { %7053 = vst [vmem:[#allocation4 + $0x26c] sm:$0xf] %v6954_v60  ;;  %v6266_v38 = vld [vmem:[#allocation3 + $0xb4] sm:$0xf]  ;;  %v6233_v51 = vld [vmem:[#allocation3 + $0xc8] sm:$0x1]  ;;  %v6571_v31 = vor.u32 %v6570_v35, %v6567_v56  ;;  %10807 = vmatpush.bf16.msra.mxu3 %v13568_v13  ;;  %10410 = vmatmul.bf16.gmra.mxu2 %v12578_v23 }
 0x3b8   : > { %v13576_v41 = vld [vmem:[#allocation10 + $0x1f8] sm:$0xff]  ;;  %v6586_v27 = vrot.slane %v6584_v3, 5  ;;  %7118 = vst [vmem:[#allocation4 + $0x294] sm:$0xf] %v7086_v47  ;;  %v6066_v19 = vrot.slane %v15785_v7, 4  ;;  %v6073_v21 = vor.u32 %v6071_v18, %v6070_v63  ;;  %v6075_v6 = vrot.slane %v6070_v63, 4  ;;  %10351 = vmatmul.bf16.gmra.mxu1 %v12790_v16 }
 0x3b9   : > { %7119 = vst [vmem:[#allocation4 + $0x2b8] sm:$0xf] %v7087_v42  ;;  %v6823_v30 = vld [vmem:[#allocation3 + $0x6c] sm:$0xe]  ;;  %10896 = vmatpush.bf16.msra.mxu0 %v13576_v41  ;;  %v6572_v39 = vrot.slane %v6571_v31, 4  ;;  %v15820_v16 = vrot.slane %v6598_v36, 5 }
 0x3ba   : > { %v6587_v35 = vsel %vm14218_vm11, %v6582_v40, %v6586_v27  ;;  %v6267_v3 = vld [vmem:[#allocation3 + $0xb8] sm:$0xf]  ;;  %6298 = vst [vmem:[#allocation4 + $0x438] sm:$0xf] %v6266_v38  ;;  %v6824_v13 = vld [vmem:[#allocation3 + $0x70] sm:$0xf]  ;;  %v6074_v53 = vsel %vm14196_vm9, %v6066_v19, %v6073_v21  ;;  %v6234_v7 = vsel %vm14178_vm2, %v6075_v6, %v6233_v51  ;;  %v10288_v40 = vadd.f32 %v15717_v48, %v15488_v1  ;;  %v15832_v63 = vpop.f32.mrf.mxu0 }
 0x3bb   : > { %v12244_v47 = vrot.slane %v6823_v30, 9  ;;  %6783 = vst [vmem:[#allocation4 + $0x2b0] sm:$0xf] %v6587_v35  ;;  %v6825_v58 = vld [vmem:[#allocation3 + $0x74] sm:$0x1]  ;;  %v6957_v0 = vrot.slane %v6824_v13, 5  ;;  %v15825_v42 = vpop.f32.mrf.mxu3  ;;  %v6577_v29 = vsel %vm14218_vm11, %v6572_v39, %v15783_v43  ;;  %v6605_v1 = vor.u32 %v15792_v22, %v15820_v16 }
 0x3bc   : > { %6232 = vst [vmem:[#allocation3 + $0xc4] sm:$0xf] %v6074_v53  ;;  %v12581_v18 = vld [vmem:[#allocation4 + $0x248] sm:$0xf]  ;;  %v6960_v56 = vrot.slane %v6825_v58, 5  ;;  %v7187_v38 = vor.u32 %v15637_v20, %v15628_v26  ;;  %v17059_v26 = vshrl.u32 %v15766_v11, 16 }
 0x3bd   : > { %17057 = vst [vmem:[#allocation29_spill] sm:$0xff] %v15825_v42  ;;  %v6958_v36 = vsel %vm14544_vm14, %v12244_v47, %v6957_v0  ;;  %v6959_v60 = vrot.slane %v6957_v0, 4  ;;  %v6330_v23 = vld [vmem:[#allocation3 + $0x78] sm:$0xf]  ;;  %v6332_v51 = vld [vmem:[#allocation3 + $0x80] sm:$0x1] }
 0x3be   : > { %6235 = vst [vmem:[#allocation3 + $0xc8] sm:$0x1] %v6234_v7  ;;  %v13446_v41 = vld [vmem:[#allocation4 + $0x268] sm:$0xf0]  ;;  %v15838_v31 = vld [vmem:[#allocation3 + $0x88] sm:$0xf] }
 0x3bf   : > { %17058 = vst [vmem:[#allocation30_spill] sm:$0xff] %v15832_v63  ;;  %v12582_v27 = vor.u32 %v13446_v41, %v12581_v18  ;;  %v6961_v19 = vsel %vm14544_vm14, %v6959_v60, %v6960_v56  ;;  %v6589_v21 = vshrl.u32 %v6330_v23, 16  ;;  %v6592_v6 = vshll.u32 %v6330_v23, 16  ;;  %v15850_v53 = vld [vmem:[#allocation3 + $0x28] sm:$0xf] }
 0x3c0   : > { %v10376_v49 = vpop.f32.mrf.mxu2  ;;  %6782 = vst [vmem:[#allocation4 + $0x28c] sm:$0xf] %v6577_v29  ;;  %v12619_v30 = vld [vmem:[#allocation4 + $0x2b4] sm:$0xf0]  ;;  %v6606_v22 = vrot.slane %v6605_v1, 4  ;;  %v6608_v39 = vshll.u32 %v6332_v51, 16  ;;  %v15856_v1 = vpop.f32.mrf.mxu1 }
 0x3c1   : > { %v10377_v43 = vadd.f32 %v10376_v49, %v10288_v40  ;;  %6299 = vst [vmem:[#allocation4 + $0x45c] sm:$0xf] %v6267_v3  ;;  %v15844_v20 = vrot.slane %v17059_v26, 4  ;;  %v17060_v35 = vshll.u32 %v15768_v33, 16  ;;  %10499 = vmatmul.bf16.gmra.mxu3 %v12582_v27  ;;  %v6591_v3 = vrot.slane %v6589_v21, 4  ;;  %v13575_v63 = vld [vmem:[#allocation10 + $0x1f0] sm:$0xff] }
 0x3c2   : > { %7054 = vst [vmem:[#allocation4 + $0x290] sm:$0xf] %v6958_v36  ;;  %v6594_v47 = vrot.slane %v6592_v6, 5  ;;  %v13451_v7 = vld [vmem:[#allocation4 + $0x294] sm:$0xf]  ;;  %v6610_v58 = vrot.slane %v6608_v39, 5  ;;  %10897 = vmatpush.bf16.msra.mxu0 %v13575_v63 }
 0x3c3   : > { %v15848_v13 = vrot.slane %v17060_v35, 5  ;;  %7055 = vst [vmem:[#allocation4 + $0x2b4] sm:$0xf] %v6961_v19  ;;  %v7088_v0 = vld [vmem:[#allocation3 + $0x84] sm:$0xf]  ;;  %v7188_v40 = vrot.slane %v7187_v38, 4  ;;  %v12622_v5 = vor.u32 %v13451_v7, %v12619_v30  ;;  %v10465_v41 = vpop.f32.mrf.mxu3  ;;  %v15871_v35 = vpop.f32.mrf.mxu0 }
 0x3c4   : > { %v6626_v18 = vshrl.u32 %v15838_v31, 16  ;;  %v15853_v29 = vld [vmem:[#allocation3 + $0x94] sm:$0xf]  ;;  %v6595_v49 = vor.u32 %v6594_v47, %v6591_v3  ;;  %v7089_v36 = vld [vmem:[#allocation3 + $0x88] sm:$0xf]  ;;  %v7214_v60 = vshll.u32 %v15766_v11, 16  ;;  %v6611_v51 = vsel %vm14218_vm11, %v6606_v22, %v6610_v58 }
 0x3c5   : > { %v12611_v56 = vld [vmem:[#allocation4 + $0x2ac] sm:$0xf0]  ;;  %v12825_v23 = vld [vmem:[#allocation4 + $0x438] sm:$0xf]  ;;  %7120 = vst [vmem:[#allocation4 + $0x2dc] sm:$0xf] %v7088_v0  ;;  %v7193_v38 = vsel %vm14218_vm11, %v7188_v40, %v15680_v9  ;;  %10593 = vmatmul.bf16.gmra.mxu0 %v12622_v5  ;;  %v15863_v27 = vadd.f32 %v10465_v41, %v10377_v43  ;;  %v7203_v22 = vsel %vm14218_vm11, %v15771_v52, %v15701_v54 }
 0x3c6   : > { %v6596_v19 = vrot.slane %v6595_v49, 4  ;;  %6785 = vst [vmem:[#allocation4 + $0x2f8] sm:$0xf] %v6611_v51  ;;  %v6826_v21 = vld [vmem:[#allocation3 + $0x78] sm:$0xe]  ;;  %v6622_v11 = vshll.u32 %v15838_v31, 16 }
 0x3c7   : > { %v13450_v6 = vld [vmem:[#allocation4 + $0x28c] sm:$0xf]  ;;  %7121 = vst [vmem:[#allocation4 + $0x300] sm:$0xf] %v7089_v36  ;;  %v7242_v39 = vshrl.u32 %v15850_v53, 16  ;;  %v6628_v47 = vrot.slane %v6626_v18, 4 }
 0x3c8   : > { %v13508_v30 = vld [vmem:[#allocation4 + $0x458] sm:$0xf0]  ;;  %v12614_v26 = vor.u32 %v13450_v6, %v12611_v56  ;;  %v6601_v43 = vsel %vm14218_vm11, %v6596_v19, %v15820_v16  ;;  %7596 = vst [vmem:[#allocation4 + $0x10] sm:$0xf] %v7193_v38  ;;  %v6827_v31 = vld [vmem:[#allocation3 + $0x7c] sm:$0xf]  ;;  %v15879_v58 = vpop.f32.mrf.mxu2 }
 0x3c9   : > { %v12826_v9 = vor.u32 %v13508_v30, %v12825_v23  ;;  %v15876_v3 = vld [vmem:[#allocation3 + $0x34] sm:$0xf]  ;;  %v6650_v7 = vshrl.u32 %v15853_v29, 16  ;;  %17061 = vst [vmem:[#allocation31_spill] sm:$0xff] %v15879_v58  ;;  %v6828_v54 = vld [vmem:[#allocation3 + $0x80] sm:$0x1] }
 0x3ca   : > { %6784 = vst [vmem:[#allocation4 + $0x2d4] sm:$0xf] %v6601_v43  ;;  %10415 = vmatmul.bf16.gmra.mxu2 %v12614_v26  ;;  %v12245_v52 = vrot.slane %v6826_v21, 9  ;;  %v6964_v0 = vrot.slane %v6827_v31, 5  ;;  %v6333_v40 = vld [vmem:[#allocation3 + $0x84] sm:$0xf] }
 0x3cb   : > { %7597 = vst [vmem:[#allocation4 + $0x34] sm:$0xf] %v7203_v22  ;;  %10356 = vmatmul.bf16.gmra.mxu1 %v12826_v9  ;;  %v6335_v5 = vld [vmem:[#allocation3 + $0x8c] sm:$0x1]  ;;  %v6613_v49 = vshrl.u32 %v6333_v40, 16  ;;  %v6616_v16 = vshll.u32 %v6333_v40, 16  ;;  %v15885_v19 = vpop.f32.mrf.mxu3 }
 0x3cc   : > { %v6624_v36 = vrot.slane %v6622_v11, 5  ;;  %v15881_v56 = vrot.slane %v7214_v60, 5  ;;  %v13455_v23 = vld [vmem:[#allocation4 + $0x2b0] sm:$0xf0]  ;;  %v6965_v18 = vsel %vm14544_vm14, %v12245_v52, %v6964_v0  ;;  %v6966_v41 = vrot.slane %v6964_v0, 4  ;;  %17062 = vst [vmem:[#allocation32_spill] sm:$0xff] %v15885_v19  ;;  %v15896_v52 = vpop.f32.mrf.mxu1 }
 0x3cd   : > { %v6967_v51 = vrot.slane %v6828_v54, 5  ;;  %v6632_v38 = vshll.u32 %v6335_v5, 16  ;;  %7056 = vst [vmem:[#allocation4 + $0x2d8] sm:$0xf] %v6965_v18  ;;  %v6615_v21 = vrot.slane %v6613_v49, 4  ;;  %v6618_v6 = vrot.slane %v6616_v16, 5 }
 0x3ce   : > { %v6629_v30 = vor.u32 %v6628_v47, %v6624_v36  ;;  %v7090_v22 = vld [vmem:[#allocation3 + $0x90] sm:$0xf]  ;;  %v7221_v26 = vor.u32 %v15844_v20, %v15881_v56  ;;  %v15889_v11 = vrot.slane %v7242_v39, 4  ;;  %v15892_v9 = vrot.slane %v6650_v7, 4  ;;  %v7091_v31 = vld [vmem:[#allocation3 + $0x94] sm:$0xf] }
 0x3cf   : > { %v6968_v43 = vsel %vm14544_vm14, %v6966_v41, %v6967_v51  ;;  %v12617_v54 = vld [vmem:[#allocation4 + $0x290] sm:$0xf]  ;;  %v6619_v0 = vor.u32 %v6618_v6, %v6615_v21  ;;  %v6634_v40 = vrot.slane %v6632_v38, 5  ;;  %v12655_v49 = vld [vmem:[#allocation4 + $0x2fc] sm:$0xf0]  ;;  %v10293_v51 = vadd.f32 %v15717_v48, %v15531_v50 }
 0x3d0   : > { %7057 = vst [vmem:[#allocation4 + $0x2fc] sm:$0xf] %v6968_v43  ;;  %v6630_v47 = vrot.slane %v6629_v30, 4  ;;  %v12618_v5 = vor.u32 %v13455_v23, %v12617_v54  ;;  %v7135_v20 = vld [vmem:[#allocation3 + $0x18] sm:$0xf]  ;;  %v7222_v41 = vrot.slane %v7221_v26, 4  ;;  %v15902_v43 = vpop.f32.mrf.mxu0  ;;  %v10381_v6 = vpop.f32.mrf.mxu2 }
 0x3d1   : > { %7122 = vst [vmem:[#allocation4 + $0x324] sm:$0xf] %v7090_v22  ;;  %v13460_v39 = vld [vmem:[#allocation4 + $0x2dc] sm:$0xf]  ;;  %v6620_v16 = vrot.slane %v6619_v0, 4  ;;  %v7205_v18 = vshrl.u32 %v7135_v20, 16 }
 0x3d2   : > { %v6635_v7 = vsel %vm14218_vm11, %v6630_v47, %v6634_v40  ;;  %7123 = vst [vmem:[#allocation4 + $0x348] sm:$0xf] %v7091_v31  ;;  %10504 = vmatmul.bf16.gmra.mxu3 %v12618_v5  ;;  %v7137_v38 = vld [vmem:[#allocation3 + $0x20] sm:$0x1]  ;;  %v7208_v23 = vshll.u32 %v7135_v20, 16  ;;  %v13559_v21 = vld [vmem:[#allocation10 + $0x170] sm:$0xff]  ;;  %v12658_v26 = vor.u32 %v13460_v39, %v12655_v49  ;;  %v10382_v40 = vadd.f32 %v10381_v6, %v10293_v51 }
 0x3d3   : > { %6787 = vst [vmem:[#allocation4 + $0x340] sm:$0xf] %v6635_v7  ;;  %v6625_v30 = vsel %vm14218_vm11, %v6620_v16, %v6624_v36  ;;  %v7207_v22 = vrot.slane %v7205_v18, 4  ;;  %v7224_v54 = vshll.u32 %v7137_v38, 16  ;;  %v6829_v0 = vld [vmem:[#allocation3 + $0x84] sm:$0xe]  ;;  %10719 = vmatpush.bf16.msra.mxu2 %v13559_v21  ;;  %v10470_v39 = vpop.f32.mrf.mxu3 }
 0x3d4   : > { %v6830_v31 = vld [vmem:[#allocation3 + $0x88] sm:$0xf]  ;;  %v12647_v47 = vld [vmem:[#allocation4 + $0x2f4] sm:$0xf0]  ;;  %6786 = vst [vmem:[#allocation4 + $0x31c] sm:$0xf] %v6625_v30  ;;  %v15908_v49 = vpop.f32.mrf.mxu1 }
 0x3d5   : > { %v7210_v50 = vrot.slane %v7208_v23, 5  ;;  %v12246_v5 = vrot.slane %v6829_v0, 9  ;;  %v7226_v55 = vrot.slane %v7224_v54, 5  ;;  %v6831_v7 = vld [vmem:[#allocation3 + $0x8c] sm:$0x1]  ;;  %v6971_v60 = vrot.slane %v6830_v31, 5  ;;  %10598 = vmatmul.bf16.gmra.mxu0 %v12658_v26 }
 0x3d6   : > { %v13567_v20 = vld [vmem:[#allocation10 + $0x1b0] sm:$0xff]  ;;  %v6336_v36 = vld [vmem:[#allocation3 + $0x90] sm:$0xf]  ;;  %v6646_v16 = vshll.u32 %v15853_v29, 16  ;;  %v7238_v18 = vshll.u32 %v15850_v53, 16  ;;  %v6974_v6 = vrot.slane %v6831_v7, 5  ;;  %v15914_v29 = vadd.f32 %v10470_v39, %v10382_v40 }
 0x3d7   : > { %v13375_v19 = vld [vmem:[#allocation4 + $0x30] sm:$0xf0]  ;;  %v7211_v58 = vor.u32 %v7210_v50, %v7207_v22  ;;  %v7227_v51 = vsel %vm14218_vm11, %v7222_v41, %v7226_v55  ;;  %v6972_v23 = vsel %vm14544_vm14, %v12246_v5, %v6971_v60  ;;  %v6973_v21 = vrot.slane %v6971_v60, 4  ;;  %10808 = vmatpush.bf16.msra.mxu3 %v13567_v20  ;;  %v6338_v30 = vld [vmem:[#allocation3 + $0x98] sm:$0x1] }
 0x3d8   : > { %v13459_v38 = vld [vmem:[#allocation4 + $0x2d4] sm:$0xf]  ;;  %v12301_v54 = vld [vmem:[#allocation4 + $0x10] sm:$0xf]  ;;  %7599 = vst [vmem:[#allocation4 + $0x7c] sm:$0xf] %v7227_v51  ;;  %v15923_v5 = vpop.f32.mrf.mxu2 }
 0x3d9   : > { %v12650_v22 = vor.u32 %v13459_v38, %v12647_v47  ;;  %v7212_v53 = vrot.slane %v7211_v58, 4  ;;  %v6637_v0 = vshrl.u32 %v6336_v36, 16  ;;  %v15916_v31 = vld [vmem:[#allocation3 + $0xa0] sm:$0xf]  ;;  %v12302_v26 = vor.u32 %v13375_v19, %v12301_v54  ;;  %7058 = vst [vmem:[#allocation4 + $0x320] sm:$0xf] %v6972_v23 }
 0x3da   : > { %v6975_v55 = vsel %vm14544_vm14, %v6973_v21, %v6974_v6  ;;  %v6640_v41 = vshll.u32 %v6336_v36, 16  ;;  %v6648_v60 = vrot.slane %v6646_v16, 5  ;;  %v6656_v40 = vshll.u32 %v6338_v30, 16  ;;  %v7092_v58 = vld [vmem:[#allocation3 + $0x9c] sm:$0xf]  ;;  %v15929_v16 = vpop.f32.mrf.mxu0 }
 0x3db   : > { %10420 = vmatmul.bf16.gmra.mxu2 %v12650_v22  ;;  %v7217_v63 = vsel %vm14218_vm11, %v7212_v53, %v15881_v56  ;;  %7059 = vst [vmem:[#allocation4 + $0x344] sm:$0xf] %v6975_v55  ;;  %v6639_v47 = vrot.slane %v6637_v0, 4  ;;  %10637 = vmatmul.bf16.vlgmr.msrb.gmra.mxu1 %v12302_v26  ;;  %v13464_v50 = vld [vmem:[#allocation4 + $0x2f8] sm:$0xf0]  ;;  %v15926_v20 = vrot.slane %v7238_v18, 5 }
 0x3dc   : > { %7598 = vst [vmem:[#allocation4 + $0x58] sm:$0xf] %v7217_v63  ;;  %v6642_v19 = vrot.slane %v6640_v41, 5  ;;  %v6653_v7 = vor.u32 %v15892_v9, %v6648_v60  ;;  %v6674_v36 = vshrl.u32 %v15916_v31, 16  ;;  %v7093_v38 = vld [vmem:[#allocation3 + $0xa0] sm:$0xf] }
 0x3dd   : > { %17063 = vst [vmem:[#allocation33_spill] sm:$0xff] %v15929_v16  ;;  %v13583_v56 = vld [vmem:[#allocation10 + $0x230] sm:$0xff]  ;;  %v6658_v23 = vrot.slane %v6656_v40, 5  ;;  %v7138_v21 = vld [vmem:[#allocation3 + $0x24] sm:$0xf]  ;;  %v7245_v6 = vor.u32 %v15889_v11, %v15926_v20  ;;  %v17064_v30 = vshrl.u32 %v15768_v33, 16  ;;  %v15943_v40 = vpop.f32.mrf.mxu3 }
 0x3de   : > { %7124 = vst [vmem:[#allocation4 + $0x36c] sm:$0xf] %v7092_v58  ;;  %v6643_v39 = vor.u32 %v6642_v19, %v6639_v47  ;;  %v6654_v51 = vrot.slane %v6653_v7, 4  ;;  %v17065_v18 = vshrl.u32 %v15876_v3, 16  ;;  %v7140_v54 = vld [vmem:[#allocation3 + $0x2c] sm:$0x1]  ;;  %10986 = vmatpush.bf16.msra.mxu1 %v13583_v56 }
 0x3df   : > { %7125 = vst [vmem:[#allocation4 + $0x390] sm:$0xf] %v7093_v38  ;;  %v15935_v9 = vrot.slane %v17064_v30, 4  ;;  %v7229_v53 = vshrl.u32 %v7138_v21, 16  ;;  %v7232_v0 = vshll.u32 %v7138_v21, 16  ;;  %v7246_v63 = vrot.slane %v7245_v6, 4  ;;  %v15947_v38 = vpop.f32.mrf.mxu1 }
 0x3e0   : > { %v15939_v22 = vrot.slane %v17065_v18, 4  ;;  %v12653_v26 = vld [vmem:[#allocation4 + $0x2d8] sm:$0xf]  ;;  %v6644_v55 = vrot.slane %v6643_v39, 4  ;;  %v6659_v41 = vsel %vm14218_vm11, %v6654_v51, %v6658_v23  ;;  %v7248_v47 = vshll.u32 %v7140_v54, 16 }
 0x3e1   : > { %v12654_v11 = vor.u32 %v13464_v50, %v12653_v26  ;;  %6789 = vst [vmem:[#allocation4 + $0x388] sm:$0xf] %v6659_v41  ;;  %v7231_v33 = vrot.slane %v7229_v53, 4  ;;  %v7234_v58 = vrot.slane %v7232_v0, 5  ;;  %v6832_v19 = vld [vmem:[#allocation3 + $0x90] sm:$0xe]  ;;  %v10298_v26 = vadd.f32 %v15717_v48, %v15566_v24 }
 0x3e2   : > { %v15945_v7 = vrot.slane %v6674_v36, 4  ;;  %v13469_v21 = vld [vmem:[#allocation4 + $0x324] sm:$0xf]  ;;  %v12691_v56 = vld [vmem:[#allocation4 + $0x344] sm:$0xf0]  ;;  %v6649_v39 = vsel %vm14218_vm11, %v6644_v55, %v6648_v60  ;;  %v7250_v30 = vrot.slane %v7248_v47, 5 }
 0x3e3   : > { %v6833_v51 = vld [vmem:[#allocation3 + $0x94] sm:$0xf]  ;;  %10509 = vmatmul.bf16.gmra.mxu3 %v12654_v11  ;;  %v12683_v23 = vld [vmem:[#allocation4 + $0x33c] sm:$0xf0]  ;;  %6788 = vst [vmem:[#allocation4 + $0x364] sm:$0xf] %v6649_v39  ;;  %v7235_v50 = vor.u32 %v7234_v58, %v7231_v33  ;;  %v12694_v60 = vor.u32 %v13469_v21, %v12691_v56  ;;  %v10386_v33 = vpop.f32.mrf.mxu2 }
 0x3e4   : > { %v6834_v6 = vld [vmem:[#allocation3 + $0x98] sm:$0x1]  ;;  %v7251_v18 = vsel %vm14218_vm11, %v7246_v63, %v7250_v30  ;;  %v12247_v54 = vrot.slane %v6832_v19, 9  ;;  %v6978_v36 = vrot.slane %v6833_v51, 5  ;;  %v7141_v53 = vld [vmem:[#allocation3 + $0x30] sm:$0xf]  ;;  %v10387_v51 = vadd.f32 %v10386_v33, %v10298_v26 }
 0x3e5   : > { %v7262_v0 = vshll.u32 %v15876_v3, 16  ;;  %v13468_v41 = vld [vmem:[#allocation4 + $0x31c] sm:$0xf]  ;;  %v7236_v47 = vrot.slane %v7235_v50, 4  ;;  %7601 = vst [vmem:[#allocation4 + $0xc4] sm:$0xf] %v7251_v18  ;;  %10603 = vmatmul.bf16.gmra.mxu0 %v12694_v60  ;;  %v15958_v3 = vpop.f32.mrf.mxu0 }
 0x3e6   : > { %v13384_v55 = vld [vmem:[#allocation4 + $0x78] sm:$0xf0]  ;;  %v7253_v11 = vshrl.u32 %v7141_v53, 16  ;;  %v12337_v39 = vld [vmem:[#allocation4 + $0x58] sm:$0xf]  ;;  %v6979_v58 = vsel %vm14544_vm14, %v12247_v54, %v6978_v36  ;;  %v6980_v63 = vrot.slane %v6978_v36, 4  ;;  %v12686_v50 = vor.u32 %v13468_v41, %v12683_v23  ;;  %v10475_v41 = vpop.f32.mrf.mxu3 }
 0x3e7   : > { %v6981_v19 = vrot.slane %v6834_v6, 5  ;;  %v7256_v30 = vshll.u32 %v7141_v53, 16  ;;  %17066 = vst [vmem:[#allocation34_spill] sm:$0xff] %v15958_v3  ;;  %v7241_v24 = vsel %vm14218_vm11, %v7236_v47, %v15926_v20  ;;  %v6339_v21 = vld [vmem:[#allocation3 + $0x9c] sm:$0xf]  ;;  %v12338_v53 = vor.u32 %v13384_v55, %v12337_v39  ;;  %v15966_v23 = vpop.f32.mrf.mxu1 }
 0x3e8   : > { %7060 = vst [vmem:[#allocation4 + $0x368] sm:$0xf] %v6979_v58  ;;  %v6341_v56 = vld [vmem:[#allocation3 + $0xa4] sm:$0x1]  ;;  %v6661_v54 = vshrl.u32 %v6339_v21, 16  ;;  %v6664_v36 = vshll.u32 %v6339_v21, 16 }
 0x3e9   : > { %7600 = vst [vmem:[#allocation4 + $0xa0] sm:$0xf] %v7241_v24  ;;  %v6982_v18 = vsel %vm14544_vm14, %v6980_v63, %v6981_v19  ;;  %v7143_v6 = vld [vmem:[#allocation3 + $0x38] sm:$0x1]  ;;  %v6670_v26 = vshll.u32 %v15916_v31, 16  ;;  %v7255_v60 = vrot.slane %v7253_v11, 4  ;;  %v15972_v11 = vadd.f32 %v10475_v41, %v10387_v51 }
 0x3ea   : > { %7061 = vst [vmem:[#allocation4 + $0x38c] sm:$0xf] %v6982_v18  ;;  %v7258_v33 = vrot.slane %v7256_v30, 5  ;;  %v13473_v42 = vld [vmem:[#allocation4 + $0x340] sm:$0xf0]  ;;  %v6663_v3 = vrot.slane %v6661_v54, 4 }
 0x3eb   : > { %v6666_v20 = vrot.slane %v6664_v36, 5  ;;  %v6680_v47 = vshll.u32 %v6341_v56, 16  ;;  %v7264_v58 = vrot.slane %v7262_v0, 5  ;;  %10425 = vmatmul.bf16.gmra.mxu2 %v12686_v50  ;;  %v6672_v24 = vrot.slane %v6670_v26, 5  ;;  %v7094_v63 = vld [vmem:[#allocation3 + $0xa8] sm:$0xf]  ;;  %10642 = vmatmul.bf16.gmra.mxu1 %v12338_v53  ;;  %v10388_v26 = vpop.f32.mrf.mxu2 }
 0x3ec   : > { %v7095_v19 = vld [vmem:[#allocation3 + $0xac] sm:$0xf]  ;;  %v7272_v21 = vshll.u32 %v7143_v6, 16  ;;  %v17067_v55 = vshll.u32 %v15808_v10, 16  ;;  %v12689_v31 = vld [vmem:[#allocation4 + $0x320] sm:$0xf]  ;;  %v7259_v56 = vor.u32 %v7258_v33, %v7255_v60  ;;  %v10300_v10 = vadd.f32 %v15717_v48, %v15586_v62 }
 0x3ed   : > { %v6667_v30 = vor.u32 %v6666_v20, %v6663_v3  ;;  %7126 = vst [vmem:[#allocation4 + $0x3b4] sm:$0xf] %v7094_v63  ;;  %v6677_v0 = vor.u32 %v15945_v7, %v6672_v24  ;;  %v7269_v50 = vor.u32 %v15939_v22, %v7264_v58  ;;  %v6835_v18 = vld [vmem:[#allocation3 + $0x9c] sm:$0xe]  ;;  %v6836_v54 = vld [vmem:[#allocation3 + $0xa0] sm:$0xf]  ;;  %v12690_v6 = vor.u32 %v13473_v42, %v12689_v31  ;;  %v15986_v31 = vpop.f32.mrf.mxu0 }
 0x3ee   : > { %v15970_v39 = vrot.slane %v17067_v55, 5  ;;  %7127 = vst [vmem:[#allocation4 + $0x3d8] sm:$0xf] %v7095_v19  ;;  %v7145_v36 = vld [vmem:[#allocation3 + $0x40] sm:$0xf]  ;;  %v7260_v55 = vrot.slane %v7259_v56, 4  ;;  %v10389_v19 = vadd.f32 %v10388_v26, %v10300_v10 }
 0x3ef   : > { %v6668_v53 = vrot.slane %v6667_v30, 4  ;;  %v6837_v51 = vld [vmem:[#allocation3 + $0xa4] sm:$0x1]  ;;  %v6678_v41 = vrot.slane %v6677_v0, 4  ;;  %v6682_v3 = vrot.slane %v6680_v47, 5  ;;  %v7270_v20 = vrot.slane %v7269_v50, 4 }
 0x3f0   : > { %v7274_v60 = vrot.slane %v7272_v21, 5  ;;  %v7144_v33 = vld [vmem:[#allocation3 + $0x3c] sm:$0xf]  ;;  %v15978_v7 = vld [vmem:[#allocation3 + $0x4c] sm:$0xf]  ;;  %v7265_v62 = vsel %vm14218_vm11, %v7260_v55, %v7264_v58  ;;  %v12248_v48 = vrot.slane %v6835_v18, 9  ;;  %v8030_v18 = vor.u32 %v15935_v9, %v15848_v13 }
 0x3f1   : > { %v15980_v63 = vld [vmem:[#allocation3 + $0xac] sm:$0xf]  ;;  %v6673_v22 = vsel %vm14218_vm11, %v6668_v53, %v6672_v24  ;;  %v6985_v42 = vrot.slane %v6836_v54, 5  ;;  %17068 = vst [vmem:[#allocation15_spill] sm:$0xff] %v15986_v31  ;;  %v12727_v30 = vld [vmem:[#allocation4 + $0x38c] sm:$0xf0]  ;;  %v6683_v47 = vsel %vm14218_vm11, %v6678_v41, %v6682_v3  ;;  %v10477_v53 = vpop.f32.mrf.mxu3 }
 0x3f2   : > { %6790 = vst [vmem:[#allocation4 + $0x3ac] sm:$0xf] %v6673_v22  ;;  %v7275_v21 = vsel %vm14218_vm11, %v7270_v20, %v7274_v60  ;;  %v6988_v56 = vrot.slane %v6837_v51, 5  ;;  %v7277_v58 = vshrl.u32 %v7144_v33, 16  ;;  %v7280_v50 = vshll.u32 %v7144_v33, 16  ;;  %v13558_v55 = vld [vmem:[#allocation10 + $0x168] sm:$0xff] }
 0x3f3   : > { %6791 = vst [vmem:[#allocation4 + $0x3d0] sm:$0xf] %v6683_v47  ;;  %v6986_v24 = vsel %vm14544_vm14, %v12248_v48, %v6985_v42  ;;  %v6987_v0 = vrot.slane %v6985_v42, 4  ;;  %v15996_v54 = vld [vmem:[#allocation3 + $0x28] sm:$0xf]  ;;  %v7290_v10 = vshrl.u32 %v7145_v36, 16  ;;  %10514 = vmatmul.bf16.gmra.mxu3 %v12690_v6  ;;  %v16005_v60 = vadd.f32 %v10477_v53, %v10389_v19  ;;  %v16010_v48 = vpop.f32.mrf.mxu1  ;;  %10720 = vmatpush.bf16.msra.mxu2 %v13558_v55 }
 0x3f4   : > { %v7314_v26 = vshrl.u32 %v15978_v7, 16  ;;  %7602 = vst [vmem:[#allocation4 + $0xe8] sm:$0xf] %v7265_v62  ;;  %v13566_v51 = vld [vmem:[#allocation10 + $0x1a8] sm:$0xff]  ;;  %v17069_v41 = vrot.slane %v15684_v44, 5  ;;  %v17070_v3 = vrot.slane %v15609_v34, 9 }
 0x3f5   : > { %17071 = vst [vmem:[#allocation16_spill] sm:$0xff] %v16005_v60  ;;  %v13478_v9 = vld [vmem:[#allocation4 + $0x36c] sm:$0xf]  ;;  %v6989_v33 = vsel %vm14544_vm14, %v6987_v0, %v6988_v56  ;;  %v7279_v22 = vrot.slane %v7277_v58, 4  ;;  %v7282_v6 = vrot.slane %v7280_v50, 5  ;;  %v6698_v62 = vshrl.u32 %v15980_v63, 16  ;;  %10809 = vmatpush.bf16.msra.mxu3 %v13566_v51 }
 0x3f6   : > { %v7727_v20 = vsel %vm14544_vm14, %v17070_v3, %v17069_v41  ;;  %7603 = vst [vmem:[#allocation4 + $0x10c] sm:$0xf] %v7275_v21  ;;  %v12730_v42 = vor.u32 %v13478_v9, %v12727_v30  ;;  %v7286_v34 = vshll.u32 %v7145_v36, 16  ;;  %v7147_v44 = vld [vmem:[#allocation3 + $0x48] sm:$0xf]  ;;  %v17072_v21 = vrot.slane %v15692_v4, 5 }
 0x3f7   : > { %7062 = vst [vmem:[#allocation4 + $0x3b0] sm:$0xf] %v6986_v24  ;;  %v12719_v47 = vld [vmem:[#allocation4 + $0x384] sm:$0xf0]  ;;  %v13393_v19 = vld [vmem:[#allocation4 + $0xc0] sm:$0xf0]  ;;  %v7283_v53 = vor.u32 %v7282_v6, %v7279_v22  ;;  %v10391_v9 = vpop.f32.mrf.mxu2 }
 0x3f8   : > { %7063 = vst [vmem:[#allocation4 + $0x3d4] sm:$0xf] %v6989_v33  ;;  %v7730_v56 = vsel %vm14544_vm14, %v15764_v28, %v17072_v21  ;;  %v7292_v0 = vrot.slane %v7290_v10, 4  ;;  %10608 = vmatmul.bf16.gmra.mxu0 %v12730_v42  ;;  %v7146_v58 = vld [vmem:[#allocation3 + $0x44] sm:$0x1]  ;;  %v7288_v50 = vrot.slane %v7286_v34, 5 }
 0x3f9   : > { %7868 = vst [vmem:[#allocation4 + $0x14] sm:$0xf] %v7727_v20  ;;  %v16017_v30 = vrot.slane %v8030_v18, 4  ;;  %v13477_v24 = vld [vmem:[#allocation4 + $0x364] sm:$0xf]  ;;  %v7301_v55 = vshrl.u32 %v7147_v44, 16 }
 0x3fa   : > { %v7304_v51 = vshll.u32 %v7147_v44, 16  ;;  %v16020_v41 = vrot.slane %v7314_v26, 4  ;;  %v16025_v4 = vld [vmem:[%s16972_s4] ss:$0 sm:$0xff]  ;;  %v6700_v10 = vrot.slane %v6698_v62, 4  ;;  %v12722_v3 = vor.u32 %v13477_v24, %v12719_v47  ;;  %v13574_v33 = vld [vmem:[#allocation10 + $0x1e8] sm:$0xff]  ;;  %v16030_v44 = vpop.f32.mrf.mxu0 }
 0x3fb   : > { %v10303_v28 = vadd.f32 %v16025_v4, %v15620_v61  ;;  %v12373_v20 = vld [vmem:[#allocation4 + $0xa0] sm:$0xf]  ;;  %7869 = vst [vmem:[#allocation4 + $0x38] sm:$0xf] %v7730_v56  ;;  %v6342_v22 = vld [vmem:[#allocation3 + $0xa8] sm:$0xf]  ;;  %v7293_v61 = vor.u32 %v7292_v0, %v7288_v50  ;;  %10898 = vmatpush.bf16.msra.mxu0 %v13574_v33  ;;  %v8020_v0 = vor.u32 %v15779_v37, %v15776_v25  ;;  %v10480_v33 = vpop.f32.mrf.mxu3 }
 0x3fc   : > { %v12374_v18 = vor.u32 %v13393_v19, %v12373_v20  ;;  %v6694_v6 = vshll.u32 %v15980_v63, 16  ;;  %v7284_v26 = vrot.slane %v7283_v53, 4  ;;  %v7296_v42 = vshll.u32 %v7146_v58, 16  ;;  %10430 = vmatmul.bf16.gmra.mxu2 %v12722_v3  ;;  %17073 = vst [vmem:[#allocation17_spill] sm:$0xff] %v16030_v44  ;;  %v6344_v21 = vld [vmem:[#allocation3 + $0xb0] sm:$0x1]  ;;  %v16034_v53 = vpop.f32.mrf.mxu1 }
 0x3fd   : > { %v10392_v34 = vadd.f32 %v10391_v9, %v10303_v28  ;;  %v6685_v36 = vshrl.u32 %v6342_v22, 16  ;;  %v6688_v31 = vshll.u32 %v6342_v22, 16  ;;  %v6704_v47 = vshll.u32 %v6344_v21, 16  ;;  %v7096_v19 = vld [vmem:[#allocation3 + $0xb4] sm:$0xf] }
 0x3fe   : > { %10647 = vmatmul.bf16.gmra.mxu1 %v12374_v18  ;;  %v6696_v62 = vrot.slane %v6694_v6, 5  ;;  %v7303_v56 = vrot.slane %v7301_v55, 4  ;;  %v7306_v24 = vrot.slane %v7304_v51, 5  ;;  %v16032_v20 = vld [vmem:[#allocation3 + $0xb8] sm:$0xf]  ;;  %v7289_v9 = vsel %vm14218_vm11, %v7284_v26, %v7288_v50  ;;  %v13582_v51 = vld [vmem:[#allocation10 + $0x228] sm:$0xff] }
 0x3ff   : > { %v13482_v63 = vld [vmem:[#allocation4 + $0x388] sm:$0xf0]  ;;  %v6687_v58 = vrot.slane %v6685_v36, 4  ;;  %v6690_v28 = vrot.slane %v6688_v31, 5  ;;  %v7097_v3 = vld [vmem:[#allocation3 + $0xb8] sm:$0xf]  ;;  %v16040_v6 = vadd.f32 %v10480_v33, %v10392_v34  ;;  %10987 = vmatpush.bf16.msra.mxu1 %v13582_v51 }
 0x400   : > { %v12725_v18 = vld [vmem:[#allocation4 + $0x368] sm:$0xf]  ;;  %v6701_v22 = vor.u32 %v6700_v10, %v6696_v62  ;;  %7128 = vst [vmem:[#allocation4 + $0x3fc] sm:$0xf] %v7096_v19  ;;  %v7298_v55 = vrot.slane %v7296_v42, 5  ;;  %v6706_v44 = vrot.slane %v6704_v47, 5  ;;  %v7307_v25 = vor.u32 %v7306_v24, %v7303_v56 }
 0x401   : > { %v6691_v21 = vor.u32 %v6690_v28, %v6687_v58  ;;  %7129 = vst [vmem:[#allocation4 + $0x420] sm:$0xf] %v7097_v3  ;;  %v7294_v36 = vrot.slane %v7293_v61, 4  ;;  %v6838_v31 = vld [vmem:[#allocation3 + $0xa8] sm:$0xe]  ;;  %v12726_v60 = vor.u32 %v13482_v63, %v12725_v18  ;;  %v7310_v34 = vshll.u32 %v15978_v7, 16  ;;  %v10393_v63 = vpop.f32.mrf.mxu2 }
 0x402   : > { %v6702_v16 = vrot.slane %v6701_v22, 4  ;;  %7604 = vst [vmem:[#allocation4 + $0x130] sm:$0xf] %v7289_v9  ;;  %v6839_v50 = vld [vmem:[#allocation3 + $0xac] sm:$0xf]  ;;  %v12249_v26 = vrot.slane %v6838_v31, 9  ;;  %v10305_v47 = vadd.f32 %v16025_v4, %v15643_v12  ;;  %v16054_v51 = vpop.f32.mrf.mxu0 }
 0x403   : > { %v6692_v37 = vrot.slane %v6691_v21, 4  ;;  %v7299_v10 = vsel %vm14218_vm11, %v7294_v36, %v7298_v55  ;;  %v6840_v42 = vld [vmem:[#allocation3 + $0xb0] sm:$0x1]  ;;  %v6992_v19 = vrot.slane %v6839_v50, 5  ;;  %v6722_v61 = vshrl.u32 %v16032_v20, 16  ;;  %10519 = vmatmul.bf16.gmra.mxu3 %v12726_v60  ;;  %17074 = vst [vmem:[#allocation19_spill] sm:$0xff] %v16054_v51  ;;  %v10482_v21 = vpop.f32.mrf.mxu3 }
 0x404   : > { %v12763_v58 = vld [vmem:[#allocation4 + $0x3d4] sm:$0xf0]  ;;  %v6707_v28 = vsel %vm14218_vm11, %v6702_v16, %v6706_v44  ;;  %7605 = vst [vmem:[#allocation4 + $0x154] sm:$0xf] %v7299_v10  ;;  %v8021_v56 = vrot.slane %v8020_v0, 4  ;;  %v6995_v9 = vrot.slane %v6840_v42, 5  ;;  %v10394_v55 = vadd.f32 %v10393_v63, %v10305_v47  ;;  %v16063_v0 = vpop.f32.mrf.mxu1 }
 0x405   : > { %v6697_v24 = vsel %vm14218_vm11, %v6692_v37, %v6696_v62  ;;  %6793 = vst [vmem:[#allocation4 + $0x418] sm:$0xf] %v6707_v28  ;;  %v6993_v7 = vsel %vm14544_vm14, %v12249_v26, %v6992_v19  ;;  %v6994_v3 = vrot.slane %v6992_v19, 4  ;;  %v7149_v12 = vld [vmem:[#allocation3 + $0x50] sm:$0x1]  ;;  %v7308_v33 = vrot.slane %v7307_v25, 4 }
 0x406   : > { %v13487_v18 = vld [vmem:[#allocation4 + $0x3b4] sm:$0xf]  ;;  %6792 = vst [vmem:[#allocation4 + $0x3f4] sm:$0xf] %v6697_v24  ;;  %v7312_v22 = vrot.slane %v7310_v34, 5  ;;  %v8026_v44 = vsel %vm14218_vm11, %v8021_v56, %v15848_v13  ;;  %v7320_v26 = vshll.u32 %v7149_v12, 16  ;;  %v8036_v25 = vsel %vm14218_vm11, %v16017_v30, %v15970_v39 }
 0x407   : > { %v12766_v16 = vor.u32 %v13487_v18, %v12763_v58  ;;  %v6996_v60 = vsel %vm14544_vm14, %v6994_v3, %v6995_v9  ;;  %7064 = vst [vmem:[#allocation4 + $0x3f8] sm:$0xf] %v6993_v7  ;;  %v16061_v62 = vld [vmem:[#allocation3 + $0x1c] sm:$0xf]  ;;  %v12755_v36 = vld [vmem:[#allocation4 + $0x3cc] sm:$0xf0]  ;;  %v16072_v37 = vadd.f32 %v10482_v21, %v10394_v55  ;;  %v10308_v30 = vadd.f32 %v16025_v4, %v15686_v59 }
 0x408   : > { %7065 = vst [vmem:[#allocation4 + $0x41c] sm:$0xf] %v6996_v60  ;;  %v7313_v31 = vsel %vm14218_vm11, %v7308_v33, %v7312_v22  ;;  %v7317_v50 = vor.u32 %v16020_v41, %v7312_v22  ;;  %v13402_v13 = vld [vmem:[#allocation4 + $0x108] sm:$0xf0]  ;;  %v13557_v10 = vld [vmem:[#allocation10 + $0x160] sm:$0xff]  ;;  %v7733_v47 = vrot.slane %v16061_v62, 5 }
 0x409   : > { %10613 = vmatmul.bf16.gmra.mxu0 %v12766_v16  ;;  %v13573_v42 = vld [vmem:[#allocation10 + $0x1e0] sm:$0xff]  ;;  %7606 = vst [vmem:[#allocation4 + $0x178] sm:$0xf] %v7313_v31  ;;  %v13486_v34 = vld [vmem:[#allocation4 + $0x3ac] sm:$0xf]  ;;  %v17075_v41 = vshrl.u32 %v15996_v54, 16  ;;  %10721 = vmatpush.bf16.msra.mxu2 %v13557_v10  ;;  %v10396_v12 = vpop.f32.mrf.mxu2 }
 0x40a   : > { %v7631_v19 = vld [vmem:[#allocation3 + $0x18] sm:$0xe]  ;;  %8429 = vst [vmem:[#allocation4 + $0x1c] sm:$0xf] %v8026_v44  ;;  %v12758_v58 = vor.u32 %v13486_v34, %v12755_v36  ;;  %v12409_v28 = vld [vmem:[#allocation4 + $0xe8] sm:$0xf]  ;;  %10899 = vmatpush.bf16.msra.mxu0 %v13573_v42  ;;  %v10397_v60 = vadd.f32 %v10396_v12, %v10308_v30 }
 0x40b   : > { %v16077_v63 = vrot.slane %v17075_v41, 4  ;;  %v7318_v39 = vrot.slane %v7317_v50, 4  ;;  %8430 = vst [vmem:[#allocation4 + $0x40] sm:$0xf] %v8036_v25  ;;  %v6724_v56 = vrot.slane %v6722_v61, 4  ;;  %v12410_v24 = vor.u32 %v13402_v13, %v12409_v28  ;;  %v10485_v10 = vpop.f32.mrf.mxu3  ;;  %v13556_v42 = vld [vmem:[#allocation10 + $0x158] sm:$0xff]  ;;  %v16086_v41 = vpop.f32.mrf.mxu0 }
 0x40c   : > { %v6345_v7 = vld [vmem:[#allocation3 + $0xb4] sm:$0xf]  ;;  %v6347_v3 = vld [vmem:[#allocation3 + $0xbc] sm:$0x1]  ;;  %v7322_v9 = vrot.slane %v7320_v26, 5  ;;  %10435 = vmatmul.bf16.gmra.mxu2 %v12758_v58  ;;  %v6718_v55 = vshll.u32 %v16032_v20, 16  ;;  %v16088_v58 = vpop.f32.mrf.mxu1 }
 0x40d   : > { %v13491_v18 = vld [vmem:[#allocation4 + $0x3d0] sm:$0xf0]  ;;  %v6709_v33 = vshrl.u32 %v6345_v7, 16  ;;  %v6712_v22 = vshll.u32 %v6345_v7, 16  ;;  %v6728_v16 = vshll.u32 %v6347_v3, 16  ;;  %v12252_v21 = vrot.slane %v7631_v19, 9  ;;  %10722 = vmatpush.bf16.msra.mxu2 %v13556_v42 }
 0x40e   : > { %10652 = vmatmul.bf16.gmra.mxu1 %v12410_v24  ;;  %v7098_v44 = vld [vmem:[#allocation3 + $0xc0] sm:$0xf]  ;;  %v7099_v62 = vld [vmem:[#allocation3 + $0xc4] sm:$0xf]  ;;  %v7735_v36 = vrot.slane %v7733_v47, 4  ;;  %v6720_v50 = vrot.slane %v6718_v55, 5  ;;  %v7323_v26 = vsel %vm14218_vm11, %v7318_v39, %v7322_v9  ;;  %v16090_v19 = vadd.f32 %v10485_v10, %v10397_v60 }
 0x40f   : > { %v12761_v59 = vld [vmem:[#allocation4 + $0x3b0] sm:$0xf]  ;;  %v6711_v61 = vrot.slane %v6709_v33, 4  ;;  %v6714_v31 = vrot.slane %v6712_v22, 5  ;;  %v7901_v25 = vld [vmem:[#allocation3 + $0x18] sm:$0xf]  ;;  %v7734_v33 = vsel %vm14544_vm14, %v12252_v21, %v7733_v47 }
 0x410   : > { %v7633_v13 = vld [vmem:[#allocation3 + $0x20] sm:$0x1]  ;;  %7130 = vst [vmem:[#allocation4 + $0x444] sm:$0xf] %v7098_v44  ;;  %v13565_v20 = vld [vmem:[#allocation10 + $0x1a0] sm:$0xff]  ;;  %v6725_v30 = vor.u32 %v6724_v56, %v6720_v50  ;;  %v6730_v24 = vrot.slane %v6728_v16, 5  ;;  %v12762_v3 = vor.u32 %v13491_v18, %v12761_v59  ;;  %v10310_v16 = vadd.f32 %v16025_v4, %v15712_v2 }
 0x411   : > { %v16084_v34 = vld [vmem:[#allocation3 + $0x24] sm:$0xf]  ;;  %17076 = vst [vmem:[#allocation20_spill] sm:$0xff] %v16086_v41  ;;  %v6715_v28 = vor.u32 %v6714_v31, %v6711_v61  ;;  %v13572_v7 = vld [vmem:[#allocation10 + $0x1d8] sm:$0xff]  ;;  %10810 = vmatpush.bf16.msra.mxu3 %v13565_v20  ;;  %v6842_v9 = vld [vmem:[#allocation3 + $0xb8] sm:$0xf]  ;;  %v10398_v31 = vpop.f32.mrf.mxu2 }
 0x412   : > { %17077 = vst [vmem:[#allocation18_spill] sm:$0xff] %v16090_v19  ;;  %v6841_v39 = vld [vmem:[#allocation3 + $0xb4] sm:$0xe]  ;;  %v6843_v12 = vld [vmem:[#allocation3 + $0xbc] sm:$0x1]  ;;  %v6726_v60 = vrot.slane %v6725_v30, 4  ;;  %10900 = vmatpush.bf16.msra.mxu0 %v13572_v7 }
 0x413   : > { %7131 = vst [vmem:[#allocation4 + $0x468] sm:$0xf] %v7099_v62  ;;  %v13496_v22 = vld [vmem:[#allocation4 + $0x3fc] sm:$0xf]  ;;  %v12799_v55 = vld [vmem:[#allocation4 + $0x41c] sm:$0xf0]  ;;  %10524 = vmatmul.bf16.gmra.mxu3 %v12762_v3 }
 0x414   : > { %7607 = vst [vmem:[#allocation4 + $0x19c] sm:$0xf] %v7323_v26  ;;  %v6716_v44 = vrot.slane %v6715_v28, 4  ;;  %v12250_v61 = vrot.slane %v6841_v39, 9  ;;  %v6999_v56 = vrot.slane %v6842_v9, 5  ;;  %v7002_v62 = vrot.slane %v6843_v12, 5  ;;  %v10487_v12 = vpop.f32.mrf.mxu3 }
 0x415   : > { %7933 = vst [vmem:[#allocation4 + $0x18] sm:$0xf] %v7901_v25  ;;  %v7736_v18 = vrot.slane %v7633_v13, 5  ;;  %v8038_v59 = vshrl.u32 %v16084_v34, 16  ;;  %v6731_v21 = vsel %vm14218_vm11, %v6726_v60, %v6730_v24  ;;  %v13555_v42 = vld [vmem:[#allocation10 + $0x150] sm:$0xff]  ;;  %v13564_v20 = vld [vmem:[#allocation10 + $0x198] sm:$0xff]  ;;  %v12802_v13 = vor.u32 %v13496_v22, %v12799_v55 }
 0x416   : > { %v6721_v47 = vsel %vm14218_vm11, %v6716_v44, %v6720_v50  ;;  %v7000_v26 = vsel %vm14544_vm14, %v12250_v61, %v6999_v56  ;;  %v7001_v10 = vrot.slane %v6999_v56, 4  ;;  %v13571_v2 = vld [vmem:[#allocation10 + $0x1d0] sm:$0xff]  ;;  %7870 = vst [vmem:[#allocation4 + $0x5c] sm:$0xf] %v7734_v33  ;;  %v16103_v25 = vld [vmem:[#allocation3 + $0x58] sm:$0xf]  ;;  %v10399_v50 = vadd.f32 %v10398_v31, %v10310_v16  ;;  %10723 = vmatpush.bf16.msra.mxu2 %v13555_v42 }
 0x417   : > { %6794 = vst [vmem:[#allocation4 + $0x43c] sm:$0xf] %v6721_v47  ;;  %v7737_v28 = vsel %vm14544_vm14, %v7735_v36, %v7736_v18  ;;  %v7970_v30 = vld [vmem:[#allocation3 + $0x2c] sm:$0x1]  ;;  %10811 = vmatpush.bf16.msra.mxu3 %v13564_v20  ;;  %v13554_v7 = vld [vmem:[#allocation10 + $0x148] sm:$0xff]  ;;  %v8041_v3 = vshll.u32 %v16084_v34, 16  ;;  %10901 = vmatpush.bf16.msra.mxu0 %v13571_v2 }
 0x418   : > { %6795 = vst [vmem:[#allocation4 + $0x460] sm:$0xf] %v6731_v21  ;;  %v7003_v24 = vsel %vm14544_vm14, %v7001_v10, %v7002_v62  ;;  %v13563_v39 = vld [vmem:[#allocation10 + $0x190] sm:$0xff]  ;;  %v8047_v9 = vshll.u32 %v15996_v54, 16  ;;  %v12791_v33 = vld [vmem:[#allocation4 + $0x414] sm:$0xf0]  ;;  %v16112_v44 = vadd.f32 %v10487_v12, %v10399_v50  ;;  %v16114_v62 = vpop.f32.mrf.mxu0  ;;  %v16116_v54 = vpop.f32.mrf.mxu1 }
 0x419   : > { %7066 = vst [vmem:[#allocation4 + $0x440] sm:$0xf] %v7000_v26  ;;  %v13570_v22 = vld [vmem:[#allocation10 + $0x1c8] sm:$0xff]  ;;  %v8040_v36 = vrot.slane %v8038_v59, 4  ;;  %v7338_v55 = vshrl.u32 %v16103_v25, 16  ;;  %10618 = vmatmul.bf16.gmra.mxu0 %v12802_v13  ;;  %v8057_v61 = vshll.u32 %v7970_v30, 16 }
 0x41a   : > { %17078 = vst [vmem:[#allocation21_spill] sm:$0xff] %v16112_v44  ;;  %v13411_v60 = vld [vmem:[#allocation4 + $0x150] sm:$0xf0]  ;;  %v8043_v16 = vrot.slane %v8041_v3, 5  ;;  %v8049_v34 = vrot.slane %v8047_v9, 5  ;;  %10724 = vmatpush.bf16.msra.mxu2 %v13554_v7  ;;  %v13553_v59 = vld [vmem:[#allocation10 + $0x140] sm:$0xff]  ;;  %v10313_v9 = vadd.f32 %v16025_v4, %v15752_v57 }
 0x41b   : > { %7067 = vst [vmem:[#allocation4 + $0x464] sm:$0xf] %v7003_v24  ;;  %v13495_v56 = vld [vmem:[#allocation4 + $0x3f4] sm:$0xf]  ;;  %v12445_v31 = vld [vmem:[#allocation4 + $0x130] sm:$0xf]  ;;  %10812 = vmatpush.bf16.msra.mxu3 %v13563_v39  ;;  %10902 = vmatpush.bf16.msra.mxu0 %v13570_v22 }
 0x41c   : > { %7871 = vst [vmem:[#allocation4 + $0x80] sm:$0xf] %v7737_v28  ;;  %v12794_v18 = vor.u32 %v13495_v56, %v12791_v33  ;;  %v13562_v47 = vld [vmem:[#allocation10 + $0x188] sm:$0xff]  ;;  %v16118_v21 = vld [vmem:[#allocation3 + $0x34] sm:$0xf]  ;;  %v12446_v26 = vor.u32 %v13411_v60, %v12445_v31  ;;  %v13569_v10 = vld [vmem:[#allocation10 + $0x1c0] sm:$0xff]  ;;  %v8044_v42 = vor.u32 %v8043_v16, %v8040_v36  ;;  %v8054_v20 = vor.u32 %v16077_v63, %v8049_v34 }
 0x41d   : > { %17079 = vst [vmem:[#allocation23_spill] sm:$0xff] %v16114_v62  ;;  %v7340_v2 = vrot.slane %v7338_v55, 4  ;;  %v7150_v13 = vld [vmem:[#allocation3 + $0x54] sm:$0xf]  ;;  %v7152_v28 = vld [vmem:[#allocation3 + $0x5c] sm:$0x1] }
 0x41e   : > { %10440 = vmatmul.bf16.gmra.mxu2 %v12794_v18  ;;  %v8059_v30 = vrot.slane %v8057_v61, 5  ;;  %10657 = vmatmul.bf16.gmra.mxu1 %v12446_v26  ;;  %v13500_v50 = vld [vmem:[#allocation4 + $0x418] sm:$0xf0]  ;;  %v7325_v24 = vshrl.u32 %v7150_v13, 16  ;;  %v7328_v7 = vshll.u32 %v7150_v13, 16  ;;  %v7334_v39 = vshll.u32 %v16103_v25, 16  ;;  %v10401_v61 = vpop.f32.mrf.mxu2 }
 0x41f   : > { %v7344_v3 = vshll.u32 %v7152_v28, 16  ;;  %v12797_v12 = vld [vmem:[#allocation4 + $0x3f8] sm:$0xf]  ;;  %10725 = vmatpush.bf16.msra.mxu2 %v13553_v59  ;;  %10813 = vmatpush.bf16.msra.mxu3 %v13562_v47  ;;  %v13561_v33 = vld [vmem:[#allocation10 + $0x180] sm:$0xff]  ;;  %v8045_v22 = vrot.slane %v8044_v42, 4  ;;  %v8055_v36 = vrot.slane %v8054_v20, 4  ;;  %v10402_v31 = vadd.f32 %v10401_v61, %v10313_v9 }
 0x420   : > { %v13581_v63 = vld [vmem:[#allocation10 + $0x220] sm:$0xff]  ;;  %v7634_v55 = vld [vmem:[#allocation3 + $0x24] sm:$0xe]  ;;  %v8075_v60 = vshrl.u32 %v16118_v21, 16  ;;  %10903 = vmatpush.bf16.msra.mxu0 %v13569_v10  ;;  %v7327_v56 = vrot.slane %v7325_v24, 4  ;;  %v7330_v16 = vrot.slane %v7328_v7, 5  ;;  %v12798_v20 = vor.u32 %v13500_v50, %v12797_v12  ;;  %v16129_v7 = vpop.f32.mrf.mxu1 }
 0x421   : > { %v7336_v18 = vrot.slane %v7334_v39, 5  ;;  %v7635_v25 = vld [vmem:[#allocation3 + $0x28] sm:$0xf]  ;;  %10988 = vmatpush.bf16.msra.mxu1 %v13581_v63  ;;  %v8050_v57 = vsel %vm14218_vm11, %v8045_v22, %v8049_v34  ;;  %v8060_v59 = vsel %vm14218_vm11, %v8055_v36, %v8059_v30  ;;  %v7903_v47 = vld [vmem:[#allocation3 + $0x24] sm:$0xf]  ;;  %v7346_v10 = vrot.slane %v7344_v3, 5  ;;  %v10490_v39 = vpop.f32.mrf.mxu3  ;;  %v16133_v3 = vpop.f32.mrf.mxu0 }
 0x422   : > { %v7636_v26 = vld [vmem:[#allocation3 + $0x2c] sm:$0x1]  ;;  %v7971_v42 = vld [vmem:[#allocation3 + $0x30] sm:$0xf]  ;;  %v12835_v13 = vld [vmem:[#allocation4 + $0x464] sm:$0xf0]  ;;  %v7331_v28 = vor.u32 %v7330_v16, %v7327_v56  ;;  %v16131_v36 = vadd.f32 %v10490_v39, %v10402_v31 }
 0x423   : > { %v7341_v62 = vor.u32 %v7340_v2, %v7336_v18  ;;  %8431 = vst [vmem:[#allocation4 + $0x64] sm:$0xf] %v8050_v57  ;;  %v7904_v24 = vld [vmem:[#allocation3 + $0x28] sm:$0xf]  ;;  %10814 = vmatpush.bf16.msra.mxu3 %v13561_v33  ;;  %v12253_v9 = vrot.slane %v7634_v55, 9  ;;  %v7740_v34 = vrot.slane %v7635_v25, 5 }
 0x424   : > { %8432 = vst [vmem:[#allocation4 + $0x88] sm:$0xf] %v8060_v59  ;;  %v7973_v63 = vld [vmem:[#allocation3 + $0x38] sm:$0x1]  ;;  %v8062_v22 = vshrl.u32 %v7971_v42, 16  ;;  %v8065_v30 = vshll.u32 %v7971_v42, 16  ;;  %10529 = vmatmul.bf16.gmra.mxu3 %v12798_v20 }
 0x425   : > { %17080 = vst [vmem:[#allocation22_spill] sm:$0xff] %v16131_v36  ;;  %v13505_v61 = vld [vmem:[#allocation4 + $0x444] sm:$0xf]  ;;  %v7332_v50 = vrot.slane %v7331_v28, 4  ;;  %v7342_v12 = vrot.slane %v7341_v62, 4  ;;  %v7743_v2 = vrot.slane %v7636_v26, 5  ;;  %v7741_v33 = vsel %vm14544_vm14, %v12253_v9, %v7740_v34 }
 0x426   : > { %7935 = vst [vmem:[#allocation4 + $0x60] sm:$0xf] %v7903_v47  ;;  %v7742_v56 = vrot.slane %v7740_v34, 4  ;;  %v8064_v55 = vrot.slane %v8062_v22, 4  ;;  %v8067_v16 = vrot.slane %v8065_v30, 5  ;;  %v8077_v25 = vrot.slane %v8075_v60, 4  ;;  %v10403_v34 = vpop.f32.mrf.mxu2 }
 0x427   : > { %17081 = vst [vmem:[#allocation35_spill] sm:$0xff] %v16133_v3  ;;  %v16137_v57 = vld [vmem:[#allocation3 + $0x40] sm:$0xf]  ;;  %v12827_v31 = vld [vmem:[#allocation4 + $0x45c] sm:$0xf0]  ;;  %v7337_v62 = vsel %vm14218_vm11, %v7332_v50, %v7336_v18  ;;  %v7347_v47 = vsel %vm14218_vm11, %v7342_v12, %v7346_v10  ;;  %v8071_v26 = vshll.u32 %v16118_v21, 16  ;;  %v12838_v20 = vor.u32 %v13505_v61, %v12835_v13 }
 0x428   : > { %7936 = vst [vmem:[#allocation4 + $0x84] sm:$0xf] %v7904_v24  ;;  %v13420_v59 = vld [vmem:[#allocation4 + $0x198] sm:$0xf0]  ;;  %v7905_v42 = vld [vmem:[#allocation3 + $0x30] sm:$0xf]  ;;  %v7744_v28 = vsel %vm14544_vm14, %v7742_v56, %v7743_v2  ;;  %v8068_v60 = vor.u32 %v8067_v16, %v8064_v55  ;;  %v10315_v18 = vadd.f32 %v16025_v4, %v15788_v45  ;;  %v16153_v16 = vpop.f32.mrf.mxu1 }
 0x429   : > { %7872 = vst [vmem:[#allocation4 + $0xa4] sm:$0xf] %v7741_v33  ;;  %v7637_v24 = vld [vmem:[#allocation3 + $0x30] sm:$0xe]  ;;  %v7638_v39 = vld [vmem:[#allocation3 + $0x34] sm:$0xf]  ;;  %10623 = vmatmul.bf16.gmra.mxu0 %v12838_v20 }
 0x42a   : > { %7608 = vst [vmem:[#allocation4 + $0x1c0] sm:$0xf] %v7337_v62  ;;  %v16146_v9 = vld [vmem:[#allocation3 + $0x64] sm:$0xf]  ;;  %v12481_v22 = vld [vmem:[#allocation4 + $0x178] sm:$0xf]  ;;  %v10404_v12 = vadd.f32 %v10403_v34, %v10315_v18  ;;  %v10492_v62 = vpop.f32.mrf.mxu3 }
 0x42b   : > { %7609 = vst [vmem:[#allocation4 + $0x1e4] sm:$0xf] %v7347_v47  ;;  %v8073_v10 = vrot.slane %v8071_v26, 5  ;;  %v8081_v30 = vshll.u32 %v7973_v63, 16  ;;  %v7906_v21 = vld [vmem:[#allocation3 + $0x34] sm:$0xf]  ;;  %v12482_v63 = vor.u32 %v13420_v59, %v12481_v22 }
 0x42c   : > { %v16150_v50 = vld [vmem:[#allocation3 + $0x18] sm:$0xe]  ;;  %v13504_v13 = vld [vmem:[#allocation4 + $0x43c] sm:$0xf]  ;;  %7873 = vst [vmem:[#allocation4 + $0xc8] sm:$0xf] %v7744_v28  ;;  %v16157_v28 = vadd.f32 %v10492_v62, %v10404_v12 }
 0x42d   : > { %v8069_v61 = vrot.slane %v8068_v60, 4  ;;  %v8078_v2 = vor.u32 %v8077_v25, %v8073_v10  ;;  %7937 = vst [vmem:[#allocation4 + $0xa8] sm:$0xf] %v7905_v42  ;;  %v7639_v33 = vld [vmem:[#allocation3 + $0x38] sm:$0x1]  ;;  %v12254_v56 = vrot.slane %v7637_v24, 9  ;;  %v12830_v47 = vor.u32 %v13504_v13, %v12827_v31  ;;  %v16168_v13 = vpop.f32.mrf.mxu0 }
 0x42e   : > { %v7747_v55 = vrot.slane %v7638_v39, 5  ;;  %v8099_v45 = vshrl.u32 %v16137_v57, 16  ;;  %7938 = vst [vmem:[#allocation4 + $0xcc] sm:$0xf] %v7906_v21  ;;  %v7974_v20 = vld [vmem:[#allocation3 + $0x3c] sm:$0xf]  ;;  %10662 = vmatmul.bf16.gmra.mxu1 %v12482_v63  ;;  %v10318_v21 = vadd.f32 %v16025_v4, %v15812_v15 }
 0x42f   : > { %v8074_v26 = vsel %vm14218_vm11, %v8069_v61, %v8073_v10  ;;  %17082 = vst [vmem:[#allocation36_spill] sm:$0xff] %v16157_v28  ;;  %v8079_v60 = vrot.slane %v8078_v2, 4  ;;  %v8083_v25 = vrot.slane %v8081_v30, 5  ;;  %v7362_v24 = vshrl.u32 %v16146_v9, 16  ;;  %10445 = vmatmul.bf16.gmra.mxu2 %v12830_v47  ;;  %v7976_v12 = vld [vmem:[#allocation3 + $0x44] sm:$0x1] }
 0x430   : > { %8433 = vst [vmem:[#allocation4 + $0xac] sm:$0xf] %v8074_v26  ;;  %v7748_v42 = vsel %vm14544_vm14, %v12254_v56, %v7747_v55  ;;  %v7749_v39 = vrot.slane %v7747_v55, 4  ;;  %v7750_v18 = vrot.slane %v7639_v33, 5  ;;  %v8086_v31 = vshrl.u32 %v7974_v20, 16  ;;  %v10406_v56 = vpop.f32.mrf.mxu2 }
 0x431   : > { %7874 = vst [vmem:[#allocation4 + $0xec] sm:$0xf] %v7748_v42  ;;  %v8084_v34 = vsel %vm14218_vm11, %v8079_v60, %v8083_v25  ;;  %v8089_v22 = vshll.u32 %v7974_v20, 16  ;;  %v8095_v10 = vshll.u32 %v16137_v57, 16  ;;  %v8101_v30 = vrot.slane %v8099_v45, 4 }
 0x432   : > { %17083 = vst [vmem:[#allocation37_spill] sm:$0xff] %v16168_v13  ;;  %v7751_v61 = vsel %vm14544_vm14, %v7749_v39, %v7750_v18  ;;  %v8088_v2 = vrot.slane %v8086_v31, 4  ;;  %v16172_v33 = vld [vmem:[#allocation3 + $0x4c] sm:$0xf]  ;;  %v13509_v55 = vld [vmem:[#allocation4 + $0x460] sm:$0xf0]  ;;  %v10407_v45 = vadd.f32 %v10406_v56, %v10318_v21  ;;  %v16175_v31 = vpop.f32.mrf.mxu1 }
 0x433   : > { %8434 = vst [vmem:[#allocation4 + $0xd0] sm:$0xf] %v8084_v34  ;;  %v8091_v62 = vrot.slane %v8089_v22, 5  ;;  %v8097_v47 = vrot.slane %v8095_v10, 5  ;;  %v7364_v57 = vrot.slane %v7362_v24, 4  ;;  %v7358_v15 = vshll.u32 %v16146_v9, 16  ;;  %v10495_v22 = vpop.f32.mrf.mxu3 }
 0x434   : > { %7875 = vst [vmem:[#allocation4 + $0x110] sm:$0xf] %v7751_v61  ;;  %v7153_v63 = vld [vmem:[#allocation3 + $0x60] sm:$0xf]  ;;  %v7155_v26 = vld [vmem:[#allocation3 + $0x68] sm:$0x1]  ;;  %v16180_v9 = vadd.f32 %v10495_v22, %v10407_v45 }
 0x435   : > { %v12833_v20 = vld [vmem:[#allocation4 + $0x440] sm:$0xf]  ;;  %v7349_v60 = vshrl.u32 %v7153_v63, 16  ;;  %v7352_v25 = vshll.u32 %v7153_v63, 16  ;;  %v8092_v42 = vor.u32 %v8091_v62, %v8088_v2  ;;  %v8105_v39 = vshll.u32 %v7976_v12, 16 }
 0x436   : > { %v12834_v18 = vor.u32 %v13509_v55, %v12833_v20  ;;  %v7360_v34 = vrot.slane %v7358_v15, 5  ;;  %v7368_v59 = vshll.u32 %v7155_v26, 16  ;;  %v8102_v13 = vor.u32 %v8101_v30, %v8097_v47  ;;  %v16177_v61 = vld [vmem:[#allocation3 + $0x1c] sm:$0xf]  ;;  %v12311_v24 = vld [vmem:[#allocation4 + $0x3c] sm:$0xf0] }
 0x437   : > { %v7351_v10 = vrot.slane %v7349_v60, 4  ;;  %v7354_v21 = vrot.slane %v7352_v25, 5  ;;  %v8123_v56 = vshrl.u32 %v16172_v33, 16  ;;  %17084 = vst [vmem:[#allocation38_spill] sm:$0xff] %v16180_v9  ;;  %v8093_v2 = vrot.slane %v8092_v42, 4 }
 0x438   : > { %10534 = vmatmul.bf16.gmra.mxu3 %v12834_v18  ;;  %v7365_v63 = vor.u32 %v7364_v57, %v7360_v34  ;;  %v7907_v12 = vld [vmem:[#allocation3 + $0x3c] sm:$0xf]  ;;  %v7908_v55 = vld [vmem:[#allocation3 + $0x40] sm:$0xf]  ;;  %v12303_v62 = vld [vmem:[#allocation4 + $0x34] sm:$0xf0]  ;;  %v10408_v57 = vpop.f32.mrf.mxu2 }
 0x439   : > { %v13372_v20 = vld [vmem:[#allocation4 + $0x1c] sm:$0xf]  ;;  %v7355_v15 = vor.u32 %v7354_v21, %v7351_v10  ;;  %v8103_v26 = vrot.slane %v8102_v13, 4  ;;  %v8107_v30 = vrot.slane %v8105_v39, 5  ;;  %7939 = vst [vmem:[#allocation4 + $0xf0] sm:$0xf] %v7907_v12  ;;  %v8098_v25 = vsel %vm14218_vm11, %v8093_v2, %v8097_v47 }
 0x43a   : > { %v12314_v3 = vor.u32 %v13372_v20, %v12311_v24  ;;  %v13429_v28 = vld [vmem:[#allocation4 + $0x1e0] sm:$0xf0]  ;;  %v7366_v36 = vrot.slane %v7365_v63, 4  ;;  %v7370_v60 = vrot.slane %v7368_v59, 5  ;;  %7940 = vst [vmem:[#allocation4 + $0x114] sm:$0xf] %v7908_v55  ;;  %v10320_v24 = vadd.f32 %v16025_v4, %v15856_v1  ;;  %v16191_v59 = vpop.f32.mrf.mxu0 }
 0x43b   : > { %v13371_v42 = vld [vmem:[#allocation4 + $0x14] sm:$0xf]  ;;  %v7356_v18 = vrot.slane %v7355_v15, 4  ;;  %v8108_v22 = vsel %vm14218_vm11, %v8103_v26, %v8107_v30  ;;  %8435 = vst [vmem:[#allocation4 + $0xf4] sm:$0xf] %v8098_v25  ;;  %v8125_v15 = vrot.slane %v8123_v56, 4  ;;  %v10497_v25 = vpop.f32.mrf.mxu3 }
 0x43c   : > { %v7640_v13 = vld [vmem:[#allocation3 + $0x3c] sm:$0xe]  ;;  %v16187_v39 = vld [vmem:[#allocation3 + $0x70] sm:$0xf]  ;;  %17085 = vst [vmem:[#allocation39_spill] sm:$0xff] %v16191_v59  ;;  %10904 = vmatmul.bf16.vlgmr.msra.gmra.mxu0 %v12314_v3  ;;  %v7371_v47 = vsel %vm14218_vm11, %v7366_v36, %v7370_v60  ;;  %v10409_v26 = vadd.f32 %v10408_v57, %v10320_v24  ;;  %v16201_v3 = vpop.f32.mrf.mxu1  ;;  %v12306_v30 = vor.u32 %v13371_v42, %v12303_v62  ;;  %v8119_v57 = vshll.u32 %v16172_v33, 16 }
 0x43d   : > { %8436 = vst [vmem:[#allocation4 + $0x118] sm:$0xf] %v8108_v22  ;;  %v7641_v10 = vld [vmem:[#allocation3 + $0x40] sm:$0xf]  ;;  %v7642_v21 = vld [vmem:[#allocation3 + $0x44] sm:$0x1]  ;;  %v7361_v2 = vsel %vm14218_vm11, %v7356_v18, %v7360_v34 }
 0x43e   : > { %v12517_v63 = vld [vmem:[#allocation4 + $0x1c0] sm:$0xf]  ;;  %7611 = vst [vmem:[#allocation4 + $0x22c] sm:$0xf] %v7371_v47  ;;  %v12255_v12 = vrot.slane %v7640_v13, 9  ;;  %v7754_v55 = vrot.slane %v7641_v10, 5  ;;  %v16205_v45 = vadd.f32 %v10497_v25, %v10409_v26 }
 0x43f   : > { %v16197_v20 = vld [vmem:[#allocation3 + $0x20] sm:$0x1]  ;;  %v16199_v1 = vld [vmem:[#allocation3 + $0x58] sm:$0xf]  ;;  %7610 = vst [vmem:[#allocation4 + $0x208] sm:$0xf] %v7361_v2  ;;  %v12518_v22 = vor.u32 %v13429_v28, %v12517_v63  ;;  %10726 = vmatmul.bf16.vlgmr.msra.gmra.mxu2 %v12306_v30  ;;  %v10323_v63 = vadd.f32 %v16025_v4, %v15896_v52 }
 0x440   : > { %v7757_v36 = vrot.slane %v7642_v21, 5  ;;  %v7977_v60 = vld [vmem:[#allocation3 + $0x48] sm:$0xf]  ;;  %v7755_v34 = vsel %vm14544_vm14, %v12255_v12, %v7754_v55  ;;  %v7756_v18 = vrot.slane %v7754_v55, 4  ;;  %v7979_v13 = vld [vmem:[#allocation3 + $0x50] sm:$0x1]  ;;  %v10411_v30 = vpop.f32.mrf.mxu2 }
 0x441   : > { %v8110_v47 = vshrl.u32 %v7977_v60, 16  ;;  %v7909_v10 = vld [vmem:[#allocation3 + $0x48] sm:$0xf]  ;;  %17086 = vst [vmem:[#allocation40_spill] sm:$0xff] %v16205_v45  ;;  %v8113_v56 = vshll.u32 %v7977_v60, 16  ;;  %v7386_v24 = vshrl.u32 %v16187_v39, 16  ;;  %10667 = vmatmul.bf16.gmra.mxu1 %v12518_v22  ;;  %v10412_v22 = vadd.f32 %v10411_v30, %v10323_v63 }
 0x442   : > { %7876 = vst [vmem:[#allocation4 + $0x134] sm:$0xf] %v7755_v34  ;;  %v7910_v62 = vld [vmem:[#allocation3 + $0x4c] sm:$0xf]  ;;  %v16208_v42 = vld [vmem:[#allocation3 + $0x64] sm:$0xf]  ;;  %v7758_v28 = vsel %vm14544_vm14, %v7756_v18, %v7757_v36 }
 0x443   : > { %v8112_v21 = vrot.slane %v8110_v47, 4  ;;  %7941 = vst [vmem:[#allocation4 + $0x138] sm:$0xf] %v7909_v10  ;;  %v8115_v2 = vrot.slane %v8113_v56, 5  ;;  %v8121_v12 = vrot.slane %v8119_v57, 5  ;;  %v8129_v55 = vshll.u32 %v7979_v13, 16  ;;  %v16219_v57 = vpop.f32.mrf.mxu0 }
 0x444   : > { %7877 = vst [vmem:[#allocation4 + $0x158] sm:$0xf] %v7758_v28  ;;  %v8147_v26 = vshrl.u32 %v16199_v1, 16  ;;  %v13376_v60 = vld [vmem:[#allocation4 + $0x38] sm:$0xf0]  ;;  %v8171_v25 = vshrl.u32 %v16208_v42, 16  ;;  %v16221_v33 = vpop.f32.mrf.mxu1  ;;  %v10500_v44 = vpop.f32.mrf.mxu3 }
 0x445   : > { %7942 = vst [vmem:[#allocation4 + $0x15c] sm:$0xf] %v7910_v62  ;;  %v7156_v36 = vld [vmem:[#allocation3 + $0x6c] sm:$0xf]  ;;  %v7158_v34 = vld [vmem:[#allocation3 + $0x74] sm:$0x1]  ;;  %v8116_v18 = vor.u32 %v8115_v2, %v8112_v21  ;;  %v8126_v47 = vor.u32 %v8125_v15, %v8121_v12 }
 0x446   : > { %v7388_v10 = vrot.slane %v7386_v24, 4  ;;  %v12309_v52 = vld [vmem:[#allocation4 + $0x18] sm:$0xf]  ;;  %v7373_v4 = vshrl.u32 %v7156_v36, 16  ;;  %v7376_v56 = vshll.u32 %v7156_v36, 16  ;;  %v7382_v13 = vshll.u32 %v16187_v39, 16 }
 0x447   : > { %17087 = vst [vmem:[#allocation41_spill] sm:$0xff] %v16219_v57  ;;  %v12310_v28 = vor.u32 %v13376_v60, %v12309_v52  ;;  %v12347_v59 = vld [vmem:[#allocation4 + $0x84] sm:$0xf0]  ;;  %v13580_v62 = vld [vmem:[#allocation10 + $0x218] sm:$0xff]  ;;  %v8117_v45 = vrot.slane %v8116_v18, 4  ;;  %v8127_v9 = vrot.slane %v8126_v47, 4 }
 0x448   : > { %17088 = vst [vmem:[#allocation42_spill] sm:$0xff] %v16221_v33  ;;  %v8131_v63 = vrot.slane %v8129_v55, 5  ;;  %v7375_v30 = vrot.slane %v7373_v4, 4  ;;  %v7378_v41 = vrot.slane %v7376_v56, 5  ;;  %v7384_v21 = vrot.slane %v7382_v13, 5  ;;  %10989 = vmatpush.bf16.msra.mxu1 %v13580_v62 }
 0x449   : > { %v7392_v15 = vshll.u32 %v7158_v34, 16  ;;  %v7643_v24 = vld [vmem:[#allocation3 + $0x48] sm:$0xe]  ;;  %v17089_v2 = vrot.slane %v16177_v61, 5  ;;  %v16227_v39 = vrot.slane %v8147_v26, 4  ;;  %10815 = vmatmul.bf16.vlgmr.msra.gmra.mxu3 %v12310_v28  ;;  %v8122_v60 = vsel %vm14218_vm11, %v8117_v45, %v8121_v12  ;;  %v10413_v45 = vpop.f32.mrf.mxu2 }
 0x44a   : > { %v16229_v57 = vld [vmem:[#allocation3 + $0x7c] sm:$0xf]  ;;  %v8132_v55 = vsel %vm14218_vm11, %v8127_v9, %v8131_v63  ;;  %v7644_v18 = vld [vmem:[#allocation3 + $0x4c] sm:$0xf]  ;;  %v16235_v47 = vld [vmem:[#allocation3 + $0x70] sm:$0xf]  ;;  %v7379_v52 = vor.u32 %v7378_v41, %v7375_v30  ;;  %v7389_v4 = vor.u32 %v7388_v10, %v7384_v21  ;;  %v16242_v10 = vadd.f32 %v10500_v44, %v10412_v22 }
 0x44b   : > { %v16225_v36 = vrot.slane %v17089_v2, 4  ;;  %v13381_v34 = vld [vmem:[#allocation4 + $0x64] sm:$0xf]  ;;  %8437 = vst [vmem:[#allocation4 + $0x13c] sm:$0xf] %v8122_v60  ;;  %v12256_v2 = vrot.slane %v7643_v24, 9 }
 0x44c   : > { %v7645_v56 = vld [vmem:[#allocation3 + $0x50] sm:$0x1]  ;;  %v12339_v26 = vld [vmem:[#allocation4 + $0x7c] sm:$0xf0]  ;;  %v12350_v13 = vor.u32 %v13381_v34, %v12347_v59  ;;  %8438 = vst [vmem:[#allocation4 + $0x160] sm:$0xf] %v8132_v55  ;;  %v16251_v22 = vpop.f32.mrf.mxu1 }
 0x44d   : > { %v7761_v28 = vrot.slane %v7644_v18, 5  ;;  %v16237_v62 = vrot.slane %v8171_v25, 4  ;;  %v13380_v12 = vld [vmem:[#allocation4 + $0x5c] sm:$0xf]  ;;  %v7380_v51 = vrot.slane %v7379_v52, 4  ;;  %v7390_v9 = vrot.slane %v7389_v4, 4 }
 0x44e   : > { %v7394_v63 = vrot.slane %v7392_v15, 5  ;;  %v7980_v19 = vld [vmem:[#allocation3 + $0x54] sm:$0xf]  ;;  %v7410_v33 = vshrl.u32 %v16229_v57, 16  ;;  %v16240_v41 = vld [vmem:[#allocation3 + $0x88] sm:$0xf]  ;;  %10909 = vmatmul.bf16.gmra.mxu0 %v12350_v13  ;;  %v12342_v52 = vor.u32 %v13380_v12, %v12339_v26  ;;  %v16263_v12 = vpop.f32.mrf.mxu0 }
 0x44f   : > { %17090 = vst [vmem:[#allocation43_spill] sm:$0xff] %v16242_v10  ;;  %v12553_v59 = vld [vmem:[#allocation4 + $0x208] sm:$0xf]  ;;  %v13438_v30 = vld [vmem:[#allocation4 + $0x228] sm:$0xf0]  ;;  %v7762_v25 = vsel %vm14544_vm14, %v12256_v2, %v7761_v28  ;;  %v7764_v24 = vrot.slane %v7645_v56, 5  ;;  %v7385_v60 = vsel %vm14218_vm11, %v7380_v51, %v7384_v21 }
 0x450   : > { %v7395_v15 = vsel %vm14218_vm11, %v7390_v9, %v7394_v63  ;;  %v7763_v55 = vrot.slane %v7761_v28, 4  ;;  %7878 = vst [vmem:[#allocation4 + $0x17c] sm:$0xf] %v7762_v25  ;;  %v8134_v18 = vshrl.u32 %v7980_v19, 16  ;;  %v7911_v34 = vld [vmem:[#allocation3 + $0x54] sm:$0xf]  ;;  %v12554_v56 = vor.u32 %v13438_v30, %v12553_v59  ;;  %10731 = vmatmul.bf16.gmra.mxu2 %v12342_v52 }
 0x451   : > { %v8195_v44 = vshrl.u32 %v16235_v47, 16  ;;  %v13385_v4 = vld [vmem:[#allocation4 + $0x80] sm:$0xf0]  ;;  %7612 = vst [vmem:[#allocation4 + $0x250] sm:$0xf] %v7385_v60  ;;  %v8137_v2 = vshll.u32 %v7980_v19, 16 }
 0x452   : > { %v7982_v13 = vld [vmem:[#allocation3 + $0x5c] sm:$0x1]  ;;  %7613 = vst [vmem:[#allocation4 + $0x274] sm:$0xf] %v7395_v15  ;;  %v7765_v51 = vsel %vm14544_vm14, %v7763_v55, %v7764_v24  ;;  %v8136_v21 = vrot.slane %v8134_v18, 4  ;;  %v8143_v28 = vshll.u32 %v16199_v1, 16  ;;  %10672 = vmatmul.bf16.gmra.mxu1 %v12554_v56 }
 0x453   : > { %v7912_v9 = vld [vmem:[#allocation3 + $0x58] sm:$0xf]  ;;  %v7412_v63 = vrot.slane %v7410_v33, 4  ;;  %v16259_v25 = vld [vmem:[%s16972_s4] ss:$0 sm:$0xff]  ;;  %17091 = vst [vmem:[#allocation44_spill] sm:$0xff] %v16263_v12 }
 0x454   : > { %v10325_v26 = vadd.f32 %v16259_v25, %v15908_v49  ;;  %7879 = vst [vmem:[#allocation4 + $0x1a0] sm:$0xf] %v7765_v51  ;;  %v8139_v19 = vrot.slane %v8137_v2, 5  ;;  %v7646_v59 = vld [vmem:[#allocation3 + $0x54] sm:$0xe]  ;;  %v17092_v30 = vrot.slane %v16177_v61, 5  ;;  %v10328_v49 = vadd.f32 %v16259_v25, %v15947_v38  ;;  %v10502_v61 = vpop.f32.mrf.mxu3  ;;  %v10416_v51 = vpop.f32.mrf.mxu2 }
 0x455   : > { %v17093_v1 = vrot.slane %v16150_v50, 9  ;;  %v7434_v24 = vshrl.u32 %v16240_v41, 16  ;;  %v12345_v60 = vld [vmem:[#allocation4 + $0x60] sm:$0xf]  ;;  %v8145_v15 = vrot.slane %v8143_v28, 5  ;;  %v8153_v52 = vshll.u32 %v7982_v13, 16 }
 0x456   : > { %7943 = vst [vmem:[#allocation4 + $0x180] sm:$0xf] %v7911_v34  ;;  %v10414_v55 = vadd.f32 %v10413_v45, %v10325_v26  ;;  %v8140_v18 = vor.u32 %v8139_v19, %v8136_v21  ;;  %v7647_v2 = vld [vmem:[#allocation3 + $0x58] sm:$0xf]  ;;  %v12346_v50 = vor.u32 %v13385_v4, %v12345_v60  ;;  %v10417_v28 = vadd.f32 %v10416_v51, %v10328_v49  ;;  %v7161_v10 = vld [vmem:[#allocation3 + $0x80] sm:$0x1] }
 0x457   : > { %v8560_v33 = vsel %vm14544_vm14, %v17093_v1, %v17092_v30  ;;  %7944 = vst [vmem:[#allocation4 + $0x1a4] sm:$0xf] %v7912_v9  ;;  %v8150_v12 = vor.u32 %v16227_v39, %v8145_v15  ;;  %v12257_v30 = vrot.slane %v7646_v59, 9  ;;  %v7768_v1 = vrot.slane %v7647_v2, 5  ;;  %v7159_v34 = vld [vmem:[#allocation3 + $0x78] sm:$0xf]  ;;  %v16282_v39 = vpop.f32.mrf.mxu1 }
 0x458   : > { %8701 = vst [vmem:[#allocation4 + $0x20] sm:$0xf] %v8560_v33  ;;  %v16275_v56 = vadd.f32 %v10502_v61, %v10414_v55  ;;  %v7406_v38 = vshll.u32 %v16229_v57, 16  ;;  %v8141_v45 = vrot.slane %v8140_v18, 4  ;;  %v7397_v21 = vshrl.u32 %v7159_v34, 16 }
 0x459   : > { %v7400_v13 = vshll.u32 %v7159_v34, 16  ;;  %v7416_v9 = vshll.u32 %v7161_v10, 16  ;;  %v8151_v26 = vrot.slane %v8150_v12, 4  ;;  %v16278_v19 = vld [vmem:[#allocation3 + $0x7c] sm:$0xf]  ;;  %v8155_v49 = vrot.slane %v8153_v52, 5  ;;  %10820 = vmatmul.bf16.gmra.mxu3 %v12346_v50 }
 0x45a   : > { %17094 = vst [vmem:[#allocation45_spill] sm:$0xff] %v16275_v56  ;;  %v16280_v4 = vld [vmem:[#allocation3 + $0x88] sm:$0xf]  ;;  %v7408_v33 = vrot.slane %v7406_v38, 5  ;;  %v8146_v60 = vsel %vm14218_vm11, %v8141_v45, %v8145_v15  ;;  %v7769_v57 = vsel %vm14544_vm14, %v12257_v30, %v7768_v1  ;;  %v7399_v55 = vrot.slane %v7397_v21, 4  ;;  %v16292_v45 = vpop.f32.mrf.mxu0 }
 0x45b   : > { %v12383_v59 = vld [vmem:[#allocation4 + $0xcc] sm:$0xf0]  ;;  %v7402_v18 = vrot.slane %v7400_v13, 5  ;;  %8439 = vst [vmem:[#allocation4 + $0x184] sm:$0xf] %v8146_v60  ;;  %v16288_v12 = vrot.slane %v8195_v44, 4  ;;  %v8156_v15 = vsel %vm14218_vm11, %v8151_v26, %v8155_v49 }
 0x45c   : > { %v7648_v10 = vld [vmem:[#allocation3 + $0x5c] sm:$0x1]  ;;  %v13390_v2 = vld [vmem:[#allocation4 + $0xac] sm:$0xf]  ;;  %v7413_v61 = vor.u32 %v7412_v63, %v7408_v33  ;;  %v7770_v51 = vrot.slane %v7768_v1, 4  ;;  %v7418_v56 = vrot.slane %v7416_v9, 5  ;;  %v10505_v1 = vpop.f32.mrf.mxu3 }
 0x45d   : > { %7880 = vst [vmem:[#allocation4 + $0x1c4] sm:$0xf] %v7769_v57  ;;  %v12386_v34 = vor.u32 %v13390_v2, %v12383_v59  ;;  %v7403_v38 = vor.u32 %v7402_v18, %v7399_v55  ;;  %v7983_v52 = vld [vmem:[#allocation3 + $0x60] sm:$0xf]  ;;  %v7771_v21 = vrot.slane %v7648_v10, 5  ;;  %v16295_v60 = vrot.slane %v7434_v24, 4  ;;  %v10418_v59 = vpop.f32.mrf.mxu2 }
 0x45e   : > { %v7414_v30 = vrot.slane %v7413_v61, 4  ;;  %8440 = vst [vmem:[#allocation4 + $0x1a8] sm:$0xf] %v8156_v15  ;;  %v8158_v13 = vshrl.u32 %v7983_v52, 16  ;;  %v8161_v44 = vshll.u32 %v7983_v52, 16  ;;  %v16300_v26 = vadd.f32 %v10505_v1, %v10417_v28 }
 0x45f   : > { %v12375_v9 = vld [vmem:[#allocation4 + $0xc4] sm:$0xf0]  ;;  %v7404_v57 = vrot.slane %v7403_v38, 4  ;;  %v16298_v55 = vld [vmem:[#allocation3 + $0x94] sm:$0xf]  ;;  %10914 = vmatmul.bf16.gmra.mxu0 %v12386_v34  ;;  %v7772_v24 = vsel %vm14544_vm14, %v7770_v51, %v7771_v21  ;;  %v10550_v61 = vadd.f32 %v15729_v14, %v15804_v32  ;;  %v10638_v34 = vpop.f32.mrf.mxu1  ;;  %v8167_v14 = vshll.u32 %v16208_v42, 16 }
 0x460   : > { %v13389_v49 = vld [vmem:[#allocation4 + $0xa4] sm:$0xf]  ;;  %v13447_v18 = vld [vmem:[#allocation4 + $0x270] sm:$0xf0]  ;;  %v7419_v10 = vsel %vm14218_vm11, %v7414_v30, %v7418_v56  ;;  %v16306_v2 = vld [vmem:[#allocation3 + $0xa0] sm:$0xf]  ;;  %v10330_v32 = vadd.f32 %v16259_v25, %v15966_v23  ;;  %v10333_v23 = vadd.f32 %v16259_v25, %v16010_v48 }
 0x461   : > { %v7409_v38 = vsel %vm14218_vm11, %v7404_v57, %v7408_v33  ;;  %7615 = vst [vmem:[#allocation4 + $0x2bc] sm:$0xf] %v7419_v10  ;;  %v8160_v28 = vrot.slane %v8158_v13, 4  ;;  %v8163_v15 = vrot.slane %v8161_v44, 5  ;;  %v7913_v52 = vld [vmem:[#allocation3 + $0x60] sm:$0xf]  ;;  %v12378_v1 = vor.u32 %v13389_v49, %v12375_v9 }
 0x462   : > { %v12589_v63 = vld [vmem:[#allocation4 + $0x250] sm:$0xf]  ;;  %7614 = vst [vmem:[#allocation4 + $0x298] sm:$0xf] %v7409_v38  ;;  %v16312_v30 = vadd.f32 %v10638_v34, %v10550_v61  ;;  %v13394_v21 = vld [vmem:[#allocation4 + $0xc8] sm:$0xf0] }
 0x463   : > { %v7985_v56 = vld [vmem:[#allocation3 + $0x68] sm:$0x1]  ;;  %v12590_v51 = vor.u32 %v13447_v18, %v12589_v63  ;;  %7881 = vst [vmem:[#allocation4 + $0x1e8] sm:$0xf] %v7772_v24  ;;  %v8164_v50 = vor.u32 %v8163_v15, %v8160_v28  ;;  %10736 = vmatmul.bf16.gmra.mxu2 %v12378_v1  ;;  %v7914_v33 = vld [vmem:[#allocation3 + $0x64] sm:$0xf]  ;;  %v10419_v24 = vadd.f32 %v10418_v59, %v10330_v32  ;;  %v16329_v1 = vpop.f32.mrf.mxu0 }
 0x464   : > { %7945 = vst [vmem:[#allocation4 + $0x1c8] sm:$0xf] %v7913_v52  ;;  %v7650_v13 = vld [vmem:[#allocation3 + $0x64] sm:$0xf]  ;;  %v17095_v44 = vrot.slane %v16197_v20, 5  ;;  %v8169_v49 = vrot.slane %v8167_v14, 5  ;;  %v10507_v38 = vpop.f32.mrf.mxu3 }
 0x465   : > { %10677 = vmatmul.bf16.gmra.mxu1 %v12590_v51  ;;  %v8165_v57 = vrot.slane %v8164_v50, 4  ;;  %v8177_v18 = vshll.u32 %v7985_v56, 16  ;;  %v7649_v42 = vld [vmem:[#allocation3 + $0x60] sm:$0xe]  ;;  %7946 = vst [vmem:[#allocation4 + $0x1ec] sm:$0xf] %v7914_v33  ;;  %v10421_v28 = vpop.f32.mrf.mxu2  ;;  %v16331_v56 = vadd.f32 %v10507_v38, %v10419_v24 }
 0x466   : > { %v8563_v9 = vsel %vm14544_vm14, %v16225_v36, %v17095_v44  ;;  %v12381_v61 = vld [vmem:[#allocation4 + $0xa8] sm:$0xf]  ;;  %v7775_v20 = vrot.slane %v7650_v13, 5  ;;  %v12419_v15 = vld [vmem:[#allocation4 + $0x114] sm:$0xf0]  ;;  %v8174_v50 = vor.u32 %v16237_v62, %v8169_v49  ;;  %17096 = vst [vmem:[#allocation46_spill] sm:$0xff] %v16329_v1  ;;  %v10422_v48 = vadd.f32 %v10421_v28, %v10333_v23 }
 0x467   : > { %v8170_v36 = vsel %vm14218_vm11, %v8165_v57, %v8169_v49  ;;  %8702 = vst [vmem:[#allocation4 + $0x44] sm:$0xf] %v8563_v9  ;;  %v8464_v52 = vld [vmem:[#allocation3 + $0x24] sm:$0xe]  ;;  %v8465_v34 = vld [vmem:[#allocation3 + $0x28] sm:$0xf]  ;;  %v12382_v59 = vor.u32 %v13394_v21, %v12381_v61  ;;  %v16334_v63 = vpop.f32.mrf.mxu1 }
 0x468   : > { %v7162_v51 = vld [vmem:[#allocation3 + $0x84] sm:$0xf]  ;;  %v7164_v14 = vld [vmem:[#allocation3 + $0x8c] sm:$0x1]  ;;  %v12258_v32 = vrot.slane %v7649_v42, 9  ;;  %v7430_v44 = vshll.u32 %v16240_v41, 16  ;;  %v10335_v41 = vadd.f32 %v16259_v25, %v16034_v53 }
 0x469   : > { %v7421_v33 = vshrl.u32 %v7162_v51, 16  ;;  %v7424_v13 = vshll.u32 %v7162_v51, 16  ;;  %v8179_v10 = vrot.slane %v8177_v18, 5  ;;  %v7651_v57 = vld [vmem:[#allocation3 + $0x68] sm:$0x1]  ;;  %v7440_v62 = vshll.u32 %v7164_v14, 16  ;;  %10825 = vmatmul.bf16.gmra.mxu3 %v12382_v59 }
 0x46a   : > { %v13579_v9 = vld [vmem:[#allocation10 + $0x210] sm:$0xff]  ;;  %v8175_v49 = vrot.slane %v8174_v50, 4  ;;  %8441 = vst [vmem:[#allocation4 + $0x1cc] sm:$0xf] %v8170_v36  ;;  %v7776_v24 = vsel %vm14544_vm14, %v12258_v32, %v7775_v20  ;;  %v8566_v23 = vrot.slane %v8465_v34, 5  ;;  %v7432_v42 = vrot.slane %v7430_v44, 5 }
 0x46b   : > { %v13399_v21 = vld [vmem:[#allocation4 + $0xf4] sm:$0xf]  ;;  %v7423_v61 = vrot.slane %v7421_v33, 4  ;;  %v7426_v38 = vrot.slane %v7424_v13, 5  ;;  %v7777_v28 = vrot.slane %v7775_v20, 4  ;;  %10990 = vmatpush.bf16.msra.mxu1 %v13579_v9  ;;  %v12268_v14 = vrot.slane %v8464_v52, 9 }
 0x46c   : > { %v12422_v18 = vor.u32 %v13399_v21, %v12419_v15  ;;  %v8180_v51 = vsel %vm14218_vm11, %v8175_v49, %v8179_v10  ;;  %v7986_v50 = vld [vmem:[#allocation3 + $0x6c] sm:$0xf]  ;;  %v12411_v1 = vld [vmem:[#allocation4 + $0x10c] sm:$0xf0]  ;;  %v7437_v34 = vor.u32 %v16295_v60, %v7432_v42  ;;  %v7778_v33 = vrot.slane %v7651_v57, 5  ;;  %v10510_v9 = vpop.f32.mrf.mxu3 }
 0x46d   : > { %v7915_v36 = vld [vmem:[#allocation3 + $0x6c] sm:$0xf]  ;;  %v7427_v32 = vor.u32 %v7426_v38, %v7423_v61  ;;  %8442 = vst [vmem:[#allocation4 + $0x1f0] sm:$0xf] %v8180_v51  ;;  %v8182_v13 = vshrl.u32 %v7986_v50, 16  ;;  %v7442_v44 = vrot.slane %v7440_v62, 5  ;;  %v8567_v15 = vsel %vm14544_vm14, %v12268_v14, %v8566_v23  ;;  %v10423_v10 = vpop.f32.mrf.mxu2 }
 0x46e   : > { %v8466_v20 = vld [vmem:[#allocation3 + $0x2c] sm:$0x1]  ;;  %7882 = vst [vmem:[#allocation4 + $0x20c] sm:$0xf] %v7776_v24  ;;  %v8185_v53 = vshll.u32 %v7986_v50, 16  ;;  %v8568_v59 = vrot.slane %v8566_v23, 4  ;;  %v7779_v61 = vsel %vm14544_vm14, %v7777_v28, %v7778_v33  ;;  %v16349_v38 = vadd.f32 %v10510_v9, %v10422_v48  ;;  %v16357_v48 = vpop.f32.mrf.mxu0 }
 0x46f   : > { %v13398_v49 = vld [vmem:[#allocation4 + $0xec] sm:$0xf]  ;;  %v7428_v21 = vrot.slane %v7427_v32, 4  ;;  %v7438_v52 = vrot.slane %v7437_v34, 4  ;;  %v8184_v60 = vrot.slane %v8182_v13, 4  ;;  %v10424_v62 = vadd.f32 %v10423_v10, %v10335_v41  ;;  %10919 = vmatmul.bf16.gmra.mxu0 %v12422_v18  ;;  %v10643_v41 = vpop.f32.mrf.mxu1 }
 0x470   : > { %7947 = vst [vmem:[#allocation4 + $0x210] sm:$0xf] %v7915_v36  ;;  %v16347_v57 = vld [vmem:[#allocation3 + $0x94] sm:$0xf]  ;;  %v8187_v51 = vrot.slane %v8185_v53, 5  ;;  %v8569_v23 = vrot.slane %v8466_v20, 5  ;;  %v10555_v50 = vadd.f32 %v15799_v17, %v15863_v27  ;;  %v12414_v18 = vor.u32 %v13398_v49, %v12411_v1 }
 0x471   : > { %v13456_v24 = vld [vmem:[#allocation4 + $0x2b8] sm:$0xf0]  ;;  %7883 = vst [vmem:[#allocation4 + $0x230] sm:$0xf] %v7779_v61  ;;  %v12625_v14 = vld [vmem:[#allocation4 + $0x298] sm:$0xf]  ;;  %v7433_v32 = vsel %vm14218_vm11, %v7428_v21, %v7432_v42  ;;  %v7443_v28 = vsel %vm14218_vm11, %v7438_v52, %v7442_v44 }
 0x472   : > { %v7652_v36 = vld [vmem:[#allocation3 + $0x6c] sm:$0xe]  ;;  %8703 = vst [vmem:[#allocation4 + $0x68] sm:$0xf] %v8567_v15  ;;  %v7988_v34 = vld [vmem:[#allocation3 + $0x74] sm:$0x1]  ;;  %v8188_v33 = vor.u32 %v8187_v51, %v8184_v60  ;;  %v16359_v20 = vadd.f32 %v10643_v41, %v10555_v50  ;;  %v12626_v17 = vor.u32 %v13456_v24, %v12625_v14  ;;  %v8570_v44 = vsel %vm14544_vm14, %v8568_v59, %v8569_v23 }
 0x473   : > { %7616 = vst [vmem:[#allocation4 + $0x2e0] sm:$0xf] %v7433_v32  ;;  %v7916_v13 = vld [vmem:[#allocation3 + $0x70] sm:$0xf]  ;;  %v8191_v27 = vshll.u32 %v16235_v47, 16  ;;  %v17097_v53 = vshrl.u32 %v16278_v19, 16  ;;  %10741 = vmatmul.bf16.gmra.mxu2 %v12414_v18  ;;  %v10338_v59 = vadd.f32 %v16259_v25, %v16063_v0 }
 0x474   : > { %7617 = vst [vmem:[#allocation4 + $0x304] sm:$0xf] %v7443_v28  ;;  %v7653_v42 = vld [vmem:[#allocation3 + $0x70] sm:$0xf]  ;;  %v12259_v1 = vrot.slane %v7652_v36, 9  ;;  %v17098_v10 = vshrl.u32 %v16280_v4, 16  ;;  %v10512_v36 = vpop.f32.mrf.mxu3 }
 0x475   : > { %v16366_v15 = vrot.slane %v17097_v53, 4  ;;  %7948 = vst [vmem:[#allocation4 + $0x234] sm:$0xf] %v7916_v13  ;;  %v7782_v9 = vrot.slane %v7653_v42, 5  ;;  %10682 = vmatmul.bf16.gmra.mxu1 %v12626_v17  ;;  %v8189_v47 = vrot.slane %v8188_v33, 4  ;;  %v8193_v52 = vrot.slane %v8191_v27, 5  ;;  %v10426_v41 = vpop.f32.mrf.mxu2 }
 0x476   : > { %v16370_v49 = vrot.slane %v17098_v10, 4  ;;  %v7654_v61 = vld [vmem:[#allocation3 + $0x74] sm:$0x1]  ;;  %v13403_v60 = vld [vmem:[#allocation4 + $0x110] sm:$0xf0]  ;;  %v8201_v24 = vshll.u32 %v7988_v34, 16  ;;  %v16386_v33 = vadd.f32 %v10512_v36, %v10424_v62  ;;  %v10427_v13 = vadd.f32 %v10426_v41, %v10338_v59 }
 0x477   : > { %v7783_v51 = vsel %vm14544_vm14, %v12259_v1, %v7782_v9  ;;  %v7784_v23 = vrot.slane %v7782_v9, 4  ;;  %8704 = vst [vmem:[#allocation4 + $0x8c] sm:$0xf] %v8570_v44  ;;  %v17099_v50 = vshrl.u32 %v16298_v55, 16  ;;  %v17100_v32 = vshrl.u32 %v16306_v2, 16 }
 0x478   : > { %v12417_v18 = vld [vmem:[#allocation4 + $0xf0] sm:$0xf]  ;;  %v8194_v0 = vsel %vm14218_vm11, %v8189_v47, %v8193_v52  ;;  %v8198_v34 = vor.u32 %v16288_v12, %v8193_v52  ;;  %7884 = vst [vmem:[#allocation4 + $0x254] sm:$0xf] %v7783_v51  ;;  %v7165_v17 = vld [vmem:[#allocation3 + $0x90] sm:$0xf]  ;;  %v16393_v51 = vpop.f32.mrf.mxu0 }
 0x479   : > { %v7460_v14 = vrot.slane %v17099_v50, 4  ;;  %v16381_v28 = vrot.slane %v17100_v32, 4  ;;  %v7167_v27 = vld [vmem:[#allocation3 + $0x98] sm:$0x1]  ;;  %v7454_v42 = vshll.u32 %v16298_v55, 16  ;;  %v7785_v44 = vrot.slane %v7654_v61, 5  ;;  %v16389_v50 = vpop.f32.mrf.mxu1 }
 0x47a   : > { %v12418_v53 = vor.u32 %v13403_v60, %v12417_v18  ;;  %v7445_v1 = vshrl.u32 %v7165_v17, 16  ;;  %v7448_v9 = vshll.u32 %v7165_v17, 16  ;;  %v8199_v10 = vrot.slane %v8198_v34, 4  ;;  %8443 = vst [vmem:[#allocation4 + $0x214] sm:$0xf] %v8194_v0 }
 0x47b   : > { %v7456_v32 = vrot.slane %v7454_v42, 5  ;;  %v7464_v21 = vshll.u32 %v7167_v27, 16  ;;  %v8203_v47 = vrot.slane %v8201_v24, 5  ;;  %v7786_v12 = vsel %vm14544_vm14, %v7784_v23, %v7785_v44  ;;  %v12455_v62 = vld [vmem:[#allocation4 + $0x15c] sm:$0xf0]  ;;  %17101 = vst [vmem:[#allocation47_spill] sm:$0xff] %v16393_v51 }
 0x47c   : > { %v7447_v52 = vrot.slane %v7445_v1, 4  ;;  %v7450_v59 = vrot.slane %v7448_v9, 5  ;;  %7885 = vst [vmem:[#allocation4 + $0x278] sm:$0xf] %v7786_v12  ;;  %10830 = vmatmul.bf16.gmra.mxu3 %v12418_v53  ;;  %v7989_v60 = vld [vmem:[#allocation3 + $0x78] sm:$0xf]  ;;  %v10340_v27 = vadd.f32 %v16259_v25, %v16088_v58  ;;  %v10515_v1 = vpop.f32.mrf.mxu3 }
 0x47d   : > { %v7461_v55 = vor.u32 %v7460_v14, %v7456_v32  ;;  %v8204_v61 = vsel %vm14218_vm11, %v8199_v10, %v8203_v47  ;;  %v7917_v36 = vld [vmem:[#allocation3 + $0x78] sm:$0xf]  ;;  %v16397_v41 = vld [vmem:[#allocation3 + $0x34] sm:$0xf]  ;;  %v8206_v34 = vshrl.u32 %v7989_v60, 16  ;;  %v8209_v17 = vshll.u32 %v7989_v60, 16  ;;  %v10428_v9 = vpop.f32.mrf.mxu2 }
 0x47e   : > { %v17102_v24 = vld [vmem:[#allocation26_spill] sm:$0xff]  ;;  %v7451_v23 = vor.u32 %v7450_v59, %v7447_v52  ;;  %8444 = vst [vmem:[#allocation4 + $0x238] sm:$0xf] %v8204_v61  ;;  %v7466_v44 = vrot.slane %v7464_v21, 5  ;;  %v16404_v52 = vld [vmem:[#allocation3 + $0xac] sm:$0xf]  ;;  %v16407_v61 = vadd.f32 %v10515_v1, %v10427_v13  ;;  %v10429_v58 = vadd.f32 %v10428_v9, %v10340_v27 }
 0x47f   : > { %v10295_v18 = vadd.f32 %v16259_v25, %v17102_v24  ;;  %v13408_v0 = vld [vmem:[#allocation4 + $0x13c] sm:$0xf]  ;;  %v7462_v14 = vrot.slane %v7461_v55, 4  ;;  %7949 = vst [vmem:[#allocation4 + $0x258] sm:$0xf] %v7917_v36  ;;  %v8208_v12 = vrot.slane %v8206_v34, 4  ;;  %v10560_v60 = vadd.f32 %v15871_v35, %v15914_v29 }
 0x480   : > { %v12458_v42 = vor.u32 %v13408_v0, %v12455_v62  ;;  %v8467_v53 = vld [vmem:[#allocation3 + $0x30] sm:$0xe]  ;;  %v7452_v47 = vrot.slane %v7451_v23, 4  ;;  %v8211_v51 = vrot.slane %v8209_v17, 5  ;;  %v8573_v24 = vrot.slane %v16397_v41, 5 }
 0x481   : > { %v12447_v10 = vld [vmem:[#allocation4 + $0x154] sm:$0xf0]  ;;  %v10384_v59 = vadd.f32 %v15923_v5, %v10295_v18  ;;  %v13407_v62 = vld [vmem:[#allocation4 + $0x134] sm:$0xf]  ;;  %v13465_v21 = vld [vmem:[#allocation4 + $0x300] sm:$0xf0]  ;;  %v7467_v55 = vsel %vm14218_vm11, %v7462_v14, %v7466_v44  ;;  %v10648_v13 = vpop.f32.mrf.mxu1 }
 0x482   : > { %10924 = vmatmul.bf16.gmra.mxu0 %v12458_v42  ;;  %v7457_v36 = vsel %vm14218_vm11, %v7452_v47, %v7456_v32  ;;  %7619 = vst [vmem:[#allocation4 + $0x34c] sm:$0xf] %v7467_v55  ;;  %v8212_v41 = vor.u32 %v8211_v51, %v8208_v12  ;;  %v7655_v0 = vld [vmem:[#allocation3 + $0x78] sm:$0xe]  ;;  %v12269_v23 = vrot.slane %v8467_v53, 9  ;;  %v12450_v18 = vor.u32 %v13407_v62, %v12447_v10  ;;  %v16424_v12 = vpop.f32.mrf.mxu0 }
 0x483   : > { %v10473_v5 = vadd.f32 %v15943_v40, %v10384_v59  ;;  %v12661_v34 = vld [vmem:[#allocation4 + $0x2e0] sm:$0xf]  ;;  %7618 = vst [vmem:[#allocation4 + $0x328] sm:$0xf] %v7457_v36  ;;  %v7991_v17 = vld [vmem:[#allocation3 + $0x80] sm:$0x1]  ;;  %v16416_v27 = vadd.f32 %v10648_v13, %v10560_v60 }
 0x484   : > { %v12662_v42 = vor.u32 %v13465_v21, %v12661_v34  ;;  %v8215_v14 = vshll.u32 %v16278_v19, 16  ;;  %v7918_v35 = vld [vmem:[#allocation3 + $0x7c] sm:$0xf]  ;;  %v8574_v32 = vsel %vm14544_vm14, %v12269_v23, %v8573_v24  ;;  %v7506_v51 = vshrl.u32 %v16404_v52, 16  ;;  %10746 = vmatmul.bf16.gmra.mxu2 %v12450_v18  ;;  %v7657_v10 = vld [vmem:[#allocation3 + $0x80] sm:$0x1]  ;;  %v10517_v55 = vpop.f32.mrf.mxu3 }
 0x485   : > { %v7656_v29 = vld [vmem:[#allocation3 + $0x7c] sm:$0xf]  ;;  %v8225_v44 = vshll.u32 %v7991_v17, 16  ;;  %7950 = vst [vmem:[#allocation4 + $0x27c] sm:$0xf] %v7918_v35  ;;  %v12260_v40 = vrot.slane %v7655_v0, 9  ;;  %v10343_v19 = vadd.f32 %v16259_v25, %v16116_v54  ;;  %v10562_v59 = vadd.f32 %v15902_v43, %v10473_v5  ;;  %v10431_v60 = vpop.f32.mrf.mxu2 }
 0x486   : > { %v7789_v53 = vrot.slane %v7656_v29, 5  ;;  %10687 = vmatmul.bf16.gmra.mxu1 %v12662_v42  ;;  %v8213_v1 = vrot.slane %v8212_v41, 4  ;;  %v8217_v9 = vrot.slane %v8215_v14, 5  ;;  %v8469_v47 = vld [vmem:[#allocation3 + $0x38] sm:$0x1]  ;;  %v8575_v54 = vrot.slane %v8573_v24, 4 }
 0x487   : > { %8705 = vst [vmem:[#allocation4 + $0xb0] sm:$0xf] %v8574_v32  ;;  %v13412_v36 = vld [vmem:[#allocation4 + $0x158] sm:$0xf0]  ;;  %v8227_v23 = vrot.slane %v8225_v44, 5  ;;  %v16432_v13 = vadd.f32 %v10517_v55, %v10429_v58  ;;  %v10432_v18 = vadd.f32 %v10431_v60, %v10343_v19  ;;  %v7792_v34 = vrot.slane %v7657_v10, 5 }
 0x488   : > { %v7790_v62 = vsel %vm14544_vm14, %v12260_v40, %v7789_v53  ;;  %v7791_v21 = vrot.slane %v7789_v53, 4  ;;  %v8218_v41 = vsel %vm14218_vm11, %v8213_v1, %v8217_v9  ;;  %v8222_v0 = vor.u32 %v16366_v15, %v8217_v9  ;;  %v7168_v43 = vld [vmem:[#allocation3 + $0x9c] sm:$0xf]  ;;  %v7170_v5 = vld [vmem:[#allocation3 + $0xa4] sm:$0x1] }
 0x489   : > { %7886 = vst [vmem:[#allocation4 + $0x29c] sm:$0xf] %v7790_v62  ;;  %v8576_v17 = vrot.slane %v8469_v47, 5  ;;  %v16434_v42 = vld [vmem:[#allocation3 + $0xb8] sm:$0xf]  ;;  %v7469_v35 = vshrl.u32 %v7168_v43, 16  ;;  %v10650_v15 = vpop.f32.mrf.mxu1 }
 0x48a   : > { %v12453_v14 = vld [vmem:[#allocation4 + $0x138] sm:$0xf]  ;;  %v7472_v29 = vshll.u32 %v7168_v43, 16  ;;  %v7478_v32 = vshll.u32 %v16306_v2, 16  ;;  %v7488_v40 = vshll.u32 %v7170_v5, 16  ;;  %v13578_v44 = vld [vmem:[#allocation10 + $0x208] sm:$0xff]  ;;  %v7793_v24 = vsel %vm14544_vm14, %v7791_v21, %v7792_v34 }
 0x48b   : > { %v12454_v53 = vor.u32 %v13412_v36, %v12453_v14  ;;  %v8223_v1 = vrot.slane %v8222_v0, 4  ;;  %8445 = vst [vmem:[#allocation4 + $0x25c] sm:$0xf] %v8218_v41  ;;  %v7992_v58 = vld [vmem:[#allocation3 + $0x84] sm:$0xf]  ;;  %v16439_v9 = vadd.f32 %v10650_v15, %v10562_v59  ;;  %v7471_v47 = vrot.slane %v7469_v35, 4  ;;  %10991 = vmatpush.bf16.msra.mxu1 %v13578_v44 }
 0x48c   : > { %v12491_v10 = vld [vmem:[#allocation4 + $0x1a4] sm:$0xf0]  ;;  %v7474_v19 = vrot.slane %v7472_v29, 5  ;;  %v7480_v62 = vrot.slane %v7478_v32, 5  ;;  %v17103_v55 = vshrl.u32 %v16347_v57, 16  ;;  %v16445_v2 = vrot.slane %v7506_v51, 4  ;;  %v10520_v15 = vpop.f32.mrf.mxu3 }
 0x48d   : > { %10835 = vmatmul.bf16.gmra.mxu3 %v12454_v53  ;;  %v13417_v36 = vld [vmem:[#allocation4 + $0x184] sm:$0xf]  ;;  %v8228_v41 = vsel %vm14218_vm11, %v8223_v1, %v8227_v23  ;;  %v7919_v21 = vld [vmem:[#allocation3 + $0x84] sm:$0xf]  ;;  %v8577_v59 = vsel %vm14544_vm14, %v8575_v54, %v8576_v17  ;;  %v12483_v0 = vld [vmem:[#allocation4 + $0x19c] sm:$0xf0]  ;;  %v10345_v29 = vadd.f32 %v16259_v25, %v16129_v7  ;;  %v10433_v44 = vpop.f32.mrf.mxu2 }
 0x48e   : > { %v16443_v60 = vrot.slane %v17103_v55, 4  ;;  %v7475_v43 = vor.u32 %v7474_v19, %v7471_v47  ;;  %v7485_v5 = vor.u32 %v16381_v28, %v7480_v62  ;;  %8446 = vst [vmem:[#allocation4 + $0x280] sm:$0xf] %v8228_v41  ;;  %v8230_v34 = vshrl.u32 %v7992_v58, 16  ;;  %v8471_v35 = vld [vmem:[#allocation3 + $0x40] sm:$0xf]  ;;  %v16455_v19 = vpop.f32.mrf.mxu0 }
 0x48f   : > { %v8233_v14 = vshll.u32 %v7992_v58, 16  ;;  %v12494_v32 = vor.u32 %v13417_v36, %v12491_v10  ;;  %v7490_v53 = vrot.slane %v7488_v40, 5  ;;  %7887 = vst [vmem:[#allocation4 + $0x2c0] sm:$0xf] %v7793_v24  ;;  %v8470_v23 = vld [vmem:[#allocation3 + $0x3c] sm:$0xe]  ;;  %v16457_v58 = vadd.f32 %v10520_v15, %v10432_v18 }
 0x490   : > { %v13416_v54 = vld [vmem:[#allocation4 + $0x17c] sm:$0xf]  ;;  %v7476_v17 = vrot.slane %v7475_v43, 4  ;;  %v7486_v1 = vrot.slane %v7485_v5, 4  ;;  %v8232_v47 = vrot.slane %v8230_v34, 4  ;;  %v10434_v55 = vadd.f32 %v10433_v44, %v10345_v29  ;;  %v17104_v41 = vld [vmem:[#allocation33_spill] sm:$0xff] }
 0x491   : > { %v8235_v28 = vrot.slane %v8233_v14, 5  ;;  %7951 = vst [vmem:[#allocation4 + $0x2a0] sm:$0xf] %v7919_v21  ;;  %v10565_v7 = vadd.f32 %v17104_v41, %v15972_v11  ;;  %v13474_v40 = vld [vmem:[#allocation4 + $0x348] sm:$0xf0]  ;;  %v8580_v24 = vrot.slane %v8471_v35, 5  ;;  %v10653_v34 = vpop.f32.mrf.mxu1  ;;  %v12486_v14 = vor.u32 %v13416_v54, %v12483_v0 }
 0x492   : > { %10929 = vmatmul.bf16.gmra.mxu0 %v12494_v32  ;;  %8706 = vst [vmem:[#allocation4 + $0xd4] sm:$0xf] %v8577_v59  ;;  %v12697_v10 = vld [vmem:[#allocation4 + $0x328] sm:$0xf]  ;;  %v16461_v36 = vld [vmem:[#allocation4 + $0x1a0] sm:$0xf0]  ;;  %v7481_v43 = vsel %vm14218_vm11, %v7476_v17, %v7480_v62  ;;  %v7491_v21 = vsel %vm14218_vm11, %v7486_v1, %v7490_v53  ;;  %v10348_v0 = vadd.f32 %v16259_v25, %v16153_v16 }
 0x493   : > { %v8236_v5 = vor.u32 %v8235_v28, %v8232_v47  ;;  %v12270_v18 = vrot.slane %v8470_v23, 9  ;;  %v12489_v29 = vld [vmem:[#allocation4 + $0x180] sm:$0xf]  ;;  %7620 = vst [vmem:[#allocation4 + $0x370] sm:$0xf] %v7481_v43  ;;  %v16467_v15 = vadd.f32 %v10653_v34, %v10565_v7  ;;  %v12698_v59 = vor.u32 %v13474_v40, %v12697_v10  ;;  %v17105_v47 = vld [vmem:[#allocation16_spill] sm:$0xff] }
 0x494   : > { %v7994_v11 = vld [vmem:[#allocation3 + $0x8c] sm:$0x1]  ;;  %v7920_v32 = vld [vmem:[#allocation3 + $0x88] sm:$0xf]  ;;  %7621 = vst [vmem:[#allocation4 + $0x394] sm:$0xf] %v7491_v21  ;;  %10751 = vmatmul.bf16.gmra.mxu2 %v12486_v14  ;;  %v12490_v54 = vor.u32 %v16461_v36, %v12489_v29  ;;  %v10522_v21 = vpop.f32.mrf.mxu3 }
 0x495   : > { %v8239_v35 = vshll.u32 %v16280_v4, 16  ;;  %v8249_v44 = vshll.u32 %v7994_v11, 16  ;;  %v7658_v41 = vld [vmem:[#allocation3 + $0x84] sm:$0xe]  ;;  %7952 = vst [vmem:[#allocation4 + $0x2c4] sm:$0xf] %v7920_v32  ;;  %v8581_v23 = vsel %vm14544_vm14, %v12270_v18, %v8580_v24  ;;  %v10436_v34 = vpop.f32.mrf.mxu2  ;;  %v16480_v36 = vadd.f32 %v10522_v21, %v10434_v55 }
 0x496   : > { %v7659_v62 = vld [vmem:[#allocation3 + $0x88] sm:$0xf]  ;;  %v8472_v53 = vld [vmem:[#allocation3 + $0x44] sm:$0x1]  ;;  %10692 = vmatmul.bf16.gmra.mxu1 %v12698_v59  ;;  %v8237_v17 = vrot.slane %v8236_v5, 4  ;;  %v17106_v28 = vld [vmem:[#allocation34_spill] sm:$0xff]  ;;  %v10437_v5 = vadd.f32 %v10436_v34, %v10348_v0 }
 0x497   : > { %v8241_v1 = vrot.slane %v8239_v35, 5  ;;  %v10567_v4 = vadd.f32 %v17106_v28, %v17105_v47  ;;  %v12261_v7 = vrot.slane %v7658_v41, 9  ;;  %v7796_v40 = vrot.slane %v7659_v62, 5  ;;  %v8474_v43 = vld [vmem:[#allocation3 + $0x4c] sm:$0xf] }
 0x498   : > { %v8582_v10 = vrot.slane %v8580_v24, 4  ;;  %v8251_v16 = vrot.slane %v8249_v44, 5  ;;  %v7660_v11 = vld [vmem:[#allocation3 + $0x8c] sm:$0x1]  ;;  %v8583_v32 = vrot.slane %v8472_v53, 5  ;;  %v7502_v24 = vshll.u32 %v16404_v52, 16  ;;  %v16485_v44 = vpop.f32.mrf.mxu0 }
 0x499   : > { %v8242_v18 = vsel %vm14218_vm11, %v8237_v17, %v8241_v1  ;;  %v8246_v14 = vor.u32 %v16370_v49, %v8241_v1  ;;  %8707 = vst [vmem:[#allocation4 + $0xf8] sm:$0xf] %v8581_v23  ;;  %v12527_v29 = vld [vmem:[#allocation4 + $0x1ec] sm:$0xf0]  ;;  %v7173_v35 = vld [vmem:[#allocation3 + $0xb0] sm:$0x1]  ;;  %v7797_v41 = vsel %vm14544_vm14, %v12261_v7, %v7796_v40  ;;  %v10655_v53 = vpop.f32.mrf.mxu1 }
 0x49a   : > { %v7171_v59 = vld [vmem:[#allocation3 + $0xa8] sm:$0xf]  ;;  %v8587_v49 = vrot.slane %v8474_v43, 5  ;;  %v13426_v23 = vld [vmem:[#allocation4 + $0x1cc] sm:$0xf]  ;;  %v7504_v55 = vrot.slane %v7502_v24, 5  ;;  %v8584_v21 = vsel %vm14544_vm14, %v8582_v10, %v8583_v32  ;;  %v16489_v34 = vadd.f32 %v10655_v53, %v10567_v4 }
 0x49b   : > { %v7493_v62 = vshrl.u32 %v7171_v59, 16  ;;  %v7496_v47 = vshll.u32 %v7171_v59, 16  ;;  %v8247_v17 = vrot.slane %v8246_v14, 4  ;;  %v8473_v28 = vld [vmem:[#allocation3 + $0x48] sm:$0xe]  ;;  %v7512_v1 = vshll.u32 %v7173_v35, 16 }
 0x49c   : > { %8447 = vst [vmem:[#allocation4 + $0x2a4] sm:$0xf] %v8242_v18  ;;  %v7798_v0 = vrot.slane %v7796_v40, 4  ;;  %v8475_v52 = vld [vmem:[#allocation3 + $0x50] sm:$0x1]  ;;  %v7799_v59 = vrot.slane %v7660_v11, 5  ;;  %v10350_v43 = vadd.f32 %v16259_v25, %v16175_v31  ;;  %v7509_v14 = vor.u32 %v16445_v2, %v7504_v55 }
 0x49d   : > { %v7495_v7 = vrot.slane %v7493_v62, 4  ;;  %v7498_v51 = vrot.slane %v7496_v47, 5  ;;  %7888 = vst [vmem:[#allocation4 + $0x2e4] sm:$0xf] %v7797_v41  ;;  %10840 = vmatmul.bf16.gmra.mxu3 %v12490_v54  ;;  %v8252_v18 = vsel %vm14218_vm11, %v8247_v17, %v8251_v16  ;;  %v7995_v40 = vld [vmem:[#allocation3 + $0x90] sm:$0xf]  ;;  %v12530_v32 = vor.u32 %v13426_v23, %v12527_v29  ;;  %v10525_v54 = vpop.f32.mrf.mxu3  ;;  %v10438_v16 = vpop.f32.mrf.mxu2 }
 0x49e   : > { %8708 = vst [vmem:[#allocation4 + $0x11c] sm:$0xf] %v8584_v21  ;;  %v12271_v35 = vrot.slane %v8473_v28, 9  ;;  %v12519_v10 = vld [vmem:[#allocation4 + $0x1e4] sm:$0xf0]  ;;  %v7800_v11 = vsel %vm14544_vm14, %v7798_v0, %v7799_v59  ;;  %v8254_v24 = vshrl.u32 %v7995_v40, 16  ;;  %v10439_v29 = vadd.f32 %v10438_v16, %v10350_v43 }
 0x49f   : > { %v7499_v4 = vor.u32 %v7498_v51, %v7495_v7  ;;  %8448 = vst [vmem:[#allocation4 + $0x2c8] sm:$0xf] %v8252_v18  ;;  %v7510_v41 = vrot.slane %v7509_v14, 4  ;;  %v7514_v62 = vrot.slane %v7512_v1, 5  ;;  %v8257_v31 = vshll.u32 %v7995_v40, 16  ;;  %v17107_v7 = vld [vmem:[#allocation15_spill] sm:$0xff] }
 0x4a0   : > { %7889 = vst [vmem:[#allocation4 + $0x308] sm:$0xf] %v7800_v11  ;;  %v8588_v2 = vsel %vm14544_vm14, %v12271_v35, %v8587_v49  ;;  %v8256_v17 = vrot.slane %v8254_v24, 4  ;;  %v8589_v28 = vrot.slane %v8587_v49, 4  ;;  %v8590_v53 = vrot.slane %v8475_v52, 5 }
 0x4a1   : > { %v7500_v47 = vrot.slane %v7499_v4, 4  ;;  %8709 = vst [vmem:[#allocation4 + $0x140] sm:$0xf] %v8588_v2  ;;  %v16500_v51 = vadd.f32 %v10525_v54, %v10437_v5  ;;  %v13425_v23 = vld [vmem:[#allocation4 + $0x1c4] sm:$0xf]  ;;  %v7515_v1 = vsel %vm14218_vm11, %v7510_v41, %v7514_v62  ;;  %v10570_v59 = vadd.f32 %v17107_v7, %v16040_v6  ;;  %v10658_v43 = vpop.f32.mrf.mxu1 }
 0x4a2   : > { %10934 = vmatmul.bf16.gmra.mxu0 %v12530_v32  ;;  %v13483_v0 = vld [vmem:[#allocation4 + $0x390] sm:$0xf0]  ;;  %v8476_v21 = vld [vmem:[#allocation3 + $0x54] sm:$0xe]  ;;  %7623 = vst [vmem:[#allocation4 + $0x3dc] sm:$0xf] %v7515_v1  ;;  %v8591_v5 = vsel %vm14544_vm14, %v8589_v28, %v8590_v53  ;;  %v12522_v18 = vor.u32 %v13425_v23, %v12519_v10 }
 0x4a3   : > { %v7505_v14 = vsel %vm14218_vm11, %v7500_v47, %v7504_v55  ;;  %v8259_v49 = vrot.slane %v8257_v31, 5  ;;  %v8477_v52 = vld [vmem:[#allocation3 + $0x58] sm:$0xf]  ;;  %v12733_v40 = vld [vmem:[#allocation4 + $0x370] sm:$0xf]  ;;  %v16510_v32 = vadd.f32 %v10658_v43, %v10570_v59  ;;  %v8263_v6 = vshll.u32 %v16347_v57, 16  ;;  %v16513_v55 = vpop.f32.mrf.mxu0 }
 0x4a4   : > { %7622 = vst [vmem:[#allocation4 + $0x3b8] sm:$0xf] %v7505_v14  ;;  %v8478_v35 = vld [vmem:[#allocation3 + $0x5c] sm:$0x1]  ;;  %v12734_v4 = vor.u32 %v13483_v0, %v12733_v40  ;;  %v7997_v11 = vld [vmem:[#allocation3 + $0x98] sm:$0x1]  ;;  %10756 = vmatmul.bf16.gmra.mxu2 %v12522_v18  ;;  %v10353_v31 = vadd.f32 %v16259_v25, %v16201_v3 }
 0x4a5   : > { %17108 = vst [vmem:[#allocation26_spill] sm:$0xff] %v16510_v32  ;;  %v8260_v24 = vor.u32 %v8259_v49, %v8256_v17  ;;  %v12272_v41 = vrot.slane %v8476_v21, 9  ;;  %v8594_v62 = vrot.slane %v8477_v52, 5  ;;  %v8265_v2 = vrot.slane %v8263_v6, 5  ;;  %v10527_v53 = vpop.f32.mrf.mxu3  ;;  %v10441_v23 = vpop.f32.mrf.mxu2  ;;  %v13430_v0 = vld [vmem:[#allocation4 + $0x1e8] sm:$0xf0] }
 0x4a6   : > { %8710 = vst [vmem:[#allocation4 + $0x164] sm:$0xf] %v8591_v5  ;;  %10697 = vmatmul.bf16.gmra.mxu1 %v12734_v4  ;;  %v8273_v54 = vshll.u32 %v7997_v11, 16  ;;  %v8597_v17 = vrot.slane %v8478_v35, 5  ;;  %v17109_v57 = vshrl.u32 %v16434_v42, 16  ;;  %v16524_v25 = vadd.f32 %v10527_v53, %v10439_v29  ;;  %v17110_v5 = vld [vmem:[#allocation17_spill] sm:$0xff] }
 0x4a7   : > { %v8261_v10 = vrot.slane %v8260_v24, 4  ;;  %v8595_v16 = vsel %vm14544_vm14, %v12272_v41, %v8594_v62  ;;  %v8596_v47 = vrot.slane %v8594_v62, 4  ;;  %v8270_v3 = vor.u32 %v16443_v60, %v8265_v2  ;;  %v12525_v7 = vld [vmem:[#allocation4 + $0x1c8] sm:$0xf]  ;;  %v7174_v59 = vld [vmem:[#allocation3 + $0xb4] sm:$0xf] }
 0x4a8   : > { %v7532_v28 = vrot.slane %v17109_v57, 4  ;;  %8711 = vst [vmem:[#allocation4 + $0x188] sm:$0xf] %v8595_v16  ;;  %v10442_v21 = vadd.f32 %v10441_v23, %v10353_v31  ;;  %v7176_v14 = vld [vmem:[#allocation3 + $0xbc] sm:$0x1]  ;;  %v10572_v52 = vadd.f32 %v17110_v5, %v16072_v37  ;;  %v7517_v18 = vshrl.u32 %v7174_v59, 16 }
 0x4a9   : > { %v8266_v1 = vsel %vm14218_vm11, %v8261_v10, %v8265_v2  ;;  %v8598_v49 = vsel %vm14544_vm14, %v8596_v47, %v8597_v17  ;;  %v12563_v43 = vld [vmem:[#allocation4 + $0x234] sm:$0xf0]  ;;  %v7520_v40 = vshll.u32 %v7174_v59, 16  ;;  %v7526_v35 = vshll.u32 %v16434_v42, 16  ;;  %v8479_v4 = vld [vmem:[#allocation3 + $0x60] sm:$0xe]  ;;  %v10660_v11 = vpop.f32.mrf.mxu1 }
 0x4aa   : > { %v12526_v60 = vor.u32 %v13430_v0, %v12525_v7  ;;  %v7536_v29 = vshll.u32 %v7176_v14, 16  ;;  %v13577_v24 = vld [vmem:[#allocation10 + $0x200] sm:$0xff]  ;;  %v8271_v6 = vrot.slane %v8270_v3, 4  ;;  %v8275_v41 = vrot.slane %v8273_v54, 5  ;;  %8449 = vst [vmem:[#allocation4 + $0x2ec] sm:$0xf] %v8266_v1 }
 0x4ab   : > { %v16531_v62 = vadd.f32 %v10660_v11, %v10572_v52  ;;  %v7519_v31 = vrot.slane %v7517_v18, 4  ;;  %v7522_v10 = vrot.slane %v7520_v40, 5  ;;  %v7528_v2 = vrot.slane %v7526_v35, 5  ;;  %8712 = vst [vmem:[#allocation4 + $0x1ac] sm:$0xf] %v8598_v49  ;;  %10992 = vmatpush.bf16.msra.mxu1 %v13577_v24  ;;  %v17112_v0 = vld [vmem:[#allocation42_spill] sm:$0xff]  ;;  %v16542_v3 = vpop.f32.mrf.mxu0 }
 0x4ac   : > { %v8276_v37 = vsel %vm14218_vm11, %v8271_v6, %v8275_v41  ;;  %v8480_v42 = vld [vmem:[#allocation3 + $0x64] sm:$0xf]  ;;  %v8481_v16 = vld [vmem:[#allocation3 + $0x68] sm:$0x1]  ;;  %v13435_v47 = vld [vmem:[#allocation4 + $0x214] sm:$0xf] }
 0x4ad   : > { %17111 = vst [vmem:[#allocation33_spill] sm:$0xff] %v16531_v62  ;;  %10845 = vmatmul.bf16.gmra.mxu3 %v12526_v60  ;;  %v7523_v17 = vor.u32 %v7522_v10, %v7519_v31  ;;  %v7533_v57 = vor.u32 %v7532_v28, %v7528_v2  ;;  %v12273_v53 = vrot.slane %v8479_v4, 9  ;;  %v8601_v54 = vrot.slane %v8480_v42, 5  ;;  %v16538_v23 = vld [vmem:[%s16972_s4] ss:$0 sm:$0xff]  ;;  %v10530_v49 = vpop.f32.mrf.mxu3  ;;  %v10443_v5 = vpop.f32.mrf.mxu2  ;;  %v17113_v6 = vld [vmem:[#allocation18_spill] sm:$0xff] }
 0x4ae   : > { %8450 = vst [vmem:[#allocation4 + $0x310] sm:$0xf] %v8276_v37  ;;  %v10355_v1 = vadd.f32 %v16538_v23, %v17112_v0  ;;  %v12566_v7 = vor.u32 %v13435_v47, %v12563_v43  ;;  %v7538_v59 = vrot.slane %v7536_v29, 5  ;;  %v8604_v14 = vrot.slane %v8481_v16, 5  ;;  %v12555_v52 = vld [vmem:[#allocation4 + $0x22c] sm:$0xf0] }
 0x4af   : > { %v7524_v28 = vrot.slane %v7523_v17, 4  ;;  %v7534_v18 = vrot.slane %v7533_v57, 4  ;;  %v8602_v40 = vsel %vm14544_vm14, %v12273_v53, %v8601_v54  ;;  %v8603_v35 = vrot.slane %v8601_v54, 4  ;;  %v13492_v11 = vld [vmem:[#allocation4 + $0x3d8] sm:$0xf0]  ;;  %v17114_v43 = vld [vmem:[#allocation19_spill] sm:$0xff] }
 0x4b0   : > { %v16546_v4 = vadd.f32 %v10530_v49, %v10442_v21  ;;  %v10444_v60 = vadd.f32 %v10443_v5, %v10355_v1  ;;  %8713 = vst [vmem:[#allocation4 + $0x1d0] sm:$0xf] %v8602_v40  ;;  %v7178_v24 = vld [vmem:[#allocation3 + $0xc4] sm:$0xf]  ;;  %v10575_v29 = vadd.f32 %v17114_v43, %v17113_v6  ;;  %v12769_v16 = vld [vmem:[#allocation4 + $0x3b8] sm:$0xf] }
 0x4b1   : > { %v13434_v41 = vld [vmem:[#allocation4 + $0x20c] sm:$0xf]  ;;  %v7529_v31 = vsel %vm14218_vm11, %v7524_v28, %v7528_v2  ;;  %v7539_v10 = vsel %vm14218_vm11, %v7534_v18, %v7538_v59  ;;  %v8605_v37 = vsel %vm14544_vm14, %v8603_v35, %v8604_v14  ;;  %v10663_v21 = vpop.f32.mrf.mxu1  ;;  %v12770_v17 = vor.u32 %v13492_v11, %v12769_v16  ;;  %v13439_v0 = vld [vmem:[#allocation4 + $0x230] sm:$0xf0]  ;;  %v7177_v49 = vld [vmem:[#allocation3 + $0xc0] sm:$0xf] }
 0x4b2   : > { %10939 = vmatmul.bf16.gmra.mxu0 %v12566_v7  ;;  %v12558_v42 = vor.u32 %v13434_v41, %v12555_v52  ;;  %7624 = vst [vmem:[#allocation4 + $0x400] sm:$0xf] %v7529_v31  ;;  %v16556_v47 = vadd.f32 %v10663_v21, %v10575_v29  ;;  %v7554_v57 = vshrl.u32 %v7178_v24, 16  ;;  %v10358_v2 = vadd.f32 %v16538_v23, %v16251_v22  ;;  %v7179_v5 = vld [vmem:[#allocation3 + $0xc8] sm:$0x1]  ;;  %v17117_v40 = vld [vmem:[#allocation20_spill] sm:$0xff] }
 0x4b3   : > { %7625 = vst [vmem:[#allocation4 + $0x424] sm:$0xf] %v7539_v10  ;;  %v16560_v7 = vpop.f32.mrf.mxu0  ;;  %v7550_v52 = vshll.u32 %v7178_v24, 16  ;;  %v12561_v28 = vld [vmem:[#allocation4 + $0x210] sm:$0xf]  ;;  %v7541_v11 = vshrl.u32 %v7177_v49, 16 }
 0x4b4   : > { %17115 = vst [vmem:[#allocation16_spill] sm:$0xff] %v16556_v47  ;;  %10761 = vmatmul.bf16.gmra.mxu2 %v12558_v42  ;;  %v7556_v1 = vrot.slane %v7554_v57, 4  ;;  %v17116_v18 = vld [vmem:[#allocation21_spill] sm:$0xff]  ;;  %v7544_v6 = vshll.u32 %v7177_v49, 16  ;;  %v12562_v43 = vor.u32 %v13439_v0, %v12561_v28  ;;  %v7560_v41 = vshll.u32 %v7179_v5, 16 }
 0x4b5   : > { %8714 = vst [vmem:[#allocation4 + $0x1f4] sm:$0xf] %v8605_v37  ;;  %v10532_v53 = vpop.f32.mrf.mxu3  ;;  %v10446_v54 = vpop.f32.mrf.mxu2  ;;  %v10577_v35 = vadd.f32 %v17117_v40, %v17116_v18  ;;  %v7552_v29 = vrot.slane %v7550_v52, 5  ;;  %v12599_v10 = vld [vmem:[#allocation4 + $0x27c] sm:$0xf0]  ;;  %v7543_v37 = vrot.slane %v7541_v11, 4 }
 0x4b6   : > { %10702 = vmatmul.bf16.gmra.mxu1 %v12770_v17  ;;  %v16562_v59 = vadd.f32 %v10532_v53, %v10444_v60  ;;  %v10447_v14 = vadd.f32 %v10446_v54, %v10358_v2  ;;  %v7546_v60 = vrot.slane %v7544_v6, 5  ;;  %v8482_v21 = vld [vmem:[#allocation3 + $0x6c] sm:$0xe]  ;;  %v8483_v16 = vld [vmem:[#allocation3 + $0x70] sm:$0xf]  ;;  %v10360_v17 = vadd.f32 %v16538_v23, %v16282_v39 }
 0x4b7   : > { %v7557_v42 = vor.u32 %v7556_v1, %v7552_v29  ;;  %v8484_v24 = vld [vmem:[#allocation3 + $0x74] sm:$0x1]  ;;  %v8608_v53 = vrot.slane %v8483_v16, 5  ;;  %v7562_v49 = vrot.slane %v7560_v41, 5  ;;  %v12274_v5 = vrot.slane %v8482_v21, 9  ;;  %v17120_v41 = vld [vmem:[#allocation23_spill] sm:$0xff] }
 0x4b8   : > { %v13444_v57 = vld [vmem:[#allocation4 + $0x25c] sm:$0xf]  ;;  %v7547_v2 = vor.u32 %v7546_v60, %v7543_v37  ;;  %v12591_v18 = vld [vmem:[#allocation4 + $0x274] sm:$0xf0]  ;;  %v8611_v11 = vrot.slane %v8484_v24, 5 }
 0x4b9   : > { %v10665_v22 = vpop.f32.mrf.mxu1  ;;  %v12602_v54 = vor.u32 %v13444_v57, %v12599_v10  ;;  %v7558_v0 = vrot.slane %v7557_v42, 4  ;;  %v17119_v10 = vld [vmem:[#allocation22_spill] sm:$0xff]  ;;  %v13443_v60 = vld [vmem:[#allocation4 + $0x254] sm:$0xf]  ;;  %v7924_v47 = vld [vmem:[#allocation3 + $0xa0] sm:$0xf] }
 0x4ba   : > { %v16566_v31 = vadd.f32 %v10665_v22, %v10577_v35  ;;  %v7548_v40 = vrot.slane %v7547_v2, 4  ;;  %v8610_v35 = vrot.slane %v8608_v53, 4  ;;  %v8609_v22 = vsel %vm14544_vm14, %v12274_v5, %v8608_v53  ;;  %v17122_v53 = vld [vmem:[#allocation24_spill] sm:$0xff]  ;;  %7956 = vst [vmem:[#allocation4 + $0x354] sm:$0xf] %v7924_v47 }
 0x4bb   : > { %v7563_v39 = vsel %vm14218_vm11, %v7558_v0, %v7562_v49  ;;  %v10580_v37 = vadd.f32 %v17120_v41, %v17119_v10  ;;  %v16582_v42 = vpop.f32.mrf.mxu0  ;;  %v12594_v24 = vor.u32 %v13443_v60, %v12591_v18  ;;  %8715 = vst [vmem:[#allocation4 + $0x218] sm:$0xf] %v8609_v22  ;;  %v17125_v22 = vld [vmem:[#allocation36_spill] sm:$0xff]  ;;  %v17126_v10 = vld [vmem:[#allocation35_spill] sm:$0xff] }
 0x4bc   : > { %17118 = vst [vmem:[#allocation34_spill] sm:$0xff] %v16566_v31  ;;  %v7553_v21 = vsel %vm14218_vm11, %v7548_v40, %v7552_v29  ;;  %v17123_v29 = vld [vmem:[#allocation28_spill] sm:$0xff]  ;;  %v10582_v41 = vadd.f32 %v17126_v10, %v17125_v22  ;;  %v13431_v46 = vld [vmem:[#allocation4 + $0x1f0] sm:$0xf0] }
 0x4bd   : > { %10850 = vmatmul.bf16.gmra.mxu3 %v12562_v43  ;;  %v10535_v52 = vpop.f32.mrf.mxu3  ;;  %v10448_v28 = vpop.f32.mrf.mxu2  ;;  %v13501_v43 = vld [vmem:[#allocation4 + $0x420] sm:$0xf0]  ;;  %7627 = vst [vmem:[#allocation4 + $0x46c] sm:$0xf] %v7563_v39  ;;  %v12597_v39 = vld [vmem:[#allocation4 + $0x258] sm:$0xf] }
 0x4be   : > { %v16570_v6 = vadd.f32 %v10535_v52, %v10447_v14  ;;  %v10449_v1 = vadd.f32 %v10448_v28, %v10360_v17  ;;  %v8612_v14 = vsel %vm14544_vm14, %v8610_v35, %v8611_v11  ;;  %v12805_v17 = vld [vmem:[#allocation4 + $0x400] sm:$0xf]  ;;  %7626 = vst [vmem:[#allocation4 + $0x448] sm:$0xf] %v7553_v21  ;;  %v13448_v52 = vld [vmem:[#allocation4 + $0x278] sm:$0xf0] }
 0x4bf   : > { %v12806_v2 = vor.u32 %v13501_v43, %v12805_v17  ;;  %8716 = vst [vmem:[#allocation4 + $0x23c] sm:$0xf] %v8612_v14  ;;  %v17124_v28 = vld [vmem:[#allocation29_spill] sm:$0xff]  ;;  %v7921_v11 = vld [vmem:[#allocation3 + $0x90] sm:$0xf] }
 0x4c0   : > { %v7922_v43 = vld [vmem:[#allocation3 + $0x94] sm:$0xf]  ;;  %7953 = vst [vmem:[#allocation4 + $0x2e8] sm:$0xf] %v7921_v11  ;;  %v8485_v21 = vld [vmem:[#allocation3 + $0x78] sm:$0xe] }
 0x4c1   : > { %v10668_v16 = vpop.f32.mrf.mxu1  ;;  %7954 = vst [vmem:[#allocation4 + $0x30c] sm:$0xf] %v7922_v43  ;;  %v8000_v31 = vld [vmem:[#allocation3 + $0xa4] sm:$0x1] }
 0x4c2   : > { %10944 = vmatmul.bf16.gmra.mxu0 %v12602_v54  ;;  %v16584_v57 = vadd.f32 %v10668_v16, %v10580_v37  ;;  %v10285_v54 = vadd.f32 %v16538_v23, %v17122_v53  ;;  %v12598_v37 = vor.u32 %v13448_v52, %v12597_v39  ;;  %v12635_v16 = vld [vmem:[#allocation4 + $0x2c4] sm:$0xf0]  ;;  %v13453_v53 = vld [vmem:[#allocation4 + $0x2a4] sm:$0xf] }
 0x4c4   : > { %17121 = vst [vmem:[#allocation15_spill] sm:$0xff] %v16584_v57  ;;  %10766 = vmatmul.bf16.gmra.mxu2 %v12594_v24  ;;  %v10374_v0 = vadd.f32 %v17123_v29, %v10285_v54  ;;  %v17128_v24 = vld [vmem:[#allocation27_spill] sm:$0xff]  ;;  %v12275_v54 = vrot.slane %v8485_v21, 9 }
 0x4c5   : > { %v10537_v49 = vpop.f32.mrf.mxu3  ;;  %v10727_v5 = vpop.f32.mrf.mxu2 }
 0x4c6   : > { %10707 = vmatmul.bf16.gmra.mxu1 %v12806_v2  ;;  %v10463_v40 = vadd.f32 %v17124_v28, %v10374_v0  ;;  %v16590_v18 = vadd.f32 %v10537_v49, %v10449_v1  ;;  %v10728_v35 = vadd.f32 %v10727_v5, %v16312_v30  ;;  %v16598_v1 = vpop.f32.mrf.mxu0  ;;  %v8486_v30 = vld [vmem:[#allocation3 + $0x7c] sm:$0xf]  ;;  %v8487_v2 = vld [vmem:[#allocation3 + $0x80] sm:$0x1]  ;;  %v12638_v49 = vor.u32 %v13453_v53, %v12635_v16  ;;  %v12627_v28 = vld [vmem:[#allocation4 + $0x2bc] sm:$0xf0] }
 0x4c7   : > { %v8615_v29 = vrot.slane %v8486_v30, 5  ;;  %v8618_v39 = vrot.slane %v8487_v2, 5  ;;  %v12841_v30 = vld [vmem:[#allocation4 + $0x448] sm:$0xf] }
 0x4c8   : > { %v10552_v17 = vadd.f32 %v17128_v24, %v10463_v40  ;;  %v7999_v40 = vld [vmem:[#allocation3 + $0xa0] sm:$0xf] }
 0x4c9   : > { %v10670_v60 = vpop.f32.mrf.mxu1  ;;  %v8616_v11 = vsel %vm14544_vm14, %v12275_v54, %v8615_v29  ;;  %v8617_v43 = vrot.slane %v8615_v29, 4  ;;  %v8291_v53 = vshrl.u32 %v7999_v40, 16  ;;  %v17132_v54 = vld [vmem:[#allocation25_spill] sm:$0xff] }
 0x4ca   : > { %v16595_v14 = vadd.f32 %v10670_v60, %v10582_v41  ;;  %v10641_v0 = vadd.f32 %v16334_v63, %v10552_v17  ;;  %v13510_v41 = vld [vmem:[#allocation4 + $0x468] sm:$0xf0]  ;;  %8717 = vst [vmem:[#allocation4 + $0x260] sm:$0xf] %v8616_v11  ;;  %v17130_v60 = vld [vmem:[#allocation37_spill] sm:$0xff]  ;;  %v10290_v29 = vadd.f32 %v16538_v23, %v17132_v54 }
 0x4cb   : > { %v13452_v63 = vld [vmem:[#allocation4 + $0x29c] sm:$0xf]  ;;  %v8619_v16 = vsel %vm14544_vm14, %v8617_v43, %v8618_v39  ;;  %v12633_v39 = vld [vmem:[#allocation4 + $0x2a0] sm:$0xf] }
 0x4cc   : > { %17127 = vst [vmem:[#allocation17_spill] sm:$0xff] %v16595_v14  ;;  %v12630_v17 = vor.u32 %v13452_v63, %v12627_v28  ;;  %v13457_v28 = vld [vmem:[#allocation4 + $0x2c0] sm:$0xf0] }
 0x4cd   : > { %10855 = vmatmul.bf16.gmra.mxu3 %v12598_v37  ;;  %v10816_v5 = vpop.f32.mrf.mxu3  ;;  %v10729_v52 = vpop.f32.mrf.mxu2  ;;  %v17129_v37 = vld [vmem:[#allocation38_spill] sm:$0xff]  ;;  %8718 = vst [vmem:[#allocation4 + $0x284] sm:$0xf] %v8619_v16  ;;  %v17136_v16 = vld [vmem:[#allocation39_spill] sm:$0xff]  ;;  %v12634_v14 = vor.u32 %v13457_v28, %v12633_v39  ;;  %v8297_v28 = vshll.u32 %v8000_v31, 16 }
 0x4ce   : > { %v16603_v22 = vadd.f32 %v10816_v5, %v10728_v35  ;;  %v10730_v10 = vadd.f32 %v10729_v52, %v10641_v0  ;;  %v10585_v21 = vadd.f32 %v17130_v60, %v17129_v37  ;;  %v12842_v35 = vor.u32 %v13510_v41, %v12841_v30  ;;  %v17133_v0 = vld [vmem:[#allocation31_spill] sm:$0xff]  ;;  %v16614_v5 = vpop.f32.mrf.mxu0  ;;  %v17134_v37 = vld [vmem:[#allocation32_spill] sm:$0xff] }
 0x4cf   : > { %v8293_v52 = vrot.slane %v8291_v53, 4  ;;  %v7663_v30 = vld [vmem:[#allocation3 + $0x98] sm:$0x1] }
 0x4d0   : > { %v7806_v53 = vrot.slane %v7663_v30, 5  ;;  %v13462_v30 = vld [vmem:[#allocation4 + $0x2ec] sm:$0xf] }
 0x4d1   : > { %v10673_v24 = vpop.f32.mrf.mxu1 }
 0x4d2   : > { %10949 = vmatmul.bf16.gmra.mxu0 %v12638_v49  ;;  %v16609_v2 = vadd.f32 %v10673_v24, %v10585_v21  ;;  %v10379_v49 = vadd.f32 %v17133_v0, %v10290_v29  ;;  %v17135_v21 = vld [vmem:[#allocation40_spill] sm:$0xff]  ;;  %v7661_v24 = vld [vmem:[#allocation3 + $0x90] sm:$0xe]  ;;  %v7998_v0 = vld [vmem:[#allocation3 + $0x9c] sm:$0xf] }
 0x4d3   : > { %v10587_v23 = vadd.f32 %v17136_v16, %v17135_v21  ;;  %v12262_v54 = vrot.slane %v7661_v24, 9  ;;  %v17138_v24 = vld [vmem:[#allocation30_spill] sm:$0xff] }
 0x4d4   : > { %17131 = vst [vmem:[#allocation42_spill] sm:$0xff] %v16609_v2  ;;  %10771 = vmatmul.bf16.gmra.mxu2 %v12630_v17  ;;  %v10468_v60 = vadd.f32 %v17134_v37, %v10379_v49  ;;  %v7662_v17 = vld [vmem:[#allocation3 + $0x94] sm:$0xf]  ;;  %v8287_v2 = vshll.u32 %v7999_v40, 16  ;;  %v8278_v49 = vshrl.u32 %v7998_v0, 16 }
 0x4d5   : > { %v10818_v11 = vpop.f32.mrf.mxu3  ;;  %v10732_v43 = vpop.f32.mrf.mxu2  ;;  %v7803_v29 = vrot.slane %v7662_v17, 5  ;;  %v8488_v37 = vld [vmem:[#allocation3 + $0x84] sm:$0xe] }
 0x4d6   : > { %10712 = vmatmul.bf16.gmra.mxu1 %v12842_v35  ;;  %v16617_v63 = vadd.f32 %v10818_v11, %v10730_v10  ;;  %v10733_v41 = vadd.f32 %v10732_v43, %v16359_v20  ;;  %v12671_v35 = vld [vmem:[#allocation4 + $0x30c] sm:$0xf0]  ;;  %v8281_v10 = vshll.u32 %v7998_v0, 16  ;;  %v7923_v11 = vld [vmem:[#allocation3 + $0x9c] sm:$0xf]  ;;  %v8289_v16 = vrot.slane %v8287_v2, 5  ;;  %v16630_v62 = vpop.f32.mrf.mxu0 }
 0x4d7   : > { %v7804_v43 = vsel %vm14544_vm14, %v12262_v54, %v7803_v29  ;;  %v7805_v21 = vrot.slane %v7803_v29, 4  ;;  %7955 = vst [vmem:[#allocation4 + $0x330] sm:$0xf] %v7923_v11  ;;  %v10557_v17 = vadd.f32 %v17138_v24, %v10468_v60  ;;  %v8280_v40 = vrot.slane %v8278_v49, 4  ;;  %v8490_v11 = vld [vmem:[#allocation3 + $0x8c] sm:$0x1] }
 0x4d8   : > { %7890 = vst [vmem:[#allocation4 + $0x32c] sm:$0xf] %v7804_v43  ;;  %v8283_v39 = vrot.slane %v8281_v10, 5  ;;  %v12674_v29 = vor.u32 %v13462_v30, %v12671_v35  ;;  %v12663_v43 = vld [vmem:[#allocation4 + $0x304] sm:$0xf0]  ;;  %v8299_v10 = vrot.slane %v8297_v28, 5 }
 0x4d9   : > { %v10675_v57 = vpop.f32.mrf.mxu1  ;;  %v7807_v0 = vsel %vm14544_vm14, %v7805_v21, %v7806_v53  ;;  %v10646_v54 = vadd.f32 %v16389_v50, %v10557_v17  ;;  %v12276_v31 = vrot.slane %v8488_v37, 9  ;;  %v8002_v24 = vld [vmem:[#allocation3 + $0xac] sm:$0xf]  ;;  %v13377_v35 = vld [vmem:[#allocation4 + $0x40] sm:$0xf0]  ;;  %v8625_v30 = vrot.slane %v8490_v11, 5 }
 0x4da   : > { %v16622_v20 = vadd.f32 %v10675_v57, %v10587_v23  ;;  %v8294_v57 = vor.u32 %v8293_v52, %v8289_v16  ;;  %v8489_v23 = vld [vmem:[#allocation3 + $0x88] sm:$0xf]  ;;  %7891 = vst [vmem:[#allocation4 + $0x350] sm:$0xf] %v7807_v0  ;;  %v8284_v2 = vor.u32 %v8283_v39, %v8280_v40  ;;  %v17139_v52 = vld [vmem:[#allocation43_spill] sm:$0xff] }
 0x4db   : > { %v17140_v21 = vld [vmem:[#allocation41_spill] sm:$0xff]  ;;  %v13461_v40 = vld [vmem:[#allocation4 + $0x2e4] sm:$0xf] }
 0x4dc   : > { %17137 = vst [vmem:[#allocation18_spill] sm:$0xff] %v16622_v20  ;;  %v8622_v20 = vrot.slane %v8489_v23, 5  ;;  %v8295_v49 = vrot.slane %v8294_v57, 4  ;;  %v10590_v50 = vadd.f32 %v17140_v21, %v17139_v52  ;;  %v8285_v17 = vrot.slane %v8284_v2, 4  ;;  %v7666_v52 = vld [vmem:[#allocation3 + $0xa4] sm:$0x1] }
 0x4dd   : > { %10860 = vmatmul.bf16.gmra.mxu3 %v12634_v14  ;;  %v10821_v60 = vpop.f32.mrf.mxu3  ;;  %v10734_v14 = vpop.f32.mrf.mxu2  ;;  %v12666_v57 = vor.u32 %v13461_v40, %v12663_v43  ;;  %v13466_v43 = vld [vmem:[#allocation4 + $0x308] sm:$0xf0]  ;;  %v12669_v21 = vld [vmem:[#allocation4 + $0x2e8] sm:$0xf] }
 0x4de   : > { %v16632_v53 = vadd.f32 %v10821_v60, %v10733_v41  ;;  %v10735_v47 = vadd.f32 %v10734_v14, %v10646_v54  ;;  %v8300_v39 = vsel %vm14218_vm11, %v8295_v49, %v8299_v10  ;;  %v8623_v28 = vsel %vm14544_vm14, %v12276_v31, %v8622_v20  ;;  %v12317_v41 = vld [vmem:[#allocation4 + $0x20] sm:$0xf]  ;;  %v7664_v10 = vld [vmem:[#allocation3 + $0x9c] sm:$0xe]  ;;  %v7665_v31 = vld [vmem:[#allocation3 + $0xa0] sm:$0xf] }
 0x4df   : > { %v8624_v37 = vrot.slane %v8622_v20, 4  ;;  %v8290_v23 = vsel %vm14218_vm11, %v8285_v17, %v8289_v16  ;;  %8452 = vst [vmem:[#allocation4 + $0x358] sm:$0xf] %v8300_v39  ;;  %v8315_v54 = vshrl.u32 %v8002_v24, 16  ;;  %v12318_v2 = vor.u32 %v13377_v35, %v12317_v41  ;;  %v17144_v35 = vld [vmem:[#allocation44_spill] sm:$0xff] }
 0x4e0   : > { %8451 = vst [vmem:[#allocation4 + $0x334] sm:$0xf] %v8290_v23  ;;  %v12263_v40 = vrot.slane %v7664_v10, 9  ;;  %v7810_v39 = vrot.slane %v7665_v31, 5  ;;  %v8001_v41 = vld [vmem:[#allocation3 + $0xa8] sm:$0xf] }
 0x4e1   : > { %v8626_v60 = vsel %vm14544_vm14, %v8624_v37, %v8625_v30  ;;  %8719 = vst [vmem:[#allocation4 + $0x2a8] sm:$0xf] %v8623_v28  ;;  %v8317_v20 = vrot.slane %v8315_v54, 4  ;;  %v8311_v28 = vshll.u32 %v8002_v24, 16  ;;  %v16651_v37 = vld [vmem:[#allocation3 + $0xb8] sm:$0xf]  ;;  %v16653_v30 = vpop.f32.mrf.mxu0 }
 0x4e2   : > { %10954 = vmatmul.bf16.gmra.mxu0 %v12674_v29  ;;  %v10678_v0 = vpop.f32.mrf.mxu1  ;;  %8720 = vst [vmem:[#allocation4 + $0x2cc] sm:$0xf] %v8626_v60  ;;  %v8003_v23 = vld [vmem:[#allocation3 + $0xb0] sm:$0x1]  ;;  %v7811_v54 = vsel %vm14544_vm14, %v12263_v40, %v7810_v39  ;;  %v7813_v60 = vrot.slane %v7666_v52, 5  ;;  %v8302_v24 = vshrl.u32 %v8001_v41, 16 }
 0x4e3   : > { %v16642_v29 = vadd.f32 %v10678_v0, %v10590_v50  ;;  %v17143_v50 = vld [vmem:[#allocation45_spill] sm:$0xff]  ;;  %v12670_v0 = vor.u32 %v13466_v43, %v12669_v21  ;;  %7892 = vst [vmem:[#allocation4 + $0x374] sm:$0xf] %v7811_v54  ;;  %v8305_v10 = vshll.u32 %v8001_v41, 16  ;;  %v8313_v31 = vrot.slane %v8311_v28, 5 }
 0x4e4   : > { %10776 = vmatmul.bf16.gmra.mxu2 %v12666_v57  ;;  %v10592_v17 = vadd.f32 %v17144_v35, %v17143_v50  ;;  %v8321_v50 = vshll.u32 %v8003_v23, 16  ;;  %v13386_v21 = vld [vmem:[#allocation4 + $0x88] sm:$0xf0]  ;;  %v8304_v40 = vrot.slane %v8302_v24, 4  ;;  %v8492_v28 = vld [vmem:[#allocation3 + $0x94] sm:$0xf] }
 0x4e5   : > { %17141 = vst [vmem:[#allocation19_spill] sm:$0xff] %v16642_v29  ;;  %v10823_v11 = vpop.f32.mrf.mxu3  ;;  %v8307_v52 = vrot.slane %v8305_v10, 5  ;;  %v13470_v24 = vld [vmem:[#allocation4 + $0x32c] sm:$0xf] }
 0x4e6   : > { %10993 = vmatmul.bf16.vlgmr.msra.gmra.mxu1 %v12318_v2  ;;  %v10737_v14 = vpop.f32.mrf.mxu2  ;;  %v16646_v49 = vadd.f32 %v10823_v11, %v10735_v47  ;;  %v12707_v47 = vld [vmem:[#allocation4 + $0x354] sm:$0xf0]  ;;  %v7812_v2 = vrot.slane %v7810_v39, 4  ;;  %v7925_v11 = vld [vmem:[#allocation3 + $0xa8] sm:$0xf]  ;;  %v8318_v39 = vor.u32 %v8317_v20, %v8313_v31  ;;  %v8323_v41 = vrot.slane %v8321_v50, 5 }
 0x4e7   : > { %v10738_v16 = vadd.f32 %v10737_v14, %v16416_v27  ;;  %v7926_v14 = vld [vmem:[#allocation3 + $0xac] sm:$0xf]  ;;  %7957 = vst [vmem:[#allocation4 + $0x378] sm:$0xf] %v7925_v11  ;;  %v8493_v11 = vld [vmem:[#allocation3 + $0x98] sm:$0x1] }
 0x4e8   : > { %17142 = vst [vmem:[#allocation21_spill] sm:$0xff] %v16646_v49  ;;  %v13471_v43 = vld [vmem:[#allocation4 + $0x334] sm:$0xf]  ;;  %v7814_v35 = vsel %vm14544_vm14, %v7812_v2, %v7813_v60  ;;  %v8308_v2 = vor.u32 %v8307_v52, %v8304_v40  ;;  %v8319_v60 = vrot.slane %v8318_v39, 4  ;;  %v12353_v20 = vld [vmem:[#allocation4 + $0x68] sm:$0xf] }
 0x4e9   : > { %7893 = vst [vmem:[#allocation4 + $0x398] sm:$0xf] %v7814_v35  ;;  %v12354_v50 = vor.u32 %v13386_v21, %v12353_v20  ;;  %v12705_v52 = vld [vmem:[#allocation4 + $0x330] sm:$0xf]  ;;  %v13475_v39 = vld [vmem:[#allocation4 + $0x350] sm:$0xf0] }
 0x4ea   : > { %v10680_v57 = vpop.f32.mrf.mxu1  ;;  %7958 = vst [vmem:[#allocation4 + $0x39c] sm:$0xf] %v7926_v14  ;;  %v8309_v14 = vrot.slane %v8308_v2, 4  ;;  %v7668_v2 = vld [vmem:[#allocation3 + $0xac] sm:$0xf] }
 0x4eb   : > { %v16655_v27 = vadd.f32 %v10680_v57, %v10592_v17  ;;  %v8491_v17 = vld [vmem:[#allocation3 + $0x90] sm:$0xe]  ;;  %v12699_v57 = vld [vmem:[#allocation4 + $0x34c] sm:$0xf0]  ;;  %v8004_v20 = vld [vmem:[#allocation3 + $0xb4] sm:$0xf] }
 0x4ec   : > { %v12277_v10 = vrot.slane %v8491_v17, 9  ;;  %v12702_v49 = vor.u32 %v13470_v24, %v12699_v57  ;;  %v7817_v24 = vrot.slane %v7668_v2, 5 }
 0x4ed   : > { %17145 = vst [vmem:[#allocation20_spill] sm:$0xff] %v16655_v27  ;;  %10865 = vmatmul.bf16.gmra.mxu3 %v12670_v0  ;;  %v12710_v27 = vor.u32 %v13471_v43, %v12707_v47  ;;  %v8339_v0 = vshrl.u32 %v16651_v37, 16  ;;  %v10826_v54 = vpop.f32.mrf.mxu3  ;;  %v10595_v47 = vadd.f32 %v16292_v45, %v16300_v26  ;;  %v8629_v43 = vrot.slane %v8492_v28, 5  ;;  %v16673_v45 = vpop.f32.mrf.mxu0 }
 0x4ee   : > { %v10739_v29 = vpop.f32.mrf.mxu2  ;;  %v16662_v23 = vadd.f32 %v10826_v54, %v10738_v16  ;;  %v8324_v16 = vsel %vm14218_vm11, %v8319_v60, %v8323_v41  ;;  %v8314_v26 = vsel %vm14218_vm11, %v8309_v14, %v8313_v31  ;;  %v7669_v60 = vld [vmem:[#allocation3 + $0xb0] sm:$0x1]  ;;  %v8326_v14 = vshrl.u32 %v8004_v20, 16 }
 0x4ef   : > { %v10740_v32 = vadd.f32 %v10739_v29, %v16439_v9  ;;  %8454 = vst [vmem:[#allocation4 + $0x3a0] sm:$0xf] %v8324_v16  ;;  %v8630_v9 = vsel %vm14544_vm14, %v12277_v10, %v8629_v43  ;;  %v8631_v29 = vrot.slane %v8629_v43, 4  ;;  %v8341_v17 = vrot.slane %v8339_v0, 4  ;;  %v17146_v31 = vld [vmem:[#allocation46_spill] sm:$0xff] }
 0x4f0   : > { %8721 = vst [vmem:[#allocation4 + $0x2f0] sm:$0xf] %v8630_v9  ;;  %v8335_v10 = vshll.u32 %v16651_v37, 16  ;;  %v12706_v0 = vor.u32 %v13475_v39, %v12705_v52  ;;  %v7928_v37 = vld [vmem:[#allocation3 + $0xb8] sm:$0xf] }
 0x4f1   : > { %8453 = vst [vmem:[#allocation4 + $0x37c] sm:$0xf] %v8314_v26  ;;  %v8328_v26 = vrot.slane %v8326_v14, 4  ;;  %v13395_v52 = vld [vmem:[#allocation4 + $0xd0] sm:$0xf0] }
 0x4f2   : > { %10959 = vmatmul.bf16.gmra.mxu0 %v12710_v27  ;;  %v10683_v35 = vpop.f32.mrf.mxu1  ;;  %v8632_v27 = vrot.slane %v8493_v11, 5  ;;  %v10597_v11 = vadd.f32 %v17146_v31, %v16331_v56  ;;  %v7927_v56 = vld [vmem:[#allocation3 + $0xb4] sm:$0xf]  ;;  %7960 = vst [vmem:[#allocation4 + $0x3e4] sm:$0xf] %v7928_v37 }
 0x4f3   : > { %v16669_v54 = vadd.f32 %v10683_v35, %v10595_v47  ;;  %v7820_v35 = vrot.slane %v7669_v60, 5  ;;  %7959 = vst [vmem:[#allocation4 + $0x3c0] sm:$0xf] %v7927_v56 }
 0x4f4   : > { %10781 = vmatmul.bf16.gmra.mxu2 %v12702_v49  ;;  %v8633_v21 = vsel %vm14544_vm14, %v8631_v29, %v8632_v27  ;;  %v7667_v49 = vld [vmem:[#allocation3 + $0xa8] sm:$0xe]  ;;  %v7819_v29 = vrot.slane %v7817_v24, 4  ;;  %v8337_v27 = vrot.slane %v8335_v10, 5 }
 0x4f5   : > { %8722 = vst [vmem:[#allocation4 + $0x314] sm:$0xf] %v8633_v21  ;;  %v10828_v57 = vpop.f32.mrf.mxu3  ;;  %v12264_v47 = vrot.slane %v7667_v49, 9  ;;  %v16693_v60 = vpop.f32.mrf.mxu0 }
 0x4f6   : > { %10998 = vmatmul.bf16.gmra.mxu1 %v12354_v50  ;;  %v10742_v40 = vpop.f32.mrf.mxu2  ;;  %v16679_v41 = vadd.f32 %v10828_v57, %v10740_v32  ;;  %v8006_v50 = vld [vmem:[#allocation3 + $0xbc] sm:$0x1]  ;;  %v8329_v32 = vshll.u32 %v8004_v20, 16  ;;  %v16689_v57 = vld [vmem:[#allocation3 + $0xc4] sm:$0xf]  ;;  %v7821_v39 = vsel %vm14544_vm14, %v7819_v29, %v7820_v35  ;;  %v8342_v49 = vor.u32 %v8341_v17, %v8337_v27 }
 0x4f7   : > { %v10743_v28 = vadd.f32 %v10742_v40, %v16467_v15  ;;  %v12743_v15 = vld [vmem:[#allocation4 + $0x39c] sm:$0xf0]  ;;  %v7818_v9 = vsel %vm14544_vm14, %v12264_v47, %v7817_v24  ;;  %v8345_v2 = vshll.u32 %v8006_v50, 16  ;;  %7895 = vst [vmem:[#allocation4 + $0x3e0] sm:$0xf] %v7821_v39 }
 0x4f8   : > { %7894 = vst [vmem:[#allocation4 + $0x3bc] sm:$0xf] %v7818_v9  ;;  %v8331_v21 = vrot.slane %v8329_v32, 5  ;;  %v13480_v40 = vld [vmem:[#allocation4 + $0x37c] sm:$0xf] }
 0x4f9   : > { %v12746_v31 = vor.u32 %v13480_v40, %v12743_v15  ;;  %v8494_v47 = vld [vmem:[#allocation3 + $0x9c] sm:$0xe]  ;;  %v8495_v24 = vld [vmem:[#allocation3 + $0xa0] sm:$0xf]  ;;  %v8347_v14 = vrot.slane %v8345_v2, 5  ;;  %v10600_v15 = vadd.f32 %v16357_v48, %v16349_v38  ;;  %v8363_v40 = vshrl.u32 %v16689_v57, 16 }
 0x4fa   : > { %v10685_v43 = vpop.f32.mrf.mxu1  ;;  %v8496_v50 = vld [vmem:[#allocation3 + $0xa4] sm:$0x1]  ;;  %v13479_v9 = vld [vmem:[#allocation4 + $0x374] sm:$0xf]  ;;  %v12389_v29 = vld [vmem:[#allocation4 + $0xb0] sm:$0xf] }
 0x4fb   : > { %v16685_v16 = vadd.f32 %v10685_v43, %v10597_v11  ;;  %v8332_v11 = vor.u32 %v8331_v21, %v8328_v26  ;;  %v8343_v43 = vrot.slane %v8342_v49, 4  ;;  %v12278_v26 = vrot.slane %v8494_v47, 9  ;;  %v13484_v47 = vld [vmem:[#allocation4 + $0x398] sm:$0xf0] }
 0x4fc   : > { %v8636_v21 = vrot.slane %v8495_v24, 5  ;;  %v12390_v39 = vor.u32 %v13395_v52, %v12389_v29  ;;  %v8639_v2 = vrot.slane %v8496_v50, 5  ;;  %v8365_v52 = vrot.slane %v8363_v40, 4  ;;  %v8009_v40 = vld [vmem:[#allocation3 + $0xc8] sm:$0x1] }
 0x4fd   : > { %10870 = vmatmul.bf16.gmra.mxu3 %v12706_v0  ;;  %v12735_v0 = vld [vmem:[#allocation4 + $0x394] sm:$0xf0]  ;;  %v8333_v17 = vrot.slane %v8332_v11, 4  ;;  %v8348_v56 = vsel %vm14218_vm11, %v8343_v43, %v8347_v14  ;;  %v17147_v14 = vld [vmem:[#allocation47_spill] sm:$0xff] }
 0x4fe   : > { %v10744_v10 = vpop.f32.mrf.mxu2  ;;  %8456 = vst [vmem:[#allocation4 + $0x3e8] sm:$0xf] %v8348_v56  ;;  %v8637_v38 = vsel %vm14544_vm14, %v12278_v26, %v8636_v21  ;;  %v8638_v48 = vrot.slane %v8636_v21, 4  ;;  %v12741_v43 = vld [vmem:[#allocation4 + $0x378] sm:$0xf] }
 0x4ff   : > { %v10831_v20 = vpop.f32.mrf.mxu3  ;;  %v10745_v35 = vadd.f32 %v10744_v10, %v16489_v34  ;;  %v8338_v34 = vsel %vm14218_vm11, %v8333_v17, %v8337_v27  ;;  %8723 = vst [vmem:[#allocation4 + $0x338] sm:$0xf] %v8637_v38  ;;  %v16711_v27 = vpop.f32.mrf.mxu0  ;;  %v7671_v10 = vld [vmem:[#allocation3 + $0xb8] sm:$0xf]  ;;  %v10602_v17 = vadd.f32 %v17147_v14, %v16386_v33  ;;  %v12742_v29 = vor.u32 %v13484_v47, %v12741_v43  ;;  %v8007_v21 = vld [vmem:[#allocation3 + $0xc0] sm:$0xf] }
 0x500   : > { %v16695_v32 = vadd.f32 %v10831_v20, %v10743_v28  ;;  %v12738_v28 = vor.u32 %v13479_v9, %v12735_v0  ;;  %8455 = vst [vmem:[#allocation4 + $0x3c4] sm:$0xf] %v8338_v34  ;;  %v7670_v20 = vld [vmem:[#allocation3 + $0xb4] sm:$0xe]  ;;  %v7672_v0 = vld [vmem:[#allocation3 + $0xbc] sm:$0x1] }
 0x501   : > { %v12265_v50 = vrot.slane %v7670_v20, 9  ;;  %v8359_v9 = vshll.u32 %v16689_v57, 16  ;;  %v7929_v34 = vld [vmem:[#allocation3 + $0xc0] sm:$0xf]  ;;  %v7930_v38 = vld [vmem:[#allocation3 + $0xc4] sm:$0xf] }
 0x502   : > { %10964 = vmatmul.bf16.gmra.mxu0 %v12746_v31  ;;  %v8640_v31 = vsel %vm14544_vm14, %v8638_v48, %v8639_v2  ;;  %v8350_v33 = vshrl.u32 %v8007_v21, 16  ;;  %v8353_v48 = vshll.u32 %v8007_v21, 16  ;;  %v8369_v57 = vshll.u32 %v8009_v40, 16  ;;  %7961 = vst [vmem:[#allocation4 + $0x408] sm:$0xf] %v7929_v34 }
 0x503   : > { %v10688_v37 = vpop.f32.mrf.mxu1  ;;  %8724 = vst [vmem:[#allocation4 + $0x35c] sm:$0xf] %v8640_v31  ;;  %v8361_v2 = vrot.slane %v8359_v9, 5  ;;  %v10605_v21 = vadd.f32 %v16424_v12, %v16407_v61  ;;  %v13488_v40 = vld [vmem:[#allocation4 + $0x3bc] sm:$0xf] }
 0x504   : > { %v16705_v49 = vadd.f32 %v10688_v37, %v10600_v15  ;;  %10786 = vmatmul.bf16.gmra.mxu2 %v12738_v28  ;;  %v7824_v15 = vrot.slane %v7671_v10, 5  ;;  %v8352_v10 = vrot.slane %v8350_v33, 4  ;;  %v8355_v43 = vrot.slane %v8353_v48, 5  ;;  %7962 = vst [vmem:[#allocation4 + $0x42c] sm:$0xf] %v7930_v38 }
 0x505   : > { %v12779_v26 = vld [vmem:[#allocation4 + $0x3e4] sm:$0xf0]  ;;  %v8366_v14 = vor.u32 %v8365_v52, %v8361_v2  ;;  %v8371_v9 = vrot.slane %v8369_v57, 5 }
 0x506   : > { %11003 = vmatmul.bf16.gmra.mxu1 %v12390_v39  ;;  %v7826_v28 = vrot.slane %v7824_v15, 4  ;;  %v7827_v39 = vrot.slane %v7672_v0, 5  ;;  %v8497_v0 = vld [vmem:[#allocation3 + $0xa8] sm:$0xe] }
 0x507   : > { %v10833_v11 = vpop.f32.mrf.mxu3  ;;  %v13489_v31 = vld [vmem:[#allocation4 + $0x3c4] sm:$0xf] }
 0x508   : > { %v16713_v24 = vadd.f32 %v10833_v11, %v10745_v35  ;;  %v7825_v35 = vsel %vm14544_vm14, %v12265_v50, %v7824_v15  ;;  %v13404_v11 = vld [vmem:[#allocation4 + $0x118] sm:$0xf0]  ;;  %v7828_v47 = vsel %vm14544_vm14, %v7826_v28, %v7827_v39  ;;  %v12782_v20 = vor.u32 %v13489_v31, %v12779_v26  ;;  %v8498_v50 = vld [vmem:[#allocation3 + $0xac] sm:$0xf]  ;;  %v16726_v39 = vpop.f32.mrf.mxu0 }
 0x509   : > { %7896 = vst [vmem:[#allocation4 + $0x404] sm:$0xf] %v7825_v35  ;;  %v8356_v15 = vor.u32 %v8355_v43, %v8352_v10  ;;  %v12425_v35 = vld [vmem:[#allocation4 + $0xf8] sm:$0xf]  ;;  %v12279_v28 = vrot.slane %v8497_v0, 9  ;;  %v8643_v26 = vrot.slane %v8498_v50, 5 }
 0x50a   : > { %7897 = vst [vmem:[#allocation4 + $0x428] sm:$0xf] %v7828_v47  ;;  %v12426_v33 = vor.u32 %v13404_v11, %v12425_v35  ;;  %v7673_v10 = vld [vmem:[#allocation3 + $0xc0] sm:$0xe]  ;;  %v7674_v43 = vld [vmem:[#allocation3 + $0xc4] sm:$0xf] }
 0x50b   : > { %v10690_v56 = vpop.f32.mrf.mxu1  ;;  %v8357_v48 = vrot.slane %v8356_v15, 4  ;;  %v8644_v57 = vsel %vm14544_vm14, %v12279_v28, %v8643_v26  ;;  %v8645_v61 = vrot.slane %v8643_v26, 4  ;;  %v12777_v0 = vld [vmem:[#allocation4 + $0x3c0] sm:$0xf]  ;;  %v12266_v50 = vrot.slane %v7673_v10, 9 }
 0x50c   : > { %v16718_v37 = vadd.f32 %v10690_v56, %v10602_v17  ;;  %v12771_v17 = vld [vmem:[#allocation4 + $0x3dc] sm:$0xf0]  ;;  %v8499_v56 = vld [vmem:[#allocation3 + $0xb0] sm:$0x1]  ;;  %8725 = vst [vmem:[#allocation4 + $0x380] sm:$0xf] %v8644_v57 }
 0x50d   : > { %10875 = vmatmul.bf16.gmra.mxu3 %v12742_v29  ;;  %v8367_v29 = vrot.slane %v8366_v14, 4  ;;  %v12774_v52 = vor.u32 %v13488_v40, %v12771_v17  ;;  %v8646_v12 = vrot.slane %v8499_v56, 5  ;;  %v8362_v47 = vsel %vm14218_vm11, %v8357_v48, %v8361_v2  ;;  %v7675_v14 = vld [vmem:[#allocation3 + $0xc8] sm:$0x1]  ;;  %v8500_v2 = vld [vmem:[#allocation3 + $0xb4] sm:$0xe] }
 0x50e   : > { %8457 = vst [vmem:[#allocation4 + $0x40c] sm:$0xf] %v8362_v47  ;;  %v10607_v17 = vadd.f32 %v16455_v19, %v16432_v13  ;;  %v7831_v15 = vrot.slane %v7674_v43, 5  ;;  %v7834_v35 = vrot.slane %v7675_v14, 5  ;;  %v8501_v26 = vld [vmem:[#allocation3 + $0xb8] sm:$0xf] }
 0x50f   : > { %v8372_v38 = vsel %vm14218_vm11, %v8367_v29, %v8371_v9  ;;  %v8647_v11 = vsel %vm14544_vm14, %v8645_v61, %v8646_v12  ;;  %v8502_v19 = vld [vmem:[#allocation3 + $0xbc] sm:$0x1] }
 0x510   : > { %8458 = vst [vmem:[#allocation4 + $0x430] sm:$0xf] %v8372_v38  ;;  %v7833_v40 = vrot.slane %v7831_v15, 4  ;;  %v16744_v28 = vpop.f32.mrf.mxu0  ;;  %v8653_v12 = vrot.slane %v8502_v19, 5  ;;  %v13413_v47 = vld [vmem:[#allocation4 + $0x160] sm:$0xf0] }
 0x511   : > { %8726 = vst [vmem:[#allocation4 + $0x3a4] sm:$0xf] %v8647_v11  ;;  %v12807_v38 = vld [vmem:[#allocation4 + $0x424] sm:$0xf0]  ;;  %v10610_v11 = vadd.f32 %v16485_v44, %v16457_v58  ;;  %v10612_v58 = vadd.f32 %v16513_v55, %v16480_v36  ;;  %v13507_v44 = vld [vmem:[#allocation4 + $0x454] sm:$0xf] }
 0x512   : > { %10969 = vmatmul.bf16.gmra.mxu0 %v12782_v20  ;;  %v13493_v20 = vld [vmem:[#allocation4 + $0x3e0] sm:$0xf0]  ;;  %v7835_v13 = vsel %vm14544_vm14, %v7833_v40, %v7834_v35  ;;  %v8503_v40 = vld [vmem:[#allocation3 + $0xc0] sm:$0xe]  ;;  %v13422_v55 = vld [vmem:[#allocation4 + $0x1a8] sm:$0xf0] }
 0x513   : > { %v10693_v34 = vpop.f32.mrf.mxu1  ;;  %v12778_v29 = vor.u32 %v13493_v20, %v12777_v0  ;;  %7899 = vst [vmem:[#allocation4 + $0x470] sm:$0xf] %v7835_v13  ;;  %v13497_v20 = vld [vmem:[#allocation4 + $0x404] sm:$0xf]  ;;  %v12461_v0 = vld [vmem:[#allocation4 + $0x140] sm:$0xf] }
 0x514   : > { %v16730_v31 = vadd.f32 %v10693_v34, %v10605_v21  ;;  %10791 = vmatmul.bf16.gmra.mxu2 %v12774_v52  ;;  %v7832_v21 = vsel %vm14544_vm14, %v12266_v50, %v7831_v15  ;;  %v12280_v52 = vrot.slane %v8500_v2, 9  ;;  %v12810_v14 = vor.u32 %v13497_v20, %v12807_v38  ;;  %v12851_v2 = vld [vmem:[#allocation4 + $0x474] sm:$0xf0]  ;;  %v8505_v13 = vld [vmem:[#allocation3 + $0xc8] sm:$0x1] }
 0x515   : > { %7898 = vst [vmem:[#allocation4 + $0x44c] sm:$0xf] %v7832_v21  ;;  %v13498_v34 = vld [vmem:[#allocation4 + $0x40c] sm:$0xf]  ;;  %v12462_v50 = vor.u32 %v13413_v47, %v12461_v0  ;;  %v12281_v19 = vrot.slane %v8503_v40, 9  ;;  %v10622_v40 = vadd.f32 %v16598_v1, %v16562_v59 }
 0x516   : > { %11008 = vmatmul.bf16.gmra.mxu1 %v12426_v33  ;;  %v8650_v33 = vrot.slane %v8501_v26, 5  ;;  %v12854_v26 = vor.u32 %v13507_v44, %v12851_v2  ;;  %v12849_v0 = vld [vmem:[#allocation4 + $0x450] sm:$0xf]  ;;  %v13449_v59 = vld [vmem:[#allocation4 + $0x280] sm:$0xf0] }
 0x517   : > { %v12815_v56 = vld [vmem:[#allocation4 + $0x42c] sm:$0xf0] }
 0x518   : > { %v12818_v48 = vor.u32 %v13498_v34, %v12815_v56  ;;  %v8651_v57 = vsel %vm14544_vm14, %v12280_v52, %v8650_v33  ;;  %v8652_v61 = vrot.slane %v8650_v33, 4  ;;  %v16756_v15 = vpop.f32.mrf.mxu0  ;;  %v8504_v34 = vld [vmem:[#allocation3 + $0xc4] sm:$0xf]  ;;  %v12533_v2 = vld [vmem:[#allocation4 + $0x1d0] sm:$0xf] }
 0x519   : > { %8727 = vst [vmem:[#allocation4 + $0x3c8] sm:$0xf] %v8651_v57  ;;  %v8657_v52 = vrot.slane %v8504_v34, 5  ;;  %v8660_v57 = vrot.slane %v8505_v13, 5  ;;  %v10625_v34 = vadd.f32 %v16614_v5, %v16570_v6  ;;  %v10906_v6 = vadd.f32 %v16653_v30, %v16603_v22  ;;  %v13458_v22 = vld [vmem:[#allocation4 + $0x2c8] sm:$0xf0] }
 0x51a   : > { %v8654_v10 = vsel %vm14544_vm14, %v8652_v61, %v8653_v12  ;;  %v12843_v33 = vld [vmem:[#allocation4 + $0x46c] sm:$0xf0]  ;;  %v10615_v61 = vadd.f32 %v16542_v3, %v16500_v51 }
 0x51b   : > { %v10695_v8 = vpop.f32.mrf.mxu1  ;;  %8728 = vst [vmem:[#allocation4 + $0x3ec] sm:$0xf] %v8654_v10  ;;  %v8659_v38 = vrot.slane %v8657_v52, 4  ;;  %v12497_v10 = vld [vmem:[#allocation4 + $0x188] sm:$0xf] }
 0x51c   : > { %v16740_v9 = vadd.f32 %v10695_v8, %v10607_v17  ;;  %v12813_v8 = vld [vmem:[#allocation4 + $0x408] sm:$0xf]  ;;  %v13506_v12 = vld [vmem:[#allocation4 + $0x44c] sm:$0xf] }
 0x51d   : > { %10880 = vmatmul.bf16.gmra.mxu3 %v12778_v29  ;;  %v13502_v29 = vld [vmem:[#allocation4 + $0x428] sm:$0xf0]  ;;  %v8661_v47 = vsel %vm14544_vm14, %v8659_v38, %v8660_v57  ;;  %v12846_v20 = vor.u32 %v13506_v12, %v12843_v33  ;;  %v12605_v38 = vld [vmem:[#allocation4 + $0x260] sm:$0xf] }
 0x51e   : > { %v12814_v56 = vor.u32 %v13502_v29, %v12813_v8  ;;  %8730 = vst [vmem:[#allocation4 + $0x434] sm:$0xf] %v8661_v47  ;;  %v10617_v8 = vadd.f32 %v16560_v7, %v16524_v25  ;;  %v13440_v7 = vld [vmem:[#allocation4 + $0x238] sm:$0xf0]  ;;  %v12606_v57 = vor.u32 %v13449_v59, %v12605_v38  ;;  %v10908_v47 = vadd.f32 %v16673_v45, %v16617_v63 }
 0x520   : > { %v16764_v36 = vpop.f32.mrf.mxu0 }
 0x522   : > { %10974 = vmatmul.bf16.gmra.mxu0 %v12818_v48  ;;  %v8658_v48 = vsel %vm14544_vm14, %v12281_v19, %v8657_v52  ;;  %v12569_v19 = vld [vmem:[#allocation4 + $0x218] sm:$0xf]  ;;  %v10627_v52 = vadd.f32 %v16630_v62, %v16590_v18  ;;  %v16797_v62 = vpop.f32.mrf.mxu2 }
 0x523   : > { %v10698_v43 = vpop.f32.mrf.mxu1  ;;  %8729 = vst [vmem:[#allocation4 + $0x410] sm:$0xf] %v8658_v48 }
 0x524   : > { %v16754_v17 = vadd.f32 %v10698_v43, %v10610_v11  ;;  %10796 = vmatmul.bf16.gmra.mxu2 %v12810_v14  ;;  %v12498_v14 = vor.u32 %v13422_v55, %v12497_v10  ;;  %v13587_v55 = vld [vmem:[%s14166_s28] sm:$0xff]   ;;  %v16799_v10 = vpop.f32.mrf.mxu3 }
 0x525   : > { %v13588_v5 = vunpack.c.l.bf16 %v13587_v55  ;;  %v13589_v12 = vunpack.c.h.bf16 %v13587_v55  ;;  %v12677_v55 = vld [vmem:[#allocation4 + $0x2f0] sm:$0xf] }
 0x526   : > { %11013 = vmatmul.bf16.gmra.mxu1 %v12462_v50  ;;  %v13511_v50 = vld [vmem:[#allocation4 + $0x470] sm:$0xf0] }
 0x527   : > { %v12850_v29 = vor.u32 %v13511_v50, %v12849_v0 }
 0x52a   : > { %v16808_v45 = vpop.f32.mrf.mxu2 }
 0x52b   : > { %v10700_v21 = vpop.f32.mrf.mxu1 }
 0x52c   : > { %v16760_v35 = vadd.f32 %v10700_v21, %v10612_v58  ;;  %v10620_v58 = vadd.f32 %v16582_v42, %v16546_v4  ;;  %v12534_v21 = vor.u32 %v13431_v46, %v12533_v2  ;;  %v12570_v42 = vor.u32 %v13440_v7, %v12569_v19  ;;  %v13730_v46 = vld [vmem:[%s14166_s28 + $0x8] sm:$0xff]  }
 0x52d   : > { %10885 = vmatmul.bf16.gmra.mxu3 %v12814_v56  ;;  %v13592_v2 = vunpack.c.l.bf16 %v13730_v46 }
 0x532   : > { %10979 = vmatmul.bf16.gmra.mxu0 %v12854_v26 }
 0x533   : > { %v10703_v11 = vpop.f32.mrf.mxu1 }
 0x534   : > { %v16770_v43 = vadd.f32 %v10703_v11, %v10615_v61  ;;  %10801 = vmatmul.bf16.gmra.mxu2 %v12846_v20 }
 0x536   : > { %11018 = vmatmul.bf16.gmra.mxu1 %v12498_v14 }
 0x53b   : > { %v10705_v51 = vpop.f32.mrf.mxu1 }
 0x53c   : > { %v16774_v3 = vadd.f32 %v10705_v51, %v10617_v8  ;;  %v12641_v51 = vld [vmem:[#allocation4 + $0x2a8] sm:$0xf] }
 0x53d   : > { %10890 = vmatmul.bf16.gmra.mxu3 %v12850_v29  ;;  %v16801_v29 = vpop.f32.mrf.mxu0  ;;  %v12642_v63 = vor.u32 %v13458_v22, %v12641_v51  ;;  %v13476_v51 = vld [vmem:[#allocation4 + $0x358] sm:$0xf0] }
 0x543   : > { %v10708_v44 = vpop.f32.mrf.mxu1 }
 0x544   : > { %v16778_v56 = vadd.f32 %v10708_v44, %v10620_v58  ;;  %v10911_v58 = vadd.f32 %v16693_v60, %v16632_v53  ;;  %v16813_v44 = vpop.f32.mrf.mxu3 }
 0x546   : > { %11023 = vmatmul.bf16.gmra.mxu1 %v12534_v21 }
 0x54b   : > { %v10710_v26 = vpop.f32.mrf.mxu1 }
 0x54c   : > { %v16782_v25 = vadd.f32 %v10710_v26, %v10622_v40  ;;  %v13593_v40 = vunpack.c.h.bf16 %v13730_v46  ;;  %v17148_v26 = vld [vmem:[#allocation21_spill] sm:$0xff]  ;;  %v16821_v59 = vpop.f32.mrf.mxu3 }
 0x54d   : > { %v10913_v7 = vadd.f32 %v16711_v27, %v17148_v26  ;;  %v13731_v27 = vld [vmem:[%s14166_s28 + $0x10] sm:$0xff]  }
 0x553   : > { %v10713_v13 = vpop.f32.mrf.mxu1 }
 0x554   : > { %v16786_v4 = vadd.f32 %v10713_v13, %v10625_v34 }
 0x556   : > { %11028 = vmatmul.bf16.gmra.mxu1 %v12570_v42  ;;  %v16817_v42 = vpop.f32.mrf.mxu0 }
 0x55b   : > { %v10715_v33 = vpop.f32.mrf.mxu1 }
 0x55c   : > { %v16790_v48 = vadd.f32 %v10715_v33, %v10627_v52  ;;  %v16819_v33 = vpop.f32.mrf.mxu2 }
 0x563   : > { %v10994_v1 = vpop.f32.mrf.mxu1 }
 0x564   : > { %v10995_v61 = vadd.f32 %v10994_v1, %v10906_v6  ;;  %v13467_v1 = vld [vmem:[#allocation4 + $0x310] sm:$0xf0] }
 0x565   : > { %v12678_v6 = vor.u32 %v13467_v1, %v12677_v55 }
 0x566   : > { %11033 = vmatmul.bf16.gmra.mxu1 %v12606_v57  ;;  %v11074_v11 = vadd.f32 %v13588_v5, %v10995_v61  ;;  %v10916_v5 = vadd.f32 %v16726_v39, %v16662_v23  ;;  %v16827_v61 = vpop.f32.mrf.mxu0 }
 0x568   : > { %v11106_v0 = vmax.f32 %v11074_v11, 0.0  ;;  %v13597_v11 = vunpack.c.h.bf16 %v13731_v27 }
 0x56b   : > { %v10996_v18 = vpop.f32.mrf.mxu1 }
 0x56c   : > { %v10997_v20 = vadd.f32 %v10996_v18, %v10908_v47  ;;  %v16829_v18 = vpop.f32.mrf.mxu2 }
 0x56e   : > { %v11075_v14 = vadd.f32 %v13589_v12, %v10997_v20  ;;  %v13596_v12 = vunpack.c.l.bf16 %v13731_v27  ;;  %v10918_v20 = vadd.f32 %v16744_v28, %v16679_v41  ;;  %v13732_v28 = vld [vmem:[%s14166_s28 + $0x18] sm:$0xff]   ;;  %v13485_v27 = vld [vmem:[#allocation4 + $0x3a0] sm:$0xf0] }
 0x56f   : > { %v13600_v26 = vunpack.c.l.bf16 %v13732_v28 }
 0x570   : > { %v11107_v50 = vmax.f32 %v11075_v14, 0.0  ;;  %v16833_v14 = vpop.f32.mrf.mxu3 }
 0x572   : > { %v13653_v30 = vpack.c.bf16 %v11107_v50, %v11106_v0 }
 0x573   : > { %v10999_v8 = vpop.f32.mrf.mxu1 }
 0x574   : > { %13654 = vst [vmem:[%s16805_s9] sm:$0xff] %v13653_v30   ;;  %v11000_v21 = vadd.f32 %v10999_v8, %v10911_v58  ;;  %v16835_v8 = vpop.f32.mrf.mxu0  ;;  %v16837_v46 = vpop.f32.mrf.mxu2 }
 0x576   : > { %11038 = vmatmul.bf16.gmra.mxu1 %v12642_v63  ;;  %v11076_v13 = vadd.f32 %v13592_v2, %v11000_v21  ;;  %v12713_v2 = vld [vmem:[#allocation4 + $0x338] sm:$0xf] }
 0x577   : > { %v12714_v21 = vor.u32 %v13476_v51, %v12713_v2 }
 0x578   : > { %v11108_v53 = vmax.f32 %v11076_v13, 0.0  ;;  %v16840_v41 = vpop.f32.mrf.mxu3  ;;  %v10923_v13 = vadd.f32 %v16764_v36, %v16713_v24 }
 0x57b   : > { %v11001_v34 = vpop.f32.mrf.mxu1 }
 0x57c   : > { %v11002_v19 = vadd.f32 %v11001_v34, %v10913_v7  ;;  %v13601_v34 = vunpack.c.h.bf16 %v13732_v28  ;;  %v16849_v1 = vpop.f32.mrf.mxu2 }
 0x57e   : > { %v11077_v52 = vadd.f32 %v13593_v40, %v11002_v19  ;;  %v10921_v40 = vadd.f32 %v16756_v15, %v16695_v32  ;;  %v16847_v19 = vpop.f32.mrf.mxu0  ;;  %v17149_v32 = vld [vmem:[#allocation26_spill] sm:$0xff] }
 0x57f   : > { %v10748_v15 = vadd.f32 %v16797_v62, %v17149_v32 }
 0x580   : > { %v11109_v60 = vmax.f32 %v11077_v52, 0.0 }
 0x581   : > { %v10837_v24 = vadd.f32 %v16799_v10, %v10748_v15 }
 0x582   : > { %v13658_v38 = vpack.c.bf16 %v11109_v60, %v11108_v53 }
 0x583   : > { %v11004_v57 = vpop.f32.mrf.mxu1  ;;  %v10926_v62 = vadd.f32 %v16801_v29, %v10837_v24 }
 0x584   : > { %13745 = vst [vmem:[%s16805_s9 + $0x8] sm:$0xff] %v13658_v38   ;;  %v11005_v47 = vadd.f32 %v11004_v57, %v10916_v5  ;;  %v16851_v57 = vpop.f32.mrf.mxu3 }
 0x586   : > { %11043 = vmatmul.bf16.gmra.mxu1 %v12678_v6  ;;  %v11078_v50 = vadd.f32 %v13596_v12, %v11005_v47  ;;  %v12749_v12 = vld [vmem:[#allocation4 + $0x380] sm:$0xf]  ;;  %v17150_v47 = vld [vmem:[#allocation33_spill] sm:$0xff] }
 0x588   : > { %v11110_v23 = vmax.f32 %v11078_v50, 0.0  ;;  %v13733_v50 = vld [vmem:[%s14166_s28 + $0x20] sm:$0xff]  }
 0x589   : > { %v13605_v51 = vunpack.c.h.bf16 %v13733_v50 }
 0x58b   : > { %v11006_v0 = vpop.f32.mrf.mxu1 }
 0x58c   : > { %v11007_v22 = vadd.f32 %v11006_v0, %v10918_v20  ;;  %v12750_v20 = vor.u32 %v13485_v27, %v12749_v12  ;;  %v16859_v0 = vpop.f32.mrf.mxu0 }
 0x58e   : > { %v11079_v30 = vadd.f32 %v13597_v11, %v11007_v22  ;;  %v10750_v11 = vadd.f32 %v16808_v45, %v17150_v47 }
 0x590   : > { %v11111_v39 = vmax.f32 %v11079_v30, 0.0  ;;  %v10839_v22 = vadd.f32 %v16813_v44, %v10750_v11  ;;  %v16864_v30 = vpop.f32.mrf.mxu2  ;;  %v17151_v44 = vld [vmem:[#allocation16_spill] sm:$0xff] }
 0x591   : > { %v10753_v29 = vadd.f32 %v16819_v33, %v17151_v44 }
 0x592   : > { %v13663_v63 = vpack.c.bf16 %v11111_v39, %v11110_v23  ;;  %v13604_v23 = vunpack.c.l.bf16 %v13733_v50  ;;  %v16866_v39 = vpop.f32.mrf.mxu3 }
 0x593   : > { %v11009_v58 = vpop.f32.mrf.mxu1 }
 0x594   : > { %13746 = vst [vmem:[%s16805_s9 + $0x10] sm:$0xff] %v13663_v63   ;;  %v11010_v7 = vadd.f32 %v11009_v58, %v10921_v40  ;;  %v10928_v63 = vadd.f32 %v16817_v42, %v10839_v22  ;;  %v16869_v28 = vpop.f32.mrf.mxu0  ;;  %v17153_v22 = vld [vmem:[#allocation15_spill] sm:$0xff] }
 0x596   : > { %11048 = vmatmul.bf16.gmra.mxu1 %v12714_v21  ;;  %v11080_v53 = vadd.f32 %v13600_v26, %v11010_v7 }
 0x598   : > { %v11112_v55 = vmax.f32 %v11080_v53, 0.0  ;;  %v16873_v7 = vpop.f32.mrf.mxu2 }
 0x59a   : > { %v10853_v42 = vpop.f32.mrf.mxu3 }
 0x59b   : > { %v11011_v52 = vpop.f32.mrf.mxu1 }
 0x59c   : > { %v11012_v60 = vadd.f32 %v11011_v52, %v10923_v13  ;;  %v10842_v13 = vadd.f32 %v16821_v59, %v10753_v29  ;;  %v13735_v29 = vld [vmem:[%s14166_s28 + $0x30] sm:$0xff]  }
 0x59e   : > { %v11081_v38 = vadd.f32 %v13601_v34, %v11012_v60  ;;  %v13494_v34 = vld [vmem:[#allocation4 + $0x3e8] sm:$0xf0]  ;;  %v12785_v60 = vld [vmem:[#allocation4 + $0x3c8] sm:$0xf]  ;;  %v10931_v33 = vadd.f32 %v16827_v61, %v10842_v13 }
 0x59f   : > { %v12786_v15 = vor.u32 %v13494_v34, %v12785_v60  ;;  %v13612_v34 = vunpack.c.l.bf16 %v13735_v29 }
 0x5a0   : > { %v11113_v6 = vmax.f32 %v11081_v38, 0.0  ;;  %v17152_v38 = vld [vmem:[#allocation34_spill] sm:$0xff]  ;;  %v10767_v12 = vpop.f32.mrf.mxu2 }
 0x5a1   : > { %v10755_v32 = vadd.f32 %v16829_v18, %v17152_v38 }
 0x5a2   : > { %v13668_v36 = vpack.c.bf16 %v11113_v6, %v11112_v55  ;;  %v13734_v55 = vld [vmem:[%s14166_s28 + $0x28] sm:$0xff]   ;;  %v10856_v18 = vpop.f32.mrf.mxu3 }
 0x5a3   : > { %v11014_v5 = vpop.f32.mrf.mxu1  ;;  %v10844_v6 = vadd.f32 %v16833_v14, %v10755_v32  ;;  %v13608_v27 = vunpack.c.l.bf16 %v13734_v55  ;;  %v10758_v14 = vadd.f32 %v16837_v46, %v17153_v22 }
 0x5a4   : > { %13747 = vst [vmem:[%s16805_s9 + $0x18] sm:$0xff] %v13668_v36   ;;  %v11015_v10 = vadd.f32 %v11014_v5, %v10926_v62  ;;  %v10942_v36 = vpop.f32.mrf.mxu0  ;;  %v13609_v5 = vunpack.c.h.bf16 %v13734_v55  ;;  %v12857_v55 = vld [vmem:[#allocation4 + $0x458] sm:$0xf] }
 0x5a5   : > { %v10933_v59 = vadd.f32 %v16835_v8, %v10844_v6  ;;  %v12821_v8 = vld [vmem:[#allocation4 + $0x410] sm:$0xf]  ;;  %v13512_v6 = vld [vmem:[#allocation4 + $0x478] sm:$0xf0] }
 0x5a6   : > { %11053 = vmatmul.bf16.gmra.mxu1 %v12750_v20  ;;  %v11082_v58 = vadd.f32 %v13604_v23, %v11015_v10  ;;  %v13503_v23 = vld [vmem:[#allocation4 + $0x430] sm:$0xf0]  ;;  %v10847_v10 = vadd.f32 %v16840_v41, %v10758_v14  ;;  %v13613_v41 = vunpack.c.h.bf16 %v13735_v29 }
 0x5a8   : > { %v11114_v40 = vmax.f32 %v11082_v58, 0.0  ;;  %v17154_v58 = vld [vmem:[#allocation17_spill] sm:$0xff]  ;;  %v10769_v44 = vpop.f32.mrf.mxu2  ;;  %v10936_v46 = vadd.f32 %v16847_v19, %v10847_v10 }
 0x5ab   : > { %v11016_v45 = vpop.f32.mrf.mxu1 }
 0x5ac   : > { %v11017_v2 = vadd.f32 %v11016_v45, %v10928_v63  ;;  %v10945_v63 = vpop.f32.mrf.mxu0 }
 0x5ae   : > { %v11083_v21 = vadd.f32 %v13605_v51, %v11017_v2  ;;  %v10760_v2 = vadd.f32 %v16849_v1, %v17154_v58 }
 0x5b0   : > { %v11115_v26 = vmax.f32 %v11083_v21, 0.0  ;;  %v12822_v21 = vor.u32 %v13503_v23, %v12821_v8 }
 0x5b2   : > { %v13673_v52 = vpack.c.bf16 %v11115_v26, %v11114_v40  ;;  %v10849_v40 = vadd.f32 %v16851_v57, %v10760_v2  ;;  %v10858_v26 = vpop.f32.mrf.mxu3  ;;  %v17155_v57 = vld [vmem:[#allocation42_spill] sm:$0xff] }
 0x5b3   : > { %v11019_v53 = vpop.f32.mrf.mxu1  ;;  %v10763_v19 = vadd.f32 %v16864_v30, %v17155_v57 }
 0x5b4   : > { %13748 = vst [vmem:[%s16805_s9 + $0x20] sm:$0xff] %v13673_v52   ;;  %v11020_v24 = vadd.f32 %v11019_v53, %v10931_v33  ;;  %v10938_v52 = vadd.f32 %v16859_v0, %v10849_v40  ;;  %v10947_v1 = vpop.f32.mrf.mxu0  ;;  %v12858_v0 = vor.u32 %v13512_v6, %v12857_v55 }
 0x5b6   : > { %11058 = vmatmul.bf16.gmra.mxu1 %v12786_v15  ;;  %v11084_v11 = vadd.f32 %v13608_v27, %v11020_v24  ;;  %v10772_v15 = vpop.f32.mrf.mxu2 }
 0x5b8   : > { %v11116_v62 = vmax.f32 %v11084_v11, 0.0  ;;  %v17156_v11 = vld [vmem:[#allocation18_spill] sm:$0xff] }
 0x5ba   : > { %v10861_v24 = vpop.f32.mrf.mxu3 }
 0x5bb   : > { %v11021_v47 = vpop.f32.mrf.mxu1 }
 0x5bc   : > { %v11022_v20 = vadd.f32 %v11021_v47, %v10933_v59 }
 0x5be   : > { %v11085_v50 = vadd.f32 %v13609_v5, %v11022_v20  ;;  %v10852_v5 = vadd.f32 %v16866_v39, %v10763_v19  ;;  %v10765_v20 = vadd.f32 %v16873_v7, %v17156_v11  ;;  %v10774_v23 = vpop.f32.mrf.mxu2  ;;  %v17157_v7 = vld [vmem:[#allocation19_spill] sm:$0xff] }
 0x5c0   : > { %v11117_v61 = vmax.f32 %v11085_v50, 0.0  ;;  %v13736_v50 = vld [vmem:[%s14166_s28 + $0x38] sm:$0xff]   ;;  %v10854_v22 = vadd.f32 %v10853_v42, %v10765_v20  ;;  %v10941_v14 = vadd.f32 %v16869_v28, %v10852_v5  ;;  %v10775_v20 = vadd.f32 %v10774_v23, %v16685_v16 }
 0x5c1   : > { %v13617_v10 = vunpack.c.h.bf16 %v13736_v50 }
 0x5c2   : > { %v13678_v51 = vpack.c.bf16 %v11117_v61, %v11116_v62  ;;  %v10950_v62 = vpop.f32.mrf.mxu0  ;;  %v13616_v61 = vunpack.c.l.bf16 %v13736_v50  ;;  %v10863_v39 = vpop.f32.mrf.mxu3 }
 0x5c3   : > { %v11024_v45 = vpop.f32.mrf.mxu1 }
 0x5c4   : > { %13749 = vst [vmem:[%s16805_s9 + $0x28] sm:$0xff] %v13678_v51   ;;  %v11025_v13 = vadd.f32 %v11024_v45, %v10936_v46  ;;  %v10943_v51 = vadd.f32 %v10942_v36, %v10854_v22  ;;  %v13737_v36 = vld [vmem:[%s14166_s28 + $0x40] sm:$0xff]   ;;  %v10864_v22 = vadd.f32 %v10863_v39, %v10775_v20 }
 0x5c5   : > { %v13621_v6 = vunpack.c.h.bf16 %v13737_v36 }
 0x5c6   : > { %11063 = vmatmul.bf16.gmra.mxu1 %v12822_v21  ;;  %v11086_v60 = vadd.f32 %v13612_v34, %v11025_v13  ;;  %v10768_v21 = vadd.f32 %v10767_v12, %v17157_v7  ;;  %v10777_v34 = vpop.f32.mrf.mxu2 }
 0x5c7   : > { %v10778_v16 = vadd.f32 %v10777_v34, %v16705_v49 }
 0x5c8   : > { %v11118_v33 = vmax.f32 %v11086_v60, 0.0  ;;  %v10857_v28 = vadd.f32 %v10856_v18, %v10768_v21 }
 0x5ca   : > { %v10952_v40 = vpop.f32.mrf.mxu0 }
 0x5cb   : > { %v11026_v53 = vpop.f32.mrf.mxu1 }
 0x5cc   : > { %v11027_v38 = vadd.f32 %v11026_v53, %v10938_v52  ;;  %v10866_v53 = vpop.f32.mrf.mxu3 }
 0x5cd   : > { %v10867_v39 = vadd.f32 %v10866_v53, %v10778_v16 }
 0x5ce   : > { %v11087_v32 = vadd.f32 %v13613_v41, %v11027_v38  ;;  %v17158_v41 = vld [vmem:[#allocation20_spill] sm:$0xff]  ;;  %v10946_v38 = vadd.f32 %v10945_v63, %v10857_v28 }
 0x5cf   : > { %v10770_v52 = vadd.f32 %v10769_v44, %v17158_v41  ;;  %v10773_v44 = vadd.f32 %v10772_v15, %v16669_v54 }
 0x5d0   : > { %v11119_v27 = vmax.f32 %v11087_v32, 0.0  ;;  %v13620_v32 = vunpack.c.l.bf16 %v13737_v36 }
 0x5d1   : > { %v10859_v60 = vadd.f32 %v10858_v26, %v10770_v52  ;;  %v10862_v11 = vadd.f32 %v10861_v24, %v10773_v44  ;;  %v13740_v44 = vld [vmem:[%s14166_s28 + $0x58] sm:$0xff]  }
 0x5d2   : > { %v13683_v59 = vpack.c.bf16 %v11119_v27, %v11118_v33  ;;  %v10955_v12 = vpop.f32.mrf.mxu0  ;;  %v10779_v27 = vpop.f32.mrf.mxu2  ;;  %v13633_v20 = vunpack.c.h.bf16 %v13740_v44 }
 0x5d3   : > { %v11029_v47 = vpop.f32.mrf.mxu1  ;;  %v10948_v57 = vadd.f32 %v10947_v1, %v10859_v60  ;;  %v13738_v1 = vld [vmem:[%s14166_s28 + $0x48] sm:$0xff]   ;;  %v10780_v28 = vadd.f32 %v10779_v27, %v16718_v37 }
 0x5d4   : > { %13750 = vst [vmem:[%s16805_s9 + $0x30] sm:$0xff] %v13683_v59   ;;  %v11030_v30 = vadd.f32 %v11029_v47, %v10941_v14  ;;  %v10868_v59 = vpop.f32.mrf.mxu3  ;;  %v10951_v14 = vadd.f32 %v10950_v62, %v10862_v11 }
 0x5d6   : > { %11068 = vmatmul.bf16.gmra.mxu1 %v12858_v0  ;;  %v11088_v8 = vadd.f32 %v13616_v61, %v11030_v30  ;;  %v13624_v30 = vunpack.c.l.bf16 %v13738_v1 }
 0x5d8   : > { %v11120_v29 = vmax.f32 %v11088_v8, 0.0  ;;  %v10953_v8 = vadd.f32 %v10952_v40, %v10864_v22  ;;  %v10869_v40 = vadd.f32 %v10868_v59, %v10780_v28 }
 0x5da   : > { %v10957_v50 = vpop.f32.mrf.mxu0  ;;  %v10782_v61 = vpop.f32.mrf.mxu2 }
 0x5db   : > { %v11031_v45 = vpop.f32.mrf.mxu1 }
 0x5dc   : > { %v11032_v58 = vadd.f32 %v11031_v45, %v10943_v51  ;;  %v10871_v51 = vpop.f32.mrf.mxu3  ;;  %v13625_v45 = vunpack.c.h.bf16 %v13738_v1 }
 0x5de   : > { %v11089_v2 = vadd.f32 %v13617_v10, %v11032_v58 }
 0x5e0   : > { %v11121_v42 = vmax.f32 %v11089_v2, 0.0 }
 0x5e2   : > { %v13688_v46 = vpack.c.bf16 %v11121_v42, %v11120_v29  ;;  %v10960_v2 = vpop.f32.mrf.mxu0  ;;  %v10784_v21 = vpop.f32.mrf.mxu2 }
 0x5e3   : > { %v11034_v13 = vpop.f32.mrf.mxu1 }
 0x5e4   : > { %13751 = vst [vmem:[%s16805_s9 + $0x38] sm:$0xff] %v13688_v46   ;;  %v11035_v55 = vadd.f32 %v11034_v13, %v10946_v38  ;;  %v10873_v29 = vpop.f32.mrf.mxu3  ;;  %v13739_v46 = vld [vmem:[%s14166_s28 + $0x50] sm:$0xff]   ;;  %v10956_v13 = vadd.f32 %v10955_v12, %v10867_v39  ;;  %v10958_v38 = vadd.f32 %v10957_v50, %v10869_v40 }
 0x5e5   : > { %v13628_v41 = vunpack.c.l.bf16 %v13739_v46  ;;  %v13629_v60 = vunpack.c.h.bf16 %v13739_v46 }
 0x5e6   : > { %v11090_v33 = vadd.f32 %v13620_v32, %v11035_v55 }
 0x5e8   : > { %v11122_v0 = vmax.f32 %v11090_v33, 0.0 }
 0x5ea   : > { %v10962_v36 = vpop.f32.mrf.mxu0  ;;  %v10787_v49 = vpop.f32.mrf.mxu2 }
 0x5eb   : > { %v11036_v19 = vpop.f32.mrf.mxu1 }
 0x5ec   : > { %v11037_v18 = vadd.f32 %v11036_v19, %v10948_v57  ;;  %v10876_v55 = vpop.f32.mrf.mxu3  ;;  %v10783_v57 = vadd.f32 %v10782_v61, %v16730_v31 }
 0x5ee   : > { %v11091_v5 = vadd.f32 %v13621_v6, %v11037_v18  ;;  %v10872_v33 = vadd.f32 %v10871_v51, %v10783_v57 }
 0x5f0   : > { %v11123_v47 = vmax.f32 %v11091_v5, 0.0  ;;  %v10785_v5 = vadd.f32 %v10784_v21, %v16740_v9  ;;  %v10788_v9 = vadd.f32 %v10787_v49, %v16754_v17 }
 0x5f2   : > { %v13693_v26 = vpack.c.bf16 %v11123_v47, %v11122_v0  ;;  %v10965_v12 = vpop.f32.mrf.mxu0  ;;  %v10789_v59 = vpop.f32.mrf.mxu2  ;;  %v10874_v0 = vadd.f32 %v10873_v29, %v10785_v5  ;;  %v10961_v47 = vadd.f32 %v10960_v2, %v10872_v33 }
 0x5f3   : > { %v11039_v63 = vpop.f32.mrf.mxu1 }
 0x5f4   : > { %13752 = vst [vmem:[%s16805_s9 + $0x40] sm:$0xff] %v13693_v26   ;;  %v11040_v10 = vadd.f32 %v11039_v63, %v10951_v14  ;;  %v10878_v11 = vpop.f32.mrf.mxu3  ;;  %v13632_v26 = vunpack.c.l.bf16 %v13740_v44  ;;  %v10963_v50 = vadd.f32 %v10962_v36, %v10874_v0 }
 0x5f6   : > { %v11092_v15 = vadd.f32 %v13624_v30, %v11040_v10 }
 0x5f8   : > { %v11124_v23 = vmax.f32 %v11092_v15, 0.0 }
 0x5fa   : > { %v10967_v14 = vpop.f32.mrf.mxu0  ;;  %v10792_v30 = vpop.f32.mrf.mxu2 }
 0x5fb   : > { %v11041_v54 = vpop.f32.mrf.mxu1 }
 0x5fc   : > { %v11042_v24 = vadd.f32 %v11041_v54, %v10953_v8  ;;  %v10877_v8 = vadd.f32 %v10876_v55, %v10788_v9 }
 0x5fe   : > { %v11093_v58 = vadd.f32 %v13625_v45, %v11042_v24  ;;  %v10881_v45 = vpop.f32.mrf.mxu3  ;;  %v10790_v24 = vadd.f32 %v10789_v59, %v16760_v35  ;;  %v10966_v16 = vadd.f32 %v10965_v12, %v10877_v8 }
 0x600   : > { %v11125_v7 = vmax.f32 %v11093_v58, 0.0  ;;  %v13741_v58 = vld [vmem:[%s14166_s28 + $0x60] sm:$0xff]   ;;  %v10879_v2 = vadd.f32 %v10878_v11, %v10790_v24 }
 0x602   : > { %v13698_v62 = vpack.c.bf16 %v11125_v7, %v11124_v23  ;;  %v10970_v23 = vpop.f32.mrf.mxu0  ;;  %v13636_v7 = vunpack.c.l.bf16 %v13741_v58  ;;  %v10794_v39 = vpop.f32.mrf.mxu2  ;;  %v10968_v29 = vadd.f32 %v10967_v14, %v10879_v2 }
 0x603   : > { %v11044_v42 = vpop.f32.mrf.mxu1 }
 0x604   : > { %13753 = vst [vmem:[%s16805_s9 + $0x48] sm:$0xff] %v13698_v62   ;;  %v11045_v52 = vadd.f32 %v11044_v42, %v10956_v13  ;;  %v13637_v62 = vunpack.c.h.bf16 %v13741_v58  ;;  %v10793_v13 = vadd.f32 %v10792_v30, %v16770_v43 }
 0x606   : > { %v11094_v32 = vadd.f32 %v13628_v41, %v11045_v52  ;;  %v10883_v17 = vpop.f32.mrf.mxu3  ;;  %v10882_v36 = vadd.f32 %v10881_v45, %v10793_v13 }
 0x608   : > { %v11126_v37 = vmax.f32 %v11094_v32, 0.0 }
 0x60a   : > { %v10972_v52 = vpop.f32.mrf.mxu0 }
 0x60b   : > { %v11046_v34 = vpop.f32.mrf.mxu1 }
 0x60c   : > { %v11047_v53 = vadd.f32 %v11046_v34, %v10958_v38  ;;  %v10797_v38 = vpop.f32.mrf.mxu2  ;;  %v10795_v34 = vadd.f32 %v10794_v39, %v16774_v3 }
 0x60d   : > { %v10798_v3 = vadd.f32 %v10797_v38, %v16778_v56 }
 0x60e   : > { %v11095_v6 = vadd.f32 %v13629_v60, %v11047_v53  ;;  %v10886_v32 = vpop.f32.mrf.mxu3  ;;  %v13742_v53 = vld [vmem:[%s14166_s28 + $0x68] sm:$0xff]   ;;  %v10884_v55 = vadd.f32 %v10883_v17, %v10795_v34 }
 0x60f   : > { %v13640_v57 = vunpack.c.l.bf16 %v13742_v53  ;;  %v10887_v11 = vadd.f32 %v10886_v32, %v10798_v3 }
 0x610   : > { %v11127_v19 = vmax.f32 %v11095_v6, 0.0  ;;  %v10971_v6 = vadd.f32 %v10970_v23, %v10882_v36  ;;  %v10973_v33 = vadd.f32 %v10972_v52, %v10884_v55 }
 0x612   : > { %v13703_v18 = vpack.c.bf16 %v11127_v19, %v11126_v37  ;;  %v13641_v19 = vunpack.c.h.bf16 %v13742_v53  ;;  %v10975_v43 = vpop.f32.mrf.mxu0 }
 0x613   : > { %v11049_v27 = vpop.f32.mrf.mxu1 }
 0x614   : > { %13754 = vst [vmem:[%s16805_s9 + $0x50] sm:$0xff] %v13703_v18   ;;  %v11050_v63 = vadd.f32 %v11049_v27, %v10961_v47  ;;  %v10799_v5 = vpop.f32.mrf.mxu2 }
 0x616   : > { %v11096_v1 = vadd.f32 %v13632_v26, %v11050_v63  ;;  %v10888_v44 = vpop.f32.mrf.mxu3 }
 0x618   : > { %v11128_v10 = vmax.f32 %v11096_v1, 0.0 }
 0x61b   : > { %v11051_v31 = vpop.f32.mrf.mxu1 }
 0x61c   : > { %v11052_v22 = vadd.f32 %v11051_v31, %v10963_v50  ;;  %v10977_v50 = vpop.f32.mrf.mxu0  ;;  %v13743_v31 = vld [vmem:[%s14166_s28 + $0x70] sm:$0xff]   ;;  %v10802_v14 = vpop.f32.mrf.mxu2 }
 0x61e   : > { %v11097_v61 = vadd.f32 %v13633_v20, %v11052_v22  ;;  %v10800_v20 = vadd.f32 %v10799_v5, %v16782_v25  ;;  %v10976_v22 = vadd.f32 %v10975_v43, %v10887_v11  ;;  %v10891_v9 = vpop.f32.mrf.mxu3  ;;  %v10803_v25 = vadd.f32 %v10802_v14, %v16786_v4 }
 0x620   : > { %v11129_v51 = vmax.f32 %v11097_v61, 0.0  ;;  %v10889_v1 = vadd.f32 %v10888_v44, %v10800_v20  ;;  %v13644_v61 = vunpack.c.l.bf16 %v13743_v31 }
 0x622   : > { %v13708_v54 = vpack.c.bf16 %v11129_v51, %v11128_v10  ;;  %v13645_v10 = vunpack.c.h.bf16 %v13743_v31  ;;  %v10978_v51 = vadd.f32 %v10977_v50, %v10889_v1 }
 0x623   : > { %v11054_v15 = vpop.f32.mrf.mxu1 }
 0x624   : > { %13755 = vst [vmem:[%s16805_s9 + $0x58] sm:$0xff] %v13708_v54   ;;  %v11055_v21 = vadd.f32 %v11054_v15, %v10966_v16  ;;  %v10980_v54 = vpop.f32.mrf.mxu0  ;;  %v10804_v2 = vpop.f32.mrf.mxu2  ;;  %v10892_v16 = vadd.f32 %v10891_v9, %v10803_v25 }
 0x625   : > { %v10805_v39 = vadd.f32 %v10804_v2, %v16790_v48 }
 0x626   : > { %v11098_v28 = vadd.f32 %v13636_v7, %v11055_v21  ;;  %v10893_v7 = vpop.f32.mrf.mxu3 }
 0x627   : > { %v10894_v17 = vadd.f32 %v10893_v7, %v10805_v39 }
 0x628   : > { %v11130_v35 = vmax.f32 %v11098_v28, 0.0 }
 0x62b   : > { %v11056_v42 = vpop.f32.mrf.mxu1 }
 0x62c   : > { %v11057_v46 = vadd.f32 %v11056_v42, %v10968_v29  ;;  %v10981_v29 = vadd.f32 %v10980_v54, %v10892_v16  ;;  %v10982_v42 = vpop.f32.mrf.mxu0 }
 0x62d   : > { %v10983_v4 = vadd.f32 %v10982_v42, %v10894_v17 }
 0x62e   : > { %v11099_v40 = vadd.f32 %v13637_v62, %v11057_v46  ;;  %v13744_v62 = vld [vmem:[%s14166_s28 + $0x78] sm:$0xff]   ;;  %s11215_s28 = sshll.u32 %s16805_s9, 4  ;;  %s11216_s28 = int_to_ptr.vmem [resolvable:$true] %s11215_s28 }
 0x62f   : > { %v13648_v28 = vunpack.c.l.bf16 %v13744_v62 }
 0x630   : > { %v11131_v41 = vmax.f32 %v11099_v40, 0.0  ;;  %v13649_v40 = vunpack.c.h.bf16 %v13744_v62 }
 0x632   : > { %v13713_v60 = vpack.c.bf16 %v11131_v41, %v11130_v35 }
 0x633   : > { %v11059_v49 = vpop.f32.mrf.mxu1 }
 0x634   : > { %13756 = vst [vmem:[%s16805_s9 + $0x60] sm:$0xff] %v13713_v60   ;;  %v11060_v37 = vadd.f32 %v11059_v49, %v10971_v6 }
 0x636   : > { %v11100_v12 = vadd.f32 %v13640_v57, %v11060_v37 }
 0x638   : > { %v11132_v0 = vmax.f32 %v11100_v12, 0.0 }
 0x63b   : > { %v11061_v18 = vpop.f32.mrf.mxu1 }
 0x63c   : > { %v11062_v27 = vadd.f32 %v11061_v18, %v10973_v33 }
 0x63e   : > { %v11101_v59 = vadd.f32 %v13641_v19, %v11062_v27 }
 0x640   : > { %v11133_v47 = vmax.f32 %v11101_v59, 0.0 }
 0x642   : > { %v13718_v26 = vpack.c.bf16 %v11133_v47, %v11132_v0 }
 0x643   : > { %v11064_v63 = vpop.f32.mrf.mxu1 }
 0x644   : > { %13757 = vst [vmem:[%s16805_s9 + $0x68] sm:$0xff] %v13718_v26   ;;  %v11065_v30 = vadd.f32 %v11064_v63, %v10976_v22 }
 0x646   : > { %v11102_v45 = vadd.f32 %v13644_v61, %v11065_v30 }
 0x648   : > { %v11134_v24 = vmax.f32 %v11102_v45, 0.0 }
 0x64b   : > { %v11066_v56 = vpop.f32.mrf.mxu1 }
 0x64c   : > { %v11067_v8 = vadd.f32 %v11066_v56, %v10978_v51 }
 0x64e   : > { %v11103_v15 = vadd.f32 %v13645_v10, %v11067_v8 }
 0x650   : > { %v11135_v58 = vmax.f32 %v11103_v15, 0.0 }
 0x652   : > { %v13723_v23 = vpack.c.bf16 %v11135_v58, %v11134_v24 }
 0x653   : > { %v11069_v21 = vpop.f32.mrf.mxu1 }
 0x654   : > { %13758 = vst [vmem:[%s16805_s9 + $0x70] sm:$0xff] %v13723_v23   ;;  %v11070_v46 = vadd.f32 %v11069_v21, %v10981_v29 }
 0x656   : > { %v11104_v35 = vadd.f32 %v13648_v28, %v11070_v46 }
 0x658   : > { %v11136_v52 = vmax.f32 %v11104_v35, 0.0 }
 0x65b   : > { %v11071_v13 = vpop.f32.mrf.mxu1 }
 0x65c   : > { %v11072_v48 = vadd.f32 %v11071_v13, %v10983_v4 }
 0x65e   : > { %v11105_v41 = vadd.f32 %v13649_v40, %v11072_v48 }
 0x660   : > { %v11137_v36 = vmax.f32 %v11105_v41, 0.0 }
 0x662   : > { %v13728_v60 = vpack.c.bf16 %v11137_v36, %v11136_v52 }
 0x664   : > { %13759 = vst [vmem:[%s16805_s9 + $0x78] sm:$0xff] %v13728_v60  }
 0x665   : > { %13973 = shalt.err (!%p13970_p10)
}
 0x666   : > { %s14023_s8 = smov 64   ;;  %s14024_s11 = smov 4  }
 0x667   : > { %13786 = dma.vmem_to_hbm [thread:$0]  (%p14127_p3), %s11216_s28, 2048, %s11218_s27, %s11203_s22, %s14023_s8, %s14023_s8, %s14024_s11  }
 0x668 PF: > { %s11232_s9 = sand.u32 1, %s14004_s18   ;;  %p17159_p12 = scmp.ge.s32.totalorder %s14016_s21, 2 }
 0x669   : > { %s11233_s10 = scalar_lea.sflag [#allocation7], %s11232_s9 }
 0x66a   : > { %p13800_p13 = pnand %p17159_p12, %p14090_p6 }
 0x66c   : > { %p13801_p0 = pneg %p13800_p13 }
 0x66e   : > { %13999 = dma.done.wait (%p13801_p0), %s11233_s10, 2048  }
 0x66f   : > { %14001 = vsyncadd (%p13801_p0), %s11233_s10, 4294965248  ;;  %p19_p5 = scmp.ge.s32.totalorder %s14117_s14, 4   ;;  %s17160_s18 = smov %s14008_s19 }
 0x670   : > { %s17161_s19 = smov %s14012_s20  ;;  %s17162_s20 = smov %s14133_s23 }
 0x671   : > { %s17163_s21 = smov %s14117_s14  ;;  %21 = sbr.rel (!%p19_p5) target bundleno = 6 (0x6), region = 99 }
 0x676   :  { %11239 = vsyncpa [#allocation6], 1 }
 0x677   :  { %11241 = vsyncpa [#allocation6 + $0x1], 1 }
 0x678   :  { %11242 = vsyncpa [#allocation9], 1 }
 0x679   :  { %11243 = vsyncpa [#allocation7], 1 }
 0x67a   :  { %11245 = vsyncpa [#allocation7 + $0x1], 1 }

</bundles_post_ra>
